<compile_context>
chip_gen: v5e
topology: v5e:2x2
jax: 0.10.0
libtpu: 0.0.40
codegen_flags: <defaults>
</compile_context>

<pallas_src>
import jax
import jax.numpy as jnp
from jax.experimental import pallas as pl
from jax.experimental.pallas import tpu as pltpu

LEAKY_SLOPE = 0.01  # nn.LeakyReLU default negative_slope
BN_EPS = 1e-5       # nn.BatchNorm2d default eps


# ----------------------------- Pallas kernels ------------------------------

def _upconv_kernel(x_ref, w_ref, b_ref, o_ref):
    # x: (TM, Cin)       -- TM rows of the flattened (N*H*W, Cin) input
    # w: (Cin, 4*Cout)   -- columns ordered (kh, kw, oc); resident across grid
    # b: (1, 4*Cout)     -- resident
    # o: (TM, 4*Cout)
    o_ref[...] = (
        jnp.dot(x_ref[...], w_ref[...], preferred_element_type=jnp.float32)
        + b_ref[...]
    ).astype(o_ref.dtype)


def _make_conv_kernel(num_inputs):
    """Conv3x3(pad=1) + LeakyReLU + BatchNorm(eval) + Dropout(eval) kernel.

    Accepts `num_inputs` input tensors whose channels are concatenated along the
    contraction (K) axis -- this fuses torch.cat([...], dim=1) into the conv.
    Per grid step it sees one halo'd row-window tile per input and produces TH
    output rows; the 3x3 taps are static slices of the VMEM tile (no HBM im2col).
    """
    def kernel(*refs):
        x_refs = refs[:num_inputs]                      # (1, 1, TH+2, W+2, C_i)
        w_refs = refs[num_inputs:2 * num_inputs]        # (9, C_i, Cout)
        b_ref, scale_ref, shift_ref, o_ref = refs[2 * num_inputs:]
        th = x_refs[0].shape[2] - 2
        w = x_refs[0].shape[3] - 2
        cout = o_ref.shape[-1]

        acc = jnp.zeros((th * w, cout), jnp.float32)
        for x_ref, w_ref in zip(x_refs, w_refs):
            c = x_ref.shape[-1]
            for dy in range(3):                         # 9 MXU matmuls, f32 acc
                for dx in range(3):
                    tap = x_ref[0, 0, dy:dy + th, dx:dx + w, :].reshape(th * w, c)
                    acc = acc + jnp.dot(
                        tap, w_ref[dy * 3 + dx],
                        preferred_element_type=jnp.float32)

        acc = acc + b_ref[...]                                   # conv bias
        acc = jnp.where(acc >= 0, acc, LEAKY_SLOPE * acc)        # LeakyReLU
        acc = acc * scale_ref[...] + shift_ref[...]              # BatchNorm (eval)
        # Dropout2d(0.25) is identity in eval mode.
        # TODO(synk): Cout is far below 128 lanes, so this store is lane-masked;
        # packing (W*Cout) into the last dim needs a lane-changing in-kernel
        # reshape and is left out for lowering robustness.
        o_ref[0] = acc.astype(o_ref.dtype)
    return kernel


# ------------------------------ JAX wrappers --------------------------------

def conv_transpose2x2_stride2(x_nhwc, weight, bias, *, compute_dtype=jnp.float32):
    """ConvTranspose2d(kernel=2, stride=2, pad=0). weight: (Cin, Cout, 2, 2)."""
    N, H, W, Cin = x_nhwc.shape
    Cout = weight.shape[1]
    M, Ncol = N * H * W, 4 * Cout

    # 256-1024 rows per tile keeps the pipeline busy and VMEM bounded
    # (re-derive upward on v5e/v6e with a raised vmem limit for very wide K/N).
    TM = 256 if M > 256 else M

    x2d = x_nhwc.reshape(M, Cin).astype(compute_dtype)
    w2d = jnp.transpose(weight, (0, 2, 3, 1)).reshape(Cin, Ncol).astype(compute_dtype)
    b2d = jnp.tile(bias, 4)[None, :].astype(jnp.float32)    # (kh, kw, oc) order

    out = pl.pallas_call(
        _upconv_kernel,
        out_shape=jax.ShapeDtypeStruct((M, Ncol), jnp.float32),
        grid=(pl.cdiv(M, TM),),
        in_specs=[
            pl.BlockSpec((TM, Cin), lambda i: (i, 0)),
            pl.BlockSpec((Cin, Ncol), lambda i: (0, 0)),   # resident weights
            pl.BlockSpec((1, Ncol), lambda i: (0, 0)),     # resident bias
        ],
        out_specs=pl.BlockSpec((TM, Ncol), lambda i: (i, 0)),
        compiler_params=pltpu.CompilerParams(dimension_semantics=("parallel",)),
    )(x2d, w2d, b2d)

    # XLA glue: scatter the 2x2 patches to the upsampled grid (small tensor).
    out = out.reshape(N, H, W, 2, 2, Cout)
    out = jnp.transpose(out, (0, 1, 3, 2, 4, 5)).reshape(N, 2 * H, 2 * W, Cout)
    return out


def conv3x3_lrelu_bn(xs, weights, bias, gamma, beta, rmean, rvar,
                     *, compute_dtype=jnp.float32):
    """Fused Conv2d(3x3, pad=1) + LeakyReLU + BatchNorm2d(eval) + Dropout2d(eval).

    xs:      list of NHWC inputs (their channels are concatenated along K).
    weights: list of torch-layout (Cout, C_i, 3, 3) weight slices matching xs.
    """
    N, H, W, _ = xs[0].shape
    Cout = weights[0].shape[0]

    TH = 8 if H % 8 == 0 else H        # output rows per grid step
    nT = H // TH

    wins, w_taps = [], []
    for x, wt in zip(xs, weights):
        C = x.shape[-1]
        xp = jnp.pad(x, ((0, 0), (1, 1), (1, 1), (0, 0)))
        # overlapping row windows with a 1-row halo: (N, nT, TH+2, W+2, C)
        win = jnp.stack([xp[:, r * TH:r * TH + TH + 2] for r in range(nT)], axis=1)
        wins.append(win.astype(compute_dtype))
        w_taps.append(
            jnp.transpose(wt, (2, 3, 1, 0)).reshape(9, C, Cout).astype(compute_dtype))

    scale = (gamma / jnp.sqrt(rvar + BN_EPS)).astype(jnp.float32)
    shift = (beta - rmean * scale).astype(jnp.float32)

    in_specs = []
    for x in xs:
        C = x.shape[-1]
        in_specs.append(
            pl.BlockSpec((1, 1, TH + 2, W + 2, C), lambda n, r: (n, r, 0, 0, 0)))
    for x in xs:
        C = x.shape[-1]
        in_specs.append(pl.BlockSpec((9, C, Cout), lambda n, r: (0, 0, 0)))  # resident
    in_specs += [pl.BlockSpec((1, Cout), lambda n, r: (0, 0))] * 3           # resident

    out = pl.pallas_call(
        _make_conv_kernel(len(xs)),
        out_shape=jax.ShapeDtypeStruct((N, H * W, Cout), jnp.float32),
        grid=(N, nT),
        in_specs=in_specs,
        out_specs=pl.BlockSpec((1, TH * W, Cout), lambda n, r: (n, r, 0)),
        compiler_params=pltpu.CompilerParams(
            dimension_semantics=("parallel", "parallel")),
    )(*wins, *w_taps,
      bias[None, :].astype(jnp.float32), scale[None, :], shift[None, :])

    return out.reshape(N, H, W, Cout)


def decoder_block_forward(params, x_nchw, skip_nchw, *, compute_dtype=jnp.float32):
    """Matches decoder_block.forward(x, skip) with NCHW inputs/outputs (eval mode)."""
    x = jnp.transpose(x_nchw, (0, 2, 3, 1))       # NCHW -> NHWC
    skip = jnp.transpose(skip_nchw, (0, 2, 3, 1))

    up = conv_transpose2x2_stride2(x, params["up_w"], params["up_b"],
                                   compute_dtype=compute_dtype)

    stages = params["stages"]
    # Stage 0 consumes `up` and `skip` directly (concat fused into the kernel
    # by splitting the conv weight along its input-channel axis).
    c_up = up.shape[-1]
    w0 = stages[0]["w"]
    h = conv3x3_lrelu_bn(
        [up, skip], [w0[:, :c_up], w0[:, c_up:]],
        stages[0]["b"], stages[0]["gamma"], stages[0]["beta"],
        stages[0]["rmean"], stages[0]["rvar"], compute_dtype=compute_dtype)
    for stage in stages[1:]:
        h = conv3x3_lrelu_bn(
            [h], [stage["w"]], stage["b"], stage["gamma"], stage["beta"],
            stage["rmean"], stage["rvar"], compute_dtype=compute_dtype)

    return jnp.transpose(h, (0, 3, 1, 2))         # NHWC -> NCHW


# ------------------------- pure-JAX reference (check) -----------------------

def _ref_forward(params, x_nchw, skip_nchw):
    x = jnp.transpose(x_nchw, (0, 2, 3, 1))
    skip = jnp.transpose(skip_nchw, (0, 2, 3, 1))
    N, H, W, _ = x.shape
    w = params["up_w"]  # (Cin, Cout, 2, 2)
    Cout = w.shape[1]
    up = jnp.einsum("nhwi,iokl->nhkwlo", x, w).reshape(N, 2 * H, 2 * W, Cout)
    up = up + params["up_b"]
    h = jnp.concatenate([up, skip], axis=-1)
    for stage in params["stages"]:
        wk = jnp.transpose(stage["w"], (2, 3, 1, 0))  # HWIO
        h = jax.lax.conv_general_dilated(
            h, wk, window_strides=(1, 1), padding="SAME",
            dimension_numbers=("NHWC", "HWIO", "NHWC"),
        ) + stage["b"]
        h = jnp.where(h >= 0, h, LEAKY_SLOPE * h)
        scale = stage["gamma"] / jnp.sqrt(stage["rvar"] + BN_EPS)
        shift = stage["beta"] - stage["rmean"] * scale
        h = h * scale + shift
    return jnp.transpose(h, (0, 3, 1, 2))


# --------------------------------- params -----------------------------------

def init_params(in_channels, out_channels, n_conv, key):
    kit = iter(jax.random.split(key, 4 + 8 * n_conv))
    p = {
        "up_w": 0.1 * jax.random.normal(
            next(kit), (in_channels, out_channels, 2, 2), jnp.float32),
        "up_b": 0.1 * jax.random.normal(
            next(kit), (out_channels,), jnp.float32),
        "stages": [],
    }
    for i in range(n_conv):
        cin = out_channels * 2 if i == 0 else out_channels
        p["stages"].append({
            "w": 0.1 * jax.random.normal(
                next(kit), (out_channels, cin, 3, 3), jnp.float32),
            "b": 0.1 * jax.random.normal(next(kit), (out_channels,), jnp.float32),
            "gamma": 1.0 + 0.1 * jax.random.normal(
                next(kit), (out_channels,), jnp.float32),
            "beta": 0.1 * jax.random.normal(next(kit), (out_channels,), jnp.float32),
            "rmean": 0.1 * jax.random.normal(next(kit), (out_channels,), jnp.float32),
            "rvar": 1.0 + 0.1 * jax.random.uniform(
                next(kit), (out_channels,), jnp.float32),
        })
    return p


if __name__ == "__main__":
    in_channels, out_channels, n_conv = 8, 4, 2
    N, H, W = 2, 16, 16

    key = jax.random.PRNGKey(0)
    kx, ks, kp = jax.random.split(key, 3)
    x = jax.random.normal(kx, (N, in_channels, H, W), jnp.float32)
    skip = jax.random.normal(ks, (N, out_channels, 2 * H, 2 * W), jnp.float32)
    params = init_params(in_channels, out_channels, n_conv, kp)

    fwd = jax.jit(decoder_block_forward)
    out = jax.block_until_ready(fwd(params, x, skip))
    assert out.shape == (N, out_channels, 2 * H, 2 * W), out.shape

    ref = jax.block_until_ready(_ref_forward(params, x, skip))
    max_err = float(jnp.max(jnp.abs(out - ref)))
    assert max_err < 2e-2, f"mismatch vs reference: {max_err}"

    print("KERNEL_OK")
</pallas_src>

<mosaic_0001>
module attributes {stable_mosaic.version = 11 : i64} {
  func.func @_upconv_kernel(%arg0: i32, %arg1: memref<256x8xf32, #tpu.memory_space<vmem>>, %arg2: memref<8x16xf32, #tpu.memory_space<vmem>>, %arg3: memref<1x16xf32, #tpu.memory_space<vmem>>, %arg4: memref<256x16xf32, #tpu.memory_space<vmem>>) attributes {dimension_semantics = [#tpu.dimension_semantics<parallel>], iteration_bounds = array<i64: 2>, scalar_prefetch = 0 : i64, scratch_operands = 0 : i64, tpu.core_type = #tpu.core_type<tc>, window_params = [{transform_indices = @transform_0, window_bounds = array<i64: 256, 8>}, {pipeline_mode = #tpu.pipeline_mode<synchronous>, transform_indices = @transform_1, window_bounds = array<i64: 8, 16>}, {pipeline_mode = #tpu.pipeline_mode<synchronous>, transform_indices = @transform_2, window_bounds = array<i64: 1, 16>}, {transform_indices = @transform_3, window_bounds = array<i64: 256, 16>}]} {
    %c0 = arith.constant 0 : index
    %c0_0 = arith.constant 0 : index
    %0 = vector.load %arg1[%c0, %c0_0] : memref<256x8xf32, #tpu.memory_space<vmem>>, vector<256x8xf32>
    %c0_1 = arith.constant 0 : index
    %c0_2 = arith.constant 0 : index
    %1 = vector.load %arg2[%c0_1, %c0_2] : memref<8x16xf32, #tpu.memory_space<vmem>>, vector<8x16xf32>
    %cst = arith.constant dense<0.000000e+00> : vector<256x16xf32>
    %2 = tpu.matmul %0, %1, %cst {dimension_numbers = #tpu.dot_dimension_numbers<[1], [0], [0], [1], [0, 0, 1, 1], [], []>} : vector<256x8xf32>, vector<8x16xf32>, vector<256x16xf32> -> vector<256x16xf32>
    %c0_3 = arith.constant 0 : index
    %c0_4 = arith.constant 0 : index
    %3 = vector.load %arg3[%c0_3, %c0_4] : memref<1x16xf32, #tpu.memory_space<vmem>>, vector<1x16xf32>
    %4 = vector.broadcast %3 : vector<1x16xf32> to vector<256x16xf32>
    %5 = arith.addf %2, %4 : vector<256x16xf32>
    %c0_5 = arith.constant 0 : index
    %c0_6 = arith.constant 0 : index
    %6 = vector.load %arg4[%c0_5, %c0_6] : memref<256x16xf32, #tpu.memory_space<vmem>>, vector<256x16xf32>
    tpu.vector_store %arg4[%c0_5, %c0_6], %5 {strides = array<i32>} : memref<256x16xf32, #tpu.memory_space<vmem>>, vector<256x16xf32>,
    return
  }
  func.func @transform_0(%arg0: i32) -> (i32, i32) {
    %c0_i32 = arith.constant 0 : i32
    %c0_i32_0 = arith.constant 0 : i32
    return %arg0, %c0_i32 : i32, i32
  }
  func.func @transform_1(%arg0: i32) -> (i32, i32) {
    %c0_i32 = arith.constant 0 : i32
    %c0_i32_0 = arith.constant 0 : i32
    %c0_i32_1 = arith.constant 0 : i32
    return %c0_i32, %c0_i32_0 : i32, i32
  }
  func.func @transform_2(%arg0: i32) -> (i32, i32) {
    %c0_i32 = arith.constant 0 : i32
    %c0_i32_0 = arith.constant 0 : i32
    %c0_i32_1 = arith.constant 0 : i32
    return %c0_i32, %c0_i32_0 : i32, i32
  }
  func.func @transform_3(%arg0: i32) -> (i32, i32) {
    %c0_i32 = arith.constant 0 : i32
    %c0_i32_0 = arith.constant 0 : i32
    return %arg0, %c0_i32 : i32, i32
  }
}

module attributes {stable_mosaic.version = 11 : i64} {
  func.func @kernel(%arg0: i32, %arg1: i32, %arg2: memref<1x1x10x34x4xf32, #tpu.memory_space<vmem>>, %arg3: memref<9x4x4xf32, #tpu.memory_space<vmem>>, %arg4: memref<1x4xf32, #tpu.memory_space<vmem>>, %arg5: memref<1x4xf32, #tpu.memory_space<vmem>>, %arg6: memref<1x4xf32, #tpu.memory_space<vmem>>, %arg7: memref<1x256x4xf32, #tpu.memory_space<vmem>>) attributes {dimension_semantics = [#tpu.dimension_semantics<parallel>, #tpu.dimension_semantics<parallel>], iteration_bounds = array<i64: 2, 4>, scalar_prefetch = 0 : i64, scratch_operands = 0 : i64, tpu.core_type = #tpu.core_type<tc>, window_params = [{transform_indices = @transform_0, window_bounds = array<i64: 1, 1, 10, 34, 4>}, {pipeline_mode = #tpu.pipeline_mode<synchronous>, transform_indices = @transform_1, window_bounds = array<i64: 9, 4, 4>}, {pipeline_mode = #tpu.pipeline_mode<synchronous>, transform_indices = @transform_2, window_bounds = array<i64: 1, 4>}, {pipeline_mode = #tpu.pipeline_mode<synchronous>, transform_indices = @transform_3, window_bounds = array<i64: 1, 4>}, {pipeline_mode = #tpu.pipeline_mode<synchronous>, transform_indices = @transform_4, window_bounds = array<i64: 1, 4>}, {transform_indices = @transform_5, window_bounds = array<i64: 1, 256, 4>}]} {
    %cst = arith.constant 0.000000e+00 : f32
    %0 = vector.broadcast %cst : f32 to vector<256x4xf32>
    %c0 = arith.constant 0 : index
    %c0_0 = arith.constant 0 : index
    %c0_1 = arith.constant 0 : index
    %c0_2 = arith.constant 0 : index
    %c0_3 = arith.constant 0 : index
    %1 = vector.load %arg2[%c0, %c0_0, %c0_1, %c0_2, %c0_3] : memref<1x1x10x34x4xf32, #tpu.memory_space<vmem>>, vector<1x1x8x32x4xf32>
    %2 = vector.shape_cast %1 : vector<1x1x8x32x4xf32> to vector<8x32x4xf32>
    %3 = vector.shape_cast %2 : vector<8x32x4xf32> to vector<256x4xf32>
    %c0_4 = arith.constant 0 : index
    %c0_5 = arith.constant 0 : index
    %c0_6 = arith.constant 0 : index
    %4 = vector.load %arg3[%c0_4, %c0_5, %c0_6] : memref<9x4x4xf32, #tpu.memory_space<vmem>>, vector<1x4x4xf32>
    %5 = vector.shape_cast %4 : vector<1x4x4xf32> to vector<4x4xf32>
    %cst_7 = arith.constant dense<0.000000e+00> : vector<256x4xf32>
    %6 = tpu.matmul %3, %5, %cst_7 {dimension_numbers = #tpu.dot_dimension_numbers<[1], [0], [0], [1], [0, 0, 1, 1], [], []>} : vector<256x4xf32>, vector<4x4xf32>, vector<256x4xf32> -> vector<256x4xf32>
    %7 = arith.addf %0, %6 : vector<256x4xf32>
    %c0_8 = arith.constant 0 : index
    %c0_9 = arith.constant 0 : index
    %c0_10 = arith.constant 0 : index
    %c1 = arith.constant 1 : index
    %c0_11 = arith.constant 0 : index
    %8 = vector.load %arg2[%c0_8, %c0_9, %c0_10, %c1, %c0_11] : memref<1x1x10x34x4xf32, #tpu.memory_space<vmem>>, vector<1x1x8x32x4xf32>
    %9 = vector.shape_cast %8 : vector<1x1x8x32x4xf32> to vector<8x32x4xf32>
    %10 = vector.shape_cast %9 : vector<8x32x4xf32> to vector<256x4xf32>
    %c1_12 = arith.constant 1 : index
    %c0_13 = arith.constant 0 : index
    %c0_14 = arith.constant 0 : index
    %11 = vector.load %arg3[%c1_12, %c0_13, %c0_14] : memref<9x4x4xf32, #tpu.memory_space<vmem>>, vector<1x4x4xf32>
    %12 = vector.shape_cast %11 : vector<1x4x4xf32> to vector<4x4xf32>
    %cst_15 = arith.constant dense<0.000000e+00> : vector<256x4xf32>
    %13 = tpu.matmul %10, %12, %cst_15 {dimension_numbers = #tpu.dot_dimension_numbers<[1], [0], [0], [1], [0, 0, 1, 1], [], []>} : vector<256x4xf32>, vector<4x4xf32>, vector<256x4xf32> -> vector<256x4xf32>
    %14 = arith.addf %7, %13 : vector<256x4xf32>
    %c0_16 = arith.constant 0 : index
    %c0_17 = arith.constant 0 : index
    %c0_18 = arith.constant 0 : index
    %c2 = arith.constant 2 : index
    %c0_19 = arith.constant 0 : index
    %15 = vector.load %arg2[%c0_16, %c0_17, %c0_18, %c2, %c0_19] : memref<1x1x10x34x4xf32, #tpu.memory_space<vmem>>, vector<1x1x8x32x4xf32>
    %16 = vector.shape_cast %15 : vector<1x1x8x32x4xf32> to vector<8x32x4xf32>
    %17 = vector.shape_cast %16 : vector<8x32x4xf32> to vector<256x4xf32>
    %c2_20 = arith.constant 2 : index
    %c0_21 = arith.constant 0 : index
    %c0_22 = arith.constant 0 : index
    %18 = vector.load %arg3[%c2_20, %c0_21, %c0_22] : memref<9x4x4xf32, #tpu.memory_space<vmem>>, vector<1x4x4xf32>
    %19 = vector.shape_cast %18 : vector<1x4x4xf32> to vector<4x4xf32>
    %cst_23 = arith.constant dense<0.000000e+00> : vector<256x4xf32>
    %20 = tpu.matmul %17, %19, %cst_23 {dimension_numbers = #tpu.dot_dimension_numbers<[1], [0], [0], [1], [0, 0, 1, 1], [], []>} : vector<256x4xf32>, vector<4x4xf32>, vector<256x4xf32> -> vector<256x4xf32>
    %21 = arith.addf %14, %20 : vector<256x4xf32>
    %c0_24 = arith.constant 0 : index
    %c0_25 = arith.constant 0 : index
    %c1_26 = arith.constant 1 : index
    %c0_27 = arith.constant 0 : index
    %c0_28 = arith.constant 0 : index
    %22 = vector.load %arg2[%c0_24, %c0_25, %c1_26, %c0_27, %c0_28] : memref<1x1x10x34x4xf32, #tpu.memory_space<vmem>>, vector<1x1x8x32x4xf32>
    %23 = vector.shape_cast %22 : vector<1x1x8x32x4xf32> to vector<8x32x4xf32>
    %24 = vector.shape_cast %23 : vector<8x32x4xf32> to vector<256x4xf32>
    %c3 = arith.constant 3 : index
    %c0_29 = arith.constant 0 : index
    %c0_30 = arith.constant 0 : index
    %25 = vector.load %arg3[%c3, %c0_29, %c0_30] : memref<9x4x4xf32, #tpu.memory_space<vmem>>, vector<1x4x4xf32>
    %26 = vector.shape_cast %25 : vector<1x4x4xf32> to vector<4x4xf32>
    %cst_31 = arith.constant dense<0.000000e+00> : vector<256x4xf32>
    %27 = tpu.matmul %24, %26, %cst_31 {dimension_numbers = #tpu.dot_dimension_numbers<[1], [0], [0], [1], [0, 0, 1, 1], [], []>} : vector<256x4xf32>, vector<4x4xf32>, vector<256x4xf32> -> vector<256x4xf32>
    %28 = arith.addf %21, %27 : vector<256x4xf32>
    %c0_32 = arith.constant 0 : index
    %c0_33 = arith.constant 0 : index
    %c1_34 = arith.constant 1 : index
    %c1_35 = arith.constant 1 : index
    %c0_36 = arith.constant 0 : index
    %29 = vector.load %arg2[%c0_32, %c0_33, %c1_34, %c1_35, %c0_36] : memref<1x1x10x34x4xf32, #tpu.memory_space<vmem>>, vector<1x1x8x32x4xf32>
    %30 = vector.shape_cast %29 : vector<1x1x8x32x4xf32> to vector<8x32x4xf32>
    %31 = vector.shape_cast %30 : vector<8x32x4xf32> to vector<256x4xf32>
    %c4 = arith.constant 4 : index
    %c0_37 = arith.constant 0 : index
    %c0_38 = arith.constant 0 : index
    %32 = vector.load %arg3[%c4, %c0_37, %c0_38] : memref<9x4x4xf32, #tpu.memory_space<vmem>>, vector<1x4x4xf32>
    %33 = vector.shape_cast %32 : vector<1x4x4xf32> to vector<4x4xf32>
    %cst_39 = arith.constant dense<0.000000e+00> : vector<256x4xf32>
    %34 = tpu.matmul %31, %33, %cst_39 {dimension_numbers = #tpu.dot_dimension_numbers<[1], [0], [0], [1], [0, 0, 1, 1], [], []>} : vector<256x4xf32>, vector<4x4xf32>, vector<256x4xf32> -> vector<256x4xf32>
    %35 = arith.addf %28, %34 : vector<256x4xf32>
    %c0_40 = arith.constant 0 : index
    %c0_41 = arith.constant 0 : index
    %c1_42 = arith.constant 1 : index
    %c2_43 = arith.constant 2 : index
    %c0_44 = arith.constant 0 : index
    %36 = vector.load %arg2[%c0_40, %c0_41, %c1_42, %c2_43, %c0_44] : memref<1x1x10x34x4xf32, #tpu.memory_space<vmem>>, vector<1x1x8x32x4xf32>
    %37 = vector.shape_cast %36 : vector<1x1x8x32x4xf32> to vector<8x32x4xf32>
    %38 = vector.shape_cast %37 : vector<8x32x4xf32> to vector<256x4xf32>
    %c5 = arith.constant 5 : index
    %c0_45 = arith.constant 0 : index
    %c0_46 = arith.constant 0 : index
    %39 = vector.load %arg3[%c5, %c0_45, %c0_46] : memref<9x4x4xf32, #tpu.memory_space<vmem>>, vector<1x4x4xf32>
    %40 = vector.shape_cast %39 : vector<1x4x4xf32> to vector<4x4xf32>
    %cst_47 = arith.constant dense<0.000000e+00> : vector<256x4xf32>
    %41 = tpu.matmul %38, %40, %cst_47 {dimension_numbers = #tpu.dot_dimension_numbers<[1], [0], [0], [1], [0, 0, 1, 1], [], []>} : vector<256x4xf32>, vector<4x4xf32>, vector<256x4xf32> -> vector<256x4xf32>
    %42 = arith.addf %35, %41 : vector<256x4xf32>
    %c0_48 = arith.constant 0 : index
    %c0_49 = arith.constant 0 : index
    %c2_50 = arith.constant 2 : index
    %c0_51 = arith.constant 0 : index
    %c0_52 = arith.constant 0 : index
    %43 = vector.load %arg2[%c0_48, %c0_49, %c2_50, %c0_51, %c0_52] : memref<1x1x10x34x4xf32, #tpu.memory_space<vmem>>, vector<1x1x8x32x4xf32>
    %44 = vector.shape_cast %43 : vector<1x1x8x32x4xf32> to vector<8x32x4xf32>
    %45 = vector.shape_cast %44 : vector<8x32x4xf32> to vector<256x4xf32>
    %c6 = arith.constant 6 : index
    %c0_53 = arith.constant 0 : index
    %c0_54 = arith.constant 0 : index
    %46 = vector.load %arg3[%c6, %c0_53, %c0_54] : memref<9x4x4xf32, #tpu.memory_space<vmem>>, vector<1x4x4xf32>
    %47 = vector.shape_cast %46 : vector<1x4x4xf32> to vector<4x4xf32>
    %cst_55 = arith.constant dense<0.000000e+00> : vector<256x4xf32>
    %48 = tpu.matmul %45, %47, %cst_55 {dimension_numbers = #tpu.dot_dimension_numbers<[1], [0], [0], [1], [0, 0, 1, 1], [], []>} : vector<256x4xf32>, vector<4x4xf32>, vector<256x4xf32> -> vector<256x4xf32>
    %49 = arith.addf %42, %48 : vector<256x4xf32>
    %c0_56 = arith.constant 0 : index
    %c0_57 = arith.constant 0 : index
    %c2_58 = arith.constant 2 : index
    %c1_59 = arith.constant 1 : index
    %c0_60 = arith.constant 0 : index
    %50 = vector.load %arg2[%c0_56, %c0_57, %c2_58, %c1_59, %c0_60] : memref<1x1x10x34x4xf32, #tpu.memory_space<vmem>>, vector<1x1x8x32x4xf32>
    %51 = vector.shape_cast %50 : vector<1x1x8x32x4xf32> to vector<8x32x4xf32>
    %52 = vector.shape_cast %51 : vector<8x32x4xf32> to vector<256x4xf32>
    %c7 = arith.constant 7 : index
    %c0_61 = arith.constant 0 : index
    %c0_62 = arith.constant 0 : index
    %53 = vector.load %arg3[%c7, %c0_61, %c0_62] : memref<9x4x4xf32, #tpu.memory_space<vmem>>, vector<1x4x4xf32>
    %54 = vector.shape_cast %53 : vector<1x4x4xf32> to vector<4x4xf32>
    %cst_63 = arith.constant dense<0.000000e+00> : vector<256x4xf32>
    %55 = tpu.matmul %52, %54, %cst_63 {dimension_numbers = #tpu.dot_dimension_numbers<[1], [0], [0], [1], [0, 0, 1, 1], [], []>} : vector<256x4xf32>, vector<4x4xf32>, vector<256x4xf32> -> vector<256x4xf32>
    %56 = arith.addf %49, %55 : vector<256x4xf32>
    %c0_64 = arith.constant 0 : index
    %c0_65 = arith.constant 0 : index
    %c2_66 = arith.constant 2 : index
    %c2_67 = arith.constant 2 : index
    %c0_68 = arith.constant 0 : index
    %57 = vector.load %arg2[%c0_64, %c0_65, %c2_66, %c2_67, %c0_68] : memref<1x1x10x34x4xf32, #tpu.memory_space<vmem>>, vector<1x1x8x32x4xf32>
    %58 = vector.shape_cast %57 : vector<1x1x8x32x4xf32> to vector<8x32x4xf32>
    %59 = vector.shape_cast %58 : vector<8x32x4xf32> to vector<256x4xf32>
    %c8 = arith.constant 8 : index
    %c0_69 = arith.constant 0 : index
    %c0_70 = arith.constant 0 : index
    %60 = vector.load %arg3[%c8, %c0_69, %c0_70] : memref<9x4x4xf32, #tpu.memory_space<vmem>>, vector<1x4x4xf32>
    %61 = vector.shape_cast %60 : vector<1x4x4xf32> to vector<4x4xf32>
    %cst_71 = arith.constant dense<0.000000e+00> : vector<256x4xf32>
    %62 = tpu.matmul %59, %61, %cst_71 {dimension_numbers = #tpu.dot_dimension_numbers<[1], [0], [0], [1], [0, 0, 1, 1], [], []>} : vector<256x4xf32>, vector<4x4xf32>, vector<256x4xf32> -> vector<256x4xf32>
    %63 = arith.addf %56, %62 : vector<256x4xf32>
    %c0_72 = arith.constant 0 : index
    %c0_73 = arith.constant 0 : index
    %64 = vector.load %arg4[%c0_72, %c0_73] : memref<1x4xf32, #tpu.memory_space<vmem>>, vector<1x4xf32>
    %65 = vector.broadcast %64 : vector<1x4xf32> to vector<256x4xf32>
    %66 = arith.addf %63, %65 : vector<256x4xf32>
    %cst_74 = arith.constant 0.000000e+00 : f32
    %67 = vector.broadcast %cst_74 : f32 to vector<256x4xf32>
    %68 = arith.cmpf oge, %66, %67 : vector<256x4xf32>
    %cst_75 = arith.constant 0.00999999977 : f32
    %69 = vector.broadcast %cst_75 : f32 to vector<256x4xf32>
    %70 = arith.mulf %69, %66 : vector<256x4xf32>
    %71 = arith.select %68, %66, %70 : vector<256x4xi1>, vector<256x4xf32>
    %c0_76 = arith.constant 0 : index
    %c0_77 = arith.constant 0 : index
    %72 = vector.load %arg5[%c0_76, %c0_77] : memref<1x4xf32, #tpu.memory_space<vmem>>, vector<1x4xf32>
    %73 = vector.broadcast %72 : vector<1x4xf32> to vector<256x4xf32>
    %74 = arith.mulf %71, %73 : vector<256x4xf32>
    %c0_78 = arith.constant 0 : index
    %c0_79 = arith.constant 0 : index
    %75 = vector.load %arg6[%c0_78, %c0_79] : memref<1x4xf32, #tpu.memory_space<vmem>>, vector<1x4xf32>
    %76 = vector.broadcast %75 : vector<1x4xf32> to vector<256x4xf32>
    %77 = arith.addf %74, %76 : vector<256x4xf32>
    %c0_80 = arith.constant 0 : index
    %c0_81 = arith.constant 0 : index
    %c0_82 = arith.constant 0 : index
    %78 = vector.load %arg7[%c0_80, %c0_81, %c0_82] : memref<1x256x4xf32, #tpu.memory_space<vmem>>, vector<1x256x4xf32>
    %79 = vector.shape_cast %78 : vector<1x256x4xf32> to vector<256x4xf32>
    %80 = vector.shape_cast %77 : vector<256x4xf32> to vector<1x256x4xf32>
    tpu.vector_store %arg7[%c0_80, %c0_81, %c0_82], %80 {strides = array<i32>} : memref<1x256x4xf32, #tpu.memory_space<vmem>>, vector<1x256x4xf32>,
    return
  }
  func.func @transform_0(%arg0: i32, %arg1: i32) -> (i32, i32, i32, i32, i32) {
    %c0_i32 = arith.constant 0 : i32
    %c0_i32_0 = arith.constant 0 : i32
    %c0_i32_1 = arith.constant 0 : i32
    %c0_i32_2 = arith.constant 0 : i32
    return %arg0, %arg1, %c0_i32, %c0_i32_0, %c0_i32_1 : i32, i32, i32, i32, i32
  }
  func.func @transform_1(%arg0: i32, %arg1: i32) -> (i32, i32, i32) {
    %c0_i32 = arith.constant 0 : i32
    %c0_i32_0 = arith.constant 0 : i32
    %c0_i32_1 = arith.constant 0 : i32
    %c0_i32_2 = arith.constant 0 : i32
    return %c0_i32, %c0_i32_0, %c0_i32_1 : i32, i32, i32
  }
  func.func @transform_2(%arg0: i32, %arg1: i32) -> (i32, i32) {
    %c0_i32 = arith.constant 0 : i32
    %c0_i32_0 = arith.constant 0 : i32
    %c0_i32_1 = arith.constant 0 : i32
    return %c0_i32, %c0_i32_0 : i32, i32
  }
  func.func @transform_3(%arg0: i32, %arg1: i32) -> (i32, i32) {
    %c0_i32 = arith.constant 0 : i32
    %c0_i32_0 = arith.constant 0 : i32
    %c0_i32_1 = arith.constant 0 : i32
    return %c0_i32, %c0_i32_0 : i32, i32
  }
  func.func @transform_4(%arg0: i32, %arg1: i32) -> (i32, i32) {
    %c0_i32 = arith.constant 0 : i32
    %c0_i32_0 = arith.constant 0 : i32
    %c0_i32_1 = arith.constant 0 : i32
    return %c0_i32, %c0_i32_0 : i32, i32
  }
  func.func @transform_5(%arg0: i32, %arg1: i32) -> (i32, i32, i32) {
    %c0_i32 = arith.constant 0 : i32
    %c0_i32_0 = arith.constant 0 : i32
    return %arg0, %arg1, %c0_i32 : i32, i32, i32
  }
}

module attributes {stable_mosaic.version = 11 : i64} {
  func.func @kernel(%arg0: i32, %arg1: i32, %arg2: memref<1x1x10x34x4xf32, #tpu.memory_space<vmem>>, %arg3: memref<1x1x10x34x4xf32, #tpu.memory_space<vmem>>, %arg4: memref<9x4x4xf32, #tpu.memory_space<vmem>>, %arg5: memref<9x4x4xf32, #tpu.memory_space<vmem>>, %arg6: memref<1x4xf32, #tpu.memory_space<vmem>>, %arg7: memref<1x4xf32, #tpu.memory_space<vmem>>, %arg8: memref<1x4xf32, #tpu.memory_space<vmem>>, %arg9: memref<1x256x4xf32, #tpu.memory_space<vmem>>) attributes {dimension_semantics = [#tpu.dimension_semantics<parallel>, #tpu.dimension_semantics<parallel>], iteration_bounds = array<i64: 2, 4>, scalar_prefetch = 0 : i64, scratch_operands = 0 : i64, tpu.core_type = #tpu.core_type<tc>, window_params = [{transform_indices = @transform_0, window_bounds = array<i64: 1, 1, 10, 34, 4>}, {transform_indices = @transform_1, window_bounds = array<i64: 1, 1, 10, 34, 4>}, {pipeline_mode = #tpu.pipeline_mode<synchronous>, transform_indices = @transform_2, window_bounds = array<i64: 9, 4, 4>}, {pipeline_mode = #tpu.pipeline_mode<synchronous>, transform_indices = @transform_3, window_bounds = array<i64: 9, 4, 4>}, {pipeline_mode = #tpu.pipeline_mode<synchronous>, transform_indices = @transform_4, window_bounds = array<i64: 1, 4>}, {pipeline_mode = #tpu.pipeline_mode<synchronous>, transform_indices = @transform_5, window_bounds = array<i64: 1, 4>}, {pipeline_mode = #tpu.pipeline_mode<synchronous>, transform_indices = @transform_6, window_bounds = array<i64: 1, 4>}, {transform_indices = @transform_7, window_bounds = array<i64: 1, 256, 4>}]} {
    %cst = arith.constant 0.000000e+00 : f32
    %0 = vector.broadcast %cst : f32 to vector<256x4xf32>
    %c0 = arith.constant 0 : index
    %c0_0 = arith.constant 0 : index
    %c0_1 = arith.constant 0 : index
    %c0_2 = arith.constant 0 : index
    %c0_3 = arith.constant 0 : index
    %1 = vector.load %arg2[%c0, %c0_0, %c0_1, %c0_2, %c0_3] : memref<1x1x10x34x4xf32, #tpu.memory_space<vmem>>, vector<1x1x8x32x4xf32>
    %2 = vector.shape_cast %1 : vector<1x1x8x32x4xf32> to vector<8x32x4xf32>
    %3 = vector.shape_cast %2 : vector<8x32x4xf32> to vector<256x4xf32>
    %c0_4 = arith.constant 0 : index
    %c0_5 = arith.constant 0 : index
    %c0_6 = arith.constant 0 : index
    %4 = vector.load %arg4[%c0_4, %c0_5, %c0_6] : memref<9x4x4xf32, #tpu.memory_space<vmem>>, vector<1x4x4xf32>
    %5 = vector.shape_cast %4 : vector<1x4x4xf32> to vector<4x4xf32>
    %cst_7 = arith.constant dense<0.000000e+00> : vector<256x4xf32>
    %6 = tpu.matmul %3, %5, %cst_7 {dimension_numbers = #tpu.dot_dimension_numbers<[1], [0], [0], [1], [0, 0, 1, 1], [], []>} : vector<256x4xf32>, vector<4x4xf32>, vector<256x4xf32> -> vector<256x4xf32>
    %7 = arith.addf %0, %6 : vector<256x4xf32>
    %c0_8 = arith.constant 0 : index
    %c0_9 = arith.constant 0 : index
    %c0_10 = arith.constant 0 : index
    %c1 = arith.constant 1 : index
    %c0_11 = arith.constant 0 : index
    %8 = vector.load %arg2[%c0_8, %c0_9, %c0_10, %c1, %c0_11] : memref<1x1x10x34x4xf32, #tpu.memory_space<vmem>>, vector<1x1x8x32x4xf32>
    %9 = vector.shape_cast %8 : vector<1x1x8x32x4xf32> to vector<8x32x4xf32>
    %10 = vector.shape_cast %9 : vector<8x32x4xf32> to vector<256x4xf32>
    %c1_12 = arith.constant 1 : index
    %c0_13 = arith.constant 0 : index
    %c0_14 = arith.constant 0 : index
    %11 = vector.load %arg4[%c1_12, %c0_13, %c0_14] : memref<9x4x4xf32, #tpu.memory_space<vmem>>, vector<1x4x4xf32>
    %12 = vector.shape_cast %11 : vector<1x4x4xf32> to vector<4x4xf32>
    %cst_15 = arith.constant dense<0.000000e+00> : vector<256x4xf32>
    %13 = tpu.matmul %10, %12, %cst_15 {dimension_numbers = #tpu.dot_dimension_numbers<[1], [0], [0], [1], [0, 0, 1, 1], [], []>} : vector<256x4xf32>, vector<4x4xf32>, vector<256x4xf32> -> vector<256x4xf32>
    %14 = arith.addf %7, %13 : vector<256x4xf32>
    %c0_16 = arith.constant 0 : index
    %c0_17 = arith.constant 0 : index
    %c0_18 = arith.constant 0 : index
    %c2 = arith.constant 2 : index
    %c0_19 = arith.constant 0 : index
    %15 = vector.load %arg2[%c0_16, %c0_17, %c0_18, %c2, %c0_19] : memref<1x1x10x34x4xf32, #tpu.memory_space<vmem>>, vector<1x1x8x32x4xf32>
    %16 = vector.shape_cast %15 : vector<1x1x8x32x4xf32> to vector<8x32x4xf32>
    %17 = vector.shape_cast %16 : vector<8x32x4xf32> to vector<256x4xf32>
    %c2_20 = arith.constant 2 : index
    %c0_21 = arith.constant 0 : index
    %c0_22 = arith.constant 0 : index
    %18 = vector.load %arg4[%c2_20, %c0_21, %c0_22] : memref<9x4x4xf32, #tpu.memory_space<vmem>>, vector<1x4x4xf32>
    %19 = vector.shape_cast %18 : vector<1x4x4xf32> to vector<4x4xf32>
    %cst_23 = arith.constant dense<0.000000e+00> : vector<256x4xf32>
    %20 = tpu.matmul %17, %19, %cst_23 {dimension_numbers = #tpu.dot_dimension_numbers<[1], [0], [0], [1], [0, 0, 1, 1], [], []>} : vector<256x4xf32>, vector<4x4xf32>, vector<256x4xf32> -> vector<256x4xf32>
    %21 = arith.addf %14, %20 : vector<256x4xf32>
    %c0_24 = arith.constant 0 : index
    %c0_25 = arith.constant 0 : index
    %c1_26 = arith.constant 1 : index
    %c0_27 = arith.constant 0 : index
    %c0_28 = arith.constant 0 : index
    %22 = vector.load %arg2[%c0_24, %c0_25, %c1_26, %c0_27, %c0_28] : memref<1x1x10x34x4xf32, #tpu.memory_space<vmem>>, vector<1x1x8x32x4xf32>
    %23 = vector.shape_cast %22 : vector<1x1x8x32x4xf32> to vector<8x32x4xf32>
    %24 = vector.shape_cast %23 : vector<8x32x4xf32> to vector<256x4xf32>
    %c3 = arith.constant 3 : index
    %c0_29 = arith.constant 0 : index
    %c0_30 = arith.constant 0 : index
    %25 = vector.load %arg4[%c3, %c0_29, %c0_30] : memref<9x4x4xf32, #tpu.memory_space<vmem>>, vector<1x4x4xf32>
    %26 = vector.shape_cast %25 : vector<1x4x4xf32> to vector<4x4xf32>
    %cst_31 = arith.constant dense<0.000000e+00> : vector<256x4xf32>
    %27 = tpu.matmul %24, %26, %cst_31 {dimension_numbers = #tpu.dot_dimension_numbers<[1], [0], [0], [1], [0, 0, 1, 1], [], []>} : vector<256x4xf32>, vector<4x4xf32>, vector<256x4xf32> -> vector<256x4xf32>
    %28 = arith.addf %21, %27 : vector<256x4xf32>
    %c0_32 = arith.constant 0 : index
    %c0_33 = arith.constant 0 : index
    %c1_34 = arith.constant 1 : index
    %c1_35 = arith.constant 1 : index
    %c0_36 = arith.constant 0 : index
    %29 = vector.load %arg2[%c0_32, %c0_33, %c1_34, %c1_35, %c0_36] : memref<1x1x10x34x4xf32, #tpu.memory_space<vmem>>, vector<1x1x8x32x4xf32>
    %30 = vector.shape_cast %29 : vector<1x1x8x32x4xf32> to vector<8x32x4xf32>
    %31 = vector.shape_cast %30 : vector<8x32x4xf32> to vector<256x4xf32>
    %c4 = arith.constant 4 : index
    %c0_37 = arith.constant 0 : index
    %c0_38 = arith.constant 0 : index
    %32 = vector.load %arg4[%c4, %c0_37, %c0_38] : memref<9x4x4xf32, #tpu.memory_space<vmem>>, vector<1x4x4xf32>
    %33 = vector.shape_cast %32 : vector<1x4x4xf32> to vector<4x4xf32>
    %cst_39 = arith.constant dense<0.000000e+00> : vector<256x4xf32>
    %34 = tpu.matmul %31, %33, %cst_39 {dimension_numbers = #tpu.dot_dimension_numbers<[1], [0], [0], [1], [0, 0, 1, 1], [], []>} : vector<256x4xf32>, vector<4x4xf32>, vector<256x4xf32> -> vector<256x4xf32>
    %35 = arith.addf %28, %34 : vector<256x4xf32>
    %c0_40 = arith.constant 0 : index
    %c0_41 = arith.constant 0 : index
    %c1_42 = arith.constant 1 : index
    %c2_43 = arith.constant 2 : index
    %c0_44 = arith.constant 0 : index
    %36 = vector.load %arg2[%c0_40, %c0_41, %c1_42, %c2_43, %c0_44] : memref<1x1x10x34x4xf32, #tpu.memory_space<vmem>>, vector<1x1x8x32x4xf32>
    %37 = vector.shape_cast %36 : vector<1x1x8x32x4xf32> to vector<8x32x4xf32>
    %38 = vector.shape_cast %37 : vector<8x32x4xf32> to vector<256x4xf32>
    %c5 = arith.constant 5 : index
    %c0_45 = arith.constant 0 : index
    %c0_46 = arith.constant 0 : index
    %39 = vector.load %arg4[%c5, %c0_45, %c0_46] : memref<9x4x4xf32, #tpu.memory_space<vmem>>, vector<1x4x4xf32>
    %40 = vector.shape_cast %39 : vector<1x4x4xf32> to vector<4x4xf32>
    %cst_47 = arith.constant dense<0.000000e+00> : vector<256x4xf32>
    %41 = tpu.matmul %38, %40, %cst_47 {dimension_numbers = #tpu.dot_dimension_numbers<[1], [0], [0], [1], [0, 0, 1, 1], [], []>} : vector<256x4xf32>, vector<4x4xf32>, vector<256x4xf32> -> vector<256x4xf32>
    %42 = arith.addf %35, %41 : vector<256x4xf32>
    %c0_48 = arith.constant 0 : index
    %c0_49 = arith.constant 0 : index
    %c2_50 = arith.constant 2 : index
    %c0_51 = arith.constant 0 : index
    %c0_52 = arith.constant 0 : index
    %43 = vector.load %arg2[%c0_48, %c0_49, %c2_50, %c0_51, %c0_52] : memref<1x1x10x34x4xf32, #tpu.memory_space<vmem>>, vector<1x1x8x32x4xf32>
    %44 = vector.shape_cast %43 : vector<1x1x8x32x4xf32> to vector<8x32x4xf32>
    %45 = vector.shape_cast %44 : vector<8x32x4xf32> to vector<256x4xf32>
    %c6 = arith.constant 6 : index
    %c0_53 = arith.constant 0 : index
    %c0_54 = arith.constant 0 : index
    %46 = vector.load %arg4[%c6, %c0_53, %c0_54] : memref<9x4x4xf32, #tpu.memory_space<vmem>>, vector<1x4x4xf32>
    %47 = vector.shape_cast %46 : vector<1x4x4xf32> to vector<4x4xf32>
    %cst_55 = arith.constant dense<0.000000e+00> : vector<256x4xf32>
    %48 = tpu.matmul %45, %47, %cst_55 {dimension_numbers = #tpu.dot_dimension_numbers<[1], [0], [0], [1], [0, 0, 1, 1], [], []>} : vector<256x4xf32>, vector<4x4xf32>, vector<256x4xf32> -> vector<256x4xf32>
    %49 = arith.addf %42, %48 : vector<256x4xf32>
    %c0_56 = arith.constant 0 : index
    %c0_57 = arith.constant 0 : index
    %c2_58 = arith.constant 2 : index
    %c1_59 = arith.constant 1 : index
    %c0_60 = arith.constant 0 : index
    %50 = vector.load %arg2[%c0_56, %c0_57, %c2_58, %c1_59, %c0_60] : memref<1x1x10x34x4xf32, #tpu.memory_space<vmem>>, vector<1x1x8x32x4xf32>
    %51 = vector.shape_cast %50 : vector<1x1x8x32x4xf32> to vector<8x32x4xf32>
    %52 = vector.shape_cast %51 : vector<8x32x4xf32> to vector<256x4xf32>
    %c7 = arith.constant 7 : index
    %c0_61 = arith.constant 0 : index
    %c0_62 = arith.constant 0 : index
    %53 = vector.load %arg4[%c7, %c0_61, %c0_62] : memref<9x4x4xf32, #tpu.memory_space<vmem>>, vector<1x4x4xf32>
    %54 = vector.shape_cast %53 : vector<1x4x4xf32> to vector<4x4xf32>
    %cst_63 = arith.constant dense<0.000000e+00> : vector<256x4xf32>
    %55 = tpu.matmul %52, %54, %cst_63 {dimension_numbers = #tpu.dot_dimension_numbers<[1], [0], [0], [1], [0, 0, 1, 1], [], []>} : vector<256x4xf32>, vector<4x4xf32>, vector<256x4xf32> -> vector<256x4xf32>
    %56 = arith.addf %49, %55 : vector<256x4xf32>
    %c0_64 = arith.constant 0 : index
    %c0_65 = arith.constant 0 : index
    %c2_66 = arith.constant 2 : index
    %c2_67 = arith.constant 2 : index
    %c0_68 = arith.constant 0 : index
    %57 = vector.load %arg2[%c0_64, %c0_65, %c2_66, %c2_67, %c0_68] : memref<1x1x10x34x4xf32, #tpu.memory_space<vmem>>, vector<1x1x8x32x4xf32>
    %58 = vector.shape_cast %57 : vector<1x1x8x32x4xf32> to vector<8x32x4xf32>
    %59 = vector.shape_cast %58 : vector<8x32x4xf32> to vector<256x4xf32>
    %c8 = arith.constant 8 : index
    %c0_69 = arith.constant 0 : index
    %c0_70 = arith.constant 0 : index
    %60 = vector.load %arg4[%c8, %c0_69, %c0_70] : memref<9x4x4xf32, #tpu.memory_space<vmem>>, vector<1x4x4xf32>
    %61 = vector.shape_cast %60 : vector<1x4x4xf32> to vector<4x4xf32>
    %cst_71 = arith.constant dense<0.000000e+00> : vector<256x4xf32>
    %62 = tpu.matmul %59, %61, %cst_71 {dimension_numbers = #tpu.dot_dimension_numbers<[1], [0], [0], [1], [0, 0, 1, 1], [], []>} : vector<256x4xf32>, vector<4x4xf32>, vector<256x4xf32> -> vector<256x4xf32>
    %63 = arith.addf %56, %62 : vector<256x4xf32>
    %c0_72 = arith.constant 0 : index
    %c0_73 = arith.constant 0 : index
    %c0_74 = arith.constant 0 : index
    %c0_75 = arith.constant 0 : index
    %c0_76 = arith.constant 0 : index
    %64 = vector.load %arg3[%c0_72, %c0_73, %c0_74, %c0_75, %c0_76] : memref<1x1x10x34x4xf32, #tpu.memory_space<vmem>>, vector<1x1x8x32x4xf32>
    %65 = vector.shape_cast %64 : vector<1x1x8x32x4xf32> to vector<8x32x4xf32>
    %66 = vector.shape_cast %65 : vector<8x32x4xf32> to vector<256x4xf32>
    %c0_77 = arith.constant 0 : index
    %c0_78 = arith.constant 0 : index
    %c0_79 = arith.constant 0 : index
    %67 = vector.load %arg5[%c0_77, %c0_78, %c0_79] : memref<9x4x4xf32, #tpu.memory_space<vmem>>, vector<1x4x4xf32>
    %68 = vector.shape_cast %67 : vector<1x4x4xf32> to vector<4x4xf32>
    %cst_80 = arith.constant dense<0.000000e+00> : vector<256x4xf32>
    %69 = tpu.matmul %66, %68, %cst_80 {dimension_numbers = #tpu.dot_dimension_numbers<[1], [0], [0], [1], [0, 0, 1, 1], [], []>} : vector<256x4xf32>, vector<4x4xf32>, vector<256x4xf32> -> vector<256x4xf32>
    %70 = arith.addf %63, %69 : vector<256x4xf32>
    %c0_81 = arith.constant 0 : index
    %c0_82 = arith.constant 0 : index
    %c0_83 = arith.constant 0 : index
    %c1_84 = arith.constant 1 : index
    %c0_85 = arith.constant 0 : index
    %71 = vector.load %arg3[%c0_81, %c0_82, %c0_83, %c1_84, %c0_85] : memref<1x1x10x34x4xf32, #tpu.memory_space<vmem>>, vector<1x1x8x32x4xf32>
    %72 = vector.shape_cast %71 : vector<1x1x8x32x4xf32> to vector<8x32x4xf32>
    %73 = vector.shape_cast %72 : vector<8x32x4xf32> to vector<256x4xf32>
    %c1_86 = arith.constant 1 : index
    %c0_87 = arith.constant 0 : index
    %c0_88 = arith.constant 0 : index
    %74 = vector.load %arg5[%c1_86, %c0_87, %c0_88] : memref<9x4x4xf32, #tpu.memory_space<vmem>>, vector<1x4x4xf32>
    %75 = vector.shape_cast %74 : vector<1x4x4xf32> to vector<4x4xf32>
    %cst_89 = arith.constant dense<0.000000e+00> : vector<256x4xf32>
    %76 = tpu.matmul %73, %75, %cst_89 {dimension_numbers = #tpu.dot_dimension_numbers<[1], [0], [0], [1], [0, 0, 1, 1], [], []>} : vector<256x4xf32>, vector<4x4xf32>, vector<256x4xf32> -> vector<256x4xf32>
    %77 = arith.addf %70, %76 : vector<256x4xf32>
    %c0_90 = arith.constant 0 : index
    %c0_91 = arith.constant 0 : index
    %c0_92 = arith.constant 0 : index
    %c2_93 = arith.constant 2 : index
    %c0_94 = arith.constant 0 : index
    %78 = vector.load %arg3[%c0_90, %c0_91, %c0_92, %c2_93, %c0_94] : memref<1x1x10x34x4xf32, #tpu.memory_space<vmem>>, vector<1x1x8x32x4xf32>
    %79 = vector.shape_cast %78 : vector<1x1x8x32x4xf32> to vector<8x32x4xf32>
    %80 = vector.shape_cast %79 : vector<8x32x4xf32> to vector<256x4xf32>
    %c2_95 = arith.constant 2 : index
    %c0_96 = arith.constant 0 : index
    %c0_97 = arith.constant 0 : index
    %81 = vector.load %arg5[%c2_95, %c0_96, %c0_97] : memref<9x4x4xf32, #tpu.memory_space<vmem>>, vector<1x4x4xf32>
    %82 = vector.shape_cast %81 : vector<1x4x4xf32> to vector<4x4xf32>
    %cst_98 = arith.constant dense<0.000000e+00> : vector<256x4xf32>
    %83 = tpu.matmul %80, %82, %cst_98 {dimension_numbers = #tpu.dot_dimension_numbers<[1], [0], [0], [1], [0, 0, 1, 1], [], []>} : vector<256x4xf32>, vector<4x4xf32>, vector<256x4xf32> -> vector<256x4xf32>
    %84 = arith.addf %77, %83 : vector<256x4xf32>
    %c0_99 = arith.constant 0 : index
    %c0_100 = arith.constant 0 : index
    %c1_101 = arith.constant 1 : index
    %c0_102 = arith.constant 0 : index
    %c0_103 = arith.constant 0 : index
    %85 = vector.load %arg3[%c0_99, %c0_100, %c1_101, %c0_102, %c0_103] : memref<1x1x10x34x4xf32, #tpu.memory_space<vmem>>, vector<1x1x8x32x4xf32>
    %86 = vector.shape_cast %85 : vector<1x1x8x32x4xf32> to vector<8x32x4xf32>
    %87 = vector.shape_cast %86 : vector<8x32x4xf32> to vector<256x4xf32>
    %c3_104 = arith.constant 3 : index
    %c0_105 = arith.constant 0 : index
    %c0_106 = arith.constant 0 : index
    %88 = vector.load %arg5[%c3_104, %c0_105, %c0_106] : memref<9x4x4xf32, #tpu.memory_space<vmem>>, vector<1x4x4xf32>
    %89 = vector.shape_cast %88 : vector<1x4x4xf32> to vector<4x4xf32>
    %cst_107 = arith.constant dense<0.000000e+00> : vector<256x4xf32>
    %90 = tpu.matmul %87, %89, %cst_107 {dimension_numbers = #tpu.dot_dimension_numbers<[1], [0], [0], [1], [0, 0, 1, 1], [], []>} : vector<256x4xf32>, vector<4x4xf32>, vector<256x4xf32> -> vector<256x4xf32>
    %91 = arith.addf %84, %90 : vector<256x4xf32>
    %c0_108 = arith.constant 0 : index
    %c0_109 = arith.constant 0 : index
    %c1_110 = arith.constant 1 : index
    %c1_111 = arith.constant 1 : index
    %c0_112 = arith.constant 0 : index
    %92 = vector.load %arg3[%c0_108, %c0_109, %c1_110, %c1_111, %c0_112] : memref<1x1x10x34x4xf32, #tpu.memory_space<vmem>>, vector<1x1x8x32x4xf32>
    %93 = vector.shape_cast %92 : vector<1x1x8x32x4xf32> to vector<8x32x4xf32>
    %94 = vector.shape_cast %93 : vector<8x32x4xf32> to vector<256x4xf32>
    %c4_113 = arith.constant 4 : index
    %c0_114 = arith.constant 0 : index
    %c0_115 = arith.constant 0 : index
    %95 = vector.load %arg5[%c4_113, %c0_114, %c0_115] : memref<9x4x4xf32, #tpu.memory_space<vmem>>, vector<1x4x4xf32>
    %96 = vector.shape_cast %95 : vector<1x4x4xf32> to vector<4x4xf32>
    %cst_116 = arith.constant dense<0.000000e+00> : vector<256x4xf32>
    %97 = tpu.matmul %94, %96, %cst_116 {dimension_numbers = #tpu.dot_dimension_numbers<[1], [0], [0], [1], [0, 0, 1, 1], [], []>} : vector<256x4xf32>, vector<4x4xf32>, vector<256x4xf32> -> vector<256x4xf32>
    %98 = arith.addf %91, %97 : vector<256x4xf32>
    %c0_117 = arith.constant 0 : index
    %c0_118 = arith.constant 0 : index
    %c1_119 = arith.constant 1 : index
    %c2_120 = arith.constant 2 : index
    %c0_121 = arith.constant 0 : index
    %99 = vector.load %arg3[%c0_117, %c0_118, %c1_119, %c2_120, %c0_121] : memref<1x1x10x34x4xf32, #tpu.memory_space<vmem>>, vector<1x1x8x32x4xf32>
    %100 = vector.shape_cast %99 : vector<1x1x8x32x4xf32> to vector<8x32x4xf32>
    %101 = vector.shape_cast %100 : vector<8x32x4xf32> to vector<256x4xf32>
    %c5_122 = arith.constant 5 : index
    %c0_123 = arith.constant 0 : index
    %c0_124 = arith.constant 0 : index
    %102 = vector.load %arg5[%c5_122, %c0_123, %c0_124] : memref<9x4x4xf32, #tpu.memory_space<vmem>>, vector<1x4x4xf32>
    %103 = vector.shape_cast %102 : vector<1x4x4xf32> to vector<4x4xf32>
    %cst_125 = arith.constant dense<0.000000e+00> : vector<256x4xf32>
    %104 = tpu.matmul %101, %103, %cst_125 {dimension_numbers = #tpu.dot_dimension_numbers<[1], [0], [0], [1], [0, 0, 1, 1], [], []>} : vector<256x4xf32>, vector<4x4xf32>, vector<256x4xf32> -> vector<256x4xf32>
    %105 = arith.addf %98, %104 : vector<256x4xf32>
    %c0_126 = arith.constant 0 : index
    %c0_127 = arith.constant 0 : index
    %c2_128 = arith.constant 2 : index
    %c0_129 = arith.constant 0 : index
    %c0_130 = arith.constant 0 : index
    %106 = vector.load %arg3[%c0_126, %c0_127, %c2_128, %c0_129, %c0_130] : memref<1x1x10x34x4xf32, #tpu.memory_space<vmem>>, vector<1x1x8x32x4xf32>
    %107 = vector.shape_cast %106 : vector<1x1x8x32x4xf32> to vector<8x32x4xf32>
    %108 = vector.shape_cast %107 : vector<8x32x4xf32> to vector<256x4xf32>
    %c6_131 = arith.constant 6 : index
    %c0_132 = arith.constant 0 : index
    %c0_133 = arith.constant 0 : index
    %109 = vector.load %arg5[%c6_131, %c0_132, %c0_133] : memref<9x4x4xf32, #tpu.memory_space<vmem>>, vector<1x4x4xf32>
    %110 = vector.shape_cast %109 : vector<1x4x4xf32> to vector<4x4xf32>
    %cst_134 = arith.constant dense<0.000000e+00> : vector<256x4xf32>
    %111 = tpu.matmul %108, %110, %cst_134 {dimension_numbers = #tpu.dot_dimension_numbers<[1], [0], [0], [1], [0, 0, 1, 1], [], []>} : vector<256x4xf32>, vector<4x4xf32>, vector<256x4xf32> -> vector<256x4xf32>
    %112 = arith.addf %105, %111 : vector<256x4xf32>
    %c0_135 = arith.constant 0 : index
    %c0_136 = arith.constant 0 : index
    %c2_137 = arith.constant 2 : index
    %c1_138 = arith.constant 1 : index
    %c0_139 = arith.constant 0 : index
    %113 = vector.load %arg3[%c0_135, %c0_136, %c2_137, %c1_138, %c0_139] : memref<1x1x10x34x4xf32, #tpu.memory_space<vmem>>, vector<1x1x8x32x4xf32>
    %114 = vector.shape_cast %113 : vector<1x1x8x32x4xf32> to vector<8x32x4xf32>
    %115 = vector.shape_cast %114 : vector<8x32x4xf32> to vector<256x4xf32>
    %c7_140 = arith.constant 7 : index
    %c0_141 = arith.constant 0 : index
    %c0_142 = arith.constant 0 : index
    %116 = vector.load %arg5[%c7_140, %c0_141, %c0_142] : memref<9x4x4xf32, #tpu.memory_space<vmem>>, vector<1x4x4xf32>
    %117 = vector.shape_cast %116 : vector<1x4x4xf32> to vector<4x4xf32>
    %cst_143 = arith.constant dense<0.000000e+00> : vector<256x4xf32>
    %118 = tpu.matmul %115, %117, %cst_143 {dimension_numbers = #tpu.dot_dimension_numbers<[1], [0], [0], [1], [0, 0, 1, 1], [], []>} : vector<256x4xf32>, vector<4x4xf32>, vector<256x4xf32> -> vector<256x4xf32>
    %119 = arith.addf %112, %118 : vector<256x4xf32>
    %c0_144 = arith.constant 0 : index
    %c0_145 = arith.constant 0 : index
    %c2_146 = arith.constant 2 : index
    %c2_147 = arith.constant 2 : index
    %c0_148 = arith.constant 0 : index
    %120 = vector.load %arg3[%c0_144, %c0_145, %c2_146, %c2_147, %c0_148] : memref<1x1x10x34x4xf32, #tpu.memory_space<vmem>>, vector<1x1x8x32x4xf32>
    %121 = vector.shape_cast %120 : vector<1x1x8x32x4xf32> to vector<8x32x4xf32>
    %122 = vector.shape_cast %121 : vector<8x32x4xf32> to vector<256x4xf32>
    %c8_149 = arith.constant 8 : index
    %c0_150 = arith.constant 0 : index
    %c0_151 = arith.constant 0 : index
    %123 = vector.load %arg5[%c8_149, %c0_150, %c0_151] : memref<9x4x4xf32, #tpu.memory_space<vmem>>, vector<1x4x4xf32>
    %124 = vector.shape_cast %123 : vector<1x4x4xf32> to vector<4x4xf32>
    %cst_152 = arith.constant dense<0.000000e+00> : vector<256x4xf32>
    %125 = tpu.matmul %122, %124, %cst_152 {dimension_numbers = #tpu.dot_dimension_numbers<[1], [0], [0], [1], [0, 0, 1, 1], [], []>} : vector<256x4xf32>, vector<4x4xf32>, vector<256x4xf32> -> vector<256x4xf32>
    %126 = arith.addf %119, %125 : vector<256x4xf32>
    %c0_153 = arith.constant 0 : index
    %c0_154 = arith.constant 0 : index
    %127 = vector.load %arg6[%c0_153, %c0_154] : memref<1x4xf32, #tpu.memory_space<vmem>>, vector<1x4xf32>
    %128 = vector.broadcast %127 : vector<1x4xf32> to vector<256x4xf32>
    %129 = arith.addf %126, %128 : vector<256x4xf32>
    %cst_155 = arith.constant 0.000000e+00 : f32
    %130 = vector.broadcast %cst_155 : f32 to vector<256x4xf32>
    %131 = arith.cmpf oge, %129, %130 : vector<256x4xf32>
    %cst_156 = arith.constant 0.00999999977 : f32
    %132 = vector.broadcast %cst_156 : f32 to vector<256x4xf32>
    %133 = arith.mulf %132, %129 : vector<256x4xf32>
    %134 = arith.select %131, %129, %133 : vector<256x4xi1>, vector<256x4xf32>
    %c0_157 = arith.constant 0 : index
    %c0_158 = arith.constant 0 : index
    %135 = vector.load %arg7[%c0_157, %c0_158] : memref<1x4xf32, #tpu.memory_space<vmem>>, vector<1x4xf32>
    %136 = vector.broadcast %135 : vector<1x4xf32> to vector<256x4xf32>
    %137 = arith.mulf %134, %136 : vector<256x4xf32>
    %c0_159 = arith.constant 0 : index
    %c0_160 = arith.constant 0 : index
    %138 = vector.load %arg8[%c0_159, %c0_160] : memref<1x4xf32, #tpu.memory_space<vmem>>, vector<1x4xf32>
    %139 = vector.broadcast %138 : vector<1x4xf32> to vector<256x4xf32>
    %140 = arith.addf %137, %139 : vector<256x4xf32>
    %c0_161 = arith.constant 0 : index
    %c0_162 = arith.constant 0 : index
    %c0_163 = arith.constant 0 : index
    %141 = vector.load %arg9[%c0_161, %c0_162, %c0_163] : memref<1x256x4xf32, #tpu.memory_space<vmem>>, vector<1x256x4xf32>
    %142 = vector.shape_cast %141 : vector<1x256x4xf32> to vector<256x4xf32>
    %143 = vector.shape_cast %140 : vector<256x4xf32> to vector<1x256x4xf32>
    tpu.vector_store %arg9[%c0_161, %c0_162, %c0_163], %143 {strides = array<i32>} : memref<1x256x4xf32, #tpu.memory_space<vmem>>, vector<1x256x4xf32>,
    return
  }
  func.func @transform_0(%arg0: i32, %arg1: i32) -> (i32, i32, i32, i32, i32) {
    %c0_i32 = arith.constant 0 : i32
    %c0_i32_0 = arith.constant 0 : i32
    %c0_i32_1 = arith.constant 0 : i32
    %c0_i32_2 = arith.constant 0 : i32
    return %arg0, %arg1, %c0_i32, %c0_i32_0, %c0_i32_1 : i32, i32, i32, i32, i32
  }
  func.func @transform_1(%arg0: i32, %arg1: i32) -> (i32, i32, i32, i32, i32) {
    %c0_i32 = arith.constant 0 : i32
    %c0_i32_0 = arith.constant 0 : i32
    %c0_i32_1 = arith.constant 0 : i32
    %c0_i32_2 = arith.constant 0 : i32
    return %arg0, %arg1, %c0_i32, %c0_i32_0, %c0_i32_1 : i32, i32, i32, i32, i32
  }
  func.func @transform_2(%arg0: i32, %arg1: i32) -> (i32, i32, i32) {
    %c0_i32 = arith.constant 0 : i32
    %c0_i32_0 = arith.constant 0 : i32
    %c0_i32_1 = arith.constant 0 : i32
    %c0_i32_2 = arith.constant 0 : i32
    return %c0_i32, %c0_i32_0, %c0_i32_1 : i32, i32, i32
  }
  func.func @transform_3(%arg0: i32, %arg1: i32) -> (i32, i32, i32) {
    %c0_i32 = arith.constant 0 : i32
    %c0_i32_0 = arith.constant 0 : i32
    %c0_i32_1 = arith.constant 0 : i32
    %c0_i32_2 = arith.constant 0 : i32
    return %c0_i32, %c0_i32_0, %c0_i32_1 : i32, i32, i32
  }
  func.func @transform_4(%arg0: i32, %arg1: i32) -> (i32, i32) {
    %c0_i32 = arith.constant 0 : i32
    %c0_i32_0 = arith.constant 0 : i32
    %c0_i32_1 = arith.constant 0 : i32
    return %c0_i32, %c0_i32_0 : i32, i32
  }
  func.func @transform_5(%arg0: i32, %arg1: i32) -> (i32, i32) {
    %c0_i32 = arith.constant 0 : i32
    %c0_i32_0 = arith.constant 0 : i32
    %c0_i32_1 = arith.constant 0 : i32
    return %c0_i32, %c0_i32_0 : i32, i32
  }
  func.func @transform_6(%arg0: i32, %arg1: i32) -> (i32, i32) {
    %c0_i32 = arith.constant 0 : i32
    %c0_i32_0 = arith.constant 0 : i32
    %c0_i32_1 = arith.constant 0 : i32
    return %c0_i32, %c0_i32_0 : i32, i32
  }
  func.func @transform_7(%arg0: i32, %arg1: i32) -> (i32, i32, i32) {
    %c0_i32 = arith.constant 0 : i32
    %c0_i32_0 = arith.constant 0 : i32
    return %arg0, %arg1, %c0_i32 : i32, i32, i32
  }
}

</mosaic_0001>

<bundles_post_ra>
// kernel: tile.8
= control target key start
LH: loop header
LB: loop body
LE: loop exit
PB: predicated region body
PF: predicated region fallthrough
CT: control target
= control target key end

     0   :  { %s22_s0 = inlined_call_operand.vmem [shape: f32[4], index: 0, kind: input, shape index: {}]   ;;  %s23_s1 = inlined_call_operand.vmem [shape: f32[4,4], index: 1, kind: output, shape index: {}]  }
   0x1   :  { %v4_v0 = vld [vmem:[%s22_s0] ss:$0 sm:$0xff] }
   0x2   :  { %5 = vst [vmem:[%s23_s1] sm:$0xf] %v4_v0 }

// kernel: tile.9
= control target key start
LH: loop header
LB: loop body
LE: loop exit
PB: predicated region body
PF: predicated region fallthrough
CT: control target
= control target key end

     0   :  { %s37_s8 = smov 4   ;;  %s38_s9 = smov 8   ;;  %vm7_vm0 = vcmask 31744   ;;  %vm13_vm1 = vcmask 130144   ;;  %vm19_vm2 = vcmask 97344   ;;  %vm25_vm3 = vcmask 64544   ;;  %s55_s0 = inlined_call_operand.vmem [shape: f32[4,4], index: 0, kind: input, shape index: {}]   ;;  %s56_s1 = inlined_call_operand.vmem [shape: f32[1,16], index: 1, kind: output, shape index: {}]  }
   0x1   :  { %v4_v0 = vld [vmem:[%s55_s0] sm:$0xf]  ;;  %s36_s0 = smov 12  }
   0x2   :  { %5 = vst [vmem:[#allocation1] sm:$0xf] %v4_v0 }
   0x9   :  { %v10_v1 = vld [vmem:[#allocation1 + $0x3] sm:$0x1]   ;;  %v22_v2 = vld [vmem:[#allocation1 + $0x1] sm:$0x1]   ;;  %v16_v3 = vld [vmem:[#allocation1 + $0x2] sm:$0x1]  }
   0xa   :  { %11 = vrot.lane.b32.xlu0 %v10_v1, %s36_s0  ;;  %23 = vrot.lane.b32.xlu1 %v22_v2, %s37_s8  ;;  %v6_v4 = vld [vmem:[#allocation1] sm:$0x1]  }
   0xb   :  { %8 = vst.msk [vmem:[#allocation0] sm:$0x1] %vm7_vm0, %v6_v4  }
  0x12   :  { %17 = vrot.lane.b32.xlu0 %v16_v3, %s38_s9 }
  0x7c   :  { %v12_v5 = vpop.permute.xlu0 %11   ;;  %v24_v6 = vpop.permute.xlu1 %23  }
  0x7d   :  { %14 = vst.msk [vmem:[#allocation0] sm:$0x1] %vm13_vm1, %v12_v5  }
  0x84   :  { %v18_v7 = vpop.permute.xlu0 %17  }
  0x85   :  { %20 = vst.msk [vmem:[#allocation0] sm:$0x1] %vm19_vm2, %v18_v7  }
  0x86   :  { %26 = vst.msk [vmem:[#allocation0] sm:$0x1] %vm25_vm3, %v24_v6  }
  0x8d   :  { %v29_v8 = vld [vmem:[#allocation0] sm:$0x1] }
  0x8e   :  { %32 = vst [vmem:[%s56_s1] sm:$0x1] %v29_v8 }

// kernel: decoder_block_forward.3
= control target key start
LH: loop header
LB: loop body
LE: loop exit
PB: predicated region body
PF: predicated region fallthrough
CT: control target
= control target key end

     0   :  { %s593_s12 = smov 0   ;;  %s789_s0 = inlined_call_operand.vmem [shape: f32[512,8], index: 0, kind: input, shape index: {}]   ;;  %s790_s1 = inlined_call_operand.vmem [shape: f32[8,16], index: 1, kind: input, shape index: {}]   ;;  %s791_s2 = inlined_call_operand.vmem [shape: f32[1,16], index: 2, kind: input, shape index: {}]   ;;  %s792_s3 = inlined_call_operand.vmem [shape: f32[512,16], index: 3, kind: output, shape index: {}]  }
   0x1 LB: > { %s510_s13 = sadd.s32 4294967295, %s571_s12   ;;  %p514_p0 = scmp.ge.s32.totalorder %s571_s12, 1  ;;  %s571_s12 = sphi %s593_s12, %s13_s12  }
   0x2   : > { %p138_p1 = scmp.lt.s32.totalorder %s571_s12, 3 }
   0x4   : > { %p139_p2 = pnand %p514_p0, %p138_p1 }
   0x5   : > { %s515_s16 = sshll.u32 (!%p139_p2), %s510_s13, 5 }
   0x6   : > { %142 = sbr.rel (%p139_p2) target bundleno = 207 (0xcf), region = 32  ;;  %p163_p3 = scmp.lt.s32.totalorder (!%p139_p2), %s515_s16, 63 }
   0xb   : > { %v206_v0 = vld [vmem:[%s790_s1] sm:$0xff]  ;;  %s794_s16 = smov (!%p163_p3, %s515_s16), 63  ;;  %vm211_vm0 = vcmask 64512   ;;  %vm421_vm1 = vcmask 130048  }
   0xc   : > { %554 = vmatpush.msra.mxu2 %v206_v0  ;;  %555 = vmatpush.msra.mxu3 %v206_v0  ;;  %s516_s17 = sshll.u32 %s794_s16, 3  ;;  %v681_v33 = vld [vmem:[%s791_s2] ss:$0 sm:$0xff] }
   0xd   : > { %323 = vmatpush.msra.mxu0 %v206_v0  ;;  %553 = vmatpush.msra.mxu1 %v206_v0  ;;  %s612_s20 = scalar_lea.vmem %s789_s0, %s516_s17  ;;  %s688_s25 = scalar_lea.vmem %s792_s3, %s516_s17 }
   0xe   : > { %v190_v1 = vld [vmem:[%s612_s20 + $0x80] sm:$0xff]  ;;  %v191_v5 = vld [vmem:[%s612_s20 + $0x88] sm:$0xff]  ;;  %v192_v9 = vld [vmem:[%s612_s20 + $0x90] sm:$0xff] }
   0xf   : > { %v198_v2 = vld [vmem:[%s612_s20 + $0xc0] sm:$0xff]  ;;  %535 = vmatmul.msk.f32.vlgmr.msra.gmra.mxu2 %vm211_vm0, %v190_v1  ;;  %v199_v6 = vld [vmem:[%s612_s20 + $0xc8] sm:$0xff]  ;;  %v200_v10 = vld [vmem:[%s612_s20 + $0xd0] sm:$0xff] }
  0x10   : > { %v174_v3 = vld [vmem:[%s612_s20] sm:$0xff]  ;;  %543 = vmatmul.msk.f32.vlgmr.msra.gmra.mxu3 %vm211_vm0, %v198_v2  ;;  %v175_v7 = vld [vmem:[%s612_s20 + $0x8] sm:$0xff]  ;;  %v176_v11 = vld [vmem:[%s612_s20 + $0x10] sm:$0xff] }
  0x11   : > { %v182_v4 = vld [vmem:[%s612_s20 + $0x40] sm:$0xff]  ;;  %519 = vmatmul.msk.f32.vlgmr.msra.gmra.mxu0 %vm211_vm0, %v174_v3  ;;  %v183_v8 = vld [vmem:[%s612_s20 + $0x48] sm:$0xff]  ;;  %v184_v12 = vld [vmem:[%s612_s20 + $0x50] sm:$0xff] }
  0x12   : > { %527 = vmatmul.msk.f32.vlgmr.msra.gmra.mxu1 %vm211_vm0, %v182_v4  ;;  %v193_v13 = vld [vmem:[%s612_s20 + $0x98] sm:$0xff]  ;;  %v194_v17 = vld [vmem:[%s612_s20 + $0xa0] sm:$0xff]  ;;  %v195_v21 = vld [vmem:[%s612_s20 + $0xa8] sm:$0xff] }
  0x13   : > { %v201_v14 = vld [vmem:[%s612_s20 + $0xd8] sm:$0xff]  ;;  %v202_v18 = vld [vmem:[%s612_s20 + $0xe0] sm:$0xff]  ;;  %v203_v22 = vld [vmem:[%s612_s20 + $0xe8] sm:$0xff] }
  0x14   : > { %v177_v15 = vld [vmem:[%s612_s20 + $0x18] sm:$0xff]  ;;  %v178_v19 = vld [vmem:[%s612_s20 + $0x20] sm:$0xff]  ;;  %v179_v23 = vld [vmem:[%s612_s20 + $0x28] sm:$0xff] }
  0x15   : > { %v185_v16 = vld [vmem:[%s612_s20 + $0x58] sm:$0xff]  ;;  %v186_v20 = vld [vmem:[%s612_s20 + $0x60] sm:$0xff]  ;;  %v187_v24 = vld [vmem:[%s612_s20 + $0x68] sm:$0xff] }
  0x16   : > { %v196_v25 = vld [vmem:[%s612_s20 + $0xb0] sm:$0xff]  ;;  %v197_v29 = vld [vmem:[%s612_s20 + $0xb8] sm:$0xff] }
  0x17   : > { %536 = vmatmul.msk.f32.gmra.mxu2 %vm211_vm0, %v191_v5  ;;  %v204_v26 = vld [vmem:[%s612_s20 + $0xf0] sm:$0xff]  ;;  %v205_v30 = vld [vmem:[%s612_s20 + $0xf8] sm:$0xff] }
  0x18   : > { %544 = vmatmul.msk.f32.gmra.mxu3 %vm211_vm0, %v199_v6  ;;  %v180_v27 = vld [vmem:[%s612_s20 + $0x30] sm:$0xff]  ;;  %v181_v31 = vld [vmem:[%s612_s20 + $0x38] sm:$0xff] }
  0x19   : > { %520 = vmatmul.msk.f32.gmra.mxu0 %vm211_vm0, %v175_v7  ;;  %v188_v28 = vld [vmem:[%s612_s20 + $0x70] sm:$0xff]  ;;  %v189_v32 = vld [vmem:[%s612_s20 + $0x78] sm:$0xff] }
  0x1a   : > { %528 = vmatmul.msk.f32.gmra.mxu1 %vm211_vm0, %v183_v8 }
  0x1f   : > { %537 = vmatmul.msk.f32.gmra.mxu2 %vm211_vm0, %v192_v9 }
  0x20   : > { %545 = vmatmul.msk.f32.gmra.mxu3 %vm211_vm0, %v200_v10 }
  0x21   : > { %521 = vmatmul.msk.f32.gmra.mxu0 %vm211_vm0, %v176_v11 }
  0x22   : > { %529 = vmatmul.msk.f32.gmra.mxu1 %vm211_vm0, %v184_v12 }
  0x27   : > { %538 = vmatmul.msk.f32.gmra.mxu2 %vm211_vm0, %v193_v13 }
  0x28   : > { %546 = vmatmul.msk.f32.gmra.mxu3 %vm211_vm0, %v201_v14 }
  0x29   : > { %522 = vmatmul.msk.f32.gmra.mxu0 %vm211_vm0, %v177_v15 }
  0x2a   : > { %530 = vmatmul.msk.f32.gmra.mxu1 %vm211_vm0, %v185_v16 }
  0x2f   : > { %539 = vmatmul.msk.f32.gmra.mxu2 %vm211_vm0, %v194_v17 }
  0x30   : > { %547 = vmatmul.msk.f32.gmra.mxu3 %vm211_vm0, %v202_v18 }
  0x31   : > { %523 = vmatmul.msk.f32.gmra.mxu0 %vm211_vm0, %v178_v19 }
  0x32   : > { %531 = vmatmul.msk.f32.gmra.mxu1 %vm211_vm0, %v186_v20 }
  0x37   : > { %540 = vmatmul.msk.f32.gmra.mxu2 %vm211_vm0, %v195_v21 }
  0x38   : > { %548 = vmatmul.msk.f32.gmra.mxu3 %vm211_vm0, %v203_v22 }
  0x39   : > { %524 = vmatmul.msk.f32.gmra.mxu0 %vm211_vm0, %v179_v23 }
  0x3a   : > { %532 = vmatmul.msk.f32.gmra.mxu1 %vm211_vm0, %v187_v24 }
  0x3f   : > { %541 = vmatmul.msk.f32.gmra.mxu2 %vm211_vm0, %v196_v25 }
  0x40   : > { %549 = vmatmul.msk.f32.gmra.mxu3 %vm211_vm0, %v204_v26 }
  0x41   : > { %525 = vmatmul.msk.f32.gmra.mxu0 %vm211_vm0, %v180_v27 }
  0x42   : > { %533 = vmatmul.msk.f32.gmra.mxu1 %vm211_vm0, %v188_v28 }
  0x47   : > { %542 = vmatmul.msk.f32.gmra.mxu2 %vm211_vm0, %v197_v29 }
  0x48   : > { %550 = vmatmul.msk.f32.gmra.mxu3 %vm211_vm0, %v205_v30 }
  0x49   : > { %526 = vmatmul.msk.f32.gmra.mxu0 %vm211_vm0, %v181_v31 }
  0x4a   : > { %534 = vmatmul.msk.f32.gmra.mxu1 %vm211_vm0, %v189_v32 }
  0x8e   : > { %v325_v34 = vpop.f32.mrf.mxu0 }
  0x8f   : > { %v349_v35 = vpop.f32.mrf.mxu1  ;;  %v326_v36 = vadd.f32 %v681_v33, %v325_v34 }
  0x90   : > { %v350_v37 = vadd.f32 %v681_v33, %v349_v35 }
  0x91   : > { %422 = vst.msk [vmem:[%s688_s25] sm:$0xff] %vm421_vm1, %v326_v36 }
  0x92   : > { %430 = vst.msk [vmem:[%s688_s25 + $0x40] sm:$0xff] %vm421_vm1, %v350_v37  ;;  %v373_v38 = vpop.f32.mrf.mxu2 }
  0x93   : > { %v397_v39 = vpop.f32.mrf.mxu3  ;;  %v374_v40 = vadd.f32 %v681_v33, %v373_v38 }
  0x94   : > { %v398_v41 = vadd.f32 %v681_v33, %v397_v39 }
  0x95   : > { %438 = vst.msk [vmem:[%s688_s25 + $0x80] sm:$0xff] %vm421_vm1, %v374_v40 }
  0x96   : > { %v328_v42 = vpop.f32.mrf.mxu0  ;;  %446 = vst.msk [vmem:[%s688_s25 + $0xc0] sm:$0xff] %vm421_vm1, %v398_v41 }
  0x97   : > { %v352_v43 = vpop.f32.mrf.mxu1  ;;  %v329_v44 = vadd.f32 %v681_v33, %v328_v42 }
  0x98   : > { %v353_v45 = vadd.f32 %v681_v33, %v352_v43 }
  0x99   : > { %423 = vst.msk [vmem:[%s688_s25 + $0x8] sm:$0xff] %vm421_vm1, %v329_v44 }
  0x9a   : > { %431 = vst.msk [vmem:[%s688_s25 + $0x48] sm:$0xff] %vm421_vm1, %v353_v45  ;;  %v376_v46 = vpop.f32.mrf.mxu2 }
  0x9b   : > { %v400_v47 = vpop.f32.mrf.mxu3  ;;  %v377_v48 = vadd.f32 %v681_v33, %v376_v46 }
  0x9c   : > { %v401_v49 = vadd.f32 %v681_v33, %v400_v47 }
  0x9d   : > { %439 = vst.msk [vmem:[%s688_s25 + $0x88] sm:$0xff] %vm421_vm1, %v377_v48 }
  0x9e   : > { %v331_v50 = vpop.f32.mrf.mxu0  ;;  %447 = vst.msk [vmem:[%s688_s25 + $0xc8] sm:$0xff] %vm421_vm1, %v401_v49 }
  0x9f   : > { %v355_v51 = vpop.f32.mrf.mxu1  ;;  %v332_v52 = vadd.f32 %v681_v33, %v331_v50 }
  0xa0   : > { %v356_v53 = vadd.f32 %v681_v33, %v355_v51 }
  0xa1   : > { %424 = vst.msk [vmem:[%s688_s25 + $0x10] sm:$0xff] %vm421_vm1, %v332_v52 }
  0xa2   : > { %432 = vst.msk [vmem:[%s688_s25 + $0x50] sm:$0xff] %vm421_vm1, %v356_v53  ;;  %v379_v54 = vpop.f32.mrf.mxu2 }
  0xa3   : > { %v403_v55 = vpop.f32.mrf.mxu3  ;;  %v380_v56 = vadd.f32 %v681_v33, %v379_v54 }
  0xa4   : > { %v404_v57 = vadd.f32 %v681_v33, %v403_v55 }
  0xa5   : > { %440 = vst.msk [vmem:[%s688_s25 + $0x90] sm:$0xff] %vm421_vm1, %v380_v56 }
  0xa6   : > { %v334_v58 = vpop.f32.mrf.mxu0  ;;  %448 = vst.msk [vmem:[%s688_s25 + $0xd0] sm:$0xff] %vm421_vm1, %v404_v57 }
  0xa7   : > { %v358_v59 = vpop.f32.mrf.mxu1  ;;  %v335_v60 = vadd.f32 %v681_v33, %v334_v58 }
  0xa8   : > { %v359_v61 = vadd.f32 %v681_v33, %v358_v59 }
  0xa9   : > { %425 = vst.msk [vmem:[%s688_s25 + $0x18] sm:$0xff] %vm421_vm1, %v335_v60 }
  0xaa   : > { %433 = vst.msk [vmem:[%s688_s25 + $0x58] sm:$0xff] %vm421_vm1, %v359_v61  ;;  %v382_v62 = vpop.f32.mrf.mxu2 }
  0xab   : > { %v406_v63 = vpop.f32.mrf.mxu3  ;;  %v383_v0 = vadd.f32 %v681_v33, %v382_v62 }
  0xac   : > { %v407_v1 = vadd.f32 %v681_v33, %v406_v63 }
  0xad   : > { %441 = vst.msk [vmem:[%s688_s25 + $0x98] sm:$0xff] %vm421_vm1, %v383_v0 }
  0xae   : > { %v337_v2 = vpop.f32.mrf.mxu0  ;;  %449 = vst.msk [vmem:[%s688_s25 + $0xd8] sm:$0xff] %vm421_vm1, %v407_v1 }
  0xaf   : > { %v361_v3 = vpop.f32.mrf.mxu1  ;;  %v338_v4 = vadd.f32 %v681_v33, %v337_v2 }
  0xb0   : > { %v362_v5 = vadd.f32 %v681_v33, %v361_v3 }
  0xb1   : > { %426 = vst.msk [vmem:[%s688_s25 + $0x20] sm:$0xff] %vm421_vm1, %v338_v4 }
  0xb2   : > { %434 = vst.msk [vmem:[%s688_s25 + $0x60] sm:$0xff] %vm421_vm1, %v362_v5  ;;  %v385_v6 = vpop.f32.mrf.mxu2 }
  0xb3   : > { %v409_v7 = vpop.f32.mrf.mxu3  ;;  %v386_v8 = vadd.f32 %v681_v33, %v385_v6 }
  0xb4   : > { %v410_v9 = vadd.f32 %v681_v33, %v409_v7 }
  0xb5   : > { %442 = vst.msk [vmem:[%s688_s25 + $0xa0] sm:$0xff] %vm421_vm1, %v386_v8 }
  0xb6   : > { %v340_v10 = vpop.f32.mrf.mxu0  ;;  %450 = vst.msk [vmem:[%s688_s25 + $0xe0] sm:$0xff] %vm421_vm1, %v410_v9 }
  0xb7   : > { %v364_v11 = vpop.f32.mrf.mxu1  ;;  %v341_v12 = vadd.f32 %v681_v33, %v340_v10 }
  0xb8   : > { %v365_v13 = vadd.f32 %v681_v33, %v364_v11 }
  0xb9   : > { %427 = vst.msk [vmem:[%s688_s25 + $0x28] sm:$0xff] %vm421_vm1, %v341_v12 }
  0xba   : > { %435 = vst.msk [vmem:[%s688_s25 + $0x68] sm:$0xff] %vm421_vm1, %v365_v13  ;;  %v388_v14 = vpop.f32.mrf.mxu2 }
  0xbb   : > { %v412_v15 = vpop.f32.mrf.mxu3  ;;  %v389_v16 = vadd.f32 %v681_v33, %v388_v14 }
  0xbc   : > { %v413_v17 = vadd.f32 %v681_v33, %v412_v15 }
  0xbd   : > { %443 = vst.msk [vmem:[%s688_s25 + $0xa8] sm:$0xff] %vm421_vm1, %v389_v16 }
  0xbe   : > { %v343_v18 = vpop.f32.mrf.mxu0  ;;  %451 = vst.msk [vmem:[%s688_s25 + $0xe8] sm:$0xff] %vm421_vm1, %v413_v17 }
  0xbf   : > { %v367_v19 = vpop.f32.mrf.mxu1  ;;  %v344_v20 = vadd.f32 %v681_v33, %v343_v18 }
  0xc0   : > { %v368_v21 = vadd.f32 %v681_v33, %v367_v19 }
  0xc1   : > { %428 = vst.msk [vmem:[%s688_s25 + $0x30] sm:$0xff] %vm421_vm1, %v344_v20 }
  0xc2   : > { %436 = vst.msk [vmem:[%s688_s25 + $0x70] sm:$0xff] %vm421_vm1, %v368_v21  ;;  %v391_v22 = vpop.f32.mrf.mxu2 }
  0xc3   : > { %v415_v23 = vpop.f32.mrf.mxu3  ;;  %v392_v24 = vadd.f32 %v681_v33, %v391_v22 }
  0xc4   : > { %v416_v25 = vadd.f32 %v681_v33, %v415_v23 }
  0xc5   : > { %444 = vst.msk [vmem:[%s688_s25 + $0xb0] sm:$0xff] %vm421_vm1, %v392_v24 }
  0xc6   : > { %v346_v26 = vpop.f32.mrf.mxu0  ;;  %452 = vst.msk [vmem:[%s688_s25 + $0xf0] sm:$0xff] %vm421_vm1, %v416_v25 }
  0xc7   : > { %v370_v27 = vpop.f32.mrf.mxu1  ;;  %v347_v28 = vadd.f32 %v681_v33, %v346_v26 }
  0xc8   : > { %v371_v29 = vadd.f32 %v681_v33, %v370_v27 }
  0xc9   : > { %429 = vst.msk [vmem:[%s688_s25 + $0x38] sm:$0xff] %vm421_vm1, %v347_v28 }
  0xca   : > { %437 = vst.msk [vmem:[%s688_s25 + $0x78] sm:$0xff] %vm421_vm1, %v371_v29  ;;  %v394_v30 = vpop.f32.mrf.mxu2 }
  0xcb   : > { %v418_v31 = vpop.f32.mrf.mxu3  ;;  %v395_v32 = vadd.f32 %v681_v33, %v394_v30 }
  0xcc   : > { %v419_v34 = vadd.f32 %v681_v33, %v418_v31 }
  0xcd   : > { %445 = vst.msk [vmem:[%s688_s25 + $0xb8] sm:$0xff] %vm421_vm1, %v395_v32 }
  0xce   : > { %453 = vst.msk [vmem:[%s688_s25 + $0xf8] sm:$0xff] %vm421_vm1, %v419_v34 }
  0xcf PF: > { %s13_s12 = sadd.s32 1, %s571_s12  }
  0xd0   : > { %p10_p4 = scmp.ge.s32.totalorder %s13_s12, 4  }
  0xd2   :  { %12 = sbr.rel (!%p10_p4) target bundleno = 1 (0x1), region = 62 }

// kernel: decoder_block_forward.5
= control target key start
LH: loop header
LB: loop body
LE: loop exit
PB: predicated region body
PF: predicated region fallthrough
CT: control target
= control target key end

     0   :  { %s3661_s18 = smov 0   ;;  %s3663_s19 = smov 0   ;;  %s4942_s0 = inlined_call_operand.vmem [shape: f32[2,4,10,34,4], index: 0, kind: input, shape index: {}]   ;;  %s4943_s1 = inlined_call_operand.vmem [shape: f32[9,4,4], index: 1, kind: input, shape index: {}]   ;;  %s4944_s2 = inlined_call_operand.vmem [shape: f32[1,4], index: 2, kind: input, shape index: {}]   ;;  %s4945_s3 = inlined_call_operand.vmem [shape: f32[1,4], index: 3, kind: input, shape index: {}]   ;;  %s4946_s4 = inlined_call_operand.vmem [shape: f32[1,4], index: 4, kind: input, shape index: {}]   ;;  %s4947_s5 = inlined_call_operand.vmem [shape: f32[2,1024,4], index: 5, kind: output, shape index: {}]  }
   0x1   :  { %s3665_s20 = smov 0   ;;  %s3667_s21 = smov 0  }
   0x2   :  { %s3669_s22 = smov 0  }
   0x3 LB: > { %s24_s23 = sadd.s32 1, %s3621_s20  ;;  %s27_s24 = sadd.s32 1, %s3625_s21  ;;  %s3629_s22 = sphi %s3669_s22, %s15_s22   ;;  %s3625_s21 = sphi %s3667_s21, %s5048_s21   ;;  %s3621_s20 = sphi %s3665_s20, %s5047_s20   ;;  %s3617_s19 = sphi %s3663_s19, %s5046_s19   ;;  %s3613_s18 = sphi %s3661_s18, %s5045_s18  }
   0x4   : > { %p25_p0 = scmp.ge.s32.totalorder %s24_s23, 4  ;;  %p3036_p1 = scmp.ge.s32.totalorder %s3629_s22, 1 }
   0x5   : > { %p207_p2 = scmp.lt.s32.totalorder %s3629_s22, 9 }
   0x6   : > { %s5050_s23 = smov (%p25_p0, %s24_s23), 0  ;;  %s5052_s24 = smov (!%p25_p0, %s27_s24), %s3625_s21 }
   0x7   : > { %p208_p3 = pnand %p3036_p1, %p207_p2  ;;  %p29_p4 = scmp.ge.s32.totalorder %s5052_s24, 2 }
   0x9   : > { %s5054_s24 = smov (%p29_p4, %s5052_s24), 0  ;;  %211 = sbr.rel (%p208_p3) target bundleno = 741 (0x2e5), region = 40 }
   0xe   : > { %v3041_v0 = vld [vmem:[%s4943_s1 + $0x4] sm:$0xf]  ;;  %vm426_vm0 = vcmask 1043456   ;;  %p243_p5 = scmp.lt.s32.totalorder %s3617_s19, 1  ;;  %p245_p6 = scmp.lt.s32.totalorder %s3613_s18, 3  ;;  %vm329_vm1 = vcmask 31744  }
   0xf   : > { %3540 = vmatpush.msk.msra.mxu1 %vm426_vm0, %v3041_v0  ;;  %3541 = vmatpush.msk.msra.mxu2 %vm426_vm0, %v3041_v0  ;;  %v3108_v1 = vld [vmem:[%s4943_s1 + $0x8] sm:$0xf]  ;;  %v3174_v2 = vld [vmem:[%s4943_s1 + $0xc] sm:$0xf]  ;;  %v294_v3 = vld [vmem:[%s4943_s1] sm:$0xf] }
  0x10   : > { %s5056_s19 = smov (!%p243_p5, %s3617_s19), 1  ;;  %3542 = vmatpush.msk.msra.mxu3 %vm426_vm0, %v3041_v0  ;;  %v3240_v4 = vld [vmem:[%s4943_s1 + $0x10] sm:$0xf]  ;;  %3042 = vmatpush.msk.msra.mxu0 %vm426_vm0, %v3041_v0  ;;  %v3372_v25 = vld [vmem:[%s4943_s1 + $0x18] sm:$0xf]  ;;  %s3038_s8 = sshll.u32 %s3613_s18, 5 }
  0x11   : > { %3109 = vmatpush.msk.msrb.mxu2 %vm426_vm0, %v3108_v1  ;;  %s246_s10 = scalar_select %p245_p6, %s3613_s18, 3  ;;  %3075 = vmatpush.msk.msrb.mxu1 %vm426_vm0, %v294_v3  ;;  %v3438_v26 = vld [vmem:[%s4943_s1 + $0x1c] sm:$0xf]  ;;  %v3306_v27 = vld [vmem:[%s4943_s1 + $0x14] sm:$0xf] }
  0x12   : > { %3175 = vmatpush.msk.msrb.mxu3 %vm426_vm0, %v3174_v2  ;;  %s3544_s11 = smul.u32 200, %s5056_s19  ;;  %3241 = vmatpush.msk.msrb.mxu0 %vm426_vm0, %v3240_v4  ;;  %v3504_v32 = vld [vmem:[%s4943_s1 + $0x20] sm:$0xf]  ;;  %p255_p7 = scmp.lt.s32.totalorder %s3038_s8, 127 }
  0x13   : > { %s3543_s12 = smul.u32 50, %s246_s10  ;;  %s3039_s10 = sshll.u32 %s5056_s19, 7 }
  0x14   : > { %s5058_s8 = smov (!%p255_p7, %s3038_s8), 127 }
  0x15   : > { %s249_s13 = sadd.s32 %s3544_s11, %s3543_s12  ;;  %s258_s11 = sadd.s32 %s3039_s10, %s5058_s8 }
  0x16   : > { %s3037_s14 = sshll.u32 %s249_s13, 3  ;;  %s3040_s13 = sshll.u32 %s258_s11, 3 }
  0x17   : > { %s3724_s17 = scalar_lea.vmem %s4942_s0, %s3037_s14  ;;  %s4617_s26 = scalar_lea.vmem %s4947_s5, %s3040_s13 }
  0x18   : > { %v3727_v5 = vld [vmem:[%s3724_s17 + $0x51] sm:$0xff]  ;;  %v3730_v6 = vld [vmem:[%s3724_s17 + $0xa1] sm:$0xff]  ;;  %v3744_v9 = vld [vmem:[%s3724_s17 + $0x59] sm:$0xff] }
  0x19   : > { %v3733_v7 = vld [vmem:[%s3724_s17 + $0xf1] sm:$0xff]  ;;  %3051 = vmatmul.msk.f32.vlgmr.msra.gmra.mxu1 %vm329_vm1, %v3727_v5  ;;  %3059 = vmatmul.msk.f32.vlgmr.msra.gmra.mxu2 %vm329_vm1, %v3730_v6  ;;  %v295_v8 = vld [vmem:[%s3724_s17 + $0x1] sm:$0xff]  ;;  %v3747_v10 = vld [vmem:[%s3724_s17 + $0xa9] sm:$0xff] }
  0x1a   : > { %3067 = vmatmul.msk.f32.vlgmr.msra.gmra.mxu3 %vm329_vm1, %v3733_v7  ;;  %3043 = vmatmul.msk.f32.vlgmr.msra.gmra.mxu0 %vm329_vm1, %v295_v8  ;;  %v3750_v11 = vld [vmem:[%s3724_s17 + $0xf9] sm:$0xff]  ;;  %v296_v12 = vld [vmem:[%s3724_s17 + $0x9] sm:$0xff]  ;;  %v3761_v13 = vld [vmem:[%s3724_s17 + $0x61] sm:$0xff] }
  0x1b   : > { %v3764_v14 = vld [vmem:[%s3724_s17 + $0xb1] sm:$0xff]  ;;  %v3767_v15 = vld [vmem:[%s3724_s17 + $0x101] sm:$0xff]  ;;  %v3778_v17 = vld [vmem:[%s3724_s17 + $0x69] sm:$0xff]  ;;  %3373 = vmatpush.msk.msra.mxu2 %vm426_vm0, %v3372_v25  ;;  %3439 = vmatpush.msk.msra.mxu3 %vm426_vm0, %v3438_v26 }
  0x1c   : > { %v297_v16 = vld [vmem:[%s3724_s17 + $0x11] sm:$0xff]  ;;  %v3781_v18 = vld [vmem:[%s3724_s17 + $0xb9] sm:$0xff]  ;;  %v3784_v19 = vld [vmem:[%s3724_s17 + $0x109] sm:$0xff]  ;;  %3307 = vmatpush.msk.msra.mxu1 %vm426_vm0, %v3306_v27  ;;  %3505 = vmatpush.msk.msra.mxu0 %vm426_vm0, %v3504_v32 }
  0x1d   : > { %v298_v20 = vld [vmem:[%s3724_s17 + $0x19] sm:$0xff]  ;;  %v3798_v22 = vld [vmem:[%s3724_s17 + $0xc9] sm:$0xff]  ;;  %v3824_v28 = vld [vmem:[%s3724_s17 + $0x81] sm:$0xff] }
  0x1e   : > { %v3795_v21 = vld [vmem:[%s3724_s17 + $0x79] sm:$0xff]  ;;  %v299_v24 = vld [vmem:[%s3724_s17 + $0x29] sm:$0xff]  ;;  %v3827_v29 = vld [vmem:[%s3724_s17 + $0xd1] sm:$0xff] }
  0x1f   : > { %v3801_v23 = vld [vmem:[%s3724_s17 + $0x119] sm:$0xff]  ;;  %v3830_v30 = vld [vmem:[%s3724_s17 + $0x121] sm:$0xff]  ;;  %v300_v31 = vld [vmem:[%s3724_s17 + $0x31] sm:$0xff] }
  0x20   : > { %v3845_v33 = vld [vmem:[%s3724_s17 + $0x89] sm:$0xff]  ;;  %v3848_v34 = vld [vmem:[%s3724_s17 + $0xd9] sm:$0xff]  ;;  %v3862_v37 = vld [vmem:[%s3724_s17 + $0x91] sm:$0xff] }
  0x21   : > { %3052 = vmatmul.msk.f32.gmra.mxu1 %vm329_vm1, %v3744_v9  ;;  %3060 = vmatmul.msk.f32.gmra.mxu2 %vm329_vm1, %v3747_v10  ;;  %v3851_v35 = vld [vmem:[%s3724_s17 + $0x129] sm:$0xff]  ;;  %v301_v36 = vld [vmem:[%s3724_s17 + $0x39] sm:$0xff]  ;;  %v3865_v38 = vld [vmem:[%s3724_s17 + $0xe1] sm:$0xff] }
  0x22   : > { %3068 = vmatmul.msk.f32.gmra.mxu3 %vm329_vm1, %v3750_v11  ;;  %3044 = vmatmul.msk.f32.gmra.mxu0 %vm329_vm1, %v296_v12  ;;  %v3868_v39 = vld [vmem:[%s3724_s17 + $0x131] sm:$0xff]  ;;  %v302_v40 = vld [vmem:[%s3724_s17 + $0x41] sm:$0xff] }
  0x23   : > { %v262_v41 = vld [vmem:[%s3724_s17] sm:$0xff]  ;;  %v3142_v43 = vld [vmem:[%s3724_s17 + $0x28] sm:$0xff]  ;;  %v3143_v46 = vld [vmem:[%s3724_s17 + $0x30] sm:$0xff] }
  0x24   : > { %v755_v42 = vld [vmem:[%s3724_s17 + $0x2] sm:$0xff]  ;;  %v756_v45 = vld [vmem:[%s3724_s17 + $0xa] sm:$0xff]  ;;  %v757_v48 = vld [vmem:[%s3724_s17 + $0x12] sm:$0xff] }
  0x25   : > { %v263_v44 = vld [vmem:[%s3724_s17 + $0x8] sm:$0xff]  ;;  %v264_v47 = vld [vmem:[%s3724_s17 + $0x10] sm:$0xff]  ;;  %v3144_v49 = vld [vmem:[%s3724_s17 + $0x38] sm:$0xff] }
  0x26   : > { %v265_v50 = vld [vmem:[%s3724_s17 + $0x18] sm:$0xff]  ;;  %v3145_v52 = vld [vmem:[%s3724_s17 + $0x40] sm:$0xff]  ;;  %v3907_v53 = vld [vmem:[%s3724_s17 + $0x2a] sm:$0xff] }
  0x27   : > { %v758_v51 = vld [vmem:[%s3724_s17 + $0x1a] sm:$0xff]  ;;  %v3910_v54 = vld [vmem:[%s3724_s17 + $0x50] sm:$0xff]  ;;  %v3946_v59 = vld [vmem:[%s3724_s17 + $0x42] sm:$0xff] }
  0x28   : > { %v3920_v55 = vld [vmem:[%s3724_s17 + $0x32] sm:$0xff]  ;;  %v3933_v57 = vld [vmem:[%s3724_s17 + $0x3a] sm:$0xff]  ;;  %v3949_v60 = vld [vmem:[%s3724_s17 + $0x68] sm:$0xff] }
  0x29   : > { %3053 = vmatmul.msk.f32.gmra.mxu1 %vm329_vm1, %v3761_v13  ;;  %3061 = vmatmul.msk.f32.gmra.mxu2 %vm329_vm1, %v3764_v14  ;;  %v3923_v56 = vld [vmem:[%s3724_s17 + $0x58] sm:$0xff]  ;;  %v3936_v58 = vld [vmem:[%s3724_s17 + $0x60] sm:$0xff]  ;;  %v4030_v32 = vld [vmem:[%s3724_s17 + $0x90] sm:$0xff] }
  0x2a   : > { %3069 = vmatmul.msk.f32.gmra.mxu3 %vm329_vm1, %v3767_v15  ;;  %3045 = vmatmul.msk.f32.gmra.mxu0 %vm329_vm1, %v297_v16  ;;  %v3961_v62 = vld [vmem:[%s3724_s17 + $0x52] sm:$0xff]  ;;  %v3983_v4 = vld [vmem:[%s3724_s17 + $0x5a] sm:$0xff]  ;;  %4972 = vst [vmem:[#allocation7_spill] sm:$0xff] %v4030_v32 }
  0x2b   : > { %v3964_v63 = vld [vmem:[%s3724_s17 + $0x78] sm:$0xff]  ;;  %v3986_v8 = vld [vmem:[%s3724_s17 + $0x80] sm:$0xff] }
  0x2c   : > { %4968 = vst [vmem:[#allocation3_spill] sm:$0xff] %v3986_v8 }
  0x31   : > { %3054 = vmatmul.msk.f32.gmra.mxu1 %vm329_vm1, %v3778_v17  ;;  %3062 = vmatmul.msk.f32.gmra.mxu2 %vm329_vm1, %v3781_v18 }
  0x32   : > { %3070 = vmatmul.msk.f32.gmra.mxu3 %vm329_vm1, %v3784_v19  ;;  %3046 = vmatmul.msk.f32.gmra.mxu0 %vm329_vm1, %v298_v20 }
  0x39   : > { %3055 = vmatmul.msk.f32.gmra.mxu1 %vm329_vm1, %v3795_v21  ;;  %3063 = vmatmul.msk.f32.gmra.mxu2 %vm329_vm1, %v3798_v22 }
  0x3a   : > { %3071 = vmatmul.msk.f32.gmra.mxu3 %vm329_vm1, %v3801_v23  ;;  %3047 = vmatmul.msk.f32.gmra.mxu0 %vm329_vm1, %v299_v24 }
  0x41   : > { %3056 = vmatmul.msk.f32.gmra.mxu1 %vm329_vm1, %v3824_v28  ;;  %3064 = vmatmul.msk.f32.gmra.mxu2 %vm329_vm1, %v3827_v29 }
  0x42   : > { %3072 = vmatmul.msk.f32.gmra.mxu3 %vm329_vm1, %v3830_v30  ;;  %3048 = vmatmul.msk.f32.gmra.mxu0 %vm329_vm1, %v300_v31 }
  0x49   : > { %3057 = vmatmul.msk.f32.gmra.mxu1 %vm329_vm1, %v3845_v33  ;;  %3065 = vmatmul.msk.f32.gmra.mxu2 %vm329_vm1, %v3848_v34 }
  0x4a   : > { %3073 = vmatmul.msk.f32.gmra.mxu3 %vm329_vm1, %v3851_v35  ;;  %3049 = vmatmul.msk.f32.gmra.mxu0 %vm329_vm1, %v301_v36 }
  0x51   : > { %3058 = vmatmul.msk.f32.gmra.mxu1 %vm329_vm1, %v3862_v37  ;;  %3066 = vmatmul.msk.f32.gmra.mxu2 %vm329_vm1, %v3865_v38 }
  0x52   : > { %3074 = vmatmul.msk.f32.gmra.mxu3 %vm329_vm1, %v3868_v39  ;;  %3050 = vmatmul.msk.f32.gmra.mxu0 %vm329_vm1, %v302_v40 }
  0x59   : > { %3076 = vmatmul.msk.f32.vlgmr.msrb.gmra.mxu1 %vm329_vm1, %v262_v41  ;;  %3110 = vmatmul.msk.f32.vlgmr.msrb.gmra.mxu2 %vm329_vm1, %v755_v42  ;;  %v4049_v42 = vld [vmem:[%s3724_s17 + $0x7a] sm:$0xff] }
  0x5a   : > { %3176 = vmatmul.msk.f32.vlgmr.msrb.gmra.mxu3 %vm329_vm1, %v3142_v43  ;;  %3242 = vmatmul.msk.f32.vlgmr.msrb.gmra.mxu0 %vm329_vm1, %v299_v24  ;;  %v4008_v24 = vld [vmem:[%s3724_s17 + $0x88] sm:$0xff]  ;;  %4974 = vst [vmem:[#allocation9_spill] sm:$0xff] %v4049_v42 }
  0x5b   : > { %4970 = vst [vmem:[#allocation5_spill] sm:$0xff] %v4008_v24 }
  0x61   : > { %3077 = vmatmul.msk.f32.gmra.mxu1 %vm329_vm1, %v263_v44  ;;  %3111 = vmatmul.msk.f32.gmra.mxu2 %vm329_vm1, %v756_v45 }
  0x62   : > { %3177 = vmatmul.msk.f32.gmra.mxu3 %vm329_vm1, %v3143_v46  ;;  %3243 = vmatmul.msk.f32.gmra.mxu0 %vm329_vm1, %v300_v31  ;;  %v4027_v31 = vld [vmem:[%s3724_s17 + $0x6a] sm:$0xff] }
  0x69   : > { %3078 = vmatmul.msk.f32.gmra.mxu1 %vm329_vm1, %v264_v47  ;;  %3112 = vmatmul.msk.f32.gmra.mxu2 %vm329_vm1, %v757_v48  ;;  %v4071_v47 = vld [vmem:[%s3724_s17 + $0x82] sm:$0xff] }
  0x6a   : > { %3178 = vmatmul.msk.f32.gmra.mxu3 %vm329_vm1, %v3144_v49  ;;  %3244 = vmatmul.msk.f32.gmra.mxu0 %vm329_vm1, %v301_v36  ;;  %4978 = vst [vmem:[#allocation13_spill] sm:$0xff] %v4071_v47  ;;  %v4074_v48 = vld [vmem:[%s3724_s17 + $0xa8] sm:$0xff] }
  0x71   : > { %3079 = vmatmul.msk.f32.gmra.mxu1 %vm329_vm1, %v265_v50  ;;  %3113 = vmatmul.msk.f32.gmra.mxu2 %vm329_vm1, %v758_v51 }
  0x72   : > { %3179 = vmatmul.msk.f32.gmra.mxu3 %vm329_vm1, %v3145_v52  ;;  %3245 = vmatmul.msk.f32.gmra.mxu0 %vm329_vm1, %v302_v40 }
  0x79   : > { %3080 = vmatmul.msk.f32.gmra.mxu1 %vm329_vm1, %v3142_v43  ;;  %3114 = vmatmul.msk.f32.gmra.mxu2 %vm329_vm1, %v3907_v53  ;;  %v4052_v43 = vld [vmem:[%s3724_s17 + $0xa0] sm:$0xff] }
  0x7a   : > { %3180 = vmatmul.msk.f32.gmra.mxu3 %vm329_vm1, %v3910_v54  ;;  %3246 = vmatmul.msk.f32.gmra.mxu0 %vm329_vm1, %v3727_v5  ;;  %4975 = vst [vmem:[#allocation10_spill] sm:$0xff] %v4052_v43 }
  0x81   : > { %3081 = vmatmul.msk.f32.gmra.mxu1 %vm329_vm1, %v3143_v46  ;;  %3115 = vmatmul.msk.f32.gmra.mxu2 %vm329_vm1, %v3920_v55 }
  0x82   : > { %3181 = vmatmul.msk.f32.gmra.mxu3 %vm329_vm1, %v3923_v56  ;;  %3247 = vmatmul.msk.f32.gmra.mxu0 %vm329_vm1, %v3744_v9 }
  0x89   : > { %3082 = vmatmul.msk.f32.gmra.mxu1 %vm329_vm1, %v3144_v49  ;;  %3116 = vmatmul.msk.f32.gmra.mxu2 %vm329_vm1, %v3933_v57 }
  0x8a   : > { %3182 = vmatmul.msk.f32.gmra.mxu3 %vm329_vm1, %v3936_v58  ;;  %3248 = vmatmul.msk.f32.gmra.mxu0 %vm329_vm1, %v3761_v13 }
  0x91   : > { %3083 = vmatmul.msk.f32.gmra.mxu1 %vm329_vm1, %v3145_v52  ;;  %3117 = vmatmul.msk.f32.gmra.mxu2 %vm329_vm1, %v3946_v59  ;;  %v4093_v52 = vld [vmem:[%s3724_s17 + $0x8a] sm:$0xff] }
  0x92   : > { %3183 = vmatmul.msk.f32.gmra.mxu3 %vm329_vm1, %v3949_v60  ;;  %3249 = vmatmul.msk.f32.gmra.mxu0 %vm329_vm1, %v3778_v17  ;;  %4981 = vst [vmem:[#allocation16_spill] sm:$0xff] %v4093_v52 }
  0x96   : > { %v3958_v61 = vpop.f32.mrf.mxu1 }
  0x97   : > { %v3966_v0 = vpop.f32.mrf.mxu0 }
  0x99   : > { %3084 = vmatmul.msk.f32.gmra.mxu1 %vm329_vm1, %v3910_v54  ;;  %3118 = vmatmul.msk.f32.gmra.mxu2 %vm329_vm1, %v3961_v62 }
  0x9a   : > { %3184 = vmatmul.msk.f32.gmra.mxu3 %vm329_vm1, %v3964_v63  ;;  %3250 = vmatmul.msk.f32.gmra.mxu0 %vm329_vm1, %v3795_v21  ;;  %v4005_v21 = vld [vmem:[%s3724_s17 + $0x62] sm:$0xff] }
  0x9c   : > { %v3976_v1 = vpop.f32.mrf.mxu2 }
  0x9d   : > { %v3978_v2 = vpop.f32.mrf.mxu3 }
  0x9e   : > { %4967 = vst [vmem:[#allocation2_spill] sm:$0xff] %v3978_v2  ;;  %v3980_v3 = vpop.f32.mrf.mxu1  ;;  %v4118_v2 = vld [vmem:[%s3724_s17 + $0xb8] sm:$0xff] }
  0x9f   : > { %v3988_v12 = vpop.f32.mrf.mxu0 }
  0xa1   : > { %3085 = vmatmul.msk.f32.gmra.mxu1 %vm329_vm1, %v3923_v56  ;;  %3119 = vmatmul.msk.f32.gmra.mxu2 %vm329_vm1, %v3983_v4 }
  0xa2   : > { %3185 = vmatmul.msk.f32.gmra.mxu3 %vm329_vm1, %v3986_v8  ;;  %3251 = vmatmul.msk.f32.gmra.mxu0 %vm329_vm1, %v3824_v28 }
  0xa4   : > { %v3998_v16 = vpop.f32.mrf.mxu2 }
  0xa5   : > { %v4000_v17 = vpop.f32.mrf.mxu3 }
  0xa6   : > { %4969 = vst [vmem:[#allocation4_spill] sm:$0xff] %v4000_v17  ;;  %v4002_v20 = vpop.f32.mrf.mxu1  ;;  %v4115_v17 = vld [vmem:[%s3724_s17 + $0x92] sm:$0xff] }
  0xa7   : > { %v4010_v25 = vpop.f32.mrf.mxu0  ;;  %4984 = vst [vmem:[#allocation19_spill] sm:$0xff] %v4115_v17 }
  0xa9   : > { %3086 = vmatmul.msk.f32.gmra.mxu1 %vm329_vm1, %v3936_v58  ;;  %3120 = vmatmul.msk.f32.gmra.mxu2 %vm329_vm1, %v4005_v21 }
  0xaa   : > { %3186 = vmatmul.msk.f32.gmra.mxu3 %vm329_vm1, %v4008_v24  ;;  %3252 = vmatmul.msk.f32.gmra.mxu0 %vm329_vm1, %v3845_v33 }
  0xac   : > { %v4020_v26 = vpop.f32.mrf.mxu2 }
  0xad   : > { %v4022_v27 = vpop.f32.mrf.mxu3 }
  0xae   : > { %4971 = vst [vmem:[#allocation6_spill] sm:$0xff] %v4022_v27  ;;  %v4024_v28 = vpop.f32.mrf.mxu1 }
  0xaf   : > { %v4032_v36 = vpop.f32.mrf.mxu0 }
  0xb1   : > { %3087 = vmatmul.msk.f32.gmra.mxu1 %vm329_vm1, %v3949_v60  ;;  %3121 = vmatmul.msk.f32.gmra.mxu2 %vm329_vm1, %v4027_v31 }
  0xb2   : > { %3187 = vmatmul.msk.f32.gmra.mxu3 %vm329_vm1, %v4030_v32  ;;  %3253 = vmatmul.msk.f32.gmra.mxu0 %vm329_vm1, %v3862_v37 }
  0xb4   : > { %v4042_v33 = vpop.f32.mrf.mxu2 }
  0xb5   : > { %v4044_v40 = vpop.f32.mrf.mxu3 }
  0xb6   : > { %4973 = vst [vmem:[#allocation8_spill] sm:$0xff] %v4044_v40  ;;  %v4046_v41 = vpop.f32.mrf.mxu1 }
  0xb7   : > { %v4054_v44 = vpop.f32.mrf.mxu0 }
  0xb9   : > { %3088 = vmatmul.msk.f32.gmra.mxu1 %vm329_vm1, %v3964_v63  ;;  %3122 = vmatmul.msk.f32.gmra.mxu2 %vm329_vm1, %v4049_v42 }
  0xba   : > { %3188 = vmatmul.msk.f32.gmra.mxu3 %vm329_vm1, %v4052_v43  ;;  %3254 = vmatmul.msk.f32.gmra.mxu0 %vm329_vm1, %v3730_v6 }
  0xbc   : > { %v4064_v37 = vpop.f32.mrf.mxu2 }
  0xbd   : > { %4976 = vst [vmem:[#allocation11_spill] sm:$0xff] %v4064_v37  ;;  %v4066_v45 = vpop.f32.mrf.mxu3  ;;  %v4153_v37 = vld [vmem:[%s3724_s17 + $0xd0] sm:$0xff] }
  0xbe   : > { %4977 = vst [vmem:[#allocation12_spill] sm:$0xff] %v4066_v45  ;;  %v4068_v46 = vpop.f32.mrf.mxu1  ;;  %v4096_v45 = vld [vmem:[%s3724_s17 + $0xb0] sm:$0xff] }
  0xbf   : > { %v4076_v49 = vpop.f32.mrf.mxu0 }
  0xc1   : > { %3089 = vmatmul.msk.f32.gmra.mxu1 %vm329_vm1, %v3986_v8  ;;  %3123 = vmatmul.msk.f32.gmra.mxu2 %vm329_vm1, %v4071_v47  ;;  %v4150_v8 = vld [vmem:[%s3724_s17 + $0xaa] sm:$0xff] }
  0xc2   : > { %3189 = vmatmul.msk.f32.gmra.mxu3 %vm329_vm1, %v4074_v48  ;;  %3255 = vmatmul.msk.f32.gmra.mxu0 %vm329_vm1, %v3747_v10 }
  0xc4   : > { %v4086_v6 = vpop.f32.mrf.mxu2 }
  0xc5   : > { %4979 = vst [vmem:[#allocation14_spill] sm:$0xff] %v4086_v6  ;;  %v4088_v50 = vpop.f32.mrf.mxu3  ;;  %v4138_v6 = vld [vmem:[%s3724_s17 + $0xc8] sm:$0xff] }
  0xc6   : > { %4980 = vst [vmem:[#allocation15_spill] sm:$0xff] %v4088_v50  ;;  %v4090_v51 = vpop.f32.mrf.mxu1 }
  0xc7   : > { %v4098_v40 = vpop.f32.mrf.mxu0 }
  0xc9   : > { %3090 = vmatmul.msk.f32.gmra.mxu1 %vm329_vm1, %v4008_v24  ;;  %3124 = vmatmul.msk.f32.gmra.mxu2 %vm329_vm1, %v4093_v52  ;;  %v4135_v52 = vld [vmem:[%s3724_s17 + $0xa2] sm:$0xff] }
  0xca   : > { %3190 = vmatmul.msk.f32.gmra.mxu3 %vm329_vm1, %v4096_v45  ;;  %3256 = vmatmul.msk.f32.gmra.mxu0 %vm329_vm1, %v3764_v14  ;;  %4987 = vst [vmem:[#allocation22_spill] sm:$0xff] %v4135_v52 }
  0xcc   : > { %v4108_v10 = vpop.f32.mrf.mxu2 }
  0xcd   : > { %4982 = vst [vmem:[#allocation17_spill] sm:$0xff] %v4108_v10  ;;  %v4110_v50 = vpop.f32.mrf.mxu3 }
  0xce   : > { %4983 = vst [vmem:[#allocation18_spill] sm:$0xff] %v4110_v50  ;;  %v4112_v27 = vpop.f32.mrf.mxu1 }
  0xcf   : > { %v4120_v24 = vpop.f32.mrf.mxu0 }
  0xd1   : > { %3091 = vmatmul.msk.f32.gmra.mxu1 %vm329_vm1, %v4030_v32  ;;  %3125 = vmatmul.msk.f32.gmra.mxu2 %vm329_vm1, %v4115_v17 }
  0xd2   : > { %3191 = vmatmul.msk.f32.gmra.mxu3 %vm329_vm1, %v4118_v2  ;;  %3257 = vmatmul.msk.f32.gmra.mxu0 %vm329_vm1, %v3781_v18 }
  0xd4   : > { %v4130_v14 = vpop.f32.mrf.mxu2 }
  0xd5   : > { %4985 = vst [vmem:[#allocation20_spill] sm:$0xff] %v4130_v14  ;;  %v4132_v50 = vpop.f32.mrf.mxu3 }
  0xd6   : > { %4986 = vst [vmem:[#allocation21_spill] sm:$0xff] %v4132_v50  ;;  %v659_v10 = vpop.f32.mrf.mxu1 }
  0xd7   : > { %v1462_v32 = vpop.f32.mrf.mxu0  ;;  %v660_v18 = vadd.f32 %v659_v10, %v3966_v0 }
  0xd9   : > { %3092 = vmatmul.msk.f32.gmra.mxu1 %vm329_vm1, %v4052_v43  ;;  %3126 = vmatmul.msk.f32.gmra.mxu2 %vm329_vm1, %v4135_v52 }
  0xda   : > { %3192 = vmatmul.msk.f32.gmra.mxu3 %vm329_vm1, %v4138_v6  ;;  %3258 = vmatmul.msk.f32.gmra.mxu0 %vm329_vm1, %v3798_v22 }
  0xdc   : > { %v905_v50 = vpop.f32.mrf.mxu2 }
  0xdd   : > { %v1001_v14 = vadd.f32 %v905_v50, %v660_v18  ;;  %v1184_v17 = vpop.f32.mrf.mxu3 }
  0xde   : > { %v662_v47 = vpop.f32.mrf.mxu1 }
  0xdf   : > { %v1280_v43 = vadd.f32 %v1184_v17, %v1001_v14  ;;  %v1465_v52 = vpop.f32.mrf.mxu0  ;;  %v663_v22 = vadd.f32 %v662_v47, %v3988_v12  ;;  %v4170_v14 = vld [vmem:[%s3724_s17 + $0xd8] sm:$0xff] }
  0xe1   : > { %v4155_v42 = vadd.f32 %v1462_v32, %v1280_v43  ;;  %3093 = vmatmul.msk.f32.gmra.mxu1 %vm329_vm1, %v4074_v48  ;;  %3127 = vmatmul.msk.f32.gmra.mxu2 %vm329_vm1, %v4150_v8  ;;  %v4167_v43 = vld [vmem:[%s3724_s17 + $0xb2] sm:$0xff] }
  0xe2   : > { %3193 = vmatmul.msk.f32.gmra.mxu3 %vm329_vm1, %v4153_v37  ;;  %3259 = vmatmul.msk.f32.gmra.mxu0 %vm329_vm1, %v3827_v29 }
  0xe3   : > { %4988 = vst [vmem:[#allocation23_spill] sm:$0xff] %v4155_v42 }
  0xe4   : > { %v908_v0 = vpop.f32.mrf.mxu2 }
  0xe5   : > { %v1002_v17 = vadd.f32 %v908_v0, %v663_v22  ;;  %v1187_v50 = vpop.f32.mrf.mxu3  ;;  %v4184_v0 = vld [vmem:[%s3724_s17 + $0xba] sm:$0xff] }
  0xe6   : > { %v665_v32 = vpop.f32.mrf.mxu1 }
  0xe7   : > { %v1281_v10 = vadd.f32 %v1187_v50, %v1002_v17  ;;  %v1468_v18 = vpop.f32.mrf.mxu0  ;;  %v666_v29 = vadd.f32 %v665_v32, %v4010_v25  ;;  %v4187_v50 = vld [vmem:[%s3724_s17 + $0xe0] sm:$0xff] }
  0xe9   : > { %v4172_v42 = vadd.f32 %v1465_v52, %v1281_v10  ;;  %3094 = vmatmul.msk.f32.gmra.mxu1 %vm329_vm1, %v4096_v45  ;;  %3128 = vmatmul.msk.f32.gmra.mxu2 %vm329_vm1, %v4167_v43 }
  0xea   : > { %3194 = vmatmul.msk.f32.gmra.mxu3 %vm329_vm1, %v4170_v14  ;;  %3260 = vmatmul.msk.f32.gmra.mxu0 %vm329_vm1, %v3848_v34 }
  0xeb   : > { %4989 = vst [vmem:[#allocation24_spill] sm:$0xff] %v4172_v42 }
  0xec   : > { %v911_v12 = vpop.f32.mrf.mxu2 }
  0xed   : > { %v1003_v47 = vadd.f32 %v911_v12, %v666_v29  ;;  %v1190_v22 = vpop.f32.mrf.mxu3  ;;  %v4201_v12 = vld [vmem:[%s3724_s17 + $0xca] sm:$0xff] }
  0xee   : > { %v668_v52 = vpop.f32.mrf.mxu1 }
  0xef   : > { %v1282_v17 = vadd.f32 %v1190_v22, %v1003_v47  ;;  %v1471_v10 = vpop.f32.mrf.mxu0  ;;  %v669_v34 = vadd.f32 %v668_v52, %v4032_v36  ;;  %v4204_v22 = vld [vmem:[%s3724_s17 + $0xf0] sm:$0xff] }
  0xf1   : > { %v4189_v42 = vadd.f32 %v1468_v18, %v1282_v17  ;;  %3095 = vmatmul.msk.f32.gmra.mxu1 %vm329_vm1, %v4118_v2  ;;  %3129 = vmatmul.msk.f32.gmra.mxu2 %vm329_vm1, %v4184_v0 }
  0xf2   : > { %3195 = vmatmul.msk.f32.gmra.mxu3 %vm329_vm1, %v4187_v50  ;;  %3261 = vmatmul.msk.f32.gmra.mxu0 %vm329_vm1, %v3865_v38 }
  0xf3   : > { %4990 = vst [vmem:[#allocation25_spill] sm:$0xff] %v4189_v42 }
  0xf4   : > { %v914_v25 = vpop.f32.mrf.mxu2 }
  0xf5   : > { %v1004_v32 = vadd.f32 %v914_v25, %v669_v34  ;;  %v1193_v29 = vpop.f32.mrf.mxu3  ;;  %v4218_v25 = vld [vmem:[%s3724_s17 + $0xd2] sm:$0xff] }
  0xf6   : > { %v671_v18 = vpop.f32.mrf.mxu1 }
  0xf7   : > { %v1283_v47 = vadd.f32 %v1193_v29, %v1004_v32  ;;  %v1474_v17 = vpop.f32.mrf.mxu0  ;;  %v672_v38 = vadd.f32 %v671_v18, %v4054_v44  ;;  %v4221_v29 = vld [vmem:[%s3724_s17 + $0xf8] sm:$0xff] }
  0xf9   : > { %v4206_v42 = vadd.f32 %v1471_v10, %v1283_v47  ;;  %3096 = vmatmul.msk.f32.gmra.mxu1 %vm329_vm1, %v4138_v6  ;;  %3130 = vmatmul.msk.f32.gmra.mxu2 %vm329_vm1, %v4201_v12 }
  0xfa   : > { %3196 = vmatmul.msk.f32.gmra.mxu3 %vm329_vm1, %v4204_v22  ;;  %3262 = vmatmul.msk.f32.gmra.mxu0 %vm329_vm1, %v3733_v7 }
  0xfb   : > { %4991 = vst [vmem:[#allocation26_spill] sm:$0xff] %v4206_v42 }
  0xfc   : > { %v917_v36 = vpop.f32.mrf.mxu2 }
  0xfd   : > { %v1005_v52 = vadd.f32 %v917_v36, %v672_v38  ;;  %v1196_v34 = vpop.f32.mrf.mxu3  ;;  %v4235_v36 = vld [vmem:[%s3724_s17 + $0xda] sm:$0xff] }
  0xfe   : > { %v674_v10 = vpop.f32.mrf.mxu1 }
  0xff   : > { %v1284_v32 = vadd.f32 %v1196_v34, %v1005_v52  ;;  %v1477_v47 = vpop.f32.mrf.mxu0  ;;  %v675_v7 = vadd.f32 %v674_v10, %v4076_v49  ;;  %v4238_v34 = vld [vmem:[%s3724_s17 + $0x100] sm:$0xff] }
 0x101   : > { %v4223_v42 = vadd.f32 %v1474_v17, %v1284_v32  ;;  %3097 = vmatmul.msk.f32.gmra.mxu1 %vm329_vm1, %v4153_v37  ;;  %3131 = vmatmul.msk.f32.gmra.mxu2 %vm329_vm1, %v4218_v25 }
 0x102   : > { %3197 = vmatmul.msk.f32.gmra.mxu3 %vm329_vm1, %v4221_v29  ;;  %3263 = vmatmul.msk.f32.gmra.mxu0 %vm329_vm1, %v3750_v11 }
 0x103   : > { %4992 = vst [vmem:[#allocation27_spill] sm:$0xff] %v4223_v42 }
 0x104   : > { %v920_v44 = vpop.f32.mrf.mxu2 }
 0x105   : > { %v1006_v18 = vadd.f32 %v920_v44, %v675_v7  ;;  %v1199_v38 = vpop.f32.mrf.mxu3  ;;  %v4252_v44 = vld [vmem:[%s3724_s17 + $0xe2] sm:$0xff] }
 0x106   : > { %v677_v17 = vpop.f32.mrf.mxu1 }
 0x107   : > { %v1285_v52 = vadd.f32 %v1199_v38, %v1006_v18  ;;  %v1480_v32 = vpop.f32.mrf.mxu0  ;;  %v678_v11 = vadd.f32 %v677_v17, %v4098_v40  ;;  %v4255_v38 = vld [vmem:[%s3724_s17 + $0x108] sm:$0xff] }
 0x109   : > { %v4240_v42 = vadd.f32 %v1477_v47, %v1285_v52  ;;  %3098 = vmatmul.msk.f32.gmra.mxu1 %vm329_vm1, %v4170_v14  ;;  %3132 = vmatmul.msk.f32.gmra.mxu2 %vm329_vm1, %v4235_v36 }
 0x10a   : > { %3198 = vmatmul.msk.f32.gmra.mxu3 %vm329_vm1, %v4238_v34  ;;  %3264 = vmatmul.msk.f32.gmra.mxu0 %vm329_vm1, %v3767_v15 }
 0x10b   : > { %4993 = vst [vmem:[#allocation28_spill] sm:$0xff] %v4240_v42 }
 0x10c   : > { %v923_v49 = vpop.f32.mrf.mxu2 }
 0x10d   : > { %v1007_v10 = vadd.f32 %v923_v49, %v678_v11  ;;  %v1202_v7 = vpop.f32.mrf.mxu3  ;;  %v4269_v49 = vld [vmem:[%s3724_s17 + $0xf2] sm:$0xff] }
 0x10e   : > { %v680_v47 = vpop.f32.mrf.mxu1 }
 0x10f   : > { %v1286_v18 = vadd.f32 %v1202_v7, %v1007_v10  ;;  %v1483_v52 = vpop.f32.mrf.mxu0  ;;  %v681_v15 = vadd.f32 %v680_v47, %v4120_v24  ;;  %v4272_v7 = vld [vmem:[%s3724_s17 + $0x118] sm:$0xff] }
 0x111   : > { %v4257_v42 = vadd.f32 %v1480_v32, %v1286_v18  ;;  %3099 = vmatmul.msk.f32.gmra.mxu1 %vm329_vm1, %v4187_v50  ;;  %3133 = vmatmul.msk.f32.gmra.mxu2 %vm329_vm1, %v4252_v44 }
 0x112   : > { %3199 = vmatmul.msk.f32.gmra.mxu3 %vm329_vm1, %v4255_v38  ;;  %3265 = vmatmul.msk.f32.gmra.mxu0 %vm329_vm1, %v3784_v19 }
 0x113   : > { %4994 = vst [vmem:[#allocation29_spill] sm:$0xff] %v4257_v42 }
 0x114   : > { %v926_v40 = vpop.f32.mrf.mxu2 }
 0x115   : > { %v1008_v17 = vadd.f32 %v926_v40, %v681_v15  ;;  %v1205_v11 = vpop.f32.mrf.mxu3  ;;  %v4286_v40 = vld [vmem:[%s3724_s17 + $0xfa] sm:$0xff] }
 0x116   : > { %v683_v32 = vpop.f32.mrf.mxu1 }
 0x117   : > { %v1287_v10 = vadd.f32 %v1205_v11, %v1008_v17  ;;  %v1486_v18 = vpop.f32.mrf.mxu0  ;;  %v684_v19 = vadd.f32 %v683_v32, %v3958_v61  ;;  %v4289_v11 = vld [vmem:[%s3724_s17 + $0x120] sm:$0xff] }
 0x119   : > { %v4274_v42 = vadd.f32 %v1483_v52, %v1287_v10  ;;  %3100 = vmatmul.msk.f32.gmra.mxu1 %vm329_vm1, %v4204_v22  ;;  %3134 = vmatmul.msk.f32.gmra.mxu2 %vm329_vm1, %v4269_v49 }
 0x11a   : > { %3200 = vmatmul.msk.f32.gmra.mxu3 %vm329_vm1, %v4272_v7  ;;  %3266 = vmatmul.msk.f32.gmra.mxu0 %vm329_vm1, %v3801_v23 }
 0x11b   : > { %4995 = vst [vmem:[#allocation30_spill] sm:$0xff] %v4274_v42 }
 0x11c   : > { %v929_v24 = vpop.f32.mrf.mxu2 }
 0x11d   : > { %v1009_v47 = vadd.f32 %v929_v24, %v684_v19  ;;  %v1208_v15 = vpop.f32.mrf.mxu3  ;;  %v4303_v24 = vld [vmem:[%s3724_s17 + $0x102] sm:$0xff] }
 0x11e   : > { %v686_v52 = vpop.f32.mrf.mxu1 }
 0x11f   : > { %v1288_v17 = vadd.f32 %v1208_v15, %v1009_v47  ;;  %v1489_v10 = vpop.f32.mrf.mxu0  ;;  %v687_v23 = vadd.f32 %v686_v52, %v3980_v3  ;;  %v4306_v15 = vld [vmem:[%s3724_s17 + $0x128] sm:$0xff] }
 0x121   : > { %v4291_v42 = vadd.f32 %v1486_v18, %v1288_v17  ;;  %3101 = vmatmul.msk.f32.gmra.mxu1 %vm329_vm1, %v4221_v29  ;;  %3135 = vmatmul.msk.f32.gmra.mxu2 %vm329_vm1, %v4286_v40 }
 0x122   : > { %3201 = vmatmul.msk.f32.gmra.mxu3 %vm329_vm1, %v4289_v11  ;;  %3267 = vmatmul.msk.f32.gmra.mxu0 %vm329_vm1, %v3830_v30 }
 0x123   : > { %4996 = vst [vmem:[#allocation31_spill] sm:$0xff] %v4291_v42 }
 0x124   : > { %v932_v61 = vpop.f32.mrf.mxu2 }
 0x125   : > { %v1010_v32 = vadd.f32 %v932_v61, %v687_v23  ;;  %v1211_v19 = vpop.f32.mrf.mxu3  ;;  %v4320_v61 = vld [vmem:[%s3724_s17 + $0x10a] sm:$0xff] }
 0x126   : > { %v689_v18 = vpop.f32.mrf.mxu1  ;;  %4998 = vst [vmem:[#allocation33_spill] sm:$0xff] %v4320_v61 }
 0x127   : > { %v1289_v47 = vadd.f32 %v1211_v19, %v1010_v32  ;;  %v1492_v17 = vpop.f32.mrf.mxu0  ;;  %v690_v30 = vadd.f32 %v689_v18, %v4002_v20  ;;  %v4323_v19 = vld [vmem:[%s3724_s17 + $0x130] sm:$0xff] }
 0x129   : > { %v4308_v42 = vadd.f32 %v1489_v10, %v1289_v47  ;;  %3102 = vmatmul.msk.f32.gmra.mxu1 %vm329_vm1, %v4238_v34  ;;  %3136 = vmatmul.msk.f32.gmra.mxu2 %vm329_vm1, %v4303_v24 }
 0x12a   : > { %3202 = vmatmul.msk.f32.gmra.mxu3 %vm329_vm1, %v4306_v15  ;;  %3268 = vmatmul.msk.f32.gmra.mxu0 %vm329_vm1, %v3851_v35 }
 0x12b   : > { %4997 = vst [vmem:[#allocation32_spill] sm:$0xff] %v4308_v42 }
 0x12c   : > { %v935_v3 = vpop.f32.mrf.mxu2 }
 0x12d   : > { %v1011_v52 = vadd.f32 %v935_v3, %v690_v30  ;;  %v1214_v23 = vpop.f32.mrf.mxu3 }
 0x12e   : > { %v692_v10 = vpop.f32.mrf.mxu1 }
 0x12f   : > { %v1290_v32 = vadd.f32 %v1214_v23, %v1011_v52  ;;  %v1495_v47 = vpop.f32.mrf.mxu0  ;;  %v693_v35 = vadd.f32 %v692_v10, %v4024_v28  ;;  %v3170_v23 = vld [vmem:[%s3724_s17 + $0x140] sm:$0xff] }
 0x131   : > { %v4325_v42 = vadd.f32 %v1492_v17, %v1290_v32  ;;  %3103 = vmatmul.msk.f32.gmra.mxu1 %vm329_vm1, %v4255_v38  ;;  %3137 = vmatmul.msk.f32.gmra.mxu2 %vm329_vm1, %v4320_v61  ;;  %v4337_v17 = vld [vmem:[%s3724_s17 + $0x11a] sm:$0xff] }
 0x132   : > { %3203 = vmatmul.msk.f32.gmra.mxu3 %vm329_vm1, %v4323_v19  ;;  %3269 = vmatmul.msk.f32.gmra.mxu0 %vm329_vm1, %v3868_v39 }
 0x133   : > { %4999 = vst [vmem:[#allocation34_spill] sm:$0xff] %v4325_v42  ;;  %v4341_v42 = vld [vmem:[%s3724_s17 + $0x141] sm:$0xff] }
 0x134   : > { %v938_v20 = vpop.f32.mrf.mxu2  ;;  %5000 = vst [vmem:[#allocation35_spill] sm:$0xff] %v4341_v42 }
 0x135   : > { %v1012_v18 = vadd.f32 %v938_v20, %v693_v35  ;;  %v1217_v30 = vpop.f32.mrf.mxu3 }
 0x136   : > { %v695_v3 = vpop.f32.mrf.mxu1 }
 0x137   : > { %v1291_v52 = vadd.f32 %v1217_v30, %v1012_v18  ;;  %v1498_v32 = vpop.f32.mrf.mxu0  ;;  %v696_v39 = vadd.f32 %v695_v3, %v4046_v41  ;;  %v3171_v30 = vld [vmem:[%s3724_s17 + $0x148] sm:$0xff] }
 0x139   : > { %v4343_v61 = vadd.f32 %v1495_v47, %v1291_v52  ;;  %3104 = vmatmul.msk.f32.gmra.mxu1 %vm329_vm1, %v4272_v7  ;;  %3138 = vmatmul.msk.f32.gmra.mxu2 %vm329_vm1, %v4337_v17  ;;  %v4354_v47 = vld [vmem:[%s3724_s17 + $0x122] sm:$0xff] }
 0x13a   : > { %3204 = vmatmul.msk.f32.gmra.mxu3 %vm329_vm1, %v3170_v23  ;;  %3270 = vmatmul.msk.f32.gmra.mxu0 %vm329_vm1, %v4341_v42  ;;  %5002 = vst [vmem:[#allocation37_spill] sm:$0xff] %v4354_v47  ;;  %v3238_v42 = vld [vmem:[%s3724_s17 + $0x151] sm:$0xff] }
 0x13b   : > { %5001 = vst [vmem:[#allocation36_spill] sm:$0xff] %v4343_v61  ;;  %v4358_v61 = vld [vmem:[%s3724_s17 + $0x149] sm:$0xff] }
 0x13c   : > { %v941_v28 = vpop.f32.mrf.mxu2  ;;  %5003 = vst [vmem:[#allocation38_spill] sm:$0xff] %v4358_v61 }
 0x13d   : > { %v1013_v10 = vadd.f32 %v941_v28, %v696_v39  ;;  %v1220_v35 = vpop.f32.mrf.mxu3 }
 0x13e   : > { %v698_v20 = vpop.f32.mrf.mxu1 }
 0x13f   : > { %v1292_v18 = vadd.f32 %v1220_v35, %v1013_v10  ;;  %v1501_v52 = vpop.f32.mrf.mxu0  ;;  %v699_v41 = vadd.f32 %v698_v20, %v4068_v46 }
 0x141   : > { %v4360_v23 = vadd.f32 %v1498_v32, %v1292_v18  ;;  %3105 = vmatmul.msk.f32.gmra.mxu1 %vm329_vm1, %v4289_v11  ;;  %3139 = vmatmul.msk.f32.gmra.mxu2 %vm329_vm1, %v4354_v47  ;;  %v4371_v32 = vld [vmem:[%s3724_s17 + $0x12a] sm:$0xff] }
 0x142   : > { %3205 = vmatmul.msk.f32.gmra.mxu3 %vm329_vm1, %v3171_v30  ;;  %3271 = vmatmul.msk.f32.gmra.mxu0 %vm329_vm1, %v4358_v61  ;;  %v3172_v18 = vld [vmem:[%s3724_s17 + $0x150] sm:$0xff] }
 0x143   : > { %5004 = vst [vmem:[#allocation39_spill] sm:$0xff] %v4360_v23 }
 0x144   : > { %v944_v3 = vpop.f32.mrf.mxu2 }
 0x145   : > { %v1014_v39 = vadd.f32 %v944_v3, %v699_v41  ;;  %v1223_v28 = vpop.f32.mrf.mxu3 }
 0x146   : > { %v701_v10 = vpop.f32.mrf.mxu1 }
 0x147   : > { %v1293_v35 = vadd.f32 %v1223_v28, %v1014_v39  ;;  %v1504_v23 = vpop.f32.mrf.mxu0  ;;  %v702_v46 = vadd.f32 %v701_v10, %v4090_v51  ;;  %v4385_v39 = vld [vmem:[%s3724_s17 + $0x132] sm:$0xff] }
 0x148   : > { %v3173_v28 = vld [vmem:[%s3724_s17 + $0x158] sm:$0xff] }
 0x149   : > { %v4375_v47 = vadd.f32 %v1501_v52, %v1293_v35  ;;  %3106 = vmatmul.msk.f32.gmra.mxu1 %vm329_vm1, %v4306_v15  ;;  %3140 = vmatmul.msk.f32.gmra.mxu2 %vm329_vm1, %v4371_v32 }
 0x14a   : > { %3206 = vmatmul.msk.f32.gmra.mxu3 %vm329_vm1, %v3172_v18  ;;  %3272 = vmatmul.msk.f32.gmra.mxu0 %vm329_vm1, %v3238_v42 }
 0x14b   : > { %5005 = vst [vmem:[#allocation40_spill] sm:$0xff] %v4375_v47  ;;  %v3239_v47 = vld [vmem:[%s3724_s17 + $0x159] sm:$0xff] }
 0x14c   : > { %v947_v20 = vpop.f32.mrf.mxu2 }
 0x14d   : > { %v1015_v30 = vadd.f32 %v947_v20, %v702_v46  ;;  %v1226_v41 = vpop.f32.mrf.mxu3 }
 0x14e   : > { %v704_v3 = vpop.f32.mrf.mxu1 }
 0x14f   : > { %v1294_v52 = vadd.f32 %v1226_v41, %v1015_v30  ;;  %v1507_v35 = vpop.f32.mrf.mxu0  ;;  %v705_v42 = vadd.f32 %v704_v3, %v4112_v27 }
 0x151   : > { %v4389_v61 = vadd.f32 %v1504_v23, %v1294_v52  ;;  %3107 = vmatmul.msk.f32.gmra.mxu1 %vm329_vm1, %v4323_v19  ;;  %3141 = vmatmul.msk.f32.gmra.mxu2 %vm329_vm1, %v4385_v39 }
 0x152   : > { %3207 = vmatmul.msk.f32.gmra.mxu3 %vm329_vm1, %v3173_v28  ;;  %3273 = vmatmul.msk.f32.gmra.mxu0 %vm329_vm1, %v3239_v47 }
 0x154   : > { %v950_v51 = vpop.f32.mrf.mxu2 }
 0x155   : > { %v1016_v10 = vadd.f32 %v950_v51, %v705_v42  ;;  %v1229_v18 = vpop.f32.mrf.mxu3 }
 0x156   : > { %v707_v46 = vpop.f32.mrf.mxu1 }
 0x157   : > { %v1295_v20 = vadd.f32 %v1229_v18, %v1016_v10  ;;  %v1510_v30 = vpop.f32.mrf.mxu0  ;;  %v708_v27 = vadd.f32 %v707_v46, %v3976_v1 }
 0x159   : > { %v4398_v23 = vadd.f32 %v1507_v35, %v1295_v20  ;;  %3308 = vmatmul.msk.f32.vlgmr.msra.gmra.mxu1 %vm329_vm1, %v3907_v53  ;;  %3374 = vmatmul.msk.f32.vlgmr.msra.gmra.mxu2 %vm329_vm1, %v3910_v54 }
 0x15a   : > { %3440 = vmatmul.msk.f32.vlgmr.msra.gmra.mxu3 %vm329_vm1, %v3727_v5  ;;  %3506 = vmatmul.msk.f32.vlgmr.msra.gmra.mxu0 %vm329_vm1, %v3961_v62 }
 0x15c   : > { %v953_v47 = vpop.f32.mrf.mxu2 }
 0x15d   : > { %v1017_v41 = vadd.f32 %v953_v47, %v708_v27  ;;  %v1232_v3 = vpop.f32.mrf.mxu3  ;;  %v3409_v27 = vld [vmem:[%s3724_s17 + $0x69] sm:$0xff] }
 0x15e   : > { %v710_v52 = vpop.f32.mrf.mxu1 }
 0x15f   : > { %v1296_v28 = vadd.f32 %v1232_v3, %v1017_v41  ;;  %v1513_v35 = vpop.f32.mrf.mxu0  ;;  %v711_v5 = vadd.f32 %v710_v52, %v3998_v16 }
 0x161   : > { %v4409_v42 = vadd.f32 %v1510_v30, %v1296_v28  ;;  %3309 = vmatmul.msk.f32.gmra.mxu1 %vm329_vm1, %v3920_v55  ;;  %3375 = vmatmul.msk.f32.gmra.mxu2 %vm329_vm1, %v3923_v56  ;;  %v3410_v28 = vld [vmem:[%s3724_s17 + $0x79] sm:$0xff] }
 0x162   : > { %3441 = vmatmul.msk.f32.gmra.mxu3 %vm329_vm1, %v3744_v9  ;;  %3507 = vmatmul.msk.f32.gmra.mxu0 %vm329_vm1, %v3983_v4 }
 0x164   : > { %v956_v53 = vpop.f32.mrf.mxu2 }
 0x165   : > { %v1018_v54 = vadd.f32 %v956_v53, %v711_v5  ;;  %v1235_v1 = vpop.f32.mrf.mxu3 }
 0x166   : > { %v713_v51 = vpop.f32.mrf.mxu1 }
 0x167   : > { %v1297_v10 = vadd.f32 %v1235_v1, %v1018_v54  ;;  %v1516_v18 = vpop.f32.mrf.mxu0  ;;  %v714_v9 = vadd.f32 %v713_v51, %v4020_v26 }
 0x169   : > { %v4420_v46 = vadd.f32 %v1513_v35, %v1297_v10  ;;  %3310 = vmatmul.msk.f32.gmra.mxu1 %vm329_vm1, %v3933_v57  ;;  %3376 = vmatmul.msk.f32.gmra.mxu2 %vm329_vm1, %v3936_v58 }
 0x16a   : > { %3442 = vmatmul.msk.f32.gmra.mxu3 %vm329_vm1, %v3761_v13  ;;  %3508 = vmatmul.msk.f32.gmra.mxu0 %vm329_vm1, %v4005_v21 }
 0x16c   : > { %v959_v55 = vpop.f32.mrf.mxu2 }
 0x16d   : > { %v1019_v56 = vadd.f32 %v959_v55, %v714_v9  ;;  %v1238_v16 = vpop.f32.mrf.mxu3 }
 0x16e   : > { %v716_v20 = vpop.f32.mrf.mxu1 }
 0x16f   : > { %v1298_v30 = vadd.f32 %v1238_v16, %v1019_v56  ;;  %v1519_v47 = vpop.f32.mrf.mxu0  ;;  %v717_v13 = vadd.f32 %v716_v20, %v4042_v33  ;;  %v5010_v56 = vld [vmem:[#allocation14_spill] sm:$0xff] }
 0x171   : > { %v4432_v57 = vadd.f32 %v1516_v18, %v1298_v30  ;;  %3311 = vmatmul.msk.f32.gmra.mxu1 %vm329_vm1, %v3946_v59  ;;  %3377 = vmatmul.msk.f32.gmra.mxu2 %vm329_vm1, %v3949_v60  ;;  %v5006_v59 = vld [vmem:[#allocation9_spill] sm:$0xff]  ;;  %v5007_v60 = vld [vmem:[#allocation11_spill] sm:$0xff] }
 0x172   : > { %3443 = vmatmul.msk.f32.gmra.mxu3 %vm329_vm1, %v3409_v27  ;;  %3509 = vmatmul.msk.f32.gmra.mxu0 %vm329_vm1, %v4027_v31  ;;  %v3411_v18 = vld [vmem:[%s3724_s17 + $0x81] sm:$0xff] }
 0x174   : > { %v962_v58 = vpop.f32.mrf.mxu2 }
 0x175   : > { %v1020_v26 = vadd.f32 %v962_v58, %v717_v13  ;;  %v1241_v41 = vpop.f32.mrf.mxu3  ;;  %v3412_v58 = vld [vmem:[%s3724_s17 + $0x89] sm:$0xff] }
 0x176   : > { %v719_v3 = vpop.f32.mrf.mxu1 }
 0x177   : > { %v1299_v52 = vadd.f32 %v1241_v41, %v1020_v26  ;;  %v1522_v35 = vpop.f32.mrf.mxu0  ;;  %v720_v33 = vadd.f32 %v719_v3, %v5007_v60  ;;  %v5012_v3 = vld [vmem:[#allocation16_spill] sm:$0xff] }
 0x179   : > { %v4443_v5 = vadd.f32 %v1519_v47, %v1299_v52  ;;  %3312 = vmatmul.msk.f32.gmra.mxu1 %vm329_vm1, %v3961_v62  ;;  %3378 = vmatmul.msk.f32.gmra.mxu2 %vm329_vm1, %v3964_v63  ;;  %v5008_v62 = vld [vmem:[#allocation3_spill] sm:$0xff]  ;;  %v5009_v63 = vld [vmem:[#allocation13_spill] sm:$0xff] }
 0x17a   : > { %3444 = vmatmul.msk.f32.gmra.mxu3 %vm329_vm1, %v3410_v28  ;;  %3510 = vmatmul.msk.f32.gmra.mxu0 %vm329_vm1, %v5006_v59  ;;  %v5013_v52 = vld [vmem:[#allocation17_spill] sm:$0xff] }
 0x17c   : > { %v965_v53 = vpop.f32.mrf.mxu2 }
 0x17d   : > { %v1021_v54 = vadd.f32 %v965_v53, %v720_v33  ;;  %v1244_v1 = vpop.f32.mrf.mxu3 }
 0x17e   : > { %v722_v51 = vpop.f32.mrf.mxu1 }
 0x17f   : > { %v1300_v10 = vadd.f32 %v1244_v1, %v1021_v54  ;;  %v1525_v9 = vpop.f32.mrf.mxu0  ;;  %v723_v16 = vadd.f32 %v722_v51, %v5010_v56  ;;  %v3413_v1 = vld [vmem:[%s3724_s17 + $0x91] sm:$0xff] }
 0x181   : > { %v4454_v55 = vadd.f32 %v1522_v35, %v1300_v10  ;;  %3313 = vmatmul.msk.f32.gmra.mxu1 %vm329_vm1, %v3983_v4  ;;  %3379 = vmatmul.msk.f32.gmra.mxu2 %vm329_vm1, %v5008_v62  ;;  %v5011_v4 = vld [vmem:[#allocation5_spill] sm:$0xff] }
 0x182   : > { %3445 = vmatmul.msk.f32.gmra.mxu3 %vm329_vm1, %v3411_v18  ;;  %3511 = vmatmul.msk.f32.gmra.mxu0 %vm329_vm1, %v5009_v63  ;;  %v5015_v18 = vld [vmem:[#allocation19_spill] sm:$0xff] }
 0x184   : > { %v968_v20 = vpop.f32.mrf.mxu2 }
 0x185   : > { %v1022_v30 = vadd.f32 %v968_v20, %v723_v16  ;;  %v1247_v27 = vpop.f32.mrf.mxu3 }
 0x186   : > { %v725_v47 = vpop.f32.mrf.mxu1 }
 0x187   : > { %v1301_v13 = vadd.f32 %v1247_v27, %v1022_v30  ;;  %v1528_v26 = vpop.f32.mrf.mxu0  ;;  %v726_v28 = vadd.f32 %v725_v47, %v5013_v52  ;;  %v3414_v47 = vld [vmem:[%s3724_s17 + $0xa1] sm:$0xff] }
 0x189   : > { %v4465_v41 = vadd.f32 %v1525_v9, %v1301_v13  ;;  %3314 = vmatmul.msk.f32.gmra.mxu1 %vm329_vm1, %v4005_v21  ;;  %3380 = vmatmul.msk.f32.gmra.mxu2 %vm329_vm1, %v5011_v4  ;;  %v5014_v21 = vld [vmem:[#allocation7_spill] sm:$0xff]  ;;  %v5016_v9 = vld [vmem:[#allocation20_spill] sm:$0xff]  ;;  %v5019_v4 = vld [vmem:[#allocation2_spill] sm:$0xff] }
 0x18a   : > { %3446 = vmatmul.msk.f32.gmra.mxu3 %vm329_vm1, %v3412_v58  ;;  %3512 = vmatmul.msk.f32.gmra.mxu0 %vm329_vm1, %v5012_v3 }
 0x18c   : > { %v971_v35 = vpop.f32.mrf.mxu2 }
 0x18d   : > { %v1023_v60 = vadd.f32 %v971_v35, %v726_v28  ;;  %v1250_v33 = vpop.f32.mrf.mxu3 }
 0x18e   : > { %v728_v53 = vpop.f32.mrf.mxu1 }
 0x18f   : > { %v1302_v54 = vadd.f32 %v1250_v33, %v1023_v60  ;;  %v1531_v51 = vpop.f32.mrf.mxu0  ;;  %v729_v62 = vadd.f32 %v728_v53, %v5016_v9 }
 0x191   : > { %v4476_v10 = vadd.f32 %v1528_v26, %v1302_v54  ;;  %3315 = vmatmul.msk.f32.gmra.mxu1 %vm329_vm1, %v4027_v31  ;;  %3381 = vmatmul.msk.f32.gmra.mxu2 %vm329_vm1, %v5014_v21  ;;  %v5017_v31 = vld [vmem:[#allocation10_spill] sm:$0xff]  ;;  %v3415_v54 = vld [vmem:[%s3724_s17 + $0xa9] sm:$0xff] }
 0x192   : > { %3447 = vmatmul.msk.f32.gmra.mxu3 %vm329_vm1, %v3413_v1  ;;  %3513 = vmatmul.msk.f32.gmra.mxu0 %vm329_vm1, %v5015_v18  ;;  %v5018_v26 = vld [vmem:[#allocation22_spill] sm:$0xff] }
 0x194   : > { %v974_v56 = vpop.f32.mrf.mxu2 }
 0x195   : > { %v1024_v16 = vadd.f32 %v974_v56, %v729_v62  ;;  %v1253_v20 = vpop.f32.mrf.mxu3 }
 0x196   : > { %v731_v30 = vpop.f32.mrf.mxu1 }
 0x197   : > { %v1303_v27 = vadd.f32 %v1253_v20, %v1024_v16  ;;  %v1534_v13 = vpop.f32.mrf.mxu0  ;;  %v732_v52 = vadd.f32 %v731_v30, %v5019_v4  ;;  %v3416_v30 = vld [vmem:[%s3724_s17 + $0xb1] sm:$0xff] }
 0x199   : > { %v4487_v58 = vadd.f32 %v1531_v51, %v1303_v27  ;;  %3316 = vmatmul.msk.f32.gmra.mxu1 %vm329_vm1, %v5006_v59  ;;  %3382 = vmatmul.msk.f32.gmra.mxu2 %vm329_vm1, %v5017_v31  ;;  %v5020_v59 = vld [vmem:[#allocation4_spill] sm:$0xff] }
 0x19a   : > { %3448 = vmatmul.msk.f32.gmra.mxu3 %vm329_vm1, %v3414_v47  ;;  %3514 = vmatmul.msk.f32.gmra.mxu0 %vm329_vm1, %v5018_v26 }
 0x19c   : > { %v977_v28 = vpop.f32.mrf.mxu2 }
 0x19d   : > { %v1025_v35 = vadd.f32 %v977_v28, %v732_v52  ;;  %v1256_v60 = vpop.f32.mrf.mxu3 }
 0x19e   : > { %v734_v33 = vpop.f32.mrf.mxu1 }
 0x19f   : > { %v1304_v53 = vadd.f32 %v1256_v60, %v1025_v35  ;;  %v1537_v1 = vpop.f32.mrf.mxu0  ;;  %v735_v21 = vadd.f32 %v734_v33, %v5020_v59  ;;  %v3417_v35 = vld [vmem:[%s3724_s17 + $0xb9] sm:$0xff] }
 0x1a1   : > { %v4498_v51 = vadd.f32 %v1534_v13, %v1304_v53  ;;  %3317 = vmatmul.msk.f32.gmra.mxu1 %vm329_vm1, %v5009_v63  ;;  %3383 = vmatmul.msk.f32.gmra.mxu2 %vm329_vm1, %v4074_v48  ;;  %v5021_v48 = vld [vmem:[#allocation6_spill] sm:$0xff] }
 0x1a2   : > { %3449 = vmatmul.msk.f32.gmra.mxu3 %vm329_vm1, %v3415_v54  ;;  %3515 = vmatmul.msk.f32.gmra.mxu0 %vm329_vm1, %v4150_v8 }
 0x1a4   : > { %v980_v9 = vpop.f32.mrf.mxu2 }
 0x1a5   : > { %v1026_v62 = vadd.f32 %v980_v9, %v735_v21  ;;  %v1259_v56 = vpop.f32.mrf.mxu3  ;;  %v3418_v9 = vld [vmem:[%s3724_s17 + $0xc9] sm:$0xff] }
 0x1a6   : > { %v737_v16 = vpop.f32.mrf.mxu1 }
 0x1a7   : > { %v1305_v20 = vadd.f32 %v1259_v56, %v1026_v62  ;;  %v1540_v27 = vpop.f32.mrf.mxu0  ;;  %v738_v63 = vadd.f32 %v737_v16, %v5021_v48 }
 0x1a9   : > { %v4509_v47 = vadd.f32 %v1537_v1, %v1305_v20  ;;  %3318 = vmatmul.msk.f32.gmra.mxu1 %vm329_vm1, %v5012_v3  ;;  %3384 = vmatmul.msk.f32.gmra.mxu2 %vm329_vm1, %v4096_v45  ;;  %v5022_v45 = vld [vmem:[#allocation8_spill] sm:$0xff] }
 0x1aa   : > { %3450 = vmatmul.msk.f32.gmra.mxu3 %vm329_vm1, %v3416_v30  ;;  %3516 = vmatmul.msk.f32.gmra.mxu0 %vm329_vm1, %v4167_v43 }
 0x1ac   : > { %v983_v13 = vpop.f32.mrf.mxu2 }
 0x1ad   : > { %v1027_v31 = vadd.f32 %v983_v13, %v738_v63  ;;  %v1262_v4 = vpop.f32.mrf.mxu3  ;;  %v3419_v63 = vld [vmem:[%s3724_s17 + $0xd1] sm:$0xff] }
 0x1ae   : > { %v740_v52 = vpop.f32.mrf.mxu1 }
 0x1af   : > { %v1306_v28 = vadd.f32 %v1262_v4, %v1027_v31  ;;  %v1543_v60 = vpop.f32.mrf.mxu0  ;;  %v741_v3 = vadd.f32 %v740_v52, %v5022_v45  ;;  %v3420_v45 = vld [vmem:[%s3724_s17 + $0xd9] sm:$0xff] }
 0x1b1   : > { %v4520_v33 = vadd.f32 %v1540_v27, %v1306_v28  ;;  %3319 = vmatmul.msk.f32.gmra.mxu1 %vm329_vm1, %v5015_v18  ;;  %3385 = vmatmul.msk.f32.gmra.mxu2 %vm329_vm1, %v4118_v2  ;;  %v5023_v2 = vld [vmem:[#allocation12_spill] sm:$0xff] }
 0x1b2   : > { %3451 = vmatmul.msk.f32.gmra.mxu3 %vm329_vm1, %v3417_v35  ;;  %3517 = vmatmul.msk.f32.gmra.mxu0 %vm329_vm1, %v4184_v0 }
 0x1b4   : > { %v986_v53 = vpop.f32.mrf.mxu2 }
 0x1b5   : > { %v1028_v54 = vadd.f32 %v986_v53, %v741_v3  ;;  %v1265_v1 = vpop.f32.mrf.mxu3 }
 0x1b6   : > { %v743_v59 = vpop.f32.mrf.mxu1 }
 0x1b7   : > { %v1307_v21 = vadd.f32 %v1265_v1, %v1028_v54  ;;  %v1546_v62 = vpop.f32.mrf.mxu0  ;;  %v744_v18 = vadd.f32 %v743_v59, %v5023_v2 }
 0x1b9   : > { %v4531_v56 = vadd.f32 %v1543_v60, %v1307_v21  ;;  %3320 = vmatmul.msk.f32.gmra.mxu1 %vm329_vm1, %v5018_v26  ;;  %3386 = vmatmul.msk.f32.gmra.mxu2 %vm329_vm1, %v4138_v6  ;;  %v5024_v6 = vld [vmem:[#allocation15_spill] sm:$0xff] }
 0x1ba   : > { %3452 = vmatmul.msk.f32.gmra.mxu3 %vm329_vm1, %v3418_v9  ;;  %3518 = vmatmul.msk.f32.gmra.mxu0 %vm329_vm1, %v4201_v12 }
 0x1bc   : > { %v989_v16 = vpop.f32.mrf.mxu2 }
 0x1bd   : > { %v1029_v20 = vadd.f32 %v989_v16, %v744_v18  ;;  %v1268_v30 = vpop.f32.mrf.mxu3 }
 0x1be   : > { %v746_v27 = vpop.f32.mrf.mxu1 }
 0x1bf   : > { %v1308_v48 = vadd.f32 %v1268_v30, %v1029_v20  ;;  %v1549_v13 = vpop.f32.mrf.mxu0  ;;  %v747_v26 = vadd.f32 %v746_v27, %v5024_v6 }
 0x1c1   : > { %v4542_v31 = vadd.f32 %v1546_v62, %v1308_v48  ;;  %3321 = vmatmul.msk.f32.gmra.mxu1 %vm329_vm1, %v4150_v8  ;;  %3387 = vmatmul.msk.f32.gmra.mxu2 %vm329_vm1, %v4153_v37  ;;  %v5025_v8 = vld [vmem:[#allocation18_spill] sm:$0xff] }
 0x1c2   : > { %3453 = vmatmul.msk.f32.gmra.mxu3 %vm329_vm1, %v3419_v63  ;;  %3519 = vmatmul.msk.f32.gmra.mxu0 %vm329_vm1, %v4218_v25  ;;  %v3421_v62 = vld [vmem:[%s3724_s17 + $0xe1] sm:$0xff]  ;;  %v3422_v63 = vld [vmem:[%s3724_s17 + $0xf1] sm:$0xff] }
 0x1c4   : > { %v992_v4 = vpop.f32.mrf.mxu2 }
 0x1c5   : > { %v1030_v52 = vadd.f32 %v992_v4, %v747_v26  ;;  %v1271_v28 = vpop.f32.mrf.mxu3 }
 0x1c6   : > { %v749_v35 = vpop.f32.mrf.mxu1 }
 0x1c7   : > { %v1309_v60 = vadd.f32 %v1271_v28, %v1030_v52  ;;  %v1552_v3 = vpop.f32.mrf.mxu0  ;;  %v750_v37 = vadd.f32 %v749_v35, %v5025_v8 }
 0x1c9   : > { %v4553_v53 = vadd.f32 %v1549_v13, %v1309_v60  ;;  %3322 = vmatmul.msk.f32.gmra.mxu1 %vm329_vm1, %v4167_v43  ;;  %3388 = vmatmul.msk.f32.gmra.mxu2 %vm329_vm1, %v4170_v14  ;;  %v5026_v14 = vld [vmem:[#allocation21_spill] sm:$0xff] }
 0x1ca   : > { %3454 = vmatmul.msk.f32.gmra.mxu3 %vm329_vm1, %v3420_v45  ;;  %3520 = vmatmul.msk.f32.gmra.mxu0 %vm329_vm1, %v4235_v36 }
 0x1cc   : > { %v995_v54 = vpop.f32.mrf.mxu2 }
 0x1cd   : > { %v1031_v1 = vadd.f32 %v995_v54, %v750_v37  ;;  %v1274_v59 = vpop.f32.mrf.mxu3  ;;  %v4605_v54 = vld [vmem:[%s4945_s3] ss:$0 sm:$0xff] }
 0x1ce   : > { %v752_v21 = vpop.f32.mrf.mxu1 }
 0x1cf   : > { %v1310_v9 = vadd.f32 %v1274_v59, %v1031_v1  ;;  %v1555_v2 = vpop.f32.mrf.mxu0  ;;  %v753_v18 = vadd.f32 %v752_v21, %v5026_v14  ;;  %v4610_v21 = vld [vmem:[%s4946_s4] ss:$0 sm:$0xff]  ;;  %v3424_v14 = vld [vmem:[%s3724_s17 + $0x101] sm:$0xff] }
 0x1d1   : > { %v4564_v43 = vadd.f32 %v1552_v3, %v1310_v9  ;;  %3323 = vmatmul.msk.f32.gmra.mxu1 %vm329_vm1, %v4184_v0  ;;  %3389 = vmatmul.msk.f32.gmra.mxu2 %vm329_vm1, %v4187_v50  ;;  %v5027_v50 = vld [vmem:[#allocation23_spill] sm:$0xff]  ;;  %v5028_v3 = vld [vmem:[#allocation24_spill] sm:$0xff] }
 0x1d2   : > { %3455 = vmatmul.msk.f32.gmra.mxu3 %vm329_vm1, %v3421_v62  ;;  %3521 = vmatmul.msk.f32.gmra.mxu0 %vm329_vm1, %v4252_v44 }
 0x1d4   : > { %v998_v16 = vpop.f32.mrf.mxu2 }
 0x1d5   : > { %v1032_v20 = vadd.f32 %v998_v16, %v753_v18  ;;  %v1277_v30 = vpop.f32.mrf.mxu3 }
 0x1d6   : > { %v1740_v27 = vpop.f32.mrf.mxu1 }
 0x1d7   : > { %v1311_v48 = vadd.f32 %v1277_v30, %v1032_v20  ;;  %v2575_v13 = vpop.f32.mrf.mxu0  ;;  %v1836_v6 = vadd.f32 %v1740_v27, %v5027_v50  ;;  %v5029_v27 = vld [vmem:[#allocation25_spill] sm:$0xff] }
 0x1d9   : > { %v4576_v0 = vadd.f32 %v1555_v2, %v1311_v48  ;;  %3324 = vmatmul.msk.f32.gmra.mxu1 %vm329_vm1, %v4201_v12  ;;  %3390 = vmatmul.msk.f32.gmra.mxu2 %vm329_vm1, %v4204_v22  ;;  %v4589_v12 = vld [vmem:[%s4944_s2] ss:$0 sm:$0xff] }
 0x1da   : > { %3456 = vmatmul.msk.f32.gmra.mxu3 %vm329_vm1, %v3422_v63  ;;  %3522 = vmatmul.msk.f32.gmra.mxu0 %vm329_vm1, %v4269_v49  ;;  %v3423_v22 = vld [vmem:[%s3724_s17 + $0xf9] sm:$0xff] }
 0x1dc   : > { %v2019_v26 = vpop.f32.mrf.mxu2 }
 0x1dd   : > { %v2115_v4 = vadd.f32 %v2019_v26, %v1836_v6  ;;  %v2297_v52 = vpop.f32.mrf.mxu3 }
 0x1de   : > { %v1743_v28 = vpop.f32.mrf.mxu1 }
 0x1df   : > { %v2393_v35 = vadd.f32 %v2297_v52, %v2115_v4  ;;  %v2578_v60 = vpop.f32.mrf.mxu0  ;;  %v1837_v8 = vadd.f32 %v1743_v28, %v5028_v3  ;;  %v3425_v52 = vld [vmem:[%s3724_s17 + $0x109] sm:$0xff]  ;;  %v5031_v3 = vld [vmem:[#allocation26_spill] sm:$0xff] }
 0x1e1   : > { %v2671_v45 = vadd.f32 %v2575_v13, %v2393_v35  ;;  %3325 = vmatmul.msk.f32.gmra.mxu1 %vm329_vm1, %v4218_v25  ;;  %3391 = vmatmul.msk.f32.gmra.mxu2 %vm329_vm1, %v4221_v29 }
 0x1e2   : > { %3457 = vmatmul.msk.f32.gmra.mxu3 %vm329_vm1, %v3423_v22  ;;  %3523 = vmatmul.msk.f32.gmra.mxu0 %vm329_vm1, %v4286_v40 }
 0x1e3   : > { %v2707_v37 = vadd.f32 %v4589_v12, %v2671_v45  ;;  %v5030_v45 = vld [vmem:[#allocation33_spill] sm:$0xff] }
 0x1e4   : > { %v2022_v25 = vpop.f32.mrf.mxu2 }
 0x1e5   : > { %vm2739_vm2 = vcmp.ge.f32.partialorder %v2707_v37, 0.0  ;;  %v2771_v1 = vmul.f32 0.01, %v2707_v37  ;;  %v2116_v29 = vadd.f32 %v2022_v25, %v1837_v8  ;;  %v2300_v59 = vpop.f32.mrf.mxu3 }
 0x1e6   : > { %v1746_v9 = vpop.f32.mrf.mxu1 }
 0x1e7   : > { %v2803_v62 = vsel %vm2739_vm2, %v2707_v37, %v2771_v1  ;;  %v2394_v2 = vadd.f32 %v2300_v59, %v2116_v29  ;;  %v2581_v18 = vpop.f32.mrf.mxu0  ;;  %v1838_v48 = vadd.f32 %v1746_v9, %v5029_v27 }
 0x1e8   : > { %v2839_v16 = vmul.f32 %v4605_v54, %v2803_v62  ;;  %v3426_v62 = vld [vmem:[%s3724_s17 + $0x119] sm:$0xff] }
 0x1e9   : > { %v2672_v20 = vadd.f32 %v2578_v60, %v2394_v2  ;;  %3326 = vmatmul.msk.f32.gmra.mxu1 %vm329_vm1, %v4235_v36  ;;  %3392 = vmatmul.msk.f32.gmra.mxu2 %vm329_vm1, %v4238_v34 }
 0x1ea   : > { %v2875_v30 = vadd.f32 %v4610_v21, %v2839_v16  ;;  %3458 = vmatmul.msk.f32.gmra.mxu3 %vm329_vm1, %v3424_v14  ;;  %3524 = vmatmul.msk.f32.gmra.mxu0 %vm329_vm1, %v4303_v24 }
 0x1eb   : > { %v2708_v63 = vadd.f32 %v4589_v12, %v2672_v20  ;;  %v5032_v20 = vld [vmem:[#allocation27_spill] sm:$0xff] }
 0x1ec   : > { %2907 = vst.msk [vmem:[%s4617_s26] sm:$0xff] %vm329_vm1, %v2875_v30  ;;  %v2025_v13 = vpop.f32.mrf.mxu2 }
 0x1ed   : > { %vm2740_vm3 = vcmp.ge.f32.partialorder %v2708_v63, 0.0  ;;  %v2772_v36 = vmul.f32 0.01, %v2708_v63  ;;  %v2117_v50 = vadd.f32 %v2025_v13, %v1838_v48  ;;  %v2303_v6 = vpop.f32.mrf.mxu3 }
 0x1ee   : > { %v1749_v34 = vpop.f32.mrf.mxu1 }
 0x1ef   : > { %v2804_v26 = vsel %vm2740_vm3, %v2708_v63, %v2772_v36  ;;  %v2395_v4 = vadd.f32 %v2303_v6, %v2117_v50  ;;  %v2584_v28 = vpop.f32.mrf.mxu0  ;;  %v1839_v8 = vadd.f32 %v1749_v34, %v5031_v3  ;;  %v3427_v6 = vld [vmem:[%s3724_s17 + $0x121] sm:$0xff] }
 0x1f0   : > { %v2840_v35 = vmul.f32 %v4605_v54, %v2804_v26 }
 0x1f1   : > { %v2673_v22 = vadd.f32 %v2581_v18, %v2395_v4  ;;  %3327 = vmatmul.msk.f32.gmra.mxu1 %vm329_vm1, %v4252_v44  ;;  %3393 = vmatmul.msk.f32.gmra.mxu2 %vm329_vm1, %v4255_v38 }
 0x1f2   : > { %v2876_v60 = vadd.f32 %v4610_v21, %v2840_v35  ;;  %3459 = vmatmul.msk.f32.gmra.mxu3 %vm329_vm1, %v3425_v52  ;;  %3525 = vmatmul.msk.f32.gmra.mxu0 %vm329_vm1, %v5030_v45  ;;  %v5033_v52 = vld [vmem:[#allocation37_spill] sm:$0xff] }
 0x1f3   : > { %v2709_v37 = vadd.f32 %v4589_v12, %v2673_v22 }
 0x1f4   : > { %2908 = vst.msk [vmem:[%s4617_s26 + $0x8] sm:$0xff] %vm329_vm1, %v2876_v60  ;;  %v2028_v25 = vpop.f32.mrf.mxu2 }
 0x1f5   : > { %vm2741_vm4 = vcmp.ge.f32.partialorder %v2709_v37, 0.0  ;;  %v2773_v44 = vmul.f32 0.01, %v2709_v37  ;;  %v2118_v1 = vadd.f32 %v2028_v25, %v1839_v8  ;;  %v2306_v29 = vpop.f32.mrf.mxu3 }
 0x1f6   : > { %v1752_v38 = vpop.f32.mrf.mxu1 }
 0x1f7   : > { %v2805_v59 = vsel %vm2741_vm4, %v2709_v37, %v2773_v44  ;;  %v2396_v9 = vadd.f32 %v2306_v29, %v2118_v1  ;;  %v2587_v2 = vpop.f32.mrf.mxu0  ;;  %v1840_v30 = vadd.f32 %v1752_v38, %v5032_v20  ;;  %v3428_v44 = vld [vmem:[%s3724_s17 + $0x129] sm:$0xff] }
 0x1f8   : > { %v2841_v14 = vmul.f32 %v4605_v54, %v2805_v59 }
 0x1f9   : > { %v2674_v18 = vadd.f32 %v2584_v28, %v2396_v9  ;;  %3328 = vmatmul.msk.f32.gmra.mxu1 %vm329_vm1, %v4269_v49  ;;  %3394 = vmatmul.msk.f32.gmra.mxu2 %vm329_vm1, %v4272_v7  ;;  %v5034_v28 = vld [vmem:[#allocation28_spill] sm:$0xff]  ;;  %v5035_v9 = vld [vmem:[#allocation29_spill] sm:$0xff] }
 0x1fa   : > { %v2877_v16 = vadd.f32 %v4610_v21, %v2841_v14  ;;  %3460 = vmatmul.msk.f32.gmra.mxu3 %vm329_vm1, %v3426_v62  ;;  %3526 = vmatmul.msk.f32.gmra.mxu0 %vm329_vm1, %v4337_v17 }
 0x1fb   : > { %v2710_v27 = vadd.f32 %v4589_v12, %v2674_v18 }
 0x1fc   : > { %2909 = vst.msk [vmem:[%s4617_s26 + $0x10] sm:$0xff] %vm329_vm1, %v2877_v16  ;;  %v2031_v48 = vpop.f32.mrf.mxu2 }
 0x1fd   : > { %vm2742_vm5 = vcmp.ge.f32.partialorder %v2710_v27, 0.0  ;;  %v2774_v49 = vmul.f32 0.01, %v2710_v27  ;;  %v2119_v63 = vadd.f32 %v2031_v48, %v1840_v30  ;;  %v2309_v13 = vpop.f32.mrf.mxu3 }
 0x1fe   : > { %v1755_v7 = vpop.f32.mrf.mxu1 }
 0x1ff   : > { %v2806_v36 = vsel %vm2742_vm5, %v2710_v27, %v2774_v49  ;;  %v2397_v50 = vadd.f32 %v2309_v13, %v2119_v63  ;;  %v2590_v34 = vpop.f32.mrf.mxu0  ;;  %v1841_v35 = vadd.f32 %v1755_v7, %v5034_v28  ;;  %v3429_v27 = vld [vmem:[%s3724_s17 + $0x131] sm:$0xff]  ;;  %v5036_v13 = vld [vmem:[#allocation30_spill] sm:$0xff] }
 0x200   : > { %v2842_v26 = vmul.f32 %v4605_v54, %v2806_v36 }
 0x201   : > { %v2675_v17 = vadd.f32 %v2587_v2, %v2397_v50  ;;  %3329 = vmatmul.msk.f32.gmra.mxu1 %vm329_vm1, %v4286_v40  ;;  %3395 = vmatmul.msk.f32.gmra.mxu2 %vm329_vm1, %v4289_v11 }
 0x202   : > { %v2878_v4 = vadd.f32 %v4610_v21, %v2842_v26  ;;  %3461 = vmatmul.msk.f32.gmra.mxu3 %vm329_vm1, %v3427_v6  ;;  %3527 = vmatmul.msk.f32.gmra.mxu0 %vm329_vm1, %v5033_v52  ;;  %v3298_v26 = vld [vmem:[%s3724_s17 + $0x11a] sm:$0xff] }
 0x203   : > { %v2711_v22 = vadd.f32 %v4589_v12, %v2675_v17  ;;  %v3364_v17 = vld [vmem:[%s3724_s17 + $0x140] sm:$0xff] }
 0x204   : > { %2910 = vst.msk [vmem:[%s4617_s26 + $0x18] sm:$0xff] %vm329_vm1, %v2878_v4  ;;  %v2034_v60 = vpop.f32.mrf.mxu2 }
 0x205   : > { %vm2743_vm6 = vcmp.ge.f32.partialorder %v2711_v22, 0.0  ;;  %v2775_v40 = vmul.f32 0.01, %v2711_v22  ;;  %v2120_v3 = vadd.f32 %v2034_v60, %v1841_v35  ;;  %v2312_v8 = vpop.f32.mrf.mxu3  ;;  %v4704_v35 = vld [vmem:[%s3724_s17 + $0x142] sm:$0xff] }
 0x206   : > { %v1758_v11 = vpop.f32.mrf.mxu1 }
 0x207   : > { %v2807_v37 = vsel %vm2743_vm6, %v2711_v22, %v2775_v40  ;;  %v2398_v25 = vadd.f32 %v2312_v8, %v2120_v3  ;;  %v2593_v1 = vpop.f32.mrf.mxu0  ;;  %v1842_v62 = vadd.f32 %v1758_v11, %v5035_v9  ;;  %v5037_v40 = vld [vmem:[#allocation35_spill] sm:$0xff] }
 0x208   : > { %v2843_v29 = vmul.f32 %v4605_v54, %v2807_v37  ;;  %v5038_v3 = vld [vmem:[#allocation31_spill] sm:$0xff] }
 0x209   : > { %v2676_v38 = vadd.f32 %v2590_v34, %v2398_v25  ;;  %3330 = vmatmul.msk.f32.gmra.mxu1 %vm329_vm1, %v4303_v24  ;;  %3396 = vmatmul.msk.f32.gmra.mxu2 %vm329_vm1, %v4306_v15 }
 0x20a   : > { %v2879_v59 = vadd.f32 %v4610_v21, %v2843_v29  ;;  %3462 = vmatmul.msk.f32.gmra.mxu3 %vm329_vm1, %v3428_v44  ;;  %3528 = vmatmul.msk.f32.gmra.mxu0 %vm329_vm1, %v4371_v32 }
 0x20b   : > { %v2712_v2 = vadd.f32 %v4589_v12, %v2676_v38  ;;  %v3299_v38 = vld [vmem:[%s3724_s17 + $0x122] sm:$0xff] }
 0x20c   : > { %2911 = vst.msk [vmem:[%s4617_s26 + $0x20] sm:$0xff] %vm329_vm1, %v2879_v59  ;;  %v2037_v14 = vpop.f32.mrf.mxu2  ;;  %v3365_v59 = vld [vmem:[%s3724_s17 + $0x148] sm:$0xff] }
 0x20d   : > { %vm2744_vm7 = vcmp.ge.f32.partialorder %v2712_v2, 0.0  ;;  %v2776_v24 = vmul.f32 0.01, %v2712_v2  ;;  %v2121_v18 = vadd.f32 %v2037_v14, %v1842_v62  ;;  %v2315_v16 = vpop.f32.mrf.mxu3  ;;  %v4721_v14 = vld [vmem:[%s3724_s17 + $0x14a] sm:$0xff] }
 0x20e   : > { %v1761_v15 = vpop.f32.mrf.mxu1 }
 0x20f   : > { %v2808_v20 = vsel %vm2744_vm7, %v2712_v2, %v2776_v24  ;;  %v2399_v30 = vadd.f32 %v2315_v16, %v2121_v18  ;;  %v2596_v48 = vpop.f32.mrf.mxu0  ;;  %v1843_v7 = vadd.f32 %v1761_v15, %v5036_v13  ;;  %v5039_v15 = vld [vmem:[#allocation38_spill] sm:$0xff] }
 0x210   : > { %v2844_v49 = vmul.f32 %v4605_v54, %v2808_v20  ;;  %v5040_v20 = vld [vmem:[#allocation32_spill] sm:$0xff] }
 0x211   : > { %v2677_v32 = vadd.f32 %v2593_v1, %v2399_v30  ;;  %3331 = vmatmul.msk.f32.gmra.mxu1 %vm329_vm1, %v5030_v45  ;;  %3397 = vmatmul.msk.f32.gmra.mxu2 %vm329_vm1, %v4323_v19 }
 0x212   : > { %v2880_v63 = vadd.f32 %v4610_v21, %v2844_v49  ;;  %3463 = vmatmul.msk.f32.gmra.mxu3 %vm329_vm1, %v3429_v27  ;;  %3529 = vmatmul.msk.f32.gmra.mxu0 %vm329_vm1, %v4385_v39 }
 0x213   : > { %v2713_v36 = vadd.f32 %v4589_v12, %v2677_v32 }
 0x214   : > { %2912 = vst.msk [vmem:[%s4617_s26 + $0x28] sm:$0xff] %vm329_vm1, %v2880_v63  ;;  %v2040_v50 = vpop.f32.mrf.mxu2 }
 0x215   : > { %vm2745_vm8 = vcmp.ge.f32.partialorder %v2713_v36, 0.0  ;;  %v2777_v45 = vmul.f32 0.01, %v2713_v36  ;;  %v2122_v6 = vadd.f32 %v2040_v50, %v1843_v7  ;;  %v2318_v34 = vpop.f32.mrf.mxu3  ;;  %v3300_v7 = vld [vmem:[%s3724_s17 + $0x12a] sm:$0xff] }
 0x216   : > { %v1764_v19 = vpop.f32.mrf.mxu1 }
 0x217   : > { %v2809_v4 = vsel %vm2745_vm8, %v2713_v36, %v2777_v45  ;;  %v2400_v52 = vadd.f32 %v2318_v34, %v2122_v6  ;;  %v2599_v28 = vpop.f32.mrf.mxu0  ;;  %v1844_v8 = vadd.f32 %v1764_v19, %v5038_v3  ;;  %v3366_v36 = vld [vmem:[%s3724_s17 + $0x150] sm:$0xff] }
 0x218   : > { %v2845_v39 = vmul.f32 %v4605_v54, %v2809_v4  ;;  %v3432_v6 = vld [vmem:[%s3724_s17 + $0x151] sm:$0xff] }
 0x219   : > { %v2678_v22 = vadd.f32 %v2596_v48, %v2400_v52  ;;  %3332 = vmatmul.msk.f32.gmra.mxu1 %vm329_vm1, %v3298_v26  ;;  %3398 = vmatmul.msk.f32.gmra.mxu2 %vm329_vm1, %v3364_v17  ;;  %v4739_v19 = vld [vmem:[%s3724_s17 + $0x152] sm:$0xff]  ;;  %v5041_v52 = vld [vmem:[#allocation34_spill] sm:$0xff] }
 0x21a   : > { %v2881_v60 = vadd.f32 %v4610_v21, %v2845_v39  ;;  %3464 = vmatmul.msk.f32.gmra.mxu3 %vm329_vm1, %v5037_v40  ;;  %3530 = vmatmul.msk.f32.gmra.mxu0 %vm329_vm1, %v4704_v35 }
 0x21b   : > { %v2714_v11 = vadd.f32 %v4589_v12, %v2678_v22 }
 0x21c   : > { %2913 = vst.msk [vmem:[%s4617_s26 + $0x30] sm:$0xff] %vm329_vm1, %v2881_v60  ;;  %v2043_v37 = vpop.f32.mrf.mxu2 }
 0x21d   : > { %vm2746_vm9 = vcmp.ge.f32.partialorder %v2714_v11, 0.0  ;;  %v2778_v25 = vmul.f32 0.01, %v2714_v11  ;;  %v2123_v44 = vadd.f32 %v2043_v37, %v1844_v8  ;;  %v2321_v1 = vpop.f32.mrf.mxu3  ;;  %v3367_v37 = vld [vmem:[%s3724_s17 + $0x158] sm:$0xff] }
 0x21e   : > { %v1767_v29 = vpop.f32.mrf.mxu1 }
 0x21f   : > { %v2810_v9 = vsel %vm2746_vm9, %v2714_v11, %v2778_v25  ;;  %v2401_v62 = vadd.f32 %v2321_v1, %v2123_v44  ;;  %v2602_v2 = vpop.f32.mrf.mxu0  ;;  %v1845_v30 = vadd.f32 %v1767_v29, %v5040_v20  ;;  %v3301_v11 = vld [vmem:[%s3724_s17 + $0x132] sm:$0xff] }
 0x220   : > { %v2846_v24 = vmul.f32 %v4605_v54, %v2810_v9  ;;  %v3433_v1 = vld [vmem:[%s3724_s17 + $0x159] sm:$0xff] }
 0x221   : > { %v2679_v18 = vadd.f32 %v2599_v28, %v2401_v62  ;;  %3333 = vmatmul.msk.f32.gmra.mxu1 %vm329_vm1, %v3299_v38  ;;  %3399 = vmatmul.msk.f32.gmra.mxu2 %vm329_vm1, %v3365_v59  ;;  %v4756_v38 = vld [vmem:[%s3724_s17 + $0x15a] sm:$0xff] }
 0x222   : > { %v2882_v16 = vadd.f32 %v4610_v21, %v2846_v24  ;;  %3465 = vmatmul.msk.f32.gmra.mxu3 %vm329_vm1, %v5039_v15  ;;  %3531 = vmatmul.msk.f32.gmra.mxu0 %vm329_vm1, %v4721_v14 }
 0x223   : > { %v2715_v27 = vadd.f32 %v4589_v12, %v2679_v18 }
 0x224   : > { %2914 = vst.msk [vmem:[%s4617_s26 + $0x38] sm:$0xff] %vm329_vm1, %v2882_v16  ;;  %v2046_v48 = vpop.f32.mrf.mxu2 }
 0x225   : > { %vm2747_vm10 = vcmp.ge.f32.partialorder %v2715_v27, 0.0  ;;  %v2779_v49 = vmul.f32 0.01, %v2715_v27  ;;  %v2124_v32 = vadd.f32 %v2046_v48, %v1845_v30  ;;  %v2324_v63 = vpop.f32.mrf.mxu3  ;;  %v3368_v48 = vld [vmem:[%s3724_s17 + $0x168] sm:$0xff] }
 0x226   : > { %v1770_v13 = vpop.f32.mrf.mxu1 }
 0x227   : > { %v2811_v50 = vsel %vm2747_vm10, %v2715_v27, %v2779_v49  ;;  %v2402_v45 = vadd.f32 %v2324_v63, %v2124_v32  ;;  %v2605_v34 = vpop.f32.mrf.mxu0  ;;  %v1846_v28 = vadd.f32 %v1770_v13, %v5041_v52  ;;  %v3434_v63 = vld [vmem:[%s3724_s17 + $0x169] sm:$0xff] }
 0x228   : > { %v2847_v26 = vmul.f32 %v4605_v54, %v2811_v50 }
 0x229   : > { %v2680_v17 = vadd.f32 %v2602_v2, %v2402_v45  ;;  %3334 = vmatmul.msk.f32.gmra.mxu1 %vm329_vm1, %v3300_v7  ;;  %3400 = vmatmul.msk.f32.gmra.mxu2 %vm329_vm1, %v3366_v36  ;;  %v5042_v2 = vld [vmem:[#allocation36_spill] sm:$0xff] }
 0x22a   : > { %v2883_v4 = vadd.f32 %v4610_v21, %v2847_v26  ;;  %3466 = vmatmul.msk.f32.gmra.mxu3 %vm329_vm1, %v3432_v6  ;;  %3532 = vmatmul.msk.f32.gmra.mxu0 %vm329_vm1, %v4739_v19  ;;  %v3500_v7 = vld [vmem:[%s3724_s17 + $0x16a] sm:$0xff] }
 0x22b   : > { %v2716_v39 = vadd.f32 %v4589_v12, %v2680_v17  ;;  %v5043_v6 = vld [vmem:[#allocation39_spill] sm:$0xff] }
 0x22c   : > { %2915 = vst.msk [vmem:[%s4617_s26 + $0x40] sm:$0xff] %vm329_vm1, %v2883_v4  ;;  %v2049_v22 = vpop.f32.mrf.mxu2 }
 0x22d   : > { %vm2748_vm11 = vcmp.ge.f32.partialorder %v2716_v39, 0.0  ;;  %v2780_v60 = vmul.f32 0.01, %v2716_v39  ;;  %v2125_v40 = vadd.f32 %v2049_v22, %v1846_v28  ;;  %v2327_v3 = vpop.f32.mrf.mxu3 }
 0x22e   : > { %v1773_v8 = vpop.f32.mrf.mxu1 }
 0x22f   : > { %v2812_v25 = vsel %vm2748_vm11, %v2716_v39, %v2780_v60  ;;  %v2403_v44 = vadd.f32 %v2327_v3, %v2125_v40  ;;  %v2608_v29 = vpop.f32.mrf.mxu0  ;;  %v1847_v24 = vadd.f32 %v1773_v8, %v5042_v2  ;;  %v3369_v39 = vld [vmem:[%s3724_s17 + $0x170] sm:$0xff] }
 0x230   : > { %v2848_v59 = vmul.f32 %v4605_v54, %v2812_v25  ;;  %v3435_v40 = vld [vmem:[%s3724_s17 + $0x171] sm:$0xff] }
 0x231   : > { %v2681_v9 = vadd.f32 %v2605_v34, %v2403_v44  ;;  %3335 = vmatmul.msk.f32.gmra.mxu1 %vm329_vm1, %v3301_v11  ;;  %3401 = vmatmul.msk.f32.gmra.mxu2 %vm329_vm1, %v3367_v37  ;;  %v3501_v8 = vld [vmem:[%s3724_s17 + $0x172] sm:$0xff] }
 0x232   : > { %v2884_v62 = vadd.f32 %v4610_v21, %v2848_v59  ;;  %3467 = vmatmul.msk.f32.gmra.mxu3 %vm329_vm1, %v3433_v1  ;;  %3533 = vmatmul.msk.f32.gmra.mxu0 %vm329_vm1, %v4756_v38  ;;  %v5044_v44 = vld [vmem:[#allocation40_spill] sm:$0xff] }
 0x233   : > { %v2717_v18 = vadd.f32 %v4589_v12, %v2681_v9 }
 0x234   : > { %2916 = vst.msk [vmem:[%s4617_s26 + $0x48] sm:$0xff] %vm329_vm1, %v2884_v62  ;;  %v2052_v16 = vpop.f32.mrf.mxu2 }
 0x235   : > { %vm2749_vm12 = vcmp.ge.f32.partialorder %v2717_v18, 0.0  ;;  %v2781_v15 = vmul.f32 0.01, %v2717_v18  ;;  %v2126_v20 = vadd.f32 %v2052_v16, %v1847_v24  ;;  %v2330_v30 = vpop.f32.mrf.mxu3  ;;  %v3370_v24 = vld [vmem:[%s3724_s17 + $0x178] sm:$0xff] }
 0x236   : > { %v1776_v27 = vpop.f32.mrf.mxu1 }
 0x237   : > { %v2813_v49 = vsel %vm2749_vm12, %v2717_v18, %v2781_v15  ;;  %v2404_v32 = vadd.f32 %v2330_v30, %v2126_v20  ;;  %v2611_v13 = vpop.f32.mrf.mxu0  ;;  %v1848_v34 = vadd.f32 %v1776_v27, %v5043_v6  ;;  %v3436_v15 = vld [vmem:[%s3724_s17 + $0x179] sm:$0xff] }
 0x238   : > { %v2849_v36 = vmul.f32 %v4605_v54, %v2813_v49  ;;  %v3502_v30 = vld [vmem:[%s3724_s17 + $0x17a] sm:$0xff] }
 0x239   : > { %v2682_v50 = vadd.f32 %v2608_v29, %v2404_v32  ;;  %3336 = vmatmul.msk.f32.gmra.mxu1 %vm329_vm1, %v4704_v35  ;;  %3402 = vmatmul.msk.f32.gmra.mxu2 %vm329_vm1, %v3368_v48 }
 0x23a   : > { %v2885_v45 = vadd.f32 %v4610_v21, %v2849_v36  ;;  %3468 = vmatmul.msk.f32.gmra.mxu3 %vm329_vm1, %v3434_v63  ;;  %3534 = vmatmul.msk.f32.gmra.mxu0 %vm329_vm1, %v3500_v7 }
 0x23b   : > { %v2718_v26 = vadd.f32 %v4589_v12, %v2682_v50 }
 0x23c   : > { %2917 = vst.msk [vmem:[%s4617_s26 + $0x50] sm:$0xff] %vm329_vm1, %v2885_v45  ;;  %v2055_v17 = vpop.f32.mrf.mxu2  ;;  %v3371_v45 = vld [vmem:[%s3724_s17 + $0x180] sm:$0xff] }
 0x23d   : > { %vm2750_vm13 = vcmp.ge.f32.partialorder %v2718_v26, 0.0  ;;  %v2782_v4 = vmul.f32 0.01, %v2718_v26  ;;  %v2127_v35 = vadd.f32 %v2055_v17, %v1848_v34  ;;  %v2333_v52 = vpop.f32.mrf.mxu3 }
 0x23e   : > { %v1779_v28 = vpop.f32.mrf.mxu1 }
 0x23f   : > { %v2814_v22 = vsel %vm2750_vm13, %v2718_v26, %v2782_v4  ;;  %v2405_v60 = vadd.f32 %v2333_v52, %v2127_v35  ;;  %v2614_v3 = vpop.f32.mrf.mxu0  ;;  %v1849_v1 = vadd.f32 %v1779_v28, %v5044_v44  ;;  %v3437_v26 = vld [vmem:[%s3724_s17 + $0x181] sm:$0xff] }
 0x240   : > { %v2850_v11 = vmul.f32 %v4605_v54, %v2814_v22  ;;  %v3503_v4 = vld [vmem:[%s3724_s17 + $0x182] sm:$0xff] }
 0x241   : > { %v2683_v37 = vadd.f32 %v2611_v13, %v2405_v60  ;;  %3337 = vmatmul.msk.f32.gmra.mxu1 %vm329_vm1, %v4721_v14  ;;  %3403 = vmatmul.msk.f32.gmra.mxu2 %vm329_vm1, %v3369_v39 }
 0x242   : > { %v2886_v25 = vadd.f32 %v4610_v21, %v2850_v11  ;;  %3469 = vmatmul.msk.f32.gmra.mxu3 %vm329_vm1, %v3435_v40  ;;  %3535 = vmatmul.msk.f32.gmra.mxu0 %vm329_vm1, %v3501_v8 }
 0x243   : > { %v2719_v29 = vadd.f32 %v4589_v12, %v2683_v37 }
 0x244   : > { %2918 = vst.msk [vmem:[%s4617_s26 + $0x58] sm:$0xff] %vm329_vm1, %v2886_v25  ;;  %v2058_v59 = vpop.f32.mrf.mxu2 }
 0x245   : > { %vm2751_vm14 = vcmp.ge.f32.partialorder %v2719_v29, 0.0  ;;  %v2783_v9 = vmul.f32 0.01, %v2719_v29  ;;  %v2128_v14 = vadd.f32 %v2058_v59, %v1849_v1  ;;  %v2336_v62 = vpop.f32.mrf.mxu3 }
 0x246   : > { %v1782_v2 = vpop.f32.mrf.mxu1 }
 0x247   : > { %v2815_v18 = vsel %vm2751_vm14, %v2719_v29, %v2783_v9  ;;  %v2406_v16 = vadd.f32 %v2336_v62, %v2128_v14  ;;  %v2617_v20 = vpop.f32.mrf.mxu0  ;;  %v1850_v32 = vadd.f32 %v1782_v2, %v4389_v61 }
 0x248   : > { %v2851_v27 = vmul.f32 %v4605_v54, %v2815_v18 }
 0x249   : > { %v2684_v48 = vadd.f32 %v2614_v3, %v2406_v16  ;;  %3338 = vmatmul.msk.f32.gmra.mxu1 %vm329_vm1, %v4739_v19  ;;  %3404 = vmatmul.msk.f32.gmra.mxu2 %vm329_vm1, %v3370_v24 }
 0x24a   : > { %v2887_v49 = vadd.f32 %v4610_v21, %v2851_v27  ;;  %3470 = vmatmul.msk.f32.gmra.mxu3 %vm329_vm1, %v3436_v15  ;;  %3536 = vmatmul.msk.f32.gmra.mxu0 %vm329_vm1, %v3502_v30 }
 0x24b   : > { %v2720_v63 = vadd.f32 %v4589_v12, %v2684_v48 }
 0x24c   : > { %2919 = vst.msk [vmem:[%s4617_s26 + $0x60] sm:$0xff] %vm329_vm1, %v2887_v49  ;;  %v2061_v13 = vpop.f32.mrf.mxu2 }
 0x24d   : > { %vm2752_vm15 = vcmp.ge.f32.partialorder %v2720_v63, 0.0  ;;  %v2784_v7 = vmul.f32 0.01, %v2720_v63  ;;  %v2129_v19 = vadd.f32 %v2061_v13, %v1850_v32  ;;  %v2339_v36 = vpop.f32.mrf.mxu3 }
 0x24e   : > { %v1785_v50 = vpop.f32.mrf.mxu1 }
 0x24f   : > { %v2816_v6 = vsel %vm2752_vm15, %v2720_v63, %v2784_v7  ;;  %v2407_v34 = vadd.f32 %v2339_v36, %v2129_v19  ;;  %v2620_v17 = vpop.f32.mrf.mxu0  ;;  %v1851_v28 = vadd.f32 %v1785_v50, %v4398_v23 }
 0x250   : > { %v2852_v35 = vmul.f32 %v4605_v54, %v2816_v6 }
 0x251   : > { %v2685_v61 = vadd.f32 %v2617_v20, %v2407_v34  ;;  %3339 = vmatmul.msk.f32.gmra.mxu1 %vm329_vm1, %v4756_v38  ;;  %3405 = vmatmul.msk.f32.gmra.mxu2 %vm329_vm1, %v3371_v45 }
 0x252   : > { %v2888_v52 = vadd.f32 %v4610_v21, %v2852_v35  ;;  %3471 = vmatmul.msk.f32.gmra.mxu3 %vm329_vm1, %v3437_v26  ;;  %3537 = vmatmul.msk.f32.gmra.mxu0 %vm329_vm1, %v3503_v4 }
 0x253   : > { %v2721_v39 = vadd.f32 %v4589_v12, %v2685_v61 }
 0x254   : > { %2920 = vst.msk [vmem:[%s4617_s26 + $0x68] sm:$0xff] %vm329_vm1, %v2888_v52  ;;  %v2064_v22 = vpop.f32.mrf.mxu2 }
 0x255   : > { %vm2753_vm0 = vcmp.ge.f32.partialorder %v2721_v39, 0.0  ;;  %v2785_v60 = vmul.f32 0.01, %v2721_v39  ;;  %v2130_v40 = vadd.f32 %v2064_v22, %v1851_v28  ;;  %v2342_v38 = vpop.f32.mrf.mxu3 }
 0x256   : > { %v1788_v3 = vpop.f32.mrf.mxu1 }
 0x257   : > { %v2817_v8 = vsel %vm2753_vm0, %v2721_v39, %v2785_v60  ;;  %v2408_v11 = vadd.f32 %v2342_v38, %v2130_v40  ;;  %v2623_v37 = vpop.f32.mrf.mxu0  ;;  %v1852_v23 = vadd.f32 %v1788_v3, %v4409_v42 }
 0x258   : > { %v2853_v25 = vmul.f32 %v4605_v54, %v2817_v8 }
 0x259   : > { %v2686_v44 = vadd.f32 %v2620_v17, %v2408_v11 }
 0x25a   : > { %v2889_v1 = vadd.f32 %v4610_v21, %v2853_v25 }
 0x25b   : > { %v2722_v29 = vadd.f32 %v4589_v12, %v2686_v44 }
 0x25c   : > { %2921 = vst.msk [vmem:[%s4617_s26 + $0x70] sm:$0xff] %vm329_vm1, %v2889_v1  ;;  %v2067_v59 = vpop.f32.mrf.mxu2 }
 0x25d   : > { %vm2754_vm2 = vcmp.ge.f32.partialorder %v2722_v29, 0.0  ;;  %v2786_v9 = vmul.f32 0.01, %v2722_v29  ;;  %v2131_v14 = vadd.f32 %v2067_v59, %v1852_v23  ;;  %v2345_v62 = vpop.f32.mrf.mxu3 }
 0x25e   : > { %v1791_v2 = vpop.f32.mrf.mxu1 }
 0x25f   : > { %v2818_v24 = vsel %vm2754_vm2, %v2722_v29, %v2786_v9  ;;  %v2409_v18 = vadd.f32 %v2345_v62, %v2131_v14  ;;  %v2626_v16 = vpop.f32.mrf.mxu0  ;;  %v1853_v42 = vadd.f32 %v1791_v2, %v4420_v46 }
 0x260   : > { %v2854_v15 = vmul.f32 %v4605_v54, %v2818_v24 }
 0x261   : > { %v2687_v20 = vadd.f32 %v2623_v37, %v2409_v18 }
 0x262   : > { %v2890_v30 = vadd.f32 %v4610_v21, %v2854_v15 }
 0x263   : > { %v2723_v27 = vadd.f32 %v4589_v12, %v2687_v20 }
 0x264   : > { %2922 = vst.msk [vmem:[%s4617_s26 + $0x78] sm:$0xff] %vm329_vm1, %v2890_v30  ;;  %v2070_v48 = vpop.f32.mrf.mxu2 }
 0x265   : > { %vm2755_vm3 = vcmp.ge.f32.partialorder %v2723_v27, 0.0  ;;  %v2787_v49 = vmul.f32 0.01, %v2723_v27  ;;  %v2132_v32 = vadd.f32 %v2070_v48, %v1853_v42  ;;  %v2348_v63 = vpop.f32.mrf.mxu3 }
 0x266   : > { %v1794_v13 = vpop.f32.mrf.mxu1 }
 0x267   : > { %v2819_v7 = vsel %vm2755_vm3, %v2723_v27, %v2787_v49  ;;  %v2410_v19 = vadd.f32 %v2348_v63, %v2132_v32  ;;  %v2629_v36 = vpop.f32.mrf.mxu0  ;;  %v1854_v46 = vadd.f32 %v1794_v13, %v4432_v57 }
 0x268   : > { %v2855_v50 = vmul.f32 %v4605_v54, %v2819_v7 }
 0x269   : > { %v2688_v45 = vadd.f32 %v2626_v16, %v2410_v19 }
 0x26a   : > { %v2891_v6 = vadd.f32 %v4610_v21, %v2855_v50 }
 0x26b   : > { %v2724_v34 = vadd.f32 %v4589_v12, %v2688_v45 }
 0x26c   : > { %2923 = vst.msk [vmem:[%s4617_s26 + $0x80] sm:$0xff] %vm329_vm1, %v2891_v6  ;;  %v2073_v26 = vpop.f32.mrf.mxu2 }
 0x26d   : > { %vm2756_vm4 = vcmp.ge.f32.partialorder %v2724_v34, 0.0  ;;  %v2788_v17 = vmul.f32 0.01, %v2724_v34  ;;  %v2133_v4 = vadd.f32 %v2073_v26, %v1854_v46  ;;  %v2351_v35 = vpop.f32.mrf.mxu3 }
 0x26e   : > { %v1797_v61 = vpop.f32.mrf.mxu1 }
 0x26f   : > { %v2820_v52 = vsel %vm2756_vm4, %v2724_v34, %v2788_v17  ;;  %v2411_v28 = vadd.f32 %v2351_v35, %v2133_v4  ;;  %v2632_v39 = vpop.f32.mrf.mxu0  ;;  %v1855_v57 = vadd.f32 %v1797_v61, %v4443_v5 }
 0x270   : > { %v2856_v22 = vmul.f32 %v4605_v54, %v2820_v52 }
 0x271   : > { %v2689_v60 = vadd.f32 %v2629_v36, %v2411_v28 }
 0x272   : > { %v2892_v40 = vadd.f32 %v4610_v21, %v2856_v22 }
 0x273   : > { %v2725_v38 = vadd.f32 %v4589_v12, %v2689_v60 }
 0x274   : > { %2924 = vst.msk [vmem:[%s4617_s26 + $0x88] sm:$0xff] %vm329_vm1, %v2892_v40  ;;  %v2076_v3 = vpop.f32.mrf.mxu2 }
 0x275   : > { %vm2757_vm5 = vcmp.ge.f32.partialorder %v2725_v38, 0.0  ;;  %v2789_v8 = vmul.f32 0.01, %v2725_v38  ;;  %v2134_v11 = vadd.f32 %v2076_v3, %v1855_v57  ;;  %v2354_v37 = vpop.f32.mrf.mxu3 }
 0x276   : > { %v1800_v25 = vpop.f32.mrf.mxu1 }
 0x277   : > { %v2821_v44 = vsel %vm2757_vm5, %v2725_v38, %v2789_v8  ;;  %v2412_v1 = vadd.f32 %v2354_v37, %v2134_v11  ;;  %v2635_v23 = vpop.f32.mrf.mxu0  ;;  %v1856_v5 = vadd.f32 %v1800_v25, %v4454_v55 }
 0x278   : > { %v2857_v29 = vmul.f32 %v4605_v54, %v2821_v44 }
 0x279   : > { %v2690_v59 = vadd.f32 %v2632_v39, %v2412_v1 }
 0x27a   : > { %v2893_v9 = vadd.f32 %v4610_v21, %v2857_v29 }
 0x27b   : > { %v2726_v14 = vadd.f32 %v4589_v12, %v2690_v59 }
 0x27c   : > { %2925 = vst.msk [vmem:[%s4617_s26 + $0x90] sm:$0xff] %vm329_vm1, %v2893_v9  ;;  %v2079_v62 = vpop.f32.mrf.mxu2 }
 0x27d   : > { %vm2758_vm6 = vcmp.ge.f32.partialorder %v2726_v14, 0.0  ;;  %v2790_v2 = vmul.f32 0.01, %v2726_v14  ;;  %v2135_v24 = vadd.f32 %v2079_v62, %v1856_v5  ;;  %v2357_v18 = vpop.f32.mrf.mxu3 }
 0x27e   : > { %v1803_v16 = vpop.f32.mrf.mxu1 }
 0x27f   : > { %v2822_v15 = vsel %vm2758_vm6, %v2726_v14, %v2790_v2  ;;  %v2413_v20 = vadd.f32 %v2357_v18, %v2135_v24  ;;  %v2638_v30 = vpop.f32.mrf.mxu0  ;;  %v1857_v55 = vadd.f32 %v1803_v16, %v4465_v41 }
 0x280   : > { %v2858_v42 = vmul.f32 %v4605_v54, %v2822_v15 }
 0x281   : > { %v2691_v27 = vadd.f32 %v2635_v23, %v2413_v20 }
 0x282   : > { %v2894_v48 = vadd.f32 %v4610_v21, %v2858_v42 }
 0x283   : > { %v2727_v49 = vadd.f32 %v4589_v12, %v2691_v27 }
 0x284   : > { %2926 = vst.msk [vmem:[%s4617_s26 + $0x98] sm:$0xff] %vm329_vm1, %v2894_v48  ;;  %v2082_v32 = vpop.f32.mrf.mxu2 }
 0x285   : > { %vm2759_vm7 = vcmp.ge.f32.partialorder %v2727_v49, 0.0  ;;  %v2791_v63 = vmul.f32 0.01, %v2727_v49  ;;  %v2136_v13 = vadd.f32 %v2082_v32, %v1857_v55  ;;  %v2360_v7 = vpop.f32.mrf.mxu3 }
 0x286   : > { %v1806_v19 = vpop.f32.mrf.mxu1 }
 0x287   : > { %v2823_v36 = vsel %vm2759_vm7, %v2727_v49, %v2791_v63  ;;  %v2414_v50 = vadd.f32 %v2360_v7, %v2136_v13  ;;  %v2641_v45 = vpop.f32.mrf.mxu0  ;;  %v1858_v41 = vadd.f32 %v1806_v19, %v4476_v10 }
 0x288   : > { %v2859_v6 = vmul.f32 %v4605_v54, %v2823_v36 }
 0x289   : > { %v2692_v46 = vadd.f32 %v2638_v30, %v2414_v50 }
 0x28a   : > { %v2895_v34 = vadd.f32 %v4610_v21, %v2859_v6 }
 0x28b   : > { %v2728_v26 = vadd.f32 %v4589_v12, %v2692_v46 }
 0x28c   : > { %2927 = vst.msk [vmem:[%s4617_s26 + $0xa0] sm:$0xff] %vm329_vm1, %v2895_v34  ;;  %v2085_v17 = vpop.f32.mrf.mxu2 }
 0x28d   : > { %vm2760_vm8 = vcmp.ge.f32.partialorder %v2728_v26, 0.0  ;;  %v2792_v4 = vmul.f32 0.01, %v2728_v26  ;;  %v2137_v35 = vadd.f32 %v2085_v17, %v1858_v41  ;;  %v2363_v61 = vpop.f32.mrf.mxu3 }
 0x28e   : > { %v1809_v52 = vpop.f32.mrf.mxu1 }
 0x28f   : > { %v2824_v28 = vsel %vm2760_vm8, %v2728_v26, %v2792_v4  ;;  %v2415_v39 = vadd.f32 %v2363_v61, %v2137_v35  ;;  %v2644_v22 = vpop.f32.mrf.mxu0  ;;  %v1859_v10 = vadd.f32 %v1809_v52, %v4487_v58 }
 0x290   : > { %v2860_v60 = vmul.f32 %v4605_v54, %v2824_v28 }
 0x291   : > { %v2693_v40 = vadd.f32 %v2641_v45, %v2415_v39 }
 0x292   : > { %v2896_v57 = vadd.f32 %v4610_v21, %v2860_v60 }
 0x293   : > { %v2729_v38 = vadd.f32 %v4589_v12, %v2693_v40 }
 0x294   : > { %2928 = vst.msk [vmem:[%s4617_s26 + $0xa8] sm:$0xff] %vm329_vm1, %v2896_v57  ;;  %v2088_v3 = vpop.f32.mrf.mxu2 }
 0x295   : > { %vm2761_vm9 = vcmp.ge.f32.partialorder %v2729_v38, 0.0  ;;  %v2793_v8 = vmul.f32 0.01, %v2729_v38  ;;  %v2138_v11 = vadd.f32 %v2088_v3, %v1859_v10  ;;  %v2366_v37 = vpop.f32.mrf.mxu3 }
 0x296   : > { %v1812_v25 = vpop.f32.mrf.mxu1 }
 0x297   : > { %v2825_v44 = vsel %vm2761_vm9, %v2729_v38, %v2793_v8  ;;  %v2416_v1 = vadd.f32 %v2366_v37, %v2138_v11  ;;  %v2647_v23 = vpop.f32.mrf.mxu0  ;;  %v1860_v58 = vadd.f32 %v1812_v25, %v4498_v51 }
 0x298   : > { %v2861_v29 = vmul.f32 %v4605_v54, %v2825_v44 }
 0x299   : > { %v2694_v59 = vadd.f32 %v2644_v22, %v2416_v1 }
 0x29a   : > { %v2897_v9 = vadd.f32 %v4610_v21, %v2861_v29 }
 0x29b   : > { %v2730_v5 = vadd.f32 %v4589_v12, %v2694_v59 }
 0x29c   : > { %2929 = vst.msk [vmem:[%s4617_s26 + $0xb0] sm:$0xff] %vm329_vm1, %v2897_v9  ;;  %v2091_v14 = vpop.f32.mrf.mxu2 }
 0x29d   : > { %vm2762_vm10 = vcmp.ge.f32.partialorder %v2730_v5, 0.0  ;;  %v2794_v62 = vmul.f32 0.01, %v2730_v5  ;;  %v2139_v2 = vadd.f32 %v2091_v14, %v1860_v58  ;;  %v2369_v24 = vpop.f32.mrf.mxu3 }
 0x29e   : > { %v1815_v18 = vpop.f32.mrf.mxu1 }
 0x29f   : > { %v2826_v16 = vsel %vm2762_vm10, %v2730_v5, %v2794_v62  ;;  %v2417_v15 = vadd.f32 %v2369_v24, %v2139_v2  ;;  %v2650_v20 = vpop.f32.mrf.mxu0  ;;  %v1861_v51 = vadd.f32 %v1815_v18, %v4509_v47 }
 0x2a0   : > { %v2862_v30 = vmul.f32 %v4605_v54, %v2826_v16 }
 0x2a1   : > { %v2695_v42 = vadd.f32 %v2647_v23, %v2417_v15 }
 0x2a2   : > { %v2898_v27 = vadd.f32 %v4610_v21, %v2862_v30 }
 0x2a3   : > { %v2731_v48 = vadd.f32 %v4589_v12, %v2695_v42 }
 0x2a4   : > { %2930 = vst.msk [vmem:[%s4617_s26 + $0xb8] sm:$0xff] %vm329_vm1, %v2898_v27  ;;  %v2094_v55 = vpop.f32.mrf.mxu2 }
 0x2a5   : > { %vm2763_vm11 = vcmp.ge.f32.partialorder %v2731_v48, 0.0  ;;  %v2795_v49 = vmul.f32 0.01, %v2731_v48  ;;  %v2140_v32 = vadd.f32 %v2094_v55, %v1861_v51  ;;  %v2372_v63 = vpop.f32.mrf.mxu3 }
 0x2a6   : > { %v1818_v13 = vpop.f32.mrf.mxu1 }
 0x2a7   : > { %v2827_v7 = vsel %vm2763_vm11, %v2731_v48, %v2795_v49  ;;  %v2418_v19 = vadd.f32 %v2372_v63, %v2140_v32  ;;  %v2653_v36 = vpop.f32.mrf.mxu0  ;;  %v1862_v47 = vadd.f32 %v1818_v13, %v4520_v33  ;;  %v3590_v49 = vld [vmem:[%s4946_s4] ss:$0 sm:$0xff] }
 0x2a8   : > { %v2863_v50 = vmul.f32 %v4605_v54, %v2827_v7 }
 0x2a9   : > { %v2696_v45 = vadd.f32 %v2650_v20, %v2418_v19 }
 0x2aa   : > { %v2899_v6 = vadd.f32 %v4610_v21, %v2863_v50 }
 0x2ab   : > { %v2732_v46 = vadd.f32 %v4589_v12, %v2696_v45 }
 0x2ac   : > { %2931 = vst.msk [vmem:[%s4617_s26 + $0xc0] sm:$0xff] %vm329_vm1, %v2899_v6  ;;  %v2097_v34 = vpop.f32.mrf.mxu2 }
 0x2ad   : > { %vm2764_vm12 = vcmp.ge.f32.partialorder %v2732_v46, 0.0  ;;  %v2796_v41 = vmul.f32 0.01, %v2732_v46  ;;  %v2141_v26 = vadd.f32 %v2097_v34, %v1862_v47  ;;  %v2375_v17 = vpop.f32.mrf.mxu3 }
 0x2ae   : > { %v1821_v4 = vpop.f32.mrf.mxu1 }
 0x2af   : > { %v2828_v35 = vsel %vm2764_vm12, %v2732_v46, %v2796_v41  ;;  %v2419_v61 = vadd.f32 %v2375_v17, %v2141_v26  ;;  %v2656_v52 = vpop.f32.mrf.mxu0  ;;  %v1863_v33 = vadd.f32 %v1821_v4, %v4531_v56 }
 0x2b0   : > { %v2864_v28 = vmul.f32 %v4605_v54, %v2828_v35 }
 0x2b1   : > { %v2697_v39 = vadd.f32 %v2653_v36, %v2419_v61 }
 0x2b2   : > { %v2900_v22 = vadd.f32 %v4610_v21, %v2864_v28 }
 0x2b3   : > { %v2733_v60 = vadd.f32 %v4589_v12, %v2697_v39 }
 0x2b4   : > { %2932 = vst.msk [vmem:[%s4617_s26 + $0xc8] sm:$0xff] %vm329_vm1, %v2900_v22  ;;  %v2100_v40 = vpop.f32.mrf.mxu2 }
 0x2b5   : > { %vm2765_vm13 = vcmp.ge.f32.partialorder %v2733_v60, 0.0  ;;  %v2797_v57 = vmul.f32 0.01, %v2733_v60  ;;  %v2142_v10 = vadd.f32 %v2100_v40, %v1863_v33  ;;  %v2378_v38 = vpop.f32.mrf.mxu3 }
 0x2b6   : > { %v1824_v3 = vpop.f32.mrf.mxu1 }
 0x2b7   : > { %v2829_v8 = vsel %vm2765_vm13, %v2733_v60, %v2797_v57  ;;  %v2420_v11 = vadd.f32 %v2378_v38, %v2142_v10  ;;  %v2659_v25 = vpop.f32.mrf.mxu0  ;;  %v1864_v56 = vadd.f32 %v1824_v3, %v4542_v31 }
 0x2b8   : > { %v2865_v37 = vmul.f32 %v4605_v54, %v2829_v8 }
 0x2b9   : > { %v2698_v44 = vadd.f32 %v2656_v52, %v2420_v11 }
 0x2ba   : > { %v2901_v1 = vadd.f32 %v4610_v21, %v2865_v37 }
 0x2bb   : > { %v2734_v23 = vadd.f32 %v4589_v12, %v2698_v44  ;;  %v3588_v12 = vld [vmem:[%s4944_s2] ss:$0 sm:$0xff] }
 0x2bc   : > { %2933 = vst.msk [vmem:[%s4617_s26 + $0xd0] sm:$0xff] %vm329_vm1, %v2901_v1  ;;  %v2103_v29 = vpop.f32.mrf.mxu2 }
 0x2bd   : > { %vm2766_vm14 = vcmp.ge.f32.partialorder %v2734_v23, 0.0  ;;  %v2798_v59 = vmul.f32 0.01, %v2734_v23  ;;  %v2143_v9 = vadd.f32 %v2103_v29, %v1864_v56  ;;  %v2381_v58 = vpop.f32.mrf.mxu3 }
 0x2be   : > { %v1827_v5 = vpop.f32.mrf.mxu1 }
 0x2bf   : > { %v2830_v14 = vsel %vm2766_vm14, %v2734_v23, %v2798_v59  ;;  %v2421_v62 = vadd.f32 %v2381_v58, %v2143_v9  ;;  %v2662_v16 = vpop.f32.mrf.mxu0  ;;  %v1865_v31 = vadd.f32 %v1827_v5, %v4553_v53  ;;  %v3589_v53 = vld [vmem:[%s4945_s3] ss:$0 sm:$0xff] }
 0x2c0   : > { %v2866_v2 = vmul.f32 %v4605_v54, %v2830_v14 }
 0x2c1   : > { %v2699_v24 = vadd.f32 %v2659_v25, %v2421_v62 }
 0x2c2   : > { %v2902_v18 = vadd.f32 %v4610_v21, %v2866_v2 }
 0x2c3   : > { %v2735_v15 = vadd.f32 %v3588_v12, %v2699_v24 }
 0x2c4   : > { %2934 = vst.msk [vmem:[%s4617_s26 + $0xd8] sm:$0xff] %vm329_vm1, %v2902_v18  ;;  %v2106_v20 = vpop.f32.mrf.mxu2 }
 0x2c5   : > { %vm2767_vm15 = vcmp.ge.f32.partialorder %v2735_v15, 0.0  ;;  %v2799_v30 = vmul.f32 0.01, %v2735_v15  ;;  %v2144_v42 = vadd.f32 %v2106_v20, %v1865_v31  ;;  %v2384_v27 = vpop.f32.mrf.mxu3 }
 0x2c6   : > { %v1830_v54 = vpop.f32.mrf.mxu1 }
 0x2c7   : > { %v2831_v51 = vsel %vm2767_vm15, %v2735_v15, %v2799_v30  ;;  %v2422_v48 = vadd.f32 %v2384_v27, %v2144_v42  ;;  %v1866_v63 = vadd.f32 %v1830_v54, %v4564_v43  ;;  %v2665_v19 = vpop.f32.mrf.mxu0 }
 0x2c8   : > { %v2867_v21 = vmul.f32 %v3589_v53, %v2831_v51 }
 0x2c9   : > { %v2700_v55 = vadd.f32 %v2662_v16, %v2422_v48 }
 0x2ca   : > { %v2903_v32 = vadd.f32 %v3590_v49, %v2867_v21 }
 0x2cb   : > { %v2736_v13 = vadd.f32 %v3588_v12, %v2700_v55 }
 0x2cc   : > { %2935 = vst.msk [vmem:[%s4617_s26 + $0xe0] sm:$0xff] %vm329_vm1, %v2903_v32  ;;  %v2109_v7 = vpop.f32.mrf.mxu2 }
 0x2cd   : > { %vm2768_vm0 = vcmp.ge.f32.partialorder %v2736_v13, 0.0  ;;  %v2800_v36 = vmul.f32 0.01, %v2736_v13  ;;  %v2145_v50 = vadd.f32 %v2109_v7, %v1866_v63  ;;  %v2387_v45 = vpop.f32.mrf.mxu3 }
 0x2ce   : > { %v1833_v34 = vpop.f32.mrf.mxu1 }
 0x2cf   : > { %v2832_v6 = vsel %vm2768_vm0, %v2736_v13, %v2800_v36  ;;  %v2423_v47 = vadd.f32 %v2387_v45, %v2145_v50  ;;  %v1867_v17 = vadd.f32 %v1833_v34, %v4576_v0  ;;  %v2668_v28 = vpop.f32.mrf.mxu0 }
 0x2d0   : > { %v2868_v46 = vmul.f32 %v3589_v53, %v2832_v6 }
 0x2d1   : > { %v2701_v41 = vadd.f32 %v2665_v19, %v2423_v47 }
 0x2d2   : > { %v2904_v26 = vadd.f32 %v3590_v49, %v2868_v46 }
 0x2d3   : > { %v2737_v43 = vadd.f32 %v3588_v12, %v2701_v41 }
 0x2d4   : > { %2936 = vst.msk [vmem:[%s4617_s26 + $0xe8] sm:$0xff] %vm329_vm1, %v2904_v26  ;;  %v2112_v4 = vpop.f32.mrf.mxu2 }
 0x2d5   : > { %vm2769_vm2 = vcmp.ge.f32.partialorder %v2737_v43, 0.0  ;;  %v2801_v35 = vmul.f32 0.01, %v2737_v43  ;;  %v2146_v61 = vadd.f32 %v2112_v4, %v1867_v17  ;;  %v2390_v52 = vpop.f32.mrf.mxu3 }
 0x2d7   : > { %v2833_v39 = vsel %vm2769_vm2, %v2737_v43, %v2801_v35  ;;  %v2424_v22 = vadd.f32 %v2390_v52, %v2146_v61 }
 0x2d8   : > { %v2869_v33 = vmul.f32 %v3589_v53, %v2833_v39 }
 0x2d9   : > { %v2702_v60 = vadd.f32 %v2668_v28, %v2424_v22 }
 0x2da   : > { %v2905_v40 = vadd.f32 %v3590_v49, %v2869_v33 }
 0x2db   : > { %v2738_v57 = vadd.f32 %v3588_v12, %v2702_v60 }
 0x2dc   : > { %2937 = vst.msk [vmem:[%s4617_s26 + $0xf0] sm:$0xff] %vm329_vm1, %v2905_v40 }
 0x2dd   : > { %vm2770_vm3 = vcmp.ge.f32.partialorder %v2738_v57, 0.0  ;;  %v2802_v0 = vmul.f32 0.01, %v2738_v57 }
 0x2df   : > { %v2834_v10 = vsel %vm2770_vm3, %v2738_v57, %v2802_v0 }
 0x2e0   : > { %v2870_v38 = vmul.f32 %v3589_v53, %v2834_v10 }
 0x2e2   : > { %v2906_v3 = vadd.f32 %v3590_v49, %v2870_v38 }
 0x2e4   : > { %2938 = vst.msk [vmem:[%s4617_s26 + $0xf8] sm:$0xff] %vm329_vm1, %v2906_v3 }
 0x2e5 PF: > { %s15_s22 = sadd.s32 1, %s3629_s22   ;;  %s5045_s18 = smov %s3621_s20 }
 0x2e6   : > { %p12_p8 = scmp.ge.s32.totalorder %s15_s22, 10   ;;  %s5046_s19 = smov %s3625_s21 }
 0x2e7   : > { %s5047_s20 = smov %s5050_s23  ;;  %s5048_s21 = smov %s5054_s24 }
 0x2e8   :  { %14 = sbr.rel (!%p12_p8) target bundleno = 3 (0x3), region = 80 }

// kernel: decoder_block_forward.4
= control target key start
LH: loop header
LB: loop body
LE: loop exit
PB: predicated region body
PF: predicated region fallthrough
CT: control target
= control target key end

     0   :  { %s6780_s24 = smov 0   ;;  %s6782_s25 = smov 0   ;;  %s9208_s0 = inlined_call_operand.vmem [shape: f32[2,4,10,34,4], index: 0, kind: input, shape index: {}]   ;;  %s9209_s1 = inlined_call_operand.vmem [shape: f32[2,4,10,34,4], index: 1, kind: input, shape index: {}]   ;;  %s9210_s2 = inlined_call_operand.vmem [shape: f32[9,4,4], index: 2, kind: input, shape index: {}]   ;;  %s9211_s3 = inlined_call_operand.vmem [shape: f32[9,4,4], index: 3, kind: input, shape index: {}]   ;;  %s9212_s4 = inlined_call_operand.vmem [shape: f32[1,4], index: 4, kind: input, shape index: {}]   ;;  %s9213_s5 = inlined_call_operand.vmem [shape: f32[1,4], index: 5, kind: input, shape index: {}]   ;;  %s9214_s6 = inlined_call_operand.vmem [shape: f32[1,4], index: 6, kind: input, shape index: {}]   ;;  %s9215_s7 = inlined_call_operand.vmem [shape: f32[2,1024,4], index: 7, kind: output, shape index: {}]  }
   0x1   :  { %s6784_s26 = smov 0   ;;  %s6786_s27 = smov 0  }
   0x2   :  { %s6788_s28 = smov 0  }
   0x3 LB: > { %s26_s29 = sadd.s32 1, %s6730_s26  ;;  %s29_s30 = sadd.s32 1, %s6734_s27  ;;  %s6738_s28 = sphi %s6788_s28, %s17_s28   ;;  %s6734_s27 = sphi %s6786_s27, %s9419_s27   ;;  %s6730_s26 = sphi %s6784_s26, %s9418_s26   ;;  %s6726_s25 = sphi %s6782_s25, %s9417_s25   ;;  %s6722_s24 = sphi %s6780_s24, %s9416_s24  }
   0x4   : > { %p27_p0 = scmp.ge.s32.totalorder %s26_s29, 4  ;;  %p5648_p1 = scmp.ge.s32.totalorder %s6738_s28, 1 }
   0x5   : > { %p273_p2 = scmp.lt.s32.totalorder %s6738_s28, 9 }
   0x6   : > { %s9421_s29 = smov (%p27_p0, %s26_s29), 0  ;;  %s9423_s30 = smov (!%p27_p0, %s29_s30), %s6734_s27 }
   0x7   : > { %p274_p3 = pnand %p5648_p1, %p273_p2  ;;  %p31_p4 = scmp.ge.s32.totalorder %s9423_s30, 2 }
   0x9   : > { %s9425_s30 = smov (%p31_p4, %s9423_s30), 0  ;;  %277 = sbr.rel (%p274_p3) target bundleno = 1319 (0x527), region = 48 }
   0xe   : > { %v5654_v0 = vld [vmem:[%s9210_s2 + $0x4] sm:$0xf]  ;;  %vm514_vm0 = vcmask 1043456   ;;  %v382_v1 = vld [vmem:[%s9210_s2] sm:$0xf]  ;;  %p322_p5 = scmp.lt.s32.totalorder %s6726_s25, 1 }
   0xf   : > { %6650 = vmatpush.msk.msra.mxu2 %vm514_vm0, %v5654_v0  ;;  %6651 = vmatpush.msk.msra.mxu3 %vm514_vm0, %v382_v1  ;;  %p324_p6 = scmp.lt.s32.totalorder %s6722_s24, 3  ;;  %v5721_v2 = vld [vmem:[%s9210_s2 + $0x8] sm:$0xf]  ;;  %v5787_v3 = vld [vmem:[%s9210_s2 + $0xc] sm:$0xf]  ;;  %vm417_vm1 = vcmask 31744  }
  0x10   : > { %s9427_s25 = smov (!%p322_p5, %s6726_s25), 1  ;;  %v5853_v4 = vld [vmem:[%s9210_s2 + $0x10] sm:$0xf]  ;;  %v5919_v5 = vld [vmem:[%s9210_s2 + $0x14] sm:$0xf]  ;;  %5655 = vmatpush.msk.msra.mxu0 %vm514_vm0, %v5654_v0  ;;  %5688 = vmatpush.msk.msra.mxu1 %vm514_vm0, %v382_v1 }
  0x11   : > { %5722 = vmatpush.msk.msrb.mxu2 %vm514_vm0, %v5721_v2  ;;  %5788 = vmatpush.msk.msrb.mxu3 %vm514_vm0, %v5787_v3  ;;  %s325_s20 = scalar_select %p324_p6, %s6722_s24, 3  ;;  %v5985_v58 = vld [vmem:[%s9210_s2 + $0x18] sm:$0xf]  ;;  %v6051_v59 = vld [vmem:[%s9210_s2 + $0x1c] sm:$0xf] }
  0x12   : > { %s6653_s21 = smul.u32 200, %s9427_s25  ;;  %5854 = vmatpush.msk.msrb.mxu0 %vm514_vm0, %v5853_v4  ;;  %5920 = vmatpush.msk.msrb.mxu1 %vm514_vm0, %v5919_v5  ;;  %v6117_v0 = vld [vmem:[%s9210_s2 + $0x20] sm:$0xf]  ;;  %s5652_s12 = sshll.u32 %s9427_s25, 7 }
  0x13   : > { %s6652_s22 = smul.u32 50, %s325_s20  ;;  %v2823_v1 = vld [vmem:[%s9211_s3] sm:$0xf] }
  0x15   : > { %s6843_s23 = sadd.s32 %s6653_s21, %s6652_s22 }
  0x16   : > { %s5649_s8 = sshll.u32 %s6843_s23, 3 }
  0x17   : > { %s6851_s11 = scalar_lea.vmem %s9208_s0, %s5649_s8  ;;  %s7704_s17 = scalar_lea.vmem %s9209_s1, %s5649_s8 }
  0x18   : > { %v6854_v6 = vld [vmem:[%s6851_s11 + $0xa1] sm:$0xff]  ;;  %v6868_v10 = vld [vmem:[%s6851_s11 + $0xa9] sm:$0xff]  ;;  %v6882_v14 = vld [vmem:[%s6851_s11 + $0xb1] sm:$0xff] }
  0x19   : > { %v6857_v7 = vld [vmem:[%s6851_s11 + $0xa0] sm:$0xff]  ;;  %5672 = vmatmul.msk.f32.vlgmr.msra.gmra.mxu2 %vm417_vm1, %v6854_v6  ;;  %v6871_v11 = vld [vmem:[%s6851_s11 + $0xa8] sm:$0xff]  ;;  %v6885_v15 = vld [vmem:[%s6851_s11 + $0xb0] sm:$0xff] }
  0x1a   : > { %5705 = vmatmul.msk.f32.vlgmr.msra.gmra.mxu3 %vm417_vm1, %v6857_v7  ;;  %v383_v8 = vld [vmem:[%s6851_s11 + $0x1] sm:$0xff]  ;;  %v384_v12 = vld [vmem:[%s6851_s11 + $0x9] sm:$0xff]  ;;  %v385_v16 = vld [vmem:[%s6851_s11 + $0x11] sm:$0xff]  ;;  %5986 = vmatpush.msk.msra.mxu2 %vm514_vm0, %v5985_v58 }
  0x1b   : > { %v350_v9 = vld [vmem:[%s6851_s11] sm:$0xff]  ;;  %5656 = vmatmul.msk.f32.vlgmr.msra.gmra.mxu0 %vm417_vm1, %v383_v8  ;;  %v351_v13 = vld [vmem:[%s6851_s11 + $0x8] sm:$0xff]  ;;  %v352_v17 = vld [vmem:[%s6851_s11 + $0x10] sm:$0xff]  ;;  %6052 = vmatpush.msk.msra.mxu3 %vm514_vm0, %v6051_v59 }
  0x1c   : > { %5689 = vmatmul.msk.f32.vlgmr.msra.gmra.mxu1 %vm417_vm1, %v350_v9  ;;  %v6896_v18 = vld [vmem:[%s6851_s11 + $0xb9] sm:$0xff]  ;;  %v6910_v22 = vld [vmem:[%s6851_s11 + $0xc9] sm:$0xff]  ;;  %v6930_v26 = vld [vmem:[%s6851_s11 + $0xd1] sm:$0xff]  ;;  %6118 = vmatpush.msk.msra.mxu0 %vm514_vm0, %v6117_v0 }
  0x1d   : > { %v6899_v19 = vld [vmem:[%s6851_s11 + $0xb8] sm:$0xff]  ;;  %v6913_v23 = vld [vmem:[%s6851_s11 + $0xc8] sm:$0xff]  ;;  %v6933_v27 = vld [vmem:[%s6851_s11 + $0xd0] sm:$0xff]  ;;  %6151 = vmatpush.msk.msra.mxu1 %vm514_vm0, %v2823_v1 }
  0x1e   : > { %v386_v20 = vld [vmem:[%s6851_s11 + $0x19] sm:$0xff]  ;;  %v6916_v24 = vld [vmem:[%s6851_s11 + $0x29] sm:$0xff]  ;;  %v6936_v28 = vld [vmem:[%s6851_s11 + $0x31] sm:$0xff] }
  0x1f   : > { %v353_v21 = vld [vmem:[%s6851_s11 + $0x18] sm:$0xff]  ;;  %v6919_v25 = vld [vmem:[%s6851_s11 + $0x28] sm:$0xff]  ;;  %v6939_v29 = vld [vmem:[%s6851_s11 + $0x30] sm:$0xff] }
  0x20   : > { %v6950_v30 = vld [vmem:[%s6851_s11 + $0xd9] sm:$0xff]  ;;  %v6970_v34 = vld [vmem:[%s6851_s11 + $0xe1] sm:$0xff]  ;;  %v6990_v38 = vld [vmem:[%s6851_s11 + $0xf1] sm:$0xff] }
  0x21   : > { %5673 = vmatmul.msk.f32.gmra.mxu2 %vm417_vm1, %v6868_v10  ;;  %v6953_v31 = vld [vmem:[%s6851_s11 + $0xd8] sm:$0xff]  ;;  %v6973_v35 = vld [vmem:[%s6851_s11 + $0xe0] sm:$0xff]  ;;  %v6993_v39 = vld [vmem:[%s6851_s11 + $0xf0] sm:$0xff] }
  0x22   : > { %5706 = vmatmul.msk.f32.gmra.mxu3 %vm417_vm1, %v6871_v11  ;;  %v6956_v32 = vld [vmem:[%s6851_s11 + $0x39] sm:$0xff]  ;;  %v6976_v36 = vld [vmem:[%s6851_s11 + $0x41] sm:$0xff]  ;;  %v6996_v40 = vld [vmem:[%s6851_s11 + $0x51] sm:$0xff] }
  0x23   : > { %5657 = vmatmul.msk.f32.gmra.mxu0 %vm417_vm1, %v384_v12  ;;  %v6959_v33 = vld [vmem:[%s6851_s11 + $0x38] sm:$0xff]  ;;  %v6979_v37 = vld [vmem:[%s6851_s11 + $0x40] sm:$0xff]  ;;  %v6999_v41 = vld [vmem:[%s6851_s11 + $0x50] sm:$0xff] }
  0x24   : > { %5690 = vmatmul.msk.f32.gmra.mxu1 %vm417_vm1, %v351_v13  ;;  %v7010_v42 = vld [vmem:[%s6851_s11 + $0xf9] sm:$0xff]  ;;  %v7030_v46 = vld [vmem:[%s6851_s11 + $0x101] sm:$0xff]  ;;  %v7050_v50 = vld [vmem:[%s6851_s11 + $0x109] sm:$0xff] }
  0x25   : > { %v7013_v43 = vld [vmem:[%s6851_s11 + $0xf8] sm:$0xff]  ;;  %v7033_v47 = vld [vmem:[%s6851_s11 + $0x100] sm:$0xff]  ;;  %v7053_v51 = vld [vmem:[%s6851_s11 + $0x108] sm:$0xff] }
  0x26   : > { %v7016_v44 = vld [vmem:[%s6851_s11 + $0x59] sm:$0xff]  ;;  %v7036_v48 = vld [vmem:[%s6851_s11 + $0x61] sm:$0xff]  ;;  %v7056_v52 = vld [vmem:[%s6851_s11 + $0x69] sm:$0xff] }
  0x27   : > { %v7019_v45 = vld [vmem:[%s6851_s11 + $0x58] sm:$0xff]  ;;  %v7039_v49 = vld [vmem:[%s6851_s11 + $0x60] sm:$0xff]  ;;  %v7059_v53 = vld [vmem:[%s6851_s11 + $0x68] sm:$0xff] }
  0x28   : > { %v7070_v54 = vld [vmem:[%s6851_s11 + $0x119] sm:$0xff]  ;;  %v7098_v60 = vld [vmem:[%s6851_s11 + $0x121] sm:$0xff]  ;;  %v7125_v2 = vld [vmem:[%s6851_s11 + $0x129] sm:$0xff] }
  0x29   : > { %5674 = vmatmul.msk.f32.gmra.mxu2 %vm417_vm1, %v6882_v14  ;;  %v7073_v55 = vld [vmem:[%s6851_s11 + $0x118] sm:$0xff]  ;;  %9248 = vst [vmem:[#allocation2_spill] sm:$0xff] %v7098_v60  ;;  %v7101_v61 = vld [vmem:[%s6851_s11 + $0x120] sm:$0xff]  ;;  %v7128_v3 = vld [vmem:[%s6851_s11 + $0x128] sm:$0xff] }
  0x2a   : > { %5707 = vmatmul.msk.f32.gmra.mxu3 %vm417_vm1, %v6885_v15  ;;  %v7076_v56 = vld [vmem:[%s6851_s11 + $0x79] sm:$0xff]  ;;  %v7104_v62 = vld [vmem:[%s6851_s11 + $0x81] sm:$0xff]  ;;  %9249 = vst [vmem:[#allocation3_spill] sm:$0xff] %v7125_v2  ;;  %v7132_v4 = vld [vmem:[%s6851_s11 + $0x89] sm:$0xff] }
  0x2b   : > { %5658 = vmatmul.msk.f32.gmra.mxu0 %vm417_vm1, %v385_v16  ;;  %v7079_v57 = vld [vmem:[%s6851_s11 + $0x78] sm:$0xff]  ;;  %v7107_v63 = vld [vmem:[%s6851_s11 + $0x80] sm:$0xff]  ;;  %9250 = vst [vmem:[#allocation4_spill] sm:$0xff] %v7128_v3  ;;  %v7135_v5 = vld [vmem:[%s6851_s11 + $0x88] sm:$0xff] }
  0x2c   : > { %5691 = vmatmul.msk.f32.gmra.mxu1 %vm417_vm1, %v352_v17  ;;  %v7146_v8 = vld [vmem:[%s6851_s11 + $0x131] sm:$0xff]  ;;  %v843_v16 = vld [vmem:[%s6851_s11 + $0x2] sm:$0xff] }
  0x2d   : > { %9251 = vst [vmem:[#allocation5_spill] sm:$0xff] %v7146_v8  ;;  %v7149_v9 = vld [vmem:[%s6851_s11 + $0x130] sm:$0xff] }
  0x2e   : > { %9252 = vst [vmem:[#allocation6_spill] sm:$0xff] %v7149_v9  ;;  %v7152_v12 = vld [vmem:[%s6851_s11 + $0x91] sm:$0xff] }
  0x2f   : > { %v7155_v13 = vld [vmem:[%s6851_s11 + $0x90] sm:$0xff] }
  0x30   : > { %v844_v1 = vld [vmem:[%s6851_s11 + $0xa] sm:$0xff] }
  0x31   : > { %5675 = vmatmul.msk.f32.gmra.mxu2 %vm417_vm1, %v6896_v18 }
  0x32   : > { %5708 = vmatmul.msk.f32.gmra.mxu3 %vm417_vm1, %v6899_v19 }
  0x33   : > { %5659 = vmatmul.msk.f32.gmra.mxu0 %vm417_vm1, %v386_v20 }
  0x34   : > { %5692 = vmatmul.msk.f32.gmra.mxu1 %vm417_vm1, %v353_v21  ;;  %v5887_v21 = vld [vmem:[%s6851_s11 + $0x2a] sm:$0xff] }
  0x39   : > { %5676 = vmatmul.msk.f32.gmra.mxu2 %vm417_vm1, %v6910_v22 }
  0x3a   : > { %5709 = vmatmul.msk.f32.gmra.mxu3 %vm417_vm1, %v6913_v23 }
  0x3b   : > { %5660 = vmatmul.msk.f32.gmra.mxu0 %vm417_vm1, %v6916_v24 }
  0x3c   : > { %5693 = vmatmul.msk.f32.gmra.mxu1 %vm417_vm1, %v6919_v25 }
  0x41   : > { %5677 = vmatmul.msk.f32.gmra.mxu2 %vm417_vm1, %v6930_v26 }
  0x42   : > { %5710 = vmatmul.msk.f32.gmra.mxu3 %vm417_vm1, %v6933_v27 }
  0x43   : > { %5661 = vmatmul.msk.f32.gmra.mxu0 %vm417_vm1, %v6936_v28 }
  0x44   : > { %5694 = vmatmul.msk.f32.gmra.mxu1 %vm417_vm1, %v6939_v29 }
  0x49   : > { %5678 = vmatmul.msk.f32.gmra.mxu2 %vm417_vm1, %v6950_v30 }
  0x4a   : > { %5711 = vmatmul.msk.f32.gmra.mxu3 %vm417_vm1, %v6953_v31 }
  0x4b   : > { %5662 = vmatmul.msk.f32.gmra.mxu0 %vm417_vm1, %v6956_v32 }
  0x4c   : > { %5695 = vmatmul.msk.f32.gmra.mxu1 %vm417_vm1, %v6959_v33 }
  0x51   : > { %5679 = vmatmul.msk.f32.gmra.mxu2 %vm417_vm1, %v6970_v34 }
  0x52   : > { %5712 = vmatmul.msk.f32.gmra.mxu3 %vm417_vm1, %v6973_v35 }
  0x53   : > { %5663 = vmatmul.msk.f32.gmra.mxu0 %vm417_vm1, %v6976_v36 }
  0x54   : > { %5696 = vmatmul.msk.f32.gmra.mxu1 %vm417_vm1, %v6979_v37 }
  0x59   : > { %5680 = vmatmul.msk.f32.gmra.mxu2 %vm417_vm1, %v6990_v38 }
  0x5a   : > { %5713 = vmatmul.msk.f32.gmra.mxu3 %vm417_vm1, %v6993_v39 }
  0x5b   : > { %5664 = vmatmul.msk.f32.gmra.mxu0 %vm417_vm1, %v6996_v40 }
  0x5c   : > { %5697 = vmatmul.msk.f32.gmra.mxu1 %vm417_vm1, %v6999_v41 }
  0x61   : > { %5681 = vmatmul.msk.f32.gmra.mxu2 %vm417_vm1, %v7010_v42 }
  0x62   : > { %5714 = vmatmul.msk.f32.gmra.mxu3 %vm417_vm1, %v7013_v43 }
  0x63   : > { %5665 = vmatmul.msk.f32.gmra.mxu0 %vm417_vm1, %v7016_v44 }
  0x64   : > { %5698 = vmatmul.msk.f32.gmra.mxu1 %vm417_vm1, %v7019_v45 }
  0x69   : > { %5682 = vmatmul.msk.f32.gmra.mxu2 %vm417_vm1, %v7030_v46 }
  0x6a   : > { %5715 = vmatmul.msk.f32.gmra.mxu3 %vm417_vm1, %v7033_v47 }
  0x6b   : > { %5666 = vmatmul.msk.f32.gmra.mxu0 %vm417_vm1, %v7036_v48 }
  0x6c   : > { %5699 = vmatmul.msk.f32.gmra.mxu1 %vm417_vm1, %v7039_v49 }
  0x71   : > { %5683 = vmatmul.msk.f32.gmra.mxu2 %vm417_vm1, %v7050_v50 }
  0x72   : > { %5716 = vmatmul.msk.f32.gmra.mxu3 %vm417_vm1, %v7053_v51 }
  0x73   : > { %5667 = vmatmul.msk.f32.gmra.mxu0 %vm417_vm1, %v7056_v52 }
  0x74   : > { %5700 = vmatmul.msk.f32.gmra.mxu1 %vm417_vm1, %v7059_v53 }
  0x79   : > { %5684 = vmatmul.msk.f32.gmra.mxu2 %vm417_vm1, %v7070_v54 }
  0x7a   : > { %5717 = vmatmul.msk.f32.gmra.mxu3 %vm417_vm1, %v7073_v55 }
  0x7b   : > { %5668 = vmatmul.msk.f32.gmra.mxu0 %vm417_vm1, %v7076_v56 }
  0x7c   : > { %5701 = vmatmul.msk.f32.gmra.mxu1 %vm417_vm1, %v7079_v57 }
  0x81   : > { %5685 = vmatmul.msk.f32.gmra.mxu2 %vm417_vm1, %v7098_v60  ;;  %v5890_v60 = vld [vmem:[%s6851_s11 + $0x42] sm:$0xff] }
  0x82   : > { %5718 = vmatmul.msk.f32.gmra.mxu3 %vm417_vm1, %v7101_v61 }
  0x83   : > { %5669 = vmatmul.msk.f32.gmra.mxu0 %vm417_vm1, %v7104_v62 }
  0x84   : > { %5702 = vmatmul.msk.f32.gmra.mxu1 %vm417_vm1, %v7107_v63 }
  0x89   : > { %5686 = vmatmul.msk.f32.gmra.mxu2 %vm417_vm1, %v7125_v2 }
  0x8a   : > { %5719 = vmatmul.msk.f32.gmra.mxu3 %vm417_vm1, %v7128_v3 }
  0x8b   : > { %5670 = vmatmul.msk.f32.gmra.mxu0 %vm417_vm1, %v7132_v4 }
  0x8c   : > { %5703 = vmatmul.msk.f32.gmra.mxu1 %vm417_vm1, %v7135_v5 }
  0x91   : > { %5687 = vmatmul.msk.f32.gmra.mxu2 %vm417_vm1, %v7146_v8 }
  0x92   : > { %5720 = vmatmul.msk.f32.gmra.mxu3 %vm417_vm1, %v7149_v9 }
  0x93   : > { %5671 = vmatmul.msk.f32.gmra.mxu0 %vm417_vm1, %v7152_v12 }
  0x94   : > { %5704 = vmatmul.msk.f32.gmra.mxu1 %vm417_vm1, %v7155_v13 }
  0x98   : > { %v7166_v17 = vpop.f32.mrf.mxu0 }
  0x99   : > { %v7168_v20 = vpop.f32.mrf.mxu1  ;;  %5723 = vmatmul.msk.f32.vlgmr.msrb.gmra.mxu2 %vm417_vm1, %v843_v16  ;;  %v5888_v16 = vld [vmem:[%s6851_s11 + $0x32] sm:$0xff] }
  0x9a   : > { %5789 = vmatmul.msk.f32.vlgmr.msrb.gmra.mxu3 %vm417_vm1, %v6919_v25 }
  0x9b   : > { %5855 = vmatmul.msk.f32.vlgmr.msrb.gmra.mxu0 %vm417_vm1, %v6916_v24 }
  0x9c   : > { %5921 = vmatmul.msk.f32.vlgmr.msrb.gmra.mxu1 %vm417_vm1, %v5887_v21  ;;  %v583_v58 = vpop.f32.mrf.mxu2 }
  0x9d   : > { %v795_v59 = vpop.f32.mrf.mxu3 }
  0x9e   : > { %v7177_v0 = vadd.f32 %v795_v59, %v583_v58  ;;  %v845_v59 = vld [vmem:[%s6851_s11 + $0x12] sm:$0xff] }
  0xa0   : > { %9253 = vst [vmem:[#allocation7_spill] sm:$0xff] %v7177_v0  ;;  %v7180_v8 = vpop.f32.mrf.mxu0 }
  0xa1   : > { %v7182_v9 = vpop.f32.mrf.mxu1  ;;  %5724 = vmatmul.msk.f32.gmra.mxu2 %vm417_vm1, %v844_v1  ;;  %v5889_v1 = vld [vmem:[%s6851_s11 + $0x3a] sm:$0xff] }
  0xa2   : > { %5790 = vmatmul.msk.f32.gmra.mxu3 %vm417_vm1, %v6939_v29 }
  0xa3   : > { %5856 = vmatmul.msk.f32.gmra.mxu0 %vm417_vm1, %v6936_v28 }
  0xa4   : > { %5922 = vmatmul.msk.f32.gmra.mxu1 %vm417_vm1, %v5888_v16  ;;  %v586_v24 = vpop.f32.mrf.mxu2 }
  0xa5   : > { %v798_v25 = vpop.f32.mrf.mxu3 }
  0xa6   : > { %v7191_v58 = vadd.f32 %v798_v25, %v586_v24  ;;  %v846_v25 = vld [vmem:[%s6851_s11 + $0x1a] sm:$0xff] }
  0xa8   : > { %9254 = vst [vmem:[#allocation8_spill] sm:$0xff] %v7191_v58  ;;  %v7194_v0 = vpop.f32.mrf.mxu0 }
  0xa9   : > { %v7196_v2 = vpop.f32.mrf.mxu1  ;;  %5725 = vmatmul.msk.f32.gmra.mxu2 %vm417_vm1, %v845_v59 }
  0xaa   : > { %5791 = vmatmul.msk.f32.gmra.mxu3 %vm417_vm1, %v6959_v33 }
  0xab   : > { %5857 = vmatmul.msk.f32.gmra.mxu0 %vm417_vm1, %v6956_v32 }
  0xac   : > { %5923 = vmatmul.msk.f32.gmra.mxu1 %vm417_vm1, %v5889_v1  ;;  %v589_v28 = vpop.f32.mrf.mxu2 }
  0xad   : > { %v801_v29 = vpop.f32.mrf.mxu3 }
  0xae   : > { %v7205_v24 = vadd.f32 %v801_v29, %v589_v28 }
  0xb0   : > { %9255 = vst [vmem:[#allocation9_spill] sm:$0xff] %v7205_v24  ;;  %v7208_v58 = vpop.f32.mrf.mxu0  ;;  %v7226_v24 = vld [vmem:[%s6851_s11 + $0x52] sm:$0xff] }
  0xb1   : > { %v7210_v3 = vpop.f32.mrf.mxu1  ;;  %5726 = vmatmul.msk.f32.gmra.mxu2 %vm417_vm1, %v846_v25  ;;  %9257 = vst [vmem:[#allocation11_spill] sm:$0xff] %v7226_v24 }
  0xb2   : > { %5792 = vmatmul.msk.f32.gmra.mxu3 %vm417_vm1, %v6979_v37 }
  0xb3   : > { %5858 = vmatmul.msk.f32.gmra.mxu0 %vm417_vm1, %v6976_v36 }
  0xb4   : > { %5924 = vmatmul.msk.f32.gmra.mxu1 %vm417_vm1, %v5890_v60  ;;  %v592_v32 = vpop.f32.mrf.mxu2 }
  0xb5   : > { %v804_v33 = vpop.f32.mrf.mxu3 }
  0xb6   : > { %v7219_v59 = vadd.f32 %v804_v33, %v592_v32 }
  0xb8   : > { %9256 = vst [vmem:[#allocation10_spill] sm:$0xff] %v7219_v59  ;;  %v7221_v28 = vpop.f32.mrf.mxu0  ;;  %v7242_v59 = vld [vmem:[%s6851_s11 + $0x5a] sm:$0xff] }
  0xb9   : > { %v7223_v29 = vpop.f32.mrf.mxu1  ;;  %5727 = vmatmul.msk.f32.gmra.mxu2 %vm417_vm1, %v5887_v21  ;;  %9259 = vst [vmem:[#allocation13_spill] sm:$0xff] %v7242_v59 }
  0xba   : > { %5793 = vmatmul.msk.f32.gmra.mxu3 %vm417_vm1, %v6999_v41 }
  0xbb   : > { %5859 = vmatmul.msk.f32.gmra.mxu0 %vm417_vm1, %v6996_v40 }
  0xbc   : > { %5925 = vmatmul.msk.f32.gmra.mxu1 %vm417_vm1, %v7226_v24  ;;  %v595_v36 = vpop.f32.mrf.mxu2 }
  0xbd   : > { %v807_v37 = vpop.f32.mrf.mxu3 }
  0xbe   : > { %v7235_v25 = vadd.f32 %v807_v37, %v595_v36 }
  0xc0   : > { %9258 = vst [vmem:[#allocation12_spill] sm:$0xff] %v7235_v25  ;;  %v7237_v32 = vpop.f32.mrf.mxu0  ;;  %v7258_v25 = vld [vmem:[%s6851_s11 + $0x62] sm:$0xff] }
  0xc1   : > { %v7239_v33 = vpop.f32.mrf.mxu1  ;;  %5728 = vmatmul.msk.f32.gmra.mxu2 %vm417_vm1, %v5888_v16  ;;  %9261 = vst [vmem:[#allocation15_spill] sm:$0xff] %v7258_v25 }
  0xc2   : > { %5794 = vmatmul.msk.f32.gmra.mxu3 %vm417_vm1, %v7019_v45 }
  0xc3   : > { %5860 = vmatmul.msk.f32.gmra.mxu0 %vm417_vm1, %v7016_v44 }
  0xc4   : > { %5926 = vmatmul.msk.f32.gmra.mxu1 %vm417_vm1, %v7242_v59  ;;  %v598_v40 = vpop.f32.mrf.mxu2 }
  0xc5   : > { %v810_v41 = vpop.f32.mrf.mxu3 }
  0xc6   : > { %v7251_v21 = vadd.f32 %v810_v41, %v598_v40 }
  0xc8   : > { %9260 = vst [vmem:[#allocation14_spill] sm:$0xff] %v7251_v21  ;;  %v7253_v36 = vpop.f32.mrf.mxu0  ;;  %v7274_v21 = vld [vmem:[%s6851_s11 + $0x6a] sm:$0xff] }
  0xc9   : > { %v7255_v37 = vpop.f32.mrf.mxu1  ;;  %5729 = vmatmul.msk.f32.gmra.mxu2 %vm417_vm1, %v5889_v1  ;;  %9263 = vst [vmem:[#allocation17_spill] sm:$0xff] %v7274_v21 }
  0xca   : > { %5795 = vmatmul.msk.f32.gmra.mxu3 %vm417_vm1, %v7039_v49 }
  0xcb   : > { %5861 = vmatmul.msk.f32.gmra.mxu0 %vm417_vm1, %v7036_v48 }
  0xcc   : > { %5927 = vmatmul.msk.f32.gmra.mxu1 %vm417_vm1, %v7258_v25  ;;  %v601_v44 = vpop.f32.mrf.mxu2 }
  0xcd   : > { %v813_v45 = vpop.f32.mrf.mxu3 }
  0xce   : > { %v7267_v16 = vadd.f32 %v813_v45, %v601_v44 }
  0xd0   : > { %9262 = vst [vmem:[#allocation16_spill] sm:$0xff] %v7267_v16  ;;  %v7269_v40 = vpop.f32.mrf.mxu0  ;;  %v7290_v16 = vld [vmem:[%s6851_s11 + $0x7a] sm:$0xff] }
  0xd1   : > { %v7271_v41 = vpop.f32.mrf.mxu1  ;;  %5730 = vmatmul.msk.f32.gmra.mxu2 %vm417_vm1, %v5890_v60  ;;  %9265 = vst [vmem:[#allocation19_spill] sm:$0xff] %v7290_v16 }
  0xd2   : > { %5796 = vmatmul.msk.f32.gmra.mxu3 %vm417_vm1, %v7059_v53 }
  0xd3   : > { %5862 = vmatmul.msk.f32.gmra.mxu0 %vm417_vm1, %v7056_v52 }
  0xd4   : > { %5928 = vmatmul.msk.f32.gmra.mxu1 %vm417_vm1, %v7274_v21  ;;  %v604_v48 = vpop.f32.mrf.mxu2 }
  0xd5   : > { %v816_v49 = vpop.f32.mrf.mxu3 }
  0xd6   : > { %v7283_v1 = vadd.f32 %v816_v49, %v604_v48 }
  0xd8   : > { %9264 = vst [vmem:[#allocation18_spill] sm:$0xff] %v7283_v1  ;;  %v7285_v44 = vpop.f32.mrf.mxu0  ;;  %v7307_v1 = vld [vmem:[%s6851_s11 + $0x82] sm:$0xff] }
  0xd9   : > { %v7287_v45 = vpop.f32.mrf.mxu1  ;;  %5731 = vmatmul.msk.f32.gmra.mxu2 %vm417_vm1, %v7226_v24  ;;  %9267 = vst [vmem:[#allocation21_spill] sm:$0xff] %v7307_v1  ;;  %v7324_v24 = vld [vmem:[%s6851_s11 + $0x8a] sm:$0xff] }
  0xda   : > { %5797 = vmatmul.msk.f32.gmra.mxu3 %vm417_vm1, %v7079_v57  ;;  %9269 = vst [vmem:[#allocation23_spill] sm:$0xff] %v7324_v24 }
  0xdb   : > { %5863 = vmatmul.msk.f32.gmra.mxu0 %vm417_vm1, %v7076_v56 }
  0xdc   : > { %5929 = vmatmul.msk.f32.gmra.mxu1 %vm417_vm1, %v7290_v16  ;;  %v607_v52 = vpop.f32.mrf.mxu2 }
  0xdd   : > { %v819_v53 = vpop.f32.mrf.mxu3 }
  0xde   : > { %v7300_v60 = vadd.f32 %v819_v53, %v607_v52 }
  0xe0   : > { %9266 = vst [vmem:[#allocation20_spill] sm:$0xff] %v7300_v60  ;;  %v7302_v48 = vpop.f32.mrf.mxu0 }
  0xe1   : > { %v7304_v49 = vpop.f32.mrf.mxu1  ;;  %5732 = vmatmul.msk.f32.gmra.mxu2 %vm417_vm1, %v7242_v59  ;;  %v7341_v59 = vld [vmem:[%s6851_s11 + $0x92] sm:$0xff] }
  0xe2   : > { %5798 = vmatmul.msk.f32.gmra.mxu3 %vm417_vm1, %v7107_v63  ;;  %9271 = vst [vmem:[#allocation25_spill] sm:$0xff] %v7341_v59 }
  0xe3   : > { %5864 = vmatmul.msk.f32.gmra.mxu0 %vm417_vm1, %v7104_v62 }
  0xe4   : > { %5930 = vmatmul.msk.f32.gmra.mxu1 %vm417_vm1, %v7307_v1  ;;  %v610_v56 = vpop.f32.mrf.mxu2 }
  0xe5   : > { %v822_v57 = vpop.f32.mrf.mxu3 }
  0xe6   : > { %v7317_v52 = vadd.f32 %v822_v57, %v610_v56 }
  0xe8   : > { %9268 = vst [vmem:[#allocation22_spill] sm:$0xff] %v7317_v52  ;;  %v7319_v53 = vpop.f32.mrf.mxu0 }
  0xe9   : > { %v7321_v60 = vpop.f32.mrf.mxu1  ;;  %5733 = vmatmul.msk.f32.gmra.mxu2 %vm417_vm1, %v7258_v25  ;;  %v7358_v25 = vld [vmem:[%s6851_s11 + $0xa2] sm:$0xff] }
  0xea   : > { %5799 = vmatmul.msk.f32.gmra.mxu3 %vm417_vm1, %v7135_v5  ;;  %9273 = vst [vmem:[#allocation27_spill] sm:$0xff] %v7358_v25 }
  0xeb   : > { %5865 = vmatmul.msk.f32.gmra.mxu0 %vm417_vm1, %v7132_v4 }
  0xec   : > { %5931 = vmatmul.msk.f32.gmra.mxu1 %vm417_vm1, %v7324_v24  ;;  %v613_v62 = vpop.f32.mrf.mxu2 }
  0xed   : > { %v825_v63 = vpop.f32.mrf.mxu3 }
  0xee   : > { %v7334_v56 = vadd.f32 %v825_v63, %v613_v62 }
  0xf0   : > { %9270 = vst [vmem:[#allocation24_spill] sm:$0xff] %v7334_v56  ;;  %v7336_v57 = vpop.f32.mrf.mxu0 }
  0xf1   : > { %v7338_v52 = vpop.f32.mrf.mxu1  ;;  %5734 = vmatmul.msk.f32.gmra.mxu2 %vm417_vm1, %v7274_v21  ;;  %v7375_v21 = vld [vmem:[%s6851_s11 + $0xaa] sm:$0xff] }
  0xf2   : > { %5800 = vmatmul.msk.f32.gmra.mxu3 %vm417_vm1, %v7155_v13 }
  0xf3   : > { %5866 = vmatmul.msk.f32.gmra.mxu0 %vm417_vm1, %v7152_v12 }
  0xf4   : > { %5932 = vmatmul.msk.f32.gmra.mxu1 %vm417_vm1, %v7341_v59  ;;  %v616_v4 = vpop.f32.mrf.mxu2 }
  0xf5   : > { %v828_v5 = vpop.f32.mrf.mxu3 }
  0xf6   : > { %v7351_v62 = vadd.f32 %v828_v5, %v616_v4 }
  0xf8   : > { %9272 = vst [vmem:[#allocation26_spill] sm:$0xff] %v7351_v62  ;;  %v7353_v63 = vpop.f32.mrf.mxu0 }
  0xf9   : > { %v7355_v56 = vpop.f32.mrf.mxu1  ;;  %5735 = vmatmul.msk.f32.gmra.mxu2 %vm417_vm1, %v7290_v16  ;;  %v7392_v16 = vld [vmem:[%s6851_s11 + $0xb2] sm:$0xff] }
  0xfa   : > { %5801 = vmatmul.msk.f32.gmra.mxu3 %vm417_vm1, %v6857_v7 }
  0xfb   : > { %5867 = vmatmul.msk.f32.gmra.mxu0 %vm417_vm1, %v6854_v6 }
  0xfc   : > { %5933 = vmatmul.msk.f32.gmra.mxu1 %vm417_vm1, %v7358_v25  ;;  %v619_v12 = vpop.f32.mrf.mxu2 }
  0xfd   : > { %v831_v13 = vpop.f32.mrf.mxu3 }
  0xfe   : > { %v7368_v4 = vadd.f32 %v831_v13, %v619_v12 }
 0x100   : > { %9274 = vst [vmem:[#allocation28_spill] sm:$0xff] %v7368_v4  ;;  %v7370_v5 = vpop.f32.mrf.mxu0 }
 0x101   : > { %v7372_v62 = vpop.f32.mrf.mxu1  ;;  %5736 = vmatmul.msk.f32.gmra.mxu2 %vm417_vm1, %v7307_v1  ;;  %v7409_v1 = vld [vmem:[%s6851_s11 + $0xba] sm:$0xff] }
 0x102   : > { %5802 = vmatmul.msk.f32.gmra.mxu3 %vm417_vm1, %v6871_v11 }
 0x103   : > { %5868 = vmatmul.msk.f32.gmra.mxu0 %vm417_vm1, %v6868_v10 }
 0x104   : > { %5934 = vmatmul.msk.f32.gmra.mxu1 %vm417_vm1, %v7375_v21  ;;  %v622_v6 = vpop.f32.mrf.mxu2 }
 0x105   : > { %v834_v7 = vpop.f32.mrf.mxu3 }
 0x106   : > { %v7385_v12 = vadd.f32 %v834_v7, %v622_v6 }
 0x108   : > { %9275 = vst [vmem:[#allocation29_spill] sm:$0xff] %v7385_v12  ;;  %v7387_v13 = vpop.f32.mrf.mxu0 }
 0x109   : > { %v7389_v4 = vpop.f32.mrf.mxu1  ;;  %5737 = vmatmul.msk.f32.gmra.mxu2 %vm417_vm1, %v7324_v24  ;;  %v7422_v24 = vld [vmem:[%s6851_s11 + $0xca] sm:$0xff] }
 0x10a   : > { %5803 = vmatmul.msk.f32.gmra.mxu3 %vm417_vm1, %v6885_v15 }
 0x10b   : > { %5869 = vmatmul.msk.f32.gmra.mxu0 %vm417_vm1, %v6882_v14 }
 0x10c   : > { %5935 = vmatmul.msk.f32.gmra.mxu1 %vm417_vm1, %v7392_v16  ;;  %v625_v10 = vpop.f32.mrf.mxu2 }
 0x10d   : > { %v837_v11 = vpop.f32.mrf.mxu3 }
 0x10e   : > { %v7402_v6 = vadd.f32 %v837_v11, %v625_v10 }
 0x110   : > { %9276 = vst [vmem:[#allocation30_spill] sm:$0xff] %v7402_v6  ;;  %v7404_v7 = vpop.f32.mrf.mxu0 }
 0x111   : > { %9277 = vst [vmem:[#allocation31_spill] sm:$0xff] %v7404_v7  ;;  %v7406_v12 = vpop.f32.mrf.mxu1  ;;  %5738 = vmatmul.msk.f32.gmra.mxu2 %vm417_vm1, %v7341_v59 }
 0x112   : > { %9278 = vst [vmem:[#allocation32_spill] sm:$0xff] %v7406_v12  ;;  %5804 = vmatmul.msk.f32.gmra.mxu3 %vm417_vm1, %v6899_v19 }
 0x113   : > { %5870 = vmatmul.msk.f32.gmra.mxu0 %vm417_vm1, %v6896_v18  ;;  %v748_v18 = vadd.f32 %v7168_v20, %v7166_v17 }
 0x114   : > { %5936 = vmatmul.msk.f32.gmra.mxu1 %vm417_vm1, %v7409_v1  ;;  %v628_v14 = vpop.f32.mrf.mxu2 }
 0x115   : > { %v840_v15 = vpop.f32.mrf.mxu3 }
 0x116   : > { %v7419_v10 = vadd.f32 %v840_v15, %v628_v14 }
 0x118   : > { %9279 = vst [vmem:[#allocation33_spill] sm:$0xff] %v7419_v10  ;;  %v1550_v11 = vpop.f32.mrf.mxu0 }
 0x119   : > { %v1828_v6 = vpop.f32.mrf.mxu1  ;;  %5739 = vmatmul.msk.f32.gmra.mxu2 %vm417_vm1, %v7358_v25  ;;  %v7435_v25 = vld [vmem:[%s6851_s11 + $0xd2] sm:$0xff] }
 0x11a   : > { %5805 = vmatmul.msk.f32.gmra.mxu3 %vm417_vm1, %v6913_v23 }
 0x11b   : > { %5871 = vmatmul.msk.f32.gmra.mxu0 %vm417_vm1, %v6910_v22  ;;  %v751_v22 = vadd.f32 %v7182_v9, %v7180_v8 }
 0x11c   : > { %5937 = vmatmul.msk.f32.gmra.mxu1 %vm417_vm1, %v7422_v24  ;;  %v993_v19 = vpop.f32.mrf.mxu2 }
 0x11d   : > { %v1272_v14 = vpop.f32.mrf.mxu3  ;;  %v1089_v15 = vadd.f32 %v993_v19, %v748_v18 }
 0x11f   : > { %v1368_v10 = vadd.f32 %v1272_v14, %v1089_v15  ;;  %v7450_v14 = vld [vmem:[%s6851_s11 + $0xda] sm:$0xff] }
 0x120   : > { %v1553_v59 = vpop.f32.mrf.mxu0 }
 0x121   : > { %v1831_v12 = vpop.f32.mrf.mxu1  ;;  %v1646_v7 = vadd.f32 %v1550_v11, %v1368_v10  ;;  %5740 = vmatmul.msk.f32.gmra.mxu2 %vm417_vm1, %v7375_v21 }
 0x122   : > { %5806 = vmatmul.msk.f32.gmra.mxu3 %vm417_vm1, %v6933_v27 }
 0x123   : > { %5872 = vmatmul.msk.f32.gmra.mxu0 %vm417_vm1, %v6930_v26  ;;  %v7447_v23 = vadd.f32 %v1828_v6, %v1646_v7  ;;  %v754_v26 = vadd.f32 %v7196_v2, %v7194_v0 }
 0x124   : > { %5938 = vmatmul.msk.f32.gmra.mxu1 %vm417_vm1, %v7435_v25  ;;  %v996_v17 = vpop.f32.mrf.mxu2 }
 0x125   : > { %v1275_v20 = vpop.f32.mrf.mxu3  ;;  %v1090_v10 = vadd.f32 %v996_v17, %v751_v22  ;;  %v7465_v17 = vld [vmem:[%s6851_s11 + $0xe2] sm:$0xff] }
 0x127   : > { %v1369_v11 = vadd.f32 %v1275_v20, %v1090_v10 }
 0x128   : > { %v1556_v18 = vpop.f32.mrf.mxu0 }
 0x129   : > { %v1834_v19 = vpop.f32.mrf.mxu1  ;;  %v1647_v27 = vadd.f32 %v1553_v59, %v1369_v11  ;;  %5741 = vmatmul.msk.f32.gmra.mxu2 %vm417_vm1, %v7392_v16 }
 0x12a   : > { %5807 = vmatmul.msk.f32.gmra.mxu3 %vm417_vm1, %v6953_v31 }
 0x12b   : > { %5873 = vmatmul.msk.f32.gmra.mxu0 %vm417_vm1, %v6950_v30  ;;  %v7462_v8 = vadd.f32 %v1831_v12, %v1647_v27  ;;  %v757_v30 = vadd.f32 %v7210_v3, %v7208_v58  ;;  %v7480_v27 = vld [vmem:[%s6851_s11 + $0xf2] sm:$0xff] }
 0x12c   : > { %5939 = vmatmul.msk.f32.gmra.mxu1 %vm417_vm1, %v7450_v14  ;;  %v999_v9 = vpop.f32.mrf.mxu2 }
 0x12d   : > { %v1278_v6 = vpop.f32.mrf.mxu3  ;;  %v1091_v59 = vadd.f32 %v999_v9, %v754_v26 }
 0x12f   : > { %v1370_v7 = vadd.f32 %v1278_v6, %v1091_v59 }
 0x130   : > { %v1559_v15 = vpop.f32.mrf.mxu0 }
 0x131   : > { %v1837_v22 = vpop.f32.mrf.mxu1  ;;  %v1648_v31 = vadd.f32 %v1556_v18, %v1370_v7  ;;  %5742 = vmatmul.msk.f32.gmra.mxu2 %vm417_vm1, %v7409_v1  ;;  %v7495_v7 = vld [vmem:[%s6851_s11 + $0xfa] sm:$0xff] }
 0x132   : > { %5808 = vmatmul.msk.f32.gmra.mxu3 %vm417_vm1, %v6973_v35 }
 0x133   : > { %5874 = vmatmul.msk.f32.gmra.mxu0 %vm417_vm1, %v6970_v34  ;;  %v7477_v2 = vadd.f32 %v1834_v19, %v1648_v31  ;;  %v760_v34 = vadd.f32 %v7223_v29, %v7221_v28 }
 0x134   : > { %5940 = vmatmul.msk.f32.gmra.mxu1 %vm417_vm1, %v7465_v17  ;;  %v1002_v0 = vpop.f32.mrf.mxu2 }
 0x135   : > { %v1281_v12 = vpop.f32.mrf.mxu3  ;;  %v1092_v20 = vadd.f32 %v1002_v0, %v757_v30 }
 0x137   : > { %v1371_v10 = vadd.f32 %v1281_v12, %v1092_v20  ;;  %v7510_v12 = vld [vmem:[%s6851_s11 + $0x102] sm:$0xff] }
 0x138   : > { %v1562_v11 = vpop.f32.mrf.mxu0 }
 0x139   : > { %v1840_v18 = vpop.f32.mrf.mxu1  ;;  %v1649_v35 = vadd.f32 %v1559_v15, %v1371_v10  ;;  %5743 = vmatmul.msk.f32.gmra.mxu2 %vm417_vm1, %v7422_v24 }
 0x13a   : > { %5809 = vmatmul.msk.f32.gmra.mxu3 %vm417_vm1, %v6993_v39 }
 0x13b   : > { %5875 = vmatmul.msk.f32.gmra.mxu0 %vm417_vm1, %v6990_v38  ;;  %v7492_v3 = vadd.f32 %v1837_v22, %v1649_v35  ;;  %v763_v38 = vadd.f32 %v7239_v33, %v7237_v32 }
 0x13c   : > { %5941 = vmatmul.msk.f32.gmra.mxu1 %vm417_vm1, %v7480_v27  ;;  %v1005_v58 = vpop.f32.mrf.mxu2 }
 0x13d   : > { %v1284_v19 = vpop.f32.mrf.mxu3  ;;  %v1093_v26 = vadd.f32 %v1005_v58, %v760_v34  ;;  %v7525_v34 = vld [vmem:[%s6851_s11 + $0x10a] sm:$0xff] }
 0x13f   : > { %v1372_v9 = vadd.f32 %v1284_v19, %v1093_v26 }
 0x140   : > { %v1565_v6 = vpop.f32.mrf.mxu0 }
 0x141   : > { %v1843_v59 = vpop.f32.mrf.mxu1  ;;  %v1650_v39 = vadd.f32 %v1562_v11, %v1372_v9  ;;  %5744 = vmatmul.msk.f32.gmra.mxu2 %vm417_vm1, %v7435_v25 }
 0x142   : > { %5810 = vmatmul.msk.f32.gmra.mxu3 %vm417_vm1, %v7013_v43 }
 0x143   : > { %5876 = vmatmul.msk.f32.gmra.mxu0 %vm417_vm1, %v7010_v42  ;;  %v7507_v28 = vadd.f32 %v1840_v18, %v1650_v39  ;;  %v766_v42 = vadd.f32 %v7255_v37, %v7253_v36 }
 0x144   : > { %5942 = vmatmul.msk.f32.gmra.mxu1 %vm417_vm1, %v7495_v7  ;;  %v1008_v29 = vpop.f32.mrf.mxu2 }
 0x145   : > { %v1287_v15 = vpop.f32.mrf.mxu3  ;;  %v1094_v22 = vadd.f32 %v1008_v29, %v763_v38 }
 0x147   : > { %v1373_v31 = vadd.f32 %v1287_v15, %v1094_v22 }
 0x148   : > { %v1568_v30 = vpop.f32.mrf.mxu0 }
 0x149   : > { %v1846_v0 = vpop.f32.mrf.mxu1  ;;  %v1651_v43 = vadd.f32 %v1565_v6, %v1373_v31  ;;  %5745 = vmatmul.msk.f32.gmra.mxu2 %vm417_vm1, %v7450_v14  ;;  %v7555_v31 = vld [vmem:[%s6851_s11 + $0x122] sm:$0xff] }
 0x14a   : > { %5811 = vmatmul.msk.f32.gmra.mxu3 %vm417_vm1, %v7033_v47 }
 0x14b   : > { %5877 = vmatmul.msk.f32.gmra.mxu0 %vm417_vm1, %v7030_v46  ;;  %v7522_v32 = vadd.f32 %v1843_v59, %v1651_v43  ;;  %v769_v46 = vadd.f32 %v7271_v41, %v7269_v40  ;;  %v7540_v59 = vld [vmem:[%s6851_s11 + $0x11a] sm:$0xff] }
 0x14c   : > { %5943 = vmatmul.msk.f32.gmra.mxu1 %vm417_vm1, %v7510_v12  ;;  %v1011_v33 = vpop.f32.mrf.mxu2 }
 0x14d   : > { %v1290_v20 = vpop.f32.mrf.mxu3  ;;  %v1095_v10 = vadd.f32 %v1011_v33, %v766_v42 }
 0x14f   : > { %v1374_v11 = vadd.f32 %v1290_v20, %v1095_v10  ;;  %v7570_v10 = vld [vmem:[%s6851_s11 + $0x12a] sm:$0xff] }
 0x150   : > { %v1571_v18 = vpop.f32.mrf.mxu0 }
 0x151   : > { %v1849_v35 = vpop.f32.mrf.mxu1  ;;  %v1652_v47 = vadd.f32 %v1568_v30, %v1374_v11  ;;  %5746 = vmatmul.msk.f32.gmra.mxu2 %vm417_vm1, %v7465_v17  ;;  %v9281_v11 = vld [vmem:[#allocation4_spill] sm:$0xff] }
 0x152   : > { %5812 = vmatmul.msk.f32.gmra.mxu3 %vm417_vm1, %v7053_v51 }
 0x153   : > { %5878 = vmatmul.msk.f32.gmra.mxu0 %vm417_vm1, %v7050_v50  ;;  %v7537_v36 = vadd.f32 %v1846_v0, %v1652_v47  ;;  %v772_v50 = vadd.f32 %v7287_v45, %v7285_v44  ;;  %v775_v44 = vadd.f32 %v7304_v49, %v7302_v48  ;;  %v778_v48 = vadd.f32 %v7321_v60, %v7319_v53  ;;  %v9284_v60 = vld [vmem:[#allocation5_spill] sm:$0xff] }
 0x154   : > { %5944 = vmatmul.msk.f32.gmra.mxu1 %vm417_vm1, %v7525_v34  ;;  %v1014_v37 = vpop.f32.mrf.mxu2  ;;  %v781_v53 = vadd.f32 %v7338_v52, %v7336_v57  ;;  %v6184_v52 = vld [vmem:[%s9211_s3 + $0x4] sm:$0xf]  ;;  %v784_v57 = vadd.f32 %v7355_v56, %v7353_v63  ;;  %v7632_v56 = vld [vmem:[%s6851_s11 + $0x149] sm:$0xff] }
 0x155   : > { %v1293_v58 = vpop.f32.mrf.mxu3  ;;  %v1096_v19 = vadd.f32 %v1014_v37, %v769_v46  ;;  %6185 = vmatpush.msk.msrb.mxu2 %vm514_vm0, %v6184_v52  ;;  %v7635_v63 = vld [vmem:[%s6851_s11 + $0x14a] sm:$0xff]  ;;  %v7679_v52 = vld [vmem:[%s6851_s11 + $0x158] sm:$0xff] }
 0x157   : > { %v1375_v26 = vadd.f32 %v1293_v58, %v1096_v19 }
 0x158   : > { %v1574_v9 = vpop.f32.mrf.mxu0 }
 0x159   : > { %v1852_v6 = vpop.f32.mrf.mxu1  ;;  %v1653_v51 = vadd.f32 %v1571_v18, %v1375_v26  ;;  %5747 = vmatmul.msk.f32.gmra.mxu2 %vm417_vm1, %v7480_v27  ;;  %v9282_v18 = vld [vmem:[#allocation3_spill] sm:$0xff]  ;;  %v7585_v26 = vld [vmem:[%s6851_s11 + $0x132] sm:$0xff] }
 0x15a   : > { %5813 = vmatmul.msk.f32.gmra.mxu3 %vm417_vm1, %v7073_v55 }
 0x15b   : > { %5879 = vmatmul.msk.f32.gmra.mxu0 %vm417_vm1, %v7070_v54  ;;  %v7552_v40 = vadd.f32 %v1849_v35, %v1653_v51  ;;  %v9280_v54 = vld [vmem:[#allocation2_spill] sm:$0xff] }
 0x15c   : > { %5945 = vmatmul.msk.f32.gmra.mxu1 %vm417_vm1, %v7540_v59  ;;  %v1017_v41 = vpop.f32.mrf.mxu2 }
 0x15d   : > { %v1296_v39 = vpop.f32.mrf.mxu3  ;;  %v1097_v38 = vadd.f32 %v1017_v41, %v772_v50 }
 0x15f   : > { %v1376_v29 = vadd.f32 %v1296_v39, %v1097_v38  ;;  %v7600_v38 = vld [vmem:[%s6851_s11 + $0x140] sm:$0xff] }
 0x160   : > { %v1577_v15 = vpop.f32.mrf.mxu0 }
 0x161   : > { %v1855_v22 = vpop.f32.mrf.mxu1  ;;  %v1654_v55 = vadd.f32 %v1574_v9, %v1376_v29  ;;  %5748 = vmatmul.msk.f32.gmra.mxu2 %vm417_vm1, %v7495_v7 }
 0x162   : > { %5814 = vmatmul.msk.f32.gmra.mxu3 %vm417_vm1, %v7101_v61 }
 0x163   : > { %5880 = vmatmul.msk.f32.gmra.mxu0 %vm417_vm1, %v9280_v54  ;;  %v7567_v45 = vadd.f32 %v1852_v6, %v1654_v55  ;;  %v9283_v6 = vld [vmem:[#allocation6_spill] sm:$0xff] }
 0x164   : > { %5946 = vmatmul.msk.f32.gmra.mxu1 %vm417_vm1, %v7555_v31  ;;  %v1020_v30 = vpop.f32.mrf.mxu2  ;;  %v7603_v55 = vld [vmem:[%s6851_s11 + $0x141] sm:$0xff] }
 0x165   : > { %v1299_v0 = vpop.f32.mrf.mxu3  ;;  %v1098_v43 = vadd.f32 %v1020_v30, %v775_v44  ;;  %v7606_v54 = vld [vmem:[%s6851_s11 + $0x142] sm:$0xff] }
 0x167   : > { %v1377_v42 = vadd.f32 %v1299_v0, %v1098_v43  ;;  %v6218_v0 = vld [vmem:[%s9211_s3 + $0x8] sm:$0xf] }
 0x168   : > { %v1580_v33 = vpop.f32.mrf.mxu0  ;;  %6219 = vmatpush.msk.msrb.mxu3 %vm514_vm0, %v6218_v0 }
 0x169   : > { %v1858_v20 = vpop.f32.mrf.mxu1  ;;  %v1655_v61 = vadd.f32 %v1577_v15, %v1377_v42  ;;  %5749 = vmatmul.msk.f32.gmra.mxu2 %vm417_vm1, %v7510_v12 }
 0x16a   : > { %5815 = vmatmul.msk.f32.gmra.mxu3 %vm417_vm1, %v9281_v11 }
 0x16b   : > { %5881 = vmatmul.msk.f32.gmra.mxu0 %vm417_vm1, %v9282_v18  ;;  %v7582_v49 = vadd.f32 %v1855_v22, %v1655_v61 }
 0x16c   : > { %5947 = vmatmul.msk.f32.gmra.mxu1 %vm417_vm1, %v7570_v10  ;;  %v1023_v35 = vpop.f32.mrf.mxu2 }
 0x16d   : > { %v1302_v47 = vpop.f32.mrf.mxu3  ;;  %v1099_v46 = vadd.f32 %v1023_v35, %v778_v48  ;;  %v787_v35 = vadd.f32 %v7372_v62, %v7370_v5 }
 0x16f   : > { %v1378_v37 = vadd.f32 %v1302_v47, %v1099_v46  ;;  %v6284_v46 = vld [vmem:[%s9211_s3 + $0xc] sm:$0xf] }
 0x170   : > { %v1583_v58 = vpop.f32.mrf.mxu0  ;;  %6285 = vmatpush.msk.msrb.mxu0 %vm514_vm0, %v6284_v46 }
 0x171   : > { %v1861_v19 = vpop.f32.mrf.mxu1  ;;  %v1656_v9 = vadd.f32 %v1580_v33, %v1378_v37  ;;  %5750 = vmatmul.msk.f32.gmra.mxu2 %vm417_vm1, %v7525_v34 }
 0x172   : > { %5816 = vmatmul.msk.f32.gmra.mxu3 %vm417_vm1, %v9283_v6  ;;  %v7657_v6 = vld [vmem:[%s6851_s11 + $0x150] sm:$0xff] }
 0x173   : > { %5882 = vmatmul.msk.f32.gmra.mxu0 %vm417_vm1, %v9284_v60  ;;  %v7597_v51 = vadd.f32 %v1858_v20, %v1656_v9  ;;  %v7629_v20 = vld [vmem:[%s6851_s11 + $0x148] sm:$0xff]  ;;  %v6350_v9 = vld [vmem:[%s9211_s3 + $0x10] sm:$0xf] }
 0x174   : > { %5948 = vmatmul.msk.f32.gmra.mxu1 %vm417_vm1, %v7585_v26  ;;  %v1026_v50 = vpop.f32.mrf.mxu2 }
 0x175   : > { %v1305_v41 = vpop.f32.mrf.mxu3  ;;  %v1100_v39 = vadd.f32 %v1026_v50, %v781_v53  ;;  %6351 = vmatpush.msk.msrb.mxu1 %vm514_vm0, %v6350_v9  ;;  %v7661_v53 = vld [vmem:[%s6851_s11 + $0x151] sm:$0xff] }
 0x176   : > { %v7664_v50 = vld [vmem:[%s6851_s11 + $0x152] sm:$0xff] }
 0x177   : > { %v1379_v29 = vadd.f32 %v1305_v41, %v1100_v39  ;;  %v790_v39 = vadd.f32 %v7389_v4, %v7387_v13  ;;  %v9285_v4 = vld [vmem:[#allocation31_spill] sm:$0xff]  ;;  %v9286_v13 = vld [vmem:[#allocation32_spill] sm:$0xff] }
 0x178   : > { %v1586_v15 = vpop.f32.mrf.mxu0 }
 0x179   : > { %v1864_v22 = vpop.f32.mrf.mxu1  ;;  %v1657_v44 = vadd.f32 %v1583_v58, %v1379_v29  ;;  %5751 = vmatmul.msk.f32.gmra.mxu2 %vm417_vm1, %v7540_v59 }
 0x17a   : > { %5817 = vmatmul.msk.f32.gmra.mxu3 %vm417_vm1, %v7600_v38 }
 0x17b   : > { %5883 = vmatmul.msk.f32.gmra.mxu0 %vm417_vm1, %v7603_v55  ;;  %v7621_v30 = vadd.f32 %v1861_v19, %v1657_v44 }
 0x17c   : > { %5949 = vmatmul.msk.f32.gmra.mxu1 %vm417_vm1, %v7606_v54  ;;  %v1029_v43 = vpop.f32.mrf.mxu2 }
 0x17d   : > { %v1308_v42 = vpop.f32.mrf.mxu3  ;;  %v1101_v33 = vadd.f32 %v1029_v43, %v784_v57 }
 0x17f   : > { %v1380_v61 = vadd.f32 %v1308_v42, %v1101_v33  ;;  %v7682_v42 = vld [vmem:[%s6851_s11 + $0x159] sm:$0xff] }
 0x180   : > { %v1589_v11 = vpop.f32.mrf.mxu0  ;;  %v7685_v33 = vld [vmem:[%s6851_s11 + $0x15a] sm:$0xff] }
 0x181   : > { %v1867_v18 = vpop.f32.mrf.mxu1  ;;  %v1658_v48 = vadd.f32 %v1586_v15, %v1380_v61  ;;  %5752 = vmatmul.msk.f32.gmra.mxu2 %vm417_vm1, %v7555_v31 }
 0x182   : > { %5818 = vmatmul.msk.f32.gmra.mxu3 %vm417_vm1, %v7629_v20 }
 0x183   : > { %5884 = vmatmul.msk.f32.gmra.mxu0 %vm417_vm1, %v7632_v56  ;;  %v7647_v47 = vadd.f32 %v1864_v22, %v1658_v48 }
 0x184   : > { %5950 = vmatmul.msk.f32.gmra.mxu1 %vm417_vm1, %v7635_v63  ;;  %v1032_v37 = vpop.f32.mrf.mxu2 }
 0x185   : > { %v1311_v58 = vpop.f32.mrf.mxu3  ;;  %v1102_v19 = vadd.f32 %v1032_v37, %v787_v35  ;;  %v5953_v37 = vld [vmem:[%s6851_s11 + $0x50] sm:$0xff] }
 0x187   : > { %v1381_v62 = vadd.f32 %v1311_v58, %v1102_v19  ;;  %v6019_v58 = vld [vmem:[%s6851_s11 + $0x51] sm:$0xff] }
 0x188   : > { %v1592_v5 = vpop.f32.mrf.mxu0 }
 0x189   : > { %v1870_v60 = vpop.f32.mrf.mxu1  ;;  %v1659_v41 = vadd.f32 %v1589_v11, %v1381_v62  ;;  %5753 = vmatmul.msk.f32.gmra.mxu2 %vm417_vm1, %v7570_v10  ;;  %v793_v11 = vadd.f32 %v9286_v13, %v9285_v4  ;;  %v6020_v4 = vld [vmem:[%s6851_s11 + $0x59] sm:$0xff] }
 0x18a   : > { %5819 = vmatmul.msk.f32.gmra.mxu3 %vm417_vm1, %v7657_v6 }
 0x18b   : > { %5885 = vmatmul.msk.f32.gmra.mxu0 %vm417_vm1, %v7661_v53  ;;  %v7676_v29 = vadd.f32 %v1867_v18, %v1659_v41  ;;  %v9287_v41 = vld [vmem:[#allocation11_spill] sm:$0xff] }
 0x18c   : > { %5951 = vmatmul.msk.f32.gmra.mxu1 %vm417_vm1, %v7664_v50  ;;  %v1035_v15 = vpop.f32.mrf.mxu2 }
 0x18d   : > { %v1314_v22 = vpop.f32.mrf.mxu3  ;;  %v1103_v44 = vadd.f32 %v1035_v15, %v790_v39 }
 0x18f   : > { %v1382_v57 = vadd.f32 %v1314_v22, %v1103_v44  ;;  %v9288_v44 = vld [vmem:[#allocation7_spill] sm:$0xff] }
 0x190   : > { %v1595_v0 = vpop.f32.mrf.mxu0 }
 0x191   : > { %v1873_v43 = vpop.f32.mrf.mxu1  ;;  %v1660_v61 = vadd.f32 %v1592_v5, %v1382_v57  ;;  %5754 = vmatmul.msk.f32.gmra.mxu2 %vm417_vm1, %v7585_v26  ;;  %v2791_v5 = vld [vmem:[%s7704_s17] sm:$0xff] }
 0x192   : > { %5820 = vmatmul.msk.f32.gmra.mxu3 %vm417_vm1, %v7679_v52 }
 0x193   : > { %5886 = vmatmul.msk.f32.gmra.mxu0 %vm417_vm1, %v7682_v42  ;;  %v7697_v18 = vadd.f32 %v1870_v60, %v1660_v61  ;;  %v5954_v61 = vld [vmem:[%s6851_s11 + $0x58] sm:$0xff] }
 0x194   : > { %5952 = vmatmul.msk.f32.gmra.mxu1 %vm417_vm1, %v7685_v33  ;;  %v1038_v48 = vpop.f32.mrf.mxu2 }
 0x195   : > { %v1317_v35 = vpop.f32.mrf.mxu3  ;;  %v1104_v46 = vadd.f32 %v1038_v48, %v793_v11  ;;  %v2792_v48 = vld [vmem:[%s7704_s17 + $0x8] sm:$0xff] }
 0x197   : > { %v1383_v19 = vadd.f32 %v1317_v35, %v1104_v46 }
 0x198   : > { %v1598_v9 = vpop.f32.mrf.mxu0 }
 0x199   : > { %v1876_v62 = vpop.f32.mrf.mxu1  ;;  %v1661_v60 = vadd.f32 %v1595_v0, %v1383_v19  ;;  %5987 = vmatmul.msk.f32.vlgmr.msra.gmra.mxu2 %vm417_vm1, %v5953_v37  ;;  %v9290_v19 = vld [vmem:[#allocation8_spill] sm:$0xff] }
 0x19a   : > { %6053 = vmatmul.msk.f32.vlgmr.msra.gmra.mxu3 %vm417_vm1, %v6019_v58 }
 0x19b   : > { %6119 = vmatmul.msk.f32.vlgmr.msra.gmra.mxu0 %vm417_vm1, %v9287_v41  ;;  %v7714_v39 = vadd.f32 %v1873_v43, %v1661_v60  ;;  %v9289_v43 = vld [vmem:[#allocation13_spill] sm:$0xff]  ;;  %v5955_v60 = vld [vmem:[%s6851_s11 + $0x60] sm:$0xff] }
 0x19c   : > { %6152 = vmatmul.msk.f32.vlgmr.msra.gmra.mxu1 %vm417_vm1, %v2791_v5  ;;  %v1041_v15 = vpop.f32.mrf.mxu2  ;;  %v6021_v41 = vld [vmem:[%s6851_s11 + $0x61] sm:$0xff] }
 0x19d   : > { %v1320_v22 = vpop.f32.mrf.mxu3  ;;  %v1105_v57 = vadd.f32 %v1041_v15, %v9288_v44  ;;  %v2793_v44 = vld [vmem:[%s7704_s17 + $0x10] sm:$0xff] }
 0x19f   : > { %v1384_v0 = vadd.f32 %v1320_v22, %v1105_v57 }
 0x1a0   : > { %v1601_v13 = vpop.f32.mrf.mxu0 }
 0x1a1   : > { %v1879_v11 = vpop.f32.mrf.mxu1  ;;  %v1662_v35 = vadd.f32 %v1598_v9, %v1384_v0  ;;  %5988 = vmatmul.msk.f32.gmra.mxu2 %vm417_vm1, %v5954_v61 }
 0x1a2   : > { %6054 = vmatmul.msk.f32.gmra.mxu3 %vm417_vm1, %v6020_v4 }
 0x1a3   : > { %6120 = vmatmul.msk.f32.gmra.mxu0 %vm417_vm1, %v9289_v43  ;;  %v7725_v46 = vadd.f32 %v1876_v62, %v1662_v35  ;;  %v9291_v62 = vld [vmem:[#allocation15_spill] sm:$0xff] }
 0x1a4   : > { %6153 = vmatmul.msk.f32.gmra.mxu1 %vm417_vm1, %v2792_v48  ;;  %v1044_v37 = vpop.f32.mrf.mxu2  ;;  %v9292_v48 = vld [vmem:[#allocation9_spill] sm:$0xff]  ;;  %v5956_v43 = vld [vmem:[%s6851_s11 + $0x68] sm:$0xff] }
 0x1a5   : > { %v1323_v58 = vpop.f32.mrf.mxu3  ;;  %v1106_v5 = vadd.f32 %v1044_v37, %v9290_v19  ;;  %v6022_v37 = vld [vmem:[%s6851_s11 + $0x69] sm:$0xff] }
 0x1a7   : > { %v1385_v9 = vadd.f32 %v1323_v58, %v1106_v5  ;;  %v2794_v5 = vld [vmem:[%s7704_s17 + $0x18] sm:$0xff] }
 0x1a8   : > { %v1604_v15 = vpop.f32.mrf.mxu0 }
 0x1a9   : > { %v1882_v22 = vpop.f32.mrf.mxu1  ;;  %v1663_v57 = vadd.f32 %v1601_v13, %v1385_v9  ;;  %5989 = vmatmul.msk.f32.gmra.mxu2 %vm417_vm1, %v5955_v60 }
 0x1aa   : > { %6055 = vmatmul.msk.f32.gmra.mxu3 %vm417_vm1, %v6021_v41 }
 0x1ab   : > { %6121 = vmatmul.msk.f32.gmra.mxu0 %vm417_vm1, %v9291_v62  ;;  %v7736_v61 = vadd.f32 %v1879_v11, %v1663_v57  ;;  %v9293_v11 = vld [vmem:[#allocation17_spill] sm:$0xff]  ;;  %v9295_v57 = vld [vmem:[#allocation10_spill] sm:$0xff] }
 0x1ac   : > { %6154 = vmatmul.msk.f32.gmra.mxu1 %vm417_vm1, %v2793_v44  ;;  %v1047_v4 = vpop.f32.mrf.mxu2 }
 0x1ad   : > { %v1326_v0 = vpop.f32.mrf.mxu3  ;;  %v1107_v35 = vadd.f32 %v1047_v4, %v9292_v48  ;;  %v5957_v4 = vld [vmem:[%s6851_s11 + $0x78] sm:$0xff] }
 0x1af   : > { %v1386_v13 = vadd.f32 %v1326_v0, %v1107_v35  ;;  %v6023_v0 = vld [vmem:[%s6851_s11 + $0x79] sm:$0xff] }
 0x1b0   : > { %v1607_v58 = vpop.f32.mrf.mxu0 }
 0x1b1   : > { %v1885_v19 = vpop.f32.mrf.mxu1  ;;  %v1664_v60 = vadd.f32 %v1604_v15, %v1386_v13  ;;  %5990 = vmatmul.msk.f32.gmra.mxu2 %vm417_vm1, %v5956_v43  ;;  %v7753_v43 = vld [vmem:[%s7704_s17 + $0x28] sm:$0xff] }
 0x1b2   : > { %6056 = vmatmul.msk.f32.gmra.mxu3 %vm417_vm1, %v6022_v37 }
 0x1b3   : > { %6122 = vmatmul.msk.f32.gmra.mxu0 %vm417_vm1, %v9293_v11  ;;  %v7747_v41 = vadd.f32 %v1882_v22, %v1664_v60  ;;  %v9296_v22 = vld [vmem:[#allocation19_spill] sm:$0xff]  ;;  %v9298_v11 = vld [vmem:[#allocation12_spill] sm:$0xff] }
 0x1b4   : > { %6155 = vmatmul.msk.f32.gmra.mxu1 %vm417_vm1, %v2794_v5  ;;  %v1050_v9 = vpop.f32.mrf.mxu2 }
 0x1b5   : > { %9294 = vst [vmem:[#allocation2_spill] sm:$0xff] %v7747_v41  ;;  %v1329_v44 = vpop.f32.mrf.mxu3  ;;  %v1108_v62 = vadd.f32 %v1050_v9, %v9295_v57 }
 0x1b7   : > { %v1387_v15 = vadd.f32 %v1329_v44, %v1108_v62  ;;  %v5958_v44 = vld [vmem:[%s6851_s11 + $0x80] sm:$0xff] }
 0x1b8   : > { %v1610_v48 = vpop.f32.mrf.mxu0 }
 0x1b9   : > { %v1888_v35 = vpop.f32.mrf.mxu1  ;;  %v1665_v37 = vadd.f32 %v1607_v58, %v1387_v15  ;;  %5991 = vmatmul.msk.f32.gmra.mxu2 %vm417_vm1, %v5957_v4  ;;  %v6024_v58 = vld [vmem:[%s6851_s11 + $0x81] sm:$0xff] }
 0x1ba   : > { %6057 = vmatmul.msk.f32.gmra.mxu3 %vm417_vm1, %v6023_v0  ;;  %v7767_v0 = vld [vmem:[%s7704_s17 + $0x30] sm:$0xff] }
 0x1bb   : > { %6123 = vmatmul.msk.f32.gmra.mxu0 %vm417_vm1, %v9296_v22  ;;  %v7761_v13 = vadd.f32 %v1885_v19, %v1665_v37  ;;  %v9299_v19 = vld [vmem:[#allocation21_spill] sm:$0xff] }
 0x1bc   : > { %6156 = vmatmul.msk.f32.gmra.mxu1 %vm417_vm1, %v7753_v43  ;;  %v1053_v5 = vpop.f32.mrf.mxu2 }
 0x1bd   : > { %9297 = vst [vmem:[#allocation4_spill] sm:$0xff] %v7761_v13  ;;  %v1332_v60 = vpop.f32.mrf.mxu3  ;;  %v1109_v9 = vadd.f32 %v1053_v5, %v9298_v11 }
 0x1bf   : > { %v1388_v57 = vadd.f32 %v1332_v60, %v1109_v9  ;;  %v9301_v60 = vld [vmem:[#allocation14_spill] sm:$0xff]  ;;  %v5959_v9 = vld [vmem:[%s6851_s11 + $0x88] sm:$0xff] }
 0x1c0   : > { %v1613_v62 = vpop.f32.mrf.mxu0 }
 0x1c1   : > { %v1891_v4 = vpop.f32.mrf.mxu1  ;;  %v1666_v15 = vadd.f32 %v1610_v48, %v1388_v57  ;;  %5992 = vmatmul.msk.f32.gmra.mxu2 %vm417_vm1, %v5958_v44  ;;  %v6025_v48 = vld [vmem:[%s6851_s11 + $0x89] sm:$0xff] }
 0x1c2   : > { %6058 = vmatmul.msk.f32.gmra.mxu3 %vm417_vm1, %v6024_v58  ;;  %v7781_v58 = vld [vmem:[%s7704_s17 + $0x38] sm:$0xff] }
 0x1c3   : > { %6124 = vmatmul.msk.f32.gmra.mxu0 %vm417_vm1, %v9299_v19  ;;  %v7775_v37 = vadd.f32 %v1888_v35, %v1666_v15  ;;  %9302 = vst [vmem:[#allocation6_spill] sm:$0xff] %v7781_v58  ;;  %v9303_v35 = vld [vmem:[#allocation23_spill] sm:$0xff] }
 0x1c4   : > { %6157 = vmatmul.msk.f32.gmra.mxu1 %vm417_vm1, %v7767_v0  ;;  %v1056_v22 = vpop.f32.mrf.mxu2 }
 0x1c5   : > { %9300 = vst [vmem:[#allocation3_spill] sm:$0xff] %v7775_v37  ;;  %v1335_v5 = vpop.f32.mrf.mxu3  ;;  %v1110_v11 = vadd.f32 %v1056_v22, %v9301_v60  ;;  %v9305_v60 = vld [vmem:[#allocation16_spill] sm:$0xff] }
 0x1c6   : > { %v5960_v37 = vld [vmem:[%s6851_s11 + $0x90] sm:$0xff] }
 0x1c7   : > { %v1389_v57 = vadd.f32 %v1335_v5, %v1110_v11 }
 0x1c8   : > { %v1616_v44 = vpop.f32.mrf.mxu0 }
 0x1c9   : > { %v1894_v13 = vpop.f32.mrf.mxu1  ;;  %v1667_v19 = vadd.f32 %v1613_v62, %v1389_v57  ;;  %5993 = vmatmul.msk.f32.gmra.mxu2 %vm417_vm1, %v5959_v9  ;;  %v6026_v62 = vld [vmem:[%s6851_s11 + $0x91] sm:$0xff] }
 0x1ca   : > { %6059 = vmatmul.msk.f32.gmra.mxu3 %vm417_vm1, %v6025_v48  ;;  %v7795_v48 = vld [vmem:[%s7704_s17 + $0x40] sm:$0xff] }
 0x1cb   : > { %6125 = vmatmul.msk.f32.gmra.mxu0 %vm417_vm1, %v9303_v35  ;;  %v7789_v15 = vadd.f32 %v1891_v4, %v1667_v19  ;;  %9306 = vst [vmem:[#allocation31_spill] sm:$0xff] %v7795_v48  ;;  %v9307_v4 = vld [vmem:[#allocation25_spill] sm:$0xff] }
 0x1cc   : > { %6158 = vmatmul.msk.f32.gmra.mxu1 %vm417_vm1, %v7781_v58  ;;  %v1059_v22 = vpop.f32.mrf.mxu2 }
 0x1cd   : > { %9304 = vst [vmem:[#allocation5_spill] sm:$0xff] %v7789_v15  ;;  %v1338_v5 = vpop.f32.mrf.mxu3  ;;  %v1111_v11 = vadd.f32 %v1059_v22, %v9305_v60  ;;  %v9309_v60 = vld [vmem:[#allocation18_spill] sm:$0xff] }
 0x1ce   : > { %v5961_v15 = vld [vmem:[%s6851_s11 + $0xa0] sm:$0xff] }
 0x1cf   : > { %v1390_v57 = vadd.f32 %v1338_v5, %v1111_v11 }
 0x1d0   : > { %v1619_v9 = vpop.f32.mrf.mxu0 }
 0x1d1   : > { %v1897_v41 = vpop.f32.mrf.mxu1  ;;  %v1668_v35 = vadd.f32 %v1616_v44, %v1390_v57  ;;  %5994 = vmatmul.msk.f32.gmra.mxu2 %vm417_vm1, %v5960_v37  ;;  %v6027_v44 = vld [vmem:[%s6851_s11 + $0xa1] sm:$0xff] }
 0x1d2   : > { %6060 = vmatmul.msk.f32.gmra.mxu3 %vm417_vm1, %v6026_v62  ;;  %v7809_v62 = vld [vmem:[%s7704_s17 + $0x50] sm:$0xff] }
 0x1d3   : > { %6126 = vmatmul.msk.f32.gmra.mxu0 %vm417_vm1, %v9307_v4  ;;  %v7803_v19 = vadd.f32 %v1894_v13, %v1668_v35  ;;  %v9310_v13 = vld [vmem:[#allocation27_spill] sm:$0xff] }
 0x1d4   : > { %6159 = vmatmul.msk.f32.gmra.mxu1 %vm417_vm1, %v7795_v48  ;;  %v1062_v22 = vpop.f32.mrf.mxu2 }
 0x1d5   : > { %9308 = vst [vmem:[#allocation32_spill] sm:$0xff] %v7803_v19  ;;  %v1341_v5 = vpop.f32.mrf.mxu3  ;;  %v1112_v11 = vadd.f32 %v1062_v22, %v9309_v60  ;;  %v9312_v60 = vld [vmem:[#allocation20_spill] sm:$0xff]  ;;  %v5962_v19 = vld [vmem:[%s6851_s11 + $0xa8] sm:$0xff] }
 0x1d7   : > { %v1391_v57 = vadd.f32 %v1341_v5, %v1112_v11 }
 0x1d8   : > { %v1622_v37 = vpop.f32.mrf.mxu0 }
 0x1d9   : > { %v1900_v58 = vpop.f32.mrf.mxu1  ;;  %v1669_v4 = vadd.f32 %v1619_v9, %v1391_v57  ;;  %5995 = vmatmul.msk.f32.gmra.mxu2 %vm417_vm1, %v5961_v15  ;;  %v6028_v9 = vld [vmem:[%s6851_s11 + $0xa9] sm:$0xff] }
 0x1da   : > { %6061 = vmatmul.msk.f32.gmra.mxu3 %vm417_vm1, %v6027_v44  ;;  %v7823_v44 = vld [vmem:[%s7704_s17 + $0x58] sm:$0xff] }
 0x1db   : > { %6127 = vmatmul.msk.f32.gmra.mxu0 %vm417_vm1, %v9310_v13  ;;  %v7817_v35 = vadd.f32 %v1897_v41, %v1669_v4 }
 0x1dc   : > { %6160 = vmatmul.msk.f32.gmra.mxu1 %vm417_vm1, %v7809_v62  ;;  %v1065_v22 = vpop.f32.mrf.mxu2 }
 0x1dd   : > { %9311 = vst [vmem:[#allocation11_spill] sm:$0xff] %v7817_v35  ;;  %v1344_v5 = vpop.f32.mrf.mxu3  ;;  %v1113_v11 = vadd.f32 %v1065_v22, %v9312_v60 }
 0x1df   : > { %v1392_v57 = vadd.f32 %v1344_v5, %v1113_v11  ;;  %v9314_v5 = vld [vmem:[#allocation22_spill] sm:$0xff]  ;;  %v5963_v11 = vld [vmem:[%s6851_s11 + $0xb0] sm:$0xff] }
 0x1e0   : > { %v1625_v15 = vpop.f32.mrf.mxu0 }
 0x1e1   : > { %v1903_v48 = vpop.f32.mrf.mxu1  ;;  %v1670_v13 = vadd.f32 %v1622_v37, %v1392_v57  ;;  %5996 = vmatmul.msk.f32.gmra.mxu2 %vm417_vm1, %v5962_v19  ;;  %v6029_v37 = vld [vmem:[%s6851_s11 + $0xb1] sm:$0xff] }
 0x1e2   : > { %6062 = vmatmul.msk.f32.gmra.mxu3 %vm417_vm1, %v6028_v9  ;;  %v7837_v9 = vld [vmem:[%s7704_s17 + $0x60] sm:$0xff] }
 0x1e3   : > { %6128 = vmatmul.msk.f32.gmra.mxu0 %vm417_vm1, %v7375_v21  ;;  %v7831_v41 = vadd.f32 %v1900_v58, %v1670_v13 }
 0x1e4   : > { %6161 = vmatmul.msk.f32.gmra.mxu1 %vm417_vm1, %v7823_v44  ;;  %v1068_v4 = vpop.f32.mrf.mxu2 }
 0x1e5   : > { %9313 = vst [vmem:[#allocation7_spill] sm:$0xff] %v7831_v41  ;;  %v1347_v22 = vpop.f32.mrf.mxu3  ;;  %v1114_v60 = vadd.f32 %v1068_v4, %v9314_v5 }
 0x1e7   : > { %v1393_v57 = vadd.f32 %v1347_v22, %v1114_v60  ;;  %v9316_v22 = vld [vmem:[#allocation24_spill] sm:$0xff]  ;;  %v5964_v60 = vld [vmem:[%s6851_s11 + $0xb8] sm:$0xff] }
 0x1e8   : > { %v1628_v19 = vpop.f32.mrf.mxu0 }
 0x1e9   : > { %v1906_v35 = vpop.f32.mrf.mxu1  ;;  %v1671_v21 = vadd.f32 %v1625_v15, %v1393_v57  ;;  %5997 = vmatmul.msk.f32.gmra.mxu2 %vm417_vm1, %v5963_v11  ;;  %v6030_v15 = vld [vmem:[%s6851_s11 + $0xb9] sm:$0xff] }
 0x1ea   : > { %6063 = vmatmul.msk.f32.gmra.mxu3 %vm417_vm1, %v6029_v37  ;;  %v7851_v37 = vld [vmem:[%s7704_s17 + $0x68] sm:$0xff] }
 0x1eb   : > { %6129 = vmatmul.msk.f32.gmra.mxu0 %vm417_vm1, %v7392_v16  ;;  %v7845_v58 = vadd.f32 %v1903_v48, %v1671_v21 }
 0x1ec   : > { %6162 = vmatmul.msk.f32.gmra.mxu1 %vm417_vm1, %v7837_v9  ;;  %v1071_v13 = vpop.f32.mrf.mxu2 }
 0x1ed   : > { %9315 = vst [vmem:[#allocation13_spill] sm:$0xff] %v7845_v58  ;;  %v1350_v4 = vpop.f32.mrf.mxu3  ;;  %v1115_v5 = vadd.f32 %v1071_v13, %v9316_v22 }
 0x1ef   : > { %v1394_v57 = vadd.f32 %v1350_v4, %v1115_v5  ;;  %v9318_v4 = vld [vmem:[#allocation26_spill] sm:$0xff]  ;;  %v5965_v5 = vld [vmem:[%s6851_s11 + $0xc8] sm:$0xff] }
 0x1f0   : > { %v1631_v11 = vpop.f32.mrf.mxu0 }
 0x1f1   : > { %v1909_v41 = vpop.f32.mrf.mxu1  ;;  %v1672_v16 = vadd.f32 %v1628_v19, %v1394_v57  ;;  %5998 = vmatmul.msk.f32.gmra.mxu2 %vm417_vm1, %v5964_v60  ;;  %v6031_v19 = vld [vmem:[%s6851_s11 + $0xc9] sm:$0xff] }
 0x1f2   : > { %6064 = vmatmul.msk.f32.gmra.mxu3 %vm417_vm1, %v6030_v15  ;;  %v7865_v15 = vld [vmem:[%s7704_s17 + $0x78] sm:$0xff] }
 0x1f3   : > { %6130 = vmatmul.msk.f32.gmra.mxu0 %vm417_vm1, %v7409_v1  ;;  %v7859_v48 = vadd.f32 %v1906_v35, %v1672_v16 }
 0x1f4   : > { %6163 = vmatmul.msk.f32.gmra.mxu1 %vm417_vm1, %v7851_v37  ;;  %v1074_v21 = vpop.f32.mrf.mxu2 }
 0x1f5   : > { %9317 = vst [vmem:[#allocation8_spill] sm:$0xff] %v7859_v48  ;;  %v1353_v13 = vpop.f32.mrf.mxu3  ;;  %v1116_v22 = vadd.f32 %v1074_v21, %v9318_v4 }
 0x1f7   : > { %v1395_v57 = vadd.f32 %v1353_v13, %v1116_v22  ;;  %v9320_v13 = vld [vmem:[#allocation28_spill] sm:$0xff] }
 0x1f8   : > { %v1634_v60 = vpop.f32.mrf.mxu0  ;;  %v5966_v22 = vld [vmem:[%s6851_s11 + $0xd0] sm:$0xff] }
 0x1f9   : > { %v1912_v58 = vpop.f32.mrf.mxu1  ;;  %v1673_v1 = vadd.f32 %v1631_v11, %v1395_v57  ;;  %5999 = vmatmul.msk.f32.gmra.mxu2 %vm417_vm1, %v5965_v5  ;;  %v6032_v11 = vld [vmem:[%s6851_s11 + $0xd1] sm:$0xff] }
 0x1fa   : > { %6065 = vmatmul.msk.f32.gmra.mxu3 %vm417_vm1, %v6031_v19  ;;  %v7879_v19 = vld [vmem:[%s7704_s17 + $0x80] sm:$0xff] }
 0x1fb   : > { %6131 = vmatmul.msk.f32.gmra.mxu0 %vm417_vm1, %v7422_v24  ;;  %v7873_v35 = vadd.f32 %v1909_v41, %v1673_v1 }
 0x1fc   : > { %6164 = vmatmul.msk.f32.gmra.mxu1 %vm417_vm1, %v7865_v15  ;;  %v1077_v16 = vpop.f32.mrf.mxu2 }
 0x1fd   : > { %9319 = vst [vmem:[#allocation15_spill] sm:$0xff] %v7873_v35  ;;  %v1356_v21 = vpop.f32.mrf.mxu3  ;;  %v1117_v4 = vadd.f32 %v1077_v16, %v9320_v13 }
 0x1ff   : > { %v1396_v57 = vadd.f32 %v1356_v21, %v1117_v4  ;;  %v9322_v21 = vld [vmem:[#allocation29_spill] sm:$0xff] }
 0x200   : > { %v1637_v5 = vpop.f32.mrf.mxu0  ;;  %v5967_v4 = vld [vmem:[%s6851_s11 + $0xd8] sm:$0xff] }
 0x201   : > { %v1915_v48 = vpop.f32.mrf.mxu1  ;;  %v1674_v24 = vadd.f32 %v1634_v60, %v1396_v57  ;;  %6000 = vmatmul.msk.f32.gmra.mxu2 %vm417_vm1, %v5966_v22  ;;  %v6033_v60 = vld [vmem:[%s6851_s11 + $0xd9] sm:$0xff] }
 0x202   : > { %6066 = vmatmul.msk.f32.gmra.mxu3 %vm417_vm1, %v6032_v11  ;;  %v7893_v11 = vld [vmem:[%s7704_s17 + $0x88] sm:$0xff] }
 0x203   : > { %6132 = vmatmul.msk.f32.gmra.mxu0 %vm417_vm1, %v7435_v25  ;;  %v7887_v41 = vadd.f32 %v1912_v58, %v1674_v24 }
 0x204   : > { %6165 = vmatmul.msk.f32.gmra.mxu1 %vm417_vm1, %v7879_v19  ;;  %v1080_v1 = vpop.f32.mrf.mxu2 }
 0x205   : > { %9321 = vst [vmem:[#allocation9_spill] sm:$0xff] %v7887_v41  ;;  %v1359_v16 = vpop.f32.mrf.mxu3  ;;  %v1118_v13 = vadd.f32 %v1080_v1, %v9322_v21 }
 0x207   : > { %v1397_v57 = vadd.f32 %v1359_v16, %v1118_v13  ;;  %v9324_v16 = vld [vmem:[#allocation30_spill] sm:$0xff] }
 0x208   : > { %v1640_v22 = vpop.f32.mrf.mxu0  ;;  %v5968_v13 = vld [vmem:[%s6851_s11 + $0xe0] sm:$0xff] }
 0x209   : > { %v1918_v35 = vpop.f32.mrf.mxu1  ;;  %v1675_v25 = vadd.f32 %v1637_v5, %v1397_v57  ;;  %6001 = vmatmul.msk.f32.gmra.mxu2 %vm417_vm1, %v5967_v4  ;;  %v6034_v5 = vld [vmem:[%s6851_s11 + $0xe1] sm:$0xff] }
 0x20a   : > { %6067 = vmatmul.msk.f32.gmra.mxu3 %vm417_vm1, %v6033_v60  ;;  %v7907_v60 = vld [vmem:[%s7704_s17 + $0x90] sm:$0xff] }
 0x20b   : > { %6133 = vmatmul.msk.f32.gmra.mxu0 %vm417_vm1, %v7450_v14  ;;  %v7901_v58 = vadd.f32 %v1915_v48, %v1675_v25 }
 0x20c   : > { %6166 = vmatmul.msk.f32.gmra.mxu1 %vm417_vm1, %v7893_v11  ;;  %v1083_v24 = vpop.f32.mrf.mxu2 }
 0x20d   : > { %9323 = vst [vmem:[#allocation17_spill] sm:$0xff] %v7901_v58  ;;  %v1362_v1 = vpop.f32.mrf.mxu3  ;;  %v1119_v21 = vadd.f32 %v1083_v24, %v9324_v16 }
 0x20f   : > { %v1398_v57 = vadd.f32 %v1362_v1, %v1119_v21  ;;  %v9325_v1 = vld [vmem:[#allocation33_spill] sm:$0xff]  ;;  %v5969_v21 = vld [vmem:[%s6851_s11 + $0xf0] sm:$0xff] }
 0x210   : > { %v1643_v4 = vpop.f32.mrf.mxu0 }
 0x211   : > { %v1921_v41 = vpop.f32.mrf.mxu1  ;;  %v1676_v14 = vadd.f32 %v1640_v22, %v1398_v57  ;;  %6002 = vmatmul.msk.f32.gmra.mxu2 %vm417_vm1, %v5968_v13  ;;  %v6035_v22 = vld [vmem:[%s6851_s11 + $0xf1] sm:$0xff] }
 0x212   : > { %6068 = vmatmul.msk.f32.gmra.mxu3 %vm417_vm1, %v6034_v5  ;;  %v7921_v5 = vld [vmem:[%s7704_s17 + $0xa0] sm:$0xff] }
 0x213   : > { %6134 = vmatmul.msk.f32.gmra.mxu0 %vm417_vm1, %v7465_v17  ;;  %v7915_v48 = vadd.f32 %v1918_v35, %v1676_v14 }
 0x214   : > { %6167 = vmatmul.msk.f32.gmra.mxu1 %vm417_vm1, %v7907_v60  ;;  %v1086_v25 = vpop.f32.mrf.mxu2 }
 0x215   : > { %v1365_v24 = vpop.f32.mrf.mxu3  ;;  %v1120_v16 = vadd.f32 %v1086_v25, %v9325_v1  ;;  %v5970_v1 = vld [vmem:[%s6851_s11 + $0xf8] sm:$0xff] }
 0x217   : > { %v1399_v57 = vadd.f32 %v1365_v24, %v1120_v16 }
 0x218   : > { %v2663_v13 = vpop.f32.mrf.mxu0 }
 0x219   : > { %v2940_v58 = vpop.f32.mrf.mxu1  ;;  %v1677_v17 = vadd.f32 %v1643_v4, %v1399_v57  ;;  %6003 = vmatmul.msk.f32.gmra.mxu2 %vm417_vm1, %v5969_v21  ;;  %v6036_v4 = vld [vmem:[%s6851_s11 + $0xf9] sm:$0xff] }
 0x21a   : > { %6069 = vmatmul.msk.f32.gmra.mxu3 %vm417_vm1, %v6035_v22  ;;  %v7935_v22 = vld [vmem:[%s7704_s17 + $0xa8] sm:$0xff] }
 0x21b   : > { %6135 = vmatmul.msk.f32.gmra.mxu0 %vm417_vm1, %v7480_v27  ;;  %v7929_v35 = vadd.f32 %v1921_v41, %v1677_v17 }
 0x21c   : > { %6168 = vmatmul.msk.f32.gmra.mxu1 %vm417_vm1, %v7921_v5  ;;  %v2107_v14 = vpop.f32.mrf.mxu2 }
 0x21d   : > { %v2385_v25 = vpop.f32.mrf.mxu3  ;;  %v2203_v24 = vadd.f32 %v2107_v14, %v7447_v23 }
 0x21f   : > { %v2481_v16 = vadd.f32 %v2385_v25, %v2203_v24  ;;  %v5971_v25 = vld [vmem:[%s6851_s11 + $0x100] sm:$0xff] }
 0x220   : > { %v2666_v21 = vpop.f32.mrf.mxu0 }
 0x221   : > { %v2943_v57 = vpop.f32.mrf.mxu1  ;;  %v2759_v27 = vadd.f32 %v2663_v13, %v2481_v16  ;;  %6004 = vmatmul.msk.f32.gmra.mxu2 %vm417_vm1, %v5970_v1  ;;  %v6037_v13 = vld [vmem:[%s6851_s11 + $0x101] sm:$0xff] }
 0x222   : > { %6070 = vmatmul.msk.f32.gmra.mxu3 %vm417_vm1, %v6036_v4  ;;  %v7949_v4 = vld [vmem:[%s7704_s17 + $0xb0] sm:$0xff] }
 0x223   : > { %6136 = vmatmul.msk.f32.gmra.mxu0 %vm417_vm1, %v7495_v7  ;;  %v7943_v23 = vadd.f32 %v2940_v58, %v2759_v27 }
 0x224   : > { %6169 = vmatmul.msk.f32.gmra.mxu1 %vm417_vm1, %v7935_v22  ;;  %v2110_v41 = vpop.f32.mrf.mxu2 }
 0x225   : > { %v2388_v17 = vpop.f32.mrf.mxu3  ;;  %v2204_v14 = vadd.f32 %v2110_v41, %v7462_v8 }
 0x227   : > { %v2482_v24 = vadd.f32 %v2388_v17, %v2204_v14  ;;  %v5972_v17 = vld [vmem:[%s6851_s11 + $0x108] sm:$0xff] }
 0x228   : > { %v2669_v1 = vpop.f32.mrf.mxu0 }
 0x229   : > { %v2946_v16 = vpop.f32.mrf.mxu1  ;;  %v2760_v7 = vadd.f32 %v2666_v21, %v2482_v24  ;;  %6005 = vmatmul.msk.f32.gmra.mxu2 %vm417_vm1, %v5971_v25  ;;  %v6038_v21 = vld [vmem:[%s6851_s11 + $0x109] sm:$0xff] }
 0x22a   : > { %6071 = vmatmul.msk.f32.gmra.mxu3 %vm417_vm1, %v6037_v13  ;;  %v7963_v13 = vld [vmem:[%s7704_s17 + $0xb8] sm:$0xff] }
 0x22b   : > { %6137 = vmatmul.msk.f32.gmra.mxu0 %vm417_vm1, %v7510_v12  ;;  %v7957_v8 = vadd.f32 %v2943_v57, %v2760_v7 }
 0x22c   : > { %6170 = vmatmul.msk.f32.gmra.mxu1 %vm417_vm1, %v7949_v4  ;;  %v2113_v58 = vpop.f32.mrf.mxu2 }
 0x22d   : > { %v2391_v27 = vpop.f32.mrf.mxu3  ;;  %v2205_v41 = vadd.f32 %v2113_v58, %v7477_v2 }
 0x22f   : > { %v2483_v14 = vadd.f32 %v2391_v27, %v2205_v41  ;;  %v5973_v27 = vld [vmem:[%s6851_s11 + $0x118] sm:$0xff] }
 0x230   : > { %v2672_v25 = vpop.f32.mrf.mxu0 }
 0x231   : > { %v2949_v24 = vpop.f32.mrf.mxu1  ;;  %v2761_v12 = vadd.f32 %v2669_v1, %v2483_v14  ;;  %6006 = vmatmul.msk.f32.gmra.mxu2 %vm417_vm1, %v5972_v17  ;;  %v6039_v1 = vld [vmem:[%s6851_s11 + $0x119] sm:$0xff] }
 0x232   : > { %6072 = vmatmul.msk.f32.gmra.mxu3 %vm417_vm1, %v6038_v21  ;;  %v7977_v21 = vld [vmem:[%s7704_s17 + $0xc8] sm:$0xff] }
 0x233   : > { %6138 = vmatmul.msk.f32.gmra.mxu0 %vm417_vm1, %v7525_v34  ;;  %v7971_v2 = vadd.f32 %v2946_v16, %v2761_v12 }
 0x234   : > { %6171 = vmatmul.msk.f32.gmra.mxu1 %vm417_vm1, %v7963_v13  ;;  %v2116_v57 = vpop.f32.mrf.mxu2 }
 0x235   : > { %v2394_v7 = vpop.f32.mrf.mxu3  ;;  %v2206_v58 = vadd.f32 %v2116_v57, %v7492_v3 }
 0x237   : > { %v2484_v41 = vadd.f32 %v2394_v7, %v2206_v58  ;;  %v5974_v7 = vld [vmem:[%s6851_s11 + $0x120] sm:$0xff] }
 0x238   : > { %v2675_v17 = vpop.f32.mrf.mxu0 }
 0x239   : > { %v2952_v14 = vpop.f32.mrf.mxu1  ;;  %v2762_v34 = vadd.f32 %v2672_v25, %v2484_v41  ;;  %6007 = vmatmul.msk.f32.gmra.mxu2 %vm417_vm1, %v5973_v27  ;;  %v6040_v25 = vld [vmem:[%s6851_s11 + $0x121] sm:$0xff] }
 0x23a   : > { %6073 = vmatmul.msk.f32.gmra.mxu3 %vm417_vm1, %v6039_v1  ;;  %v7991_v1 = vld [vmem:[%s7704_s17 + $0xd0] sm:$0xff] }
 0x23b   : > { %6139 = vmatmul.msk.f32.gmra.mxu0 %vm417_vm1, %v7540_v59  ;;  %v7985_v3 = vadd.f32 %v2949_v24, %v2762_v34 }
 0x23c   : > { %6172 = vmatmul.msk.f32.gmra.mxu1 %vm417_vm1, %v7977_v21  ;;  %v2119_v16 = vpop.f32.mrf.mxu2 }
 0x23d   : > { %v2397_v12 = vpop.f32.mrf.mxu3  ;;  %v2207_v57 = vadd.f32 %v2119_v16, %v7507_v28 }
 0x23f   : > { %v2485_v58 = vadd.f32 %v2397_v12, %v2207_v57  ;;  %v5975_v12 = vld [vmem:[%s6851_s11 + $0x128] sm:$0xff] }
 0x240   : > { %v2678_v27 = vpop.f32.mrf.mxu0 }
 0x241   : > { %v2955_v41 = vpop.f32.mrf.mxu1  ;;  %v2763_v59 = vadd.f32 %v2675_v17, %v2485_v58  ;;  %6008 = vmatmul.msk.f32.gmra.mxu2 %vm417_vm1, %v5974_v7  ;;  %v6041_v17 = vld [vmem:[%s6851_s11 + $0x129] sm:$0xff] }
 0x242   : > { %6074 = vmatmul.msk.f32.gmra.mxu3 %vm417_vm1, %v6040_v25  ;;  %v8005_v25 = vld [vmem:[%s7704_s17 + $0xd8] sm:$0xff] }
 0x243   : > { %6140 = vmatmul.msk.f32.gmra.mxu0 %vm417_vm1, %v7555_v31  ;;  %v7999_v28 = vadd.f32 %v2952_v14, %v2763_v59 }
 0x244   : > { %6173 = vmatmul.msk.f32.gmra.mxu1 %vm417_vm1, %v7991_v1  ;;  %v2122_v24 = vpop.f32.mrf.mxu2 }
 0x245   : > { %9326 = vst [vmem:[#allocation10_spill] sm:$0xff] %v7999_v28  ;;  %v2400_v34 = vpop.f32.mrf.mxu3  ;;  %v2208_v16 = vadd.f32 %v2122_v24, %v7522_v32 }
 0x247   : > { %v2486_v57 = vadd.f32 %v2400_v34, %v2208_v16  ;;  %v5976_v34 = vld [vmem:[%s6851_s11 + $0x130] sm:$0xff] }
 0x248   : > { %v2681_v7 = vpop.f32.mrf.mxu0  ;;  %v6042_v16 = vld [vmem:[%s6851_s11 + $0x131] sm:$0xff] }
 0x249   : > { %v2958_v58 = vpop.f32.mrf.mxu1  ;;  %v2764_v31 = vadd.f32 %v2678_v27, %v2486_v57  ;;  %6009 = vmatmul.msk.f32.gmra.mxu2 %vm417_vm1, %v5975_v12  ;;  %v8019_v57 = vld [vmem:[%s7704_s17 + $0xe0] sm:$0xff] }
 0x24a   : > { %6075 = vmatmul.msk.f32.gmra.mxu3 %vm417_vm1, %v6041_v17 }
 0x24b   : > { %6141 = vmatmul.msk.f32.gmra.mxu0 %vm417_vm1, %v7570_v10  ;;  %v8013_v32 = vadd.f32 %v2955_v41, %v2764_v31 }
 0x24c   : > { %6174 = vmatmul.msk.f32.gmra.mxu1 %vm417_vm1, %v8005_v25  ;;  %v2125_v14 = vpop.f32.mrf.mxu2 }
 0x24d   : > { %v2403_v59 = vpop.f32.mrf.mxu3  ;;  %v2209_v24 = vadd.f32 %v2125_v14, %v7537_v36 }
 0x24f   : > { %v2487_v28 = vadd.f32 %v2403_v59, %v2209_v24 }
 0x250   : > { %v2684_v27 = vpop.f32.mrf.mxu0 }
 0x251   : > { %v2961_v12 = vpop.f32.mrf.mxu1  ;;  %v2765_v17 = vadd.f32 %v2681_v7, %v2487_v28  ;;  %6010 = vmatmul.msk.f32.gmra.mxu2 %vm417_vm1, %v5976_v34  ;;  %v8031_v7 = vld [vmem:[%s7704_s17 + $0xf0] sm:$0xff] }
 0x252   : > { %6076 = vmatmul.msk.f32.gmra.mxu3 %vm417_vm1, %v6042_v16 }
 0x253   : > { %6142 = vmatmul.msk.f32.gmra.mxu0 %vm417_vm1, %v7585_v26  ;;  %v8027_v36 = vadd.f32 %v2958_v58, %v2765_v17 }
 0x254   : > { %6175 = vmatmul.msk.f32.gmra.mxu1 %vm417_vm1, %v8019_v57  ;;  %v2128_v10 = vpop.f32.mrf.mxu2 }
 0x255   : > { %v2406_v41 = vpop.f32.mrf.mxu3  ;;  %v2210_v31 = vadd.f32 %v2128_v10, %v7552_v40 }
 0x257   : > { %v2488_v14 = vadd.f32 %v2406_v41, %v2210_v31 }
 0x258   : > { %v2687_v59 = vpop.f32.mrf.mxu0 }
 0x259   : > { %v2964_v28 = vpop.f32.mrf.mxu1  ;;  %v2766_v24 = vadd.f32 %v2684_v27, %v2488_v14  ;;  %6011 = vmatmul.msk.f32.gmra.mxu2 %vm417_vm1, %v7600_v38  ;;  %v8045_v38 = vld [vmem:[%s7704_s17 + $0xf8] sm:$0xff] }
 0x25a   : > { %6077 = vmatmul.msk.f32.gmra.mxu3 %vm417_vm1, %v7603_v55 }
 0x25b   : > { %6143 = vmatmul.msk.f32.gmra.mxu0 %vm417_vm1, %v7606_v54  ;;  %v8041_v40 = vadd.f32 %v2961_v12, %v2766_v24 }
 0x25c   : > { %6176 = vmatmul.msk.f32.gmra.mxu1 %vm417_vm1, %v8031_v7  ;;  %v2131_v26 = vpop.f32.mrf.mxu2 }
 0x25d   : > { %v2409_v58 = vpop.f32.mrf.mxu3  ;;  %v2211_v34 = vadd.f32 %v2131_v26, %v7567_v45 }
 0x25f   : > { %v2489_v16 = vadd.f32 %v2409_v58, %v2211_v34  ;;  %v8073_v58 = vld [vmem:[%s7704_s17 + $0x108] sm:$0xff] }
 0x260   : > { %v2690_v27 = vpop.f32.mrf.mxu0 }
 0x261   : > { %v2967_v17 = vpop.f32.mrf.mxu1  ;;  %v2767_v10 = vadd.f32 %v2687_v59, %v2489_v16  ;;  %6012 = vmatmul.msk.f32.gmra.mxu2 %vm417_vm1, %v7629_v20  ;;  %v8059_v20 = vld [vmem:[%s7704_s17 + $0x100] sm:$0xff] }
 0x262   : > { %6078 = vmatmul.msk.f32.gmra.mxu3 %vm417_vm1, %v7632_v56 }
 0x263   : > { %6144 = vmatmul.msk.f32.gmra.mxu0 %vm417_vm1, %v7635_v63  ;;  %v8055_v45 = vadd.f32 %v2964_v28, %v2767_v10 }
 0x264   : > { %6177 = vmatmul.msk.f32.gmra.mxu1 %vm417_vm1, %v8045_v38  ;;  %v2134_v55 = vpop.f32.mrf.mxu2 }
 0x265   : > { %v2412_v54 = vpop.f32.mrf.mxu3  ;;  %v2212_v12 = vadd.f32 %v2134_v55, %v7582_v49 }
 0x267   : > { %v2490_v41 = vadd.f32 %v2412_v54, %v2212_v12  ;;  %v6113_v54 = vld [vmem:[%s6851_s11 + $0x16a] sm:$0xff] }
 0x268   : > { %v2693_v31 = vpop.f32.mrf.mxu0 }
 0x269   : > { %v2970_v14 = vpop.f32.mrf.mxu1  ;;  %v2768_v59 = vadd.f32 %v2690_v27, %v2490_v41  ;;  %6013 = vmatmul.msk.f32.gmra.mxu2 %vm417_vm1, %v7657_v6  ;;  %v5981_v27 = vld [vmem:[%s6851_s11 + $0x168] sm:$0xff]  ;;  %v6482_v41 = vld [vmem:[%s9211_s3 + $0x18] sm:$0xf] }
 0x26a   : > { %6079 = vmatmul.msk.f32.gmra.mxu3 %vm417_vm1, %v7661_v53 }
 0x26b   : > { %6145 = vmatmul.msk.f32.gmra.mxu0 %vm417_vm1, %v7664_v50  ;;  %v8069_v49 = vadd.f32 %v2967_v17, %v2768_v59  ;;  %v6047_v17 = vld [vmem:[%s6851_s11 + $0x169] sm:$0xff]  ;;  %6483 = vmatpush.msk.msra.mxu3 %vm514_vm0, %v6482_v41  ;;  %v6115_v41 = vld [vmem:[%s6851_s11 + $0x17a] sm:$0xff] }
 0x26c   : > { %6178 = vmatmul.msk.f32.gmra.mxu1 %vm417_vm1, %v8059_v20  ;;  %v2137_v56 = vpop.f32.mrf.mxu2 }
 0x26d   : > { %v2415_v63 = vpop.f32.mrf.mxu3  ;;  %v2213_v28 = vadd.f32 %v2137_v56, %v7597_v51  ;;  %v5982_v56 = vld [vmem:[%s6851_s11 + $0x170] sm:$0xff] }
 0x26f   : > { %v2491_v24 = vadd.f32 %v2415_v63, %v2213_v28  ;;  %v6048_v63 = vld [vmem:[%s6851_s11 + $0x171] sm:$0xff] }
 0x270   : > { %v2696_v26 = vpop.f32.mrf.mxu0 }
 0x271   : > { %v2973_v6 = vpop.f32.mrf.mxu1  ;;  %v2769_v53 = vadd.f32 %v2693_v31, %v2491_v24  ;;  %6014 = vmatmul.msk.f32.gmra.mxu2 %vm417_vm1, %v7679_v52 }
 0x272   : > { %6080 = vmatmul.msk.f32.gmra.mxu3 %vm417_vm1, %v7682_v42  ;;  %v8090_v42 = vld [vmem:[%s7704_s17 + $0x118] sm:$0xff] }
 0x273   : > { %6146 = vmatmul.msk.f32.gmra.mxu0 %vm417_vm1, %v7685_v33  ;;  %v8083_v51 = vadd.f32 %v2970_v14, %v2769_v53  ;;  %v8112_v53 = vld [vmem:[%s7704_s17 + $0x120] sm:$0xff] }
 0x274   : > { %6179 = vmatmul.msk.f32.gmra.mxu1 %vm417_vm1, %v8073_v58  ;;  %v2140_v50 = vpop.f32.mrf.mxu2 }
 0x275   : > { %v2418_v34 = vpop.f32.mrf.mxu3  ;;  %v2214_v16 = vadd.f32 %v2140_v50, %v7621_v30  ;;  %v6416_v30 = vld [vmem:[%s9211_s3 + $0x14] sm:$0xf] }
 0x276   : > { %6417 = vmatpush.msk.msra.mxu2 %vm514_vm0, %v6416_v30 }
 0x277   : > { %v2492_v10 = vadd.f32 %v2418_v34, %v2214_v16  ;;  %v6548_v34 = vld [vmem:[%s9211_s3 + $0x1c] sm:$0xf] }
 0x278   : > { %v2699_v55 = vpop.f32.mrf.mxu0  ;;  %6549 = vmatpush.msk.msra.mxu0 %vm514_vm0, %v6548_v34 }
 0x279   : > { %v2976_v52 = vpop.f32.mrf.mxu1  ;;  %v2770_v33 = vadd.f32 %v2696_v26, %v2492_v10  ;;  %6015 = vmatmul.msk.f32.gmra.mxu2 %vm417_vm1, %v5981_v27  ;;  %v6614_v10 = vld [vmem:[%s9211_s3 + $0x20] sm:$0xf] }
 0x27a   : > { %6081 = vmatmul.msk.f32.gmra.mxu3 %vm417_vm1, %v6047_v17  ;;  %6615 = vmatpush.msk.msra.mxu1 %vm514_vm0, %v6614_v10 }
 0x27b   : > { %6147 = vmatmul.msk.f32.gmra.mxu0 %vm417_vm1, %v6113_v54  ;;  %v8100_v12 = vadd.f32 %v2973_v6, %v2770_v33  ;;  %v6114_v6 = vld [vmem:[%s6851_s11 + $0x172] sm:$0xff] }
 0x27c   : > { %6180 = vmatmul.msk.f32.gmra.mxu1 %vm417_vm1, %v8090_v42  ;;  %v2143_v31 = vpop.f32.mrf.mxu2  ;;  %v6049_v54 = vld [vmem:[%s6851_s11 + $0x179] sm:$0xff] }
 0x27d   : > { %v2421_v14 = vpop.f32.mrf.mxu3  ;;  %v2215_v59 = vadd.f32 %v2143_v31, %v7647_v47  ;;  %v8134_v31 = vld [vmem:[%s7704_s17 + $0x128] sm:$0xff] }
 0x27f   : > { %v2493_v28 = vadd.f32 %v2421_v14, %v2215_v59 }
 0x280   : > { %v2702_v24 = vpop.f32.mrf.mxu0 }
 0x281   : > { %v2979_v26 = vpop.f32.mrf.mxu1  ;;  %v2771_v50 = vadd.f32 %v2699_v55, %v2493_v28  ;;  %6016 = vmatmul.msk.f32.gmra.mxu2 %vm417_vm1, %v5982_v56  ;;  %v5983_v55 = vld [vmem:[%s6851_s11 + $0x178] sm:$0xff]  ;;  %v5984_v28 = vld [vmem:[%s6851_s11 + $0x180] sm:$0xff] }
 0x282   : > { %6082 = vmatmul.msk.f32.gmra.mxu3 %vm417_vm1, %v6048_v63 }
 0x283   : > { %6148 = vmatmul.msk.f32.gmra.mxu0 %vm417_vm1, %v6114_v6  ;;  %v8119_v47 = vadd.f32 %v2976_v52, %v2771_v50  ;;  %v6050_v6 = vld [vmem:[%s6851_s11 + $0x181] sm:$0xff] }
 0x284   : > { %6181 = vmatmul.msk.f32.gmra.mxu1 %vm417_vm1, %v8112_v53  ;;  %v2146_v16 = vpop.f32.mrf.mxu2 }
 0x285   : > { %v2424_v27 = vpop.f32.mrf.mxu3  ;;  %v2216_v17 = vadd.f32 %v2146_v16, %v7676_v29  ;;  %v6116_v16 = vld [vmem:[%s6851_s11 + $0x182] sm:$0xff]  ;;  %s5651_s11 = sshll.u32 %s6722_s24, 5 }
 0x286   : > { %p343_p7 = scmp.lt.s32.totalorder %s5651_s11, 127 }
 0x287   : > { %v2494_v52 = vadd.f32 %v2424_v27, %v2216_v17  ;;  %v8148_v27 = vld [vmem:[%s7704_s17 + $0x130] sm:$0xff] }
 0x288   : > { %v2705_v33 = vpop.f32.mrf.mxu0  ;;  %s9429_s11 = smov (!%p343_p7, %s5651_s11), 127 }
 0x289   : > { %v2982_v30 = vpop.f32.mrf.mxu1  ;;  %v2772_v14 = vadd.f32 %v2702_v24, %v2494_v52  ;;  %6017 = vmatmul.msk.f32.gmra.mxu2 %vm417_vm1, %v5983_v55  ;;  %v3346_v52 = vld [vmem:[%s7704_s17 + $0x2] sm:$0xff]  ;;  %s346_s13 = sadd.s32 %s5652_s12, %s9429_s11 }
 0x28a   : > { %6083 = vmatmul.msk.f32.gmra.mxu3 %vm417_vm1, %v6049_v54  ;;  %v3068_v54 = vld [vmem:[%s7704_s17 + $0x1] sm:$0xff]  ;;  %s5653_s25 = sshll.u32 %s346_s13, 3 }
 0x28b   : > { %6149 = vmatmul.msk.f32.gmra.mxu0 %vm417_vm1, %v6115_v41  ;;  %v8141_v29 = vadd.f32 %v2979_v26, %v2772_v14  ;;  %s8890_s19 = scalar_lea.vmem %s9215_s7, %s5653_s25 }
 0x28c   : > { %6182 = vmatmul.msk.f32.gmra.mxu1 %vm417_vm1, %v8134_v31  ;;  %v2149_v59 = vpop.f32.mrf.mxu2 }
 0x28d   : > { %v2427_v56 = vpop.f32.mrf.mxu3  ;;  %v2217_v63 = vadd.f32 %v2149_v59, %v7697_v18  ;;  %v6318_v59 = vld [vmem:[%s7704_s17 + $0x29] sm:$0xff] }
 0x28f   : > { %v2495_v24 = vadd.f32 %v2427_v56, %v2217_v63 }
 0x290   : > { %v2708_v50 = vpop.f32.mrf.mxu0 }
 0x291   : > { %v2985_v34 = vpop.f32.mrf.mxu1  ;;  %v2773_v17 = vadd.f32 %v2705_v33, %v2495_v24  ;;  %6018 = vmatmul.msk.f32.gmra.mxu2 %vm417_vm1, %v5984_v28  ;;  %v3347_v24 = vld [vmem:[%s7704_s17 + $0xa] sm:$0xff] }
 0x292   : > { %6084 = vmatmul.msk.f32.gmra.mxu3 %vm417_vm1, %v6050_v6  ;;  %v3069_v6 = vld [vmem:[%s7704_s17 + $0x9] sm:$0xff] }
 0x293   : > { %6150 = vmatmul.msk.f32.gmra.mxu0 %vm417_vm1, %v6116_v16  ;;  %v8155_v18 = vadd.f32 %v2982_v30, %v2773_v17 }
 0x294   : > { %6183 = vmatmul.msk.f32.gmra.mxu1 %vm417_vm1, %v8148_v27  ;;  %v2152_v26 = vpop.f32.mrf.mxu2 }
 0x295   : > { %v2430_v10 = vpop.f32.mrf.mxu3  ;;  %v2218_v55 = vadd.f32 %v2152_v26, %v7714_v39  ;;  %v6319_v26 = vld [vmem:[%s7704_s17 + $0x31] sm:$0xff] }
 0x297   : > { %v2496_v33 = vadd.f32 %v2430_v10, %v2218_v55 }
 0x298   : > { %v2711_v41 = vpop.f32.mrf.mxu0 }
 0x299   : > { %v2988_v14 = vpop.f32.mrf.mxu1  ;;  %v2774_v56 = vadd.f32 %v2708_v50, %v2496_v33  ;;  %6186 = vmatmul.msk.f32.vlgmr.msrb.gmra.mxu2 %vm417_vm1, %v3068_v54  ;;  %v3070_v54 = vld [vmem:[%s7704_s17 + $0x11] sm:$0xff] }
 0x29a   : > { %6220 = vmatmul.msk.f32.vlgmr.msrb.gmra.mxu3 %vm417_vm1, %v3346_v52  ;;  %v3348_v52 = vld [vmem:[%s7704_s17 + $0x12] sm:$0xff] }
 0x29b   : > { %6286 = vmatmul.msk.f32.vlgmr.msrb.gmra.mxu0 %vm417_vm1, %v7753_v43  ;;  %v8166_v39 = vadd.f32 %v2985_v34, %v2774_v56 }
 0x29c   : > { %6352 = vmatmul.msk.f32.vlgmr.msrb.gmra.mxu1 %vm417_vm1, %v6318_v59  ;;  %v2155_v30 = vpop.f32.mrf.mxu2 }
 0x29d   : > { %v2433_v63 = vpop.f32.mrf.mxu3  ;;  %v2219_v28 = vadd.f32 %v2155_v30, %v7725_v46  ;;  %v6320_v30 = vld [vmem:[%s7704_s17 + $0x39] sm:$0xff] }
 0x29f   : > { %v2497_v50 = vadd.f32 %v2433_v63, %v2219_v28 }
 0x2a0   : > { %v2714_v16 = vpop.f32.mrf.mxu0 }
 0x2a1   : > { %v2991_v17 = vpop.f32.mrf.mxu1  ;;  %v2775_v10 = vadd.f32 %v2711_v41, %v2497_v50  ;;  %6187 = vmatmul.msk.f32.gmra.mxu2 %vm417_vm1, %v3069_v6  ;;  %v9328_v6 = vld [vmem:[#allocation2_spill] sm:$0xff] }
 0x2a2   : > { %6221 = vmatmul.msk.f32.gmra.mxu3 %vm417_vm1, %v3347_v24  ;;  %v3071_v50 = vld [vmem:[%s7704_s17 + $0x19] sm:$0xff] }
 0x2a3   : > { %6287 = vmatmul.msk.f32.gmra.mxu0 %vm417_vm1, %v7767_v0  ;;  %v8177_v46 = vadd.f32 %v2988_v14, %v2775_v10  ;;  %v9327_v0 = vld [vmem:[#allocation6_spill] sm:$0xff] }
 0x2a4   : > { %6353 = vmatmul.msk.f32.gmra.mxu1 %vm417_vm1, %v6319_v26  ;;  %v2158_v43 = vpop.f32.mrf.mxu2  ;;  %v3349_v10 = vld [vmem:[%s7704_s17 + $0x1a] sm:$0xff] }
 0x2a5   : > { %v2436_v34 = vpop.f32.mrf.mxu3  ;;  %v2220_v55 = vadd.f32 %v2158_v43, %v7736_v61 }
 0x2a7   : > { %v2498_v33 = vadd.f32 %v2436_v34, %v2220_v55  ;;  %v6321_v55 = vld [vmem:[%s7704_s17 + $0x41] sm:$0xff] }
 0x2a8   : > { %v2717_v41 = vpop.f32.mrf.mxu0 }
 0x2a9   : > { %v2994_v56 = vpop.f32.mrf.mxu1  ;;  %v2776_v63 = vadd.f32 %v2714_v16, %v2498_v33  ;;  %6188 = vmatmul.msk.f32.gmra.mxu2 %vm417_vm1, %v3070_v54 }
 0x2aa   : > { %6222 = vmatmul.msk.f32.gmra.mxu3 %vm417_vm1, %v3348_v52  ;;  %v9329_v52 = vld [vmem:[#allocation31_spill] sm:$0xff] }
 0x2ab   : > { %6288 = vmatmul.msk.f32.gmra.mxu0 %vm417_vm1, %v9327_v0  ;;  %v8188_v61 = vadd.f32 %v2991_v17, %v2776_v63  ;;  %v9331_v0 = vld [vmem:[#allocation4_spill] sm:$0xff] }
 0x2ac   : > { %6354 = vmatmul.msk.f32.gmra.mxu1 %vm417_vm1, %v6320_v30  ;;  %v2161_v14 = vpop.f32.mrf.mxu2 }
 0x2ad   : > { %v2439_v28 = vpop.f32.mrf.mxu3  ;;  %v2221_v24 = vadd.f32 %v2161_v14, %v9328_v6 }
 0x2af   : > { %v2499_v43 = vadd.f32 %v2439_v28, %v2221_v24  ;;  %v8203_v28 = vld [vmem:[%s7704_s17 + $0x2a] sm:$0xff] }
 0x2b0   : > { %v2720_v16 = vpop.f32.mrf.mxu0 }
 0x2b1   : > { %v2997_v34 = vpop.f32.mrf.mxu1  ;;  %v2777_v54 = vadd.f32 %v2717_v41, %v2499_v43  ;;  %6189 = vmatmul.msk.f32.gmra.mxu2 %vm417_vm1, %v3071_v50  ;;  %v8206_v50 = vld [vmem:[%s7704_s17 + $0x51] sm:$0xff] }
 0x2b2   : > { %6223 = vmatmul.msk.f32.gmra.mxu3 %vm417_vm1, %v3349_v10 }
 0x2b3   : > { %6289 = vmatmul.msk.f32.gmra.mxu0 %vm417_vm1, %v9329_v52  ;;  %v8199_v17 = vadd.f32 %v2994_v56, %v2777_v54  ;;  %v9333_v52 = vld [vmem:[#allocation3_spill] sm:$0xff] }
 0x2b4   : > { %6355 = vmatmul.msk.f32.gmra.mxu1 %vm417_vm1, %v6321_v55  ;;  %v2164_v33 = vpop.f32.mrf.mxu2 }
 0x2b5   : > { %9330 = vst [vmem:[#allocation19_spill] sm:$0xff] %v8199_v17  ;;  %v2442_v63 = vpop.f32.mrf.mxu3  ;;  %v2222_v14 = vadd.f32 %v2164_v33, %v9331_v0 }
 0x2b7   : > { %v2500_v6 = vadd.f32 %v2442_v63, %v2222_v14  ;;  %v8219_v63 = vld [vmem:[%s7704_s17 + $0x32] sm:$0xff] }
 0x2b8   : > { %v2723_v41 = vpop.f32.mrf.mxu0  ;;  %v8222_v14 = vld [vmem:[%s7704_s17 + $0x59] sm:$0xff] }
 0x2b9   : > { %v3000_v24 = vpop.f32.mrf.mxu1  ;;  %v2778_v10 = vadd.f32 %v2720_v16, %v2500_v6  ;;  %6190 = vmatmul.msk.f32.gmra.mxu2 %vm417_vm1, %v6318_v59 }
 0x2ba   : > { %6224 = vmatmul.msk.f32.gmra.mxu3 %vm417_vm1, %v8203_v28 }
 0x2bb   : > { %6290 = vmatmul.msk.f32.gmra.mxu0 %vm417_vm1, %v7809_v62  ;;  %v8215_v56 = vadd.f32 %v2997_v34, %v2778_v10 }
 0x2bc   : > { %6356 = vmatmul.msk.f32.gmra.mxu1 %vm417_vm1, %v8206_v50  ;;  %v2167_v43 = vpop.f32.mrf.mxu2 }
 0x2bd   : > { %9332 = vst [vmem:[#allocation12_spill] sm:$0xff] %v8215_v56  ;;  %v2445_v54 = vpop.f32.mrf.mxu3  ;;  %v2223_v33 = vadd.f32 %v2167_v43, %v9333_v52  ;;  %v9335_v43 = vld [vmem:[#allocation5_spill] sm:$0xff] }
 0x2be   : > { %v8235_v52 = vld [vmem:[%s7704_s17 + $0x3a] sm:$0xff] }
 0x2bf   : > { %v2501_v16 = vadd.f32 %v2445_v54, %v2223_v33 }
 0x2c0   : > { %v2726_v59 = vpop.f32.mrf.mxu0 }
 0x2c1   : > { %v3003_v0 = vpop.f32.mrf.mxu1  ;;  %v2779_v6 = vadd.f32 %v2723_v41, %v2501_v16  ;;  %6191 = vmatmul.msk.f32.gmra.mxu2 %vm417_vm1, %v6319_v26  ;;  %v8238_v16 = vld [vmem:[%s7704_s17 + $0x61] sm:$0xff] }
 0x2c2   : > { %6225 = vmatmul.msk.f32.gmra.mxu3 %vm417_vm1, %v8219_v63 }
 0x2c3   : > { %6291 = vmatmul.msk.f32.gmra.mxu0 %vm417_vm1, %v7823_v44  ;;  %v8231_v62 = vadd.f32 %v3000_v24, %v2779_v6 }
 0x2c4   : > { %6357 = vmatmul.msk.f32.gmra.mxu1 %vm417_vm1, %v8222_v14  ;;  %v2170_v34 = vpop.f32.mrf.mxu2 }
 0x2c5   : > { %9334 = vst [vmem:[#allocation21_spill] sm:$0xff] %v8231_v62  ;;  %v2448_v10 = vpop.f32.mrf.mxu3  ;;  %v2224_v54 = vadd.f32 %v2170_v34, %v9335_v43  ;;  %v9337_v34 = vld [vmem:[#allocation32_spill] sm:$0xff]  ;;  %v8251_v43 = vld [vmem:[%s7704_s17 + $0x42] sm:$0xff] }
 0x2c6   : > { %9338 = vst [vmem:[#allocation23_spill] sm:$0xff] %v8251_v43 }
 0x2c7   : > { %v2502_v41 = vadd.f32 %v2448_v10, %v2224_v54 }
 0x2c8   : > { %v2729_v26 = vpop.f32.mrf.mxu0 }
 0x2c9   : > { %v3006_v33 = vpop.f32.mrf.mxu1  ;;  %v2780_v56 = vadd.f32 %v2726_v59, %v2502_v41  ;;  %6192 = vmatmul.msk.f32.gmra.mxu2 %vm417_vm1, %v6320_v30  ;;  %v8254_v41 = vld [vmem:[%s7704_s17 + $0x69] sm:$0xff] }
 0x2ca   : > { %6226 = vmatmul.msk.f32.gmra.mxu3 %vm417_vm1, %v8235_v52 }
 0x2cb   : > { %6292 = vmatmul.msk.f32.gmra.mxu0 %vm417_vm1, %v7837_v9  ;;  %v8247_v44 = vadd.f32 %v3003_v0, %v2780_v56 }
 0x2cc   : > { %6358 = vmatmul.msk.f32.gmra.mxu1 %vm417_vm1, %v8238_v16  ;;  %v2173_v24 = vpop.f32.mrf.mxu2 }
 0x2cd   : > { %9336 = vst [vmem:[#allocation14_spill] sm:$0xff] %v8247_v44  ;;  %v2451_v6 = vpop.f32.mrf.mxu3  ;;  %v2225_v10 = vadd.f32 %v2173_v24, %v9337_v34  ;;  %v9340_v24 = vld [vmem:[#allocation11_spill] sm:$0xff]  ;;  %v8267_v34 = vld [vmem:[%s7704_s17 + $0x52] sm:$0xff] }
 0x2cf   : > { %v2503_v59 = vadd.f32 %v2451_v6, %v2225_v10 }
 0x2d0   : > { %v2732_v30 = vpop.f32.mrf.mxu0 }
 0x2d1   : > { %v3009_v54 = vpop.f32.mrf.mxu1  ;;  %v2781_v62 = vadd.f32 %v2729_v26, %v2503_v59  ;;  %6193 = vmatmul.msk.f32.gmra.mxu2 %vm417_vm1, %v6321_v55  ;;  %v8270_v59 = vld [vmem:[%s7704_s17 + $0x79] sm:$0xff] }
 0x2d2   : > { %6227 = vmatmul.msk.f32.gmra.mxu3 %vm417_vm1, %v8251_v43 }
 0x2d3   : > { %6293 = vmatmul.msk.f32.gmra.mxu0 %vm417_vm1, %v7851_v37  ;;  %v8263_v9 = vadd.f32 %v3006_v33, %v2781_v62 }
 0x2d4   : > { %6359 = vmatmul.msk.f32.gmra.mxu1 %vm417_vm1, %v8254_v41  ;;  %v2176_v56 = vpop.f32.mrf.mxu2 }
 0x2d5   : > { %9339 = vst [vmem:[#allocation16_spill] sm:$0xff] %v8263_v9  ;;  %v2454_v0 = vpop.f32.mrf.mxu3  ;;  %v2226_v6 = vadd.f32 %v2176_v56, %v9340_v24  ;;  %v9342_v56 = vld [vmem:[#allocation7_spill] sm:$0xff] }
 0x2d6   : > { %v8287_v9 = vld [vmem:[%s7704_s17 + $0x81] sm:$0xff] }
 0x2d7   : > { %v2504_v26 = vadd.f32 %v2454_v0, %v2226_v6 }
 0x2d8   : > { %v2735_v55 = vpop.f32.mrf.mxu0 }
 0x2d9   : > { %v3012_v10 = vpop.f32.mrf.mxu1  ;;  %v2782_v44 = vadd.f32 %v2732_v30, %v2504_v26  ;;  %6194 = vmatmul.msk.f32.gmra.mxu2 %vm417_vm1, %v8206_v50  ;;  %v8284_v30 = vld [vmem:[%s7704_s17 + $0x5a] sm:$0xff] }
 0x2da   : > { %6228 = vmatmul.msk.f32.gmra.mxu3 %vm417_vm1, %v8267_v34 }
 0x2db   : > { %6294 = vmatmul.msk.f32.gmra.mxu0 %vm417_vm1, %v7865_v15  ;;  %v8280_v37 = vadd.f32 %v3009_v54, %v2782_v44 }
 0x2dc   : > { %6360 = vmatmul.msk.f32.gmra.mxu1 %vm417_vm1, %v8270_v59  ;;  %v2179_v62 = vpop.f32.mrf.mxu2 }
 0x2dd   : > { %9341 = vst [vmem:[#allocation25_spill] sm:$0xff] %v8280_v37  ;;  %v2457_v33 = vpop.f32.mrf.mxu3  ;;  %v2227_v0 = vadd.f32 %v2179_v62, %v9342_v56  ;;  %v9344_v62 = vld [vmem:[#allocation13_spill] sm:$0xff]  ;;  %v8304_v37 = vld [vmem:[%s7704_s17 + $0x89] sm:$0xff] }
 0x2df   : > { %v2505_v24 = vadd.f32 %v2457_v33, %v2227_v0 }
 0x2e0   : > { %v2738_v6 = vpop.f32.mrf.mxu0 }
 0x2e1   : > { %v3015_v26 = vpop.f32.mrf.mxu1  ;;  %v2783_v43 = vadd.f32 %v2735_v55, %v2505_v24  ;;  %6195 = vmatmul.msk.f32.gmra.mxu2 %vm417_vm1, %v8222_v14  ;;  %v8301_v55 = vld [vmem:[%s7704_s17 + $0x62] sm:$0xff] }
 0x2e2   : > { %6229 = vmatmul.msk.f32.gmra.mxu3 %vm417_vm1, %v8284_v30  ;;  %9345 = vst [vmem:[#allocation27_spill] sm:$0xff] %v8301_v55 }
 0x2e3   : > { %6295 = vmatmul.msk.f32.gmra.mxu0 %vm417_vm1, %v7879_v19  ;;  %v8297_v15 = vadd.f32 %v3012_v10, %v2783_v43 }
 0x2e4   : > { %6361 = vmatmul.msk.f32.gmra.mxu1 %vm417_vm1, %v8287_v9  ;;  %v2182_v44 = vpop.f32.mrf.mxu2 }
 0x2e5   : > { %9343 = vst [vmem:[#allocation18_spill] sm:$0xff] %v8297_v15  ;;  %v2460_v54 = vpop.f32.mrf.mxu3  ;;  %v2228_v33 = vadd.f32 %v2182_v44, %v9344_v62  ;;  %v9347_v44 = vld [vmem:[#allocation8_spill] sm:$0xff] }
 0x2e6   : > { %v8321_v15 = vld [vmem:[%s7704_s17 + $0x91] sm:$0xff] }
 0x2e7   : > { %v2506_v56 = vadd.f32 %v2460_v54, %v2228_v33 }
 0x2e8   : > { %v2741_v0 = vpop.f32.mrf.mxu0 }
 0x2e9   : > { %v3018_v24 = vpop.f32.mrf.mxu1  ;;  %v2784_v17 = vadd.f32 %v2738_v6, %v2506_v56  ;;  %6196 = vmatmul.msk.f32.gmra.mxu2 %vm417_vm1, %v8238_v16  ;;  %v8318_v6 = vld [vmem:[%s7704_s17 + $0x6a] sm:$0xff] }
 0x2ea   : > { %6230 = vmatmul.msk.f32.gmra.mxu3 %vm417_vm1, %v8301_v55  ;;  %9348 = vst [vmem:[#allocation22_spill] sm:$0xff] %v8318_v6 }
 0x2eb   : > { %6296 = vmatmul.msk.f32.gmra.mxu0 %vm417_vm1, %v7893_v11  ;;  %v8314_v19 = vadd.f32 %v3015_v26, %v2784_v17 }
 0x2ec   : > { %6362 = vmatmul.msk.f32.gmra.mxu1 %vm417_vm1, %v8304_v37  ;;  %v2185_v43 = vpop.f32.mrf.mxu2 }
 0x2ed   : > { %9346 = vst [vmem:[#allocation20_spill] sm:$0xff] %v8314_v19  ;;  %v2463_v10 = vpop.f32.mrf.mxu3  ;;  %v2229_v54 = vadd.f32 %v2185_v43, %v9347_v44  ;;  %v9350_v43 = vld [vmem:[#allocation15_spill] sm:$0xff] }
 0x2ee   : > { %v8338_v19 = vld [vmem:[%s7704_s17 + $0xa1] sm:$0xff] }
 0x2ef   : > { %v2507_v62 = vadd.f32 %v2463_v10, %v2229_v54 }
 0x2f0   : > { %v2744_v33 = vpop.f32.mrf.mxu0 }
 0x2f1   : > { %v3021_v56 = vpop.f32.mrf.mxu1  ;;  %v2785_v55 = vadd.f32 %v2741_v0, %v2507_v62  ;;  %6197 = vmatmul.msk.f32.gmra.mxu2 %vm417_vm1, %v8254_v41  ;;  %v8335_v0 = vld [vmem:[%s7704_s17 + $0x7a] sm:$0xff] }
 0x2f2   : > { %6231 = vmatmul.msk.f32.gmra.mxu3 %vm417_vm1, %v8318_v6  ;;  %9351 = vst [vmem:[#allocation26_spill] sm:$0xff] %v8335_v0 }
 0x2f3   : > { %6297 = vmatmul.msk.f32.gmra.mxu0 %vm417_vm1, %v7907_v60  ;;  %v8331_v11 = vadd.f32 %v3018_v24, %v2785_v55 }
 0x2f4   : > { %6363 = vmatmul.msk.f32.gmra.mxu1 %vm417_vm1, %v8321_v15  ;;  %v2188_v17 = vpop.f32.mrf.mxu2 }
 0x2f5   : > { %9349 = vst [vmem:[#allocation24_spill] sm:$0xff] %v8331_v11  ;;  %v2466_v26 = vpop.f32.mrf.mxu3  ;;  %v2230_v10 = vadd.f32 %v2188_v17, %v9350_v43  ;;  %v9353_v17 = vld [vmem:[#allocation9_spill] sm:$0xff]  ;;  %v8355_v11 = vld [vmem:[%s7704_s17 + $0xa9] sm:$0xff] }
 0x2f7   : > { %v2508_v44 = vadd.f32 %v2466_v26, %v2230_v10 }
 0x2f8   : > { %v2747_v54 = vpop.f32.mrf.mxu0 }
 0x2f9   : > { %v3024_v62 = vpop.f32.mrf.mxu1  ;;  %v2786_v6 = vadd.f32 %v2744_v33, %v2508_v44  ;;  %6198 = vmatmul.msk.f32.gmra.mxu2 %vm417_vm1, %v8270_v59  ;;  %v8352_v33 = vld [vmem:[%s7704_s17 + $0x82] sm:$0xff] }
 0x2fa   : > { %6232 = vmatmul.msk.f32.gmra.mxu3 %vm417_vm1, %v8335_v0  ;;  %9354 = vst [vmem:[#allocation29_spill] sm:$0xff] %v8352_v33 }
 0x2fb   : > { %6298 = vmatmul.msk.f32.gmra.mxu0 %vm417_vm1, %v7921_v5  ;;  %v8348_v60 = vadd.f32 %v3021_v56, %v2786_v6 }
 0x2fc   : > { %6364 = vmatmul.msk.f32.gmra.mxu1 %vm417_vm1, %v8338_v19  ;;  %v2191_v55 = vpop.f32.mrf.mxu2 }
 0x2fd   : > { %9352 = vst [vmem:[#allocation28_spill] sm:$0xff] %v8348_v60  ;;  %v2469_v24 = vpop.f32.mrf.mxu3  ;;  %v2231_v26 = vadd.f32 %v2191_v55, %v9353_v17  ;;  %v9356_v55 = vld [vmem:[#allocation17_spill] sm:$0xff] }
 0x2fe   : > { %v8372_v60 = vld [vmem:[%s7704_s17 + $0xb1] sm:$0xff] }
 0x2ff   : > { %v2509_v43 = vadd.f32 %v2469_v24, %v2231_v26 }
 0x300   : > { %v2750_v10 = vpop.f32.mrf.mxu0 }
 0x301   : > { %v3027_v44 = vpop.f32.mrf.mxu1  ;;  %v2787_v0 = vadd.f32 %v2747_v54, %v2509_v43  ;;  %6199 = vmatmul.msk.f32.gmra.mxu2 %vm417_vm1, %v8287_v9  ;;  %v8369_v54 = vld [vmem:[%s7704_s17 + $0x8a] sm:$0xff] }
 0x302   : > { %6233 = vmatmul.msk.f32.gmra.mxu3 %vm417_vm1, %v8352_v33 }
 0x303   : > { %6299 = vmatmul.msk.f32.gmra.mxu0 %vm417_vm1, %v7935_v22  ;;  %v8365_v5 = vadd.f32 %v3024_v62, %v2787_v0 }
 0x304   : > { %6365 = vmatmul.msk.f32.gmra.mxu1 %vm417_vm1, %v8355_v11  ;;  %v2194_v6 = vpop.f32.mrf.mxu2 }
 0x305   : > { %9355 = vst [vmem:[#allocation30_spill] sm:$0xff] %v8365_v5  ;;  %v2472_v56 = vpop.f32.mrf.mxu3  ;;  %v2232_v24 = vadd.f32 %v2194_v6, %v9356_v55 }
 0x307   : > { %v2510_v17 = vadd.f32 %v2472_v56, %v2232_v24 }
 0x308   : > { %v2753_v26 = vpop.f32.mrf.mxu0 }
 0x309   : > { %v3030_v43 = vpop.f32.mrf.mxu1  ;;  %v2788_v33 = vadd.f32 %v2750_v10, %v2510_v17  ;;  %6200 = vmatmul.msk.f32.gmra.mxu2 %vm417_vm1, %v8304_v37  ;;  %v8386_v10 = vld [vmem:[%s7704_s17 + $0x92] sm:$0xff] }
 0x30a   : > { %6234 = vmatmul.msk.f32.gmra.mxu3 %vm417_vm1, %v8369_v54  ;;  %v8389_v17 = vld [vmem:[%s7704_s17 + $0xb9] sm:$0xff] }
 0x30b   : > { %6300 = vmatmul.msk.f32.gmra.mxu0 %vm417_vm1, %v7949_v4  ;;  %v8382_v22 = vadd.f32 %v3027_v44, %v2788_v33 }
 0x30c   : > { %6366 = vmatmul.msk.f32.gmra.mxu1 %vm417_vm1, %v8372_v60  ;;  %v2197_v0 = vpop.f32.mrf.mxu2 }
 0x30d   : > { %9357 = vst [vmem:[#allocation33_spill] sm:$0xff] %v8382_v22  ;;  %v2475_v62 = vpop.f32.mrf.mxu3  ;;  %v2233_v6 = vadd.f32 %v2197_v0, %v7915_v48 }
 0x30f   : > { %v2511_v56 = vadd.f32 %v2475_v62, %v2233_v6 }
 0x310   : > { %v2756_v55 = vpop.f32.mrf.mxu0 }
 0x311   : > { %v3033_v24 = vpop.f32.mrf.mxu1  ;;  %v2789_v5 = vadd.f32 %v2753_v26, %v2511_v56  ;;  %6201 = vmatmul.msk.f32.gmra.mxu2 %vm417_vm1, %v8321_v15  ;;  %v8403_v26 = vld [vmem:[%s7704_s17 + $0xa2] sm:$0xff] }
 0x312   : > { %6235 = vmatmul.msk.f32.gmra.mxu3 %vm417_vm1, %v8386_v10  ;;  %v8406_v56 = vld [vmem:[%s7704_s17 + $0xc9] sm:$0xff] }
 0x313   : > { %6301 = vmatmul.msk.f32.gmra.mxu0 %vm417_vm1, %v7963_v13  ;;  %v8399_v48 = vadd.f32 %v3030_v43, %v2789_v5 }
 0x314   : > { %6367 = vmatmul.msk.f32.gmra.mxu1 %vm417_vm1, %v8389_v17  ;;  %v2200_v4 = vpop.f32.mrf.mxu2 }
 0x315   : > { %9358 = vst [vmem:[#allocation6_spill] sm:$0xff] %v8399_v48  ;;  %v2478_v33 = vpop.f32.mrf.mxu3  ;;  %v2234_v44 = vadd.f32 %v2200_v4, %v7929_v35 }
 0x317   : > { %v2512_v0 = vadd.f32 %v2478_v33, %v2234_v44 }
 0x318   : > { %v3775_v62 = vpop.f32.mrf.mxu0 }
 0x319   : > { %v4053_v6 = vpop.f32.mrf.mxu1  ;;  %v2790_v22 = vadd.f32 %v2756_v55, %v2512_v0  ;;  %6202 = vmatmul.msk.f32.gmra.mxu2 %vm417_vm1, %v8338_v19  ;;  %v8420_v55 = vld [vmem:[%s7704_s17 + $0xaa] sm:$0xff] }
 0x31a   : > { %6236 = vmatmul.msk.f32.gmra.mxu3 %vm417_vm1, %v8403_v26  ;;  %v8423_v0 = vld [vmem:[%s7704_s17 + $0xd1] sm:$0xff] }
 0x31b   : > { %6302 = vmatmul.msk.f32.gmra.mxu0 %vm417_vm1, %v7977_v21  ;;  %v8416_v35 = vadd.f32 %v3033_v24, %v2790_v22 }
 0x31c   : > { %6368 = vmatmul.msk.f32.gmra.mxu1 %vm417_vm1, %v8406_v56  ;;  %v3218_v13 = vpop.f32.mrf.mxu2 }
 0x31d   : > { %9359 = vst [vmem:[#allocation2_spill] sm:$0xff] %v8416_v35  ;;  %v3496_v5 = vpop.f32.mrf.mxu3  ;;  %v3314_v43 = vadd.f32 %v3218_v13, %v7943_v23 }
 0x31f   : > { %v3592_v4 = vadd.f32 %v3496_v5, %v3314_v43 }
 0x320   : > { %v3778_v33 = vpop.f32.mrf.mxu0 }
 0x321   : > { %v4056_v44 = vpop.f32.mrf.mxu1  ;;  %v3871_v48 = vadd.f32 %v3775_v62, %v3592_v4  ;;  %6203 = vmatmul.msk.f32.gmra.mxu2 %vm417_vm1, %v8355_v11  ;;  %v8437_v62 = vld [vmem:[%s7704_s17 + $0xb2] sm:$0xff] }
 0x322   : > { %6237 = vmatmul.msk.f32.gmra.mxu3 %vm417_vm1, %v8420_v55  ;;  %v8440_v4 = vld [vmem:[%s7704_s17 + $0xd9] sm:$0xff] }
 0x323   : > { %6303 = vmatmul.msk.f32.gmra.mxu0 %vm417_vm1, %v7991_v1  ;;  %v8433_v23 = vadd.f32 %v4053_v6, %v3871_v48 }
 0x324   : > { %6369 = vmatmul.msk.f32.gmra.mxu1 %vm417_vm1, %v8423_v0  ;;  %v3221_v21 = vpop.f32.mrf.mxu2 }
 0x325   : > { %9360 = vst [vmem:[#allocation31_spill] sm:$0xff] %v8433_v23  ;;  %v3499_v22 = vpop.f32.mrf.mxu3  ;;  %v3315_v24 = vadd.f32 %v3221_v21, %v7957_v8 }
 0x327   : > { %v3593_v13 = vadd.f32 %v3499_v22, %v3315_v24 }
 0x328   : > { %v3781_v5 = vpop.f32.mrf.mxu0 }
 0x329   : > { %v4059_v43 = vpop.f32.mrf.mxu1  ;;  %v3872_v35 = vadd.f32 %v3778_v33, %v3593_v13  ;;  %6204 = vmatmul.msk.f32.gmra.mxu2 %vm417_vm1, %v8372_v60  ;;  %v8454_v33 = vld [vmem:[%s7704_s17 + $0xba] sm:$0xff] }
 0x32a   : > { %6238 = vmatmul.msk.f32.gmra.mxu3 %vm417_vm1, %v8437_v62  ;;  %v8457_v13 = vld [vmem:[%s7704_s17 + $0xe1] sm:$0xff] }
 0x32b   : > { %6304 = vmatmul.msk.f32.gmra.mxu0 %vm417_vm1, %v8005_v25  ;;  %v8450_v8 = vadd.f32 %v4056_v44, %v3872_v35 }
 0x32c   : > { %6370 = vmatmul.msk.f32.gmra.mxu1 %vm417_vm1, %v8440_v4  ;;  %v3224_v1 = vpop.f32.mrf.mxu2 }
 0x32d   : > { %9361 = vst [vmem:[#allocation4_spill] sm:$0xff] %v8450_v8  ;;  %v3502_v48 = vpop.f32.mrf.mxu3  ;;  %v3316_v6 = vadd.f32 %v3224_v1, %v7971_v2 }
 0x32f   : > { %v3594_v21 = vadd.f32 %v3502_v48, %v3316_v6 }
 0x330   : > { %v3784_v22 = vpop.f32.mrf.mxu0 }
 0x331   : > { %v4062_v24 = vpop.f32.mrf.mxu1  ;;  %v3873_v23 = vadd.f32 %v3781_v5, %v3594_v21  ;;  %6205 = vmatmul.msk.f32.gmra.mxu2 %vm417_vm1, %v8389_v17  ;;  %v8471_v5 = vld [vmem:[%s7704_s17 + $0xca] sm:$0xff] }
 0x332   : > { %6239 = vmatmul.msk.f32.gmra.mxu3 %vm417_vm1, %v8454_v33  ;;  %9363 = vst [vmem:[#allocation5_spill] sm:$0xff] %v8471_v5  ;;  %v8474_v21 = vld [vmem:[%s7704_s17 + $0xf1] sm:$0xff] }
 0x333   : > { %6305 = vmatmul.msk.f32.gmra.mxu0 %vm417_vm1, %v8019_v57  ;;  %v8467_v2 = vadd.f32 %v4059_v43, %v3873_v23  ;;  %v9365_v43 = vld [vmem:[#allocation10_spill] sm:$0xff] }
 0x334   : > { %6371 = vmatmul.msk.f32.gmra.mxu1 %vm417_vm1, %v8457_v13  ;;  %v3227_v25 = vpop.f32.mrf.mxu2 }
 0x335   : > { %9362 = vst [vmem:[#allocation3_spill] sm:$0xff] %v8467_v2  ;;  %v3505_v35 = vpop.f32.mrf.mxu3  ;;  %v3317_v44 = vadd.f32 %v3227_v25, %v7985_v3  ;;  %v8491_v2 = vld [vmem:[%s7704_s17 + $0xf9] sm:$0xff] }
 0x337   : > { %v3595_v1 = vadd.f32 %v3505_v35, %v3317_v44 }
 0x338   : > { %v3787_v48 = vpop.f32.mrf.mxu0 }
 0x339   : > { %v4065_v6 = vpop.f32.mrf.mxu1  ;;  %v3874_v8 = vadd.f32 %v3784_v22, %v3595_v1  ;;  %6206 = vmatmul.msk.f32.gmra.mxu2 %vm417_vm1, %v8406_v56  ;;  %v8488_v22 = vld [vmem:[%s7704_s17 + $0xd2] sm:$0xff] }
 0x33a   : > { %6240 = vmatmul.msk.f32.gmra.mxu3 %vm417_vm1, %v8471_v5 }
 0x33b   : > { %6306 = vmatmul.msk.f32.gmra.mxu0 %vm417_vm1, %v8031_v7  ;;  %v8484_v3 = vadd.f32 %v4062_v24, %v3874_v8 }
 0x33c   : > { %6372 = vmatmul.msk.f32.gmra.mxu1 %vm417_vm1, %v8474_v21  ;;  %v3230_v57 = vpop.f32.mrf.mxu2 }
 0x33d   : > { %9364 = vst [vmem:[#allocation32_spill] sm:$0xff] %v8484_v3  ;;  %v3508_v23 = vpop.f32.mrf.mxu3  ;;  %v3318_v25 = vadd.f32 %v3230_v57, %v9365_v43 }
 0x33f   : > { %v3596_v35 = vadd.f32 %v3508_v23, %v3318_v25 }
 0x340   : > { %v3790_v44 = vpop.f32.mrf.mxu0 }
 0x341   : > { %v4068_v1 = vpop.f32.mrf.mxu1  ;;  %v3875_v5 = vadd.f32 %v3787_v48, %v3596_v35  ;;  %6207 = vmatmul.msk.f32.gmra.mxu2 %vm417_vm1, %v8423_v0  ;;  %v8505_v48 = vld [vmem:[%s7704_s17 + $0xda] sm:$0xff] }
 0x342   : > { %6241 = vmatmul.msk.f32.gmra.mxu3 %vm417_vm1, %v8488_v22  ;;  %v8508_v35 = vld [vmem:[%s7704_s17 + $0x101] sm:$0xff] }
 0x343   : > { %6307 = vmatmul.msk.f32.gmra.mxu0 %vm417_vm1, %v8045_v38  ;;  %v8501_v7 = vadd.f32 %v4065_v6, %v3875_v5 }
 0x344   : > { %6373 = vmatmul.msk.f32.gmra.mxu1 %vm417_vm1, %v8491_v2  ;;  %v3233_v8 = vpop.f32.mrf.mxu2 }
 0x345   : > { %9366 = vst [vmem:[#allocation11_spill] sm:$0xff] %v8501_v7  ;;  %v3511_v24 = vpop.f32.mrf.mxu3  ;;  %v3319_v57 = vadd.f32 %v3233_v8, %v8013_v32 }
 0x347   : > { %v3597_v23 = vadd.f32 %v3511_v24, %v3319_v57 }
 0x348   : > { %v3793_v43 = vpop.f32.mrf.mxu0 }
 0x349   : > { %v4071_v25 = vpop.f32.mrf.mxu1  ;;  %v3876_v3 = vadd.f32 %v3790_v44, %v3597_v23  ;;  %6208 = vmatmul.msk.f32.gmra.mxu2 %vm417_vm1, %v8440_v4  ;;  %v8522_v44 = vld [vmem:[%s7704_s17 + $0xe2] sm:$0xff] }
 0x34a   : > { %6242 = vmatmul.msk.f32.gmra.mxu3 %vm417_vm1, %v8505_v48  ;;  %v8525_v23 = vld [vmem:[%s7704_s17 + $0x109] sm:$0xff] }
 0x34b   : > { %6308 = vmatmul.msk.f32.gmra.mxu0 %vm417_vm1, %v8059_v20  ;;  %v8518_v32 = vadd.f32 %v4068_v1, %v3876_v3 }
 0x34c   : > { %6374 = vmatmul.msk.f32.gmra.mxu1 %vm417_vm1, %v8508_v35  ;;  %v3236_v38 = vpop.f32.mrf.mxu2 }
 0x34d   : > { %9367 = vst [vmem:[#allocation7_spill] sm:$0xff] %v8518_v32  ;;  %v3514_v5 = vpop.f32.mrf.mxu3  ;;  %v3320_v6 = vadd.f32 %v3236_v38, %v8027_v36 }
 0x34f   : > { %v3598_v8 = vadd.f32 %v3514_v5, %v3320_v6 }
 0x350   : > { %v3796_v24 = vpop.f32.mrf.mxu0 }
 0x351   : > { %v4074_v57 = vpop.f32.mrf.mxu1  ;;  %v3877_v7 = vadd.f32 %v3793_v43, %v3598_v8  ;;  %6209 = vmatmul.msk.f32.gmra.mxu2 %vm417_vm1, %v8457_v13  ;;  %v8539_v43 = vld [vmem:[%s7704_s17 + $0xf2] sm:$0xff] }
 0x352   : > { %6243 = vmatmul.msk.f32.gmra.mxu3 %vm417_vm1, %v8522_v44  ;;  %v8542_v8 = vld [vmem:[%s7704_s17 + $0x119] sm:$0xff] }
 0x353   : > { %6309 = vmatmul.msk.f32.gmra.mxu0 %vm417_vm1, %v8073_v58  ;;  %v8535_v36 = vadd.f32 %v4071_v25, %v3877_v7 }
 0x354   : > { %6375 = vmatmul.msk.f32.gmra.mxu1 %vm417_vm1, %v8525_v23  ;;  %v3239_v20 = vpop.f32.mrf.mxu2 }
 0x355   : > { %9368 = vst [vmem:[#allocation13_spill] sm:$0xff] %v8535_v36  ;;  %v3517_v3 = vpop.f32.mrf.mxu3  ;;  %v3321_v1 = vadd.f32 %v3239_v20, %v8041_v40 }
 0x357   : > { %v3599_v38 = vadd.f32 %v3517_v3, %v3321_v1 }
 0x358   : > { %v3799_v5 = vpop.f32.mrf.mxu0 }
 0x359   : > { %v4077_v6 = vpop.f32.mrf.mxu1  ;;  %v3878_v32 = vadd.f32 %v3796_v24, %v3599_v38  ;;  %6210 = vmatmul.msk.f32.gmra.mxu2 %vm417_vm1, %v8474_v21  ;;  %v8556_v24 = vld [vmem:[%s7704_s17 + $0xfa] sm:$0xff] }
 0x35a   : > { %6244 = vmatmul.msk.f32.gmra.mxu3 %vm417_vm1, %v8539_v43  ;;  %v8559_v38 = vld [vmem:[%s7704_s17 + $0x121] sm:$0xff] }
 0x35b   : > { %6310 = vmatmul.msk.f32.gmra.mxu0 %vm417_vm1, %v8090_v42  ;;  %v8552_v40 = vadd.f32 %v4074_v57, %v3878_v32 }
 0x35c   : > { %6376 = vmatmul.msk.f32.gmra.mxu1 %vm417_vm1, %v8542_v8  ;;  %v3242_v58 = vpop.f32.mrf.mxu2 }
 0x35d   : > { %9369 = vst [vmem:[#allocation8_spill] sm:$0xff] %v8552_v40  ;;  %v3520_v7 = vpop.f32.mrf.mxu3  ;;  %v3322_v25 = vadd.f32 %v3242_v58, %v8055_v45 }
 0x35f   : > { %v3600_v20 = vadd.f32 %v3520_v7, %v3322_v25 }
 0x360   : > { %v3802_v3 = vpop.f32.mrf.mxu0 }
 0x361   : > { %v4080_v1 = vpop.f32.mrf.mxu1  ;;  %v3879_v36 = vadd.f32 %v3799_v5, %v3600_v20  ;;  %6211 = vmatmul.msk.f32.gmra.mxu2 %vm417_vm1, %v8491_v2  ;;  %v8573_v5 = vld [vmem:[%s7704_s17 + $0x102] sm:$0xff] }
 0x362   : > { %6245 = vmatmul.msk.f32.gmra.mxu3 %vm417_vm1, %v8556_v24  ;;  %v8576_v20 = vld [vmem:[%s7704_s17 + $0x129] sm:$0xff] }
 0x363   : > { %6311 = vmatmul.msk.f32.gmra.mxu0 %vm417_vm1, %v8112_v53  ;;  %v8569_v45 = vadd.f32 %v4077_v6, %v3879_v36 }
 0x364   : > { %6377 = vmatmul.msk.f32.gmra.mxu1 %vm417_vm1, %v8559_v38  ;;  %v3245_v42 = vpop.f32.mrf.mxu2 }
 0x365   : > { %9370 = vst [vmem:[#allocation15_spill] sm:$0xff] %v8569_v45  ;;  %v3523_v32 = vpop.f32.mrf.mxu3  ;;  %v3323_v57 = vadd.f32 %v3245_v42, %v8069_v49 }
 0x367   : > { %v3601_v58 = vadd.f32 %v3523_v32, %v3323_v57 }
 0x368   : > { %v3805_v7 = vpop.f32.mrf.mxu0 }
 0x369   : > { %v4083_v25 = vpop.f32.mrf.mxu1  ;;  %v3880_v40 = vadd.f32 %v3802_v3, %v3601_v58  ;;  %6212 = vmatmul.msk.f32.gmra.mxu2 %vm417_vm1, %v8508_v35  ;;  %v8590_v3 = vld [vmem:[%s7704_s17 + $0x10a] sm:$0xff] }
 0x36a   : > { %6246 = vmatmul.msk.f32.gmra.mxu3 %vm417_vm1, %v8573_v5  ;;  %v6345_v58 = vld [vmem:[%s7704_s17 + $0x131] sm:$0xff] }
 0x36b   : > { %6312 = vmatmul.msk.f32.gmra.mxu0 %vm417_vm1, %v8134_v31  ;;  %v8586_v49 = vadd.f32 %v4080_v1, %v3880_v40 }
 0x36c   : > { %6378 = vmatmul.msk.f32.gmra.mxu1 %vm417_vm1, %v8576_v20  ;;  %v3248_v53 = vpop.f32.mrf.mxu2 }
 0x36d   : > { %9371 = vst [vmem:[#allocation9_spill] sm:$0xff] %v8586_v49  ;;  %v3526_v36 = vpop.f32.mrf.mxu3  ;;  %v3324_v6 = vadd.f32 %v3248_v53, %v8083_v51  ;;  %v8604_v53 = vld [vmem:[%s7704_s17 + $0x11a] sm:$0xff] }
 0x36e   : > { %9373 = vst [vmem:[#allocation10_spill] sm:$0xff] %v8604_v53  ;;  %v6346_v49 = vld [vmem:[%s7704_s17 + $0x141] sm:$0xff] }
 0x36f   : > { %v3602_v42 = vadd.f32 %v3526_v36, %v3324_v6 }
 0x370   : > { %v3808_v32 = vpop.f32.mrf.mxu0 }
 0x371   : > { %v4086_v57 = vpop.f32.mrf.mxu1  ;;  %v3881_v45 = vadd.f32 %v3805_v7, %v3602_v42  ;;  %6213 = vmatmul.msk.f32.gmra.mxu2 %vm417_vm1, %v8525_v23  ;;  %v8607_v42 = vld [vmem:[%s7704_s17 + $0x140] sm:$0xff] }
 0x372   : > { %6247 = vmatmul.msk.f32.gmra.mxu3 %vm417_vm1, %v8590_v3  ;;  %9374 = vst [vmem:[#allocation34_spill] sm:$0xff] %v8607_v42 }
 0x373   : > { %6313 = vmatmul.msk.f32.gmra.mxu0 %vm417_vm1, %v8148_v27  ;;  %v8600_v51 = vadd.f32 %v4083_v25, %v3881_v45 }
 0x374   : > { %6379 = vmatmul.msk.f32.gmra.mxu1 %vm417_vm1, %v6345_v58  ;;  %v3251_v31 = vpop.f32.mrf.mxu2 }
 0x375   : > { %9372 = vst [vmem:[#allocation17_spill] sm:$0xff] %v8600_v51  ;;  %v3529_v40 = vpop.f32.mrf.mxu3  ;;  %v3325_v1 = vadd.f32 %v3251_v31, %v8100_v12  ;;  %v8624_v51 = vld [vmem:[%s7704_s17 + $0x148] sm:$0xff] }
 0x376   : > { %9377 = vst [vmem:[#allocation37_spill] sm:$0xff] %v8624_v51 }
 0x377   : > { %v3603_v7 = vadd.f32 %v3529_v40, %v3325_v1  ;;  %v8621_v40 = vld [vmem:[%s7704_s17 + $0x122] sm:$0xff] }
 0x378   : > { %v3811_v36 = vpop.f32.mrf.mxu0  ;;  %9376 = vst [vmem:[#allocation36_spill] sm:$0xff] %v8621_v40 }
 0x379   : > { %v4089_v6 = vpop.f32.mrf.mxu1  ;;  %v3882_v27 = vadd.f32 %v3808_v32, %v3603_v7  ;;  %6214 = vmatmul.msk.f32.gmra.mxu2 %vm417_vm1, %v8542_v8 }
 0x37a   : > { %6248 = vmatmul.msk.f32.gmra.mxu3 %vm417_vm1, %v8604_v53  ;;  %v6347_v53 = vld [vmem:[%s7704_s17 + $0x149] sm:$0xff] }
 0x37b   : > { %6314 = vmatmul.msk.f32.gmra.mxu0 %vm417_vm1, %v8607_v42  ;;  %v8617_v12 = vadd.f32 %v4086_v57, %v3882_v27 }
 0x37c   : > { %6380 = vmatmul.msk.f32.gmra.mxu1 %vm417_vm1, %v6346_v49  ;;  %v3254_v45 = vpop.f32.mrf.mxu2 }
 0x37d   : > { %9375 = vst [vmem:[#allocation35_spill] sm:$0xff] %v8617_v12  ;;  %v3532_v25 = vpop.f32.mrf.mxu3  ;;  %v3326_v31 = vadd.f32 %v3254_v45, %v8119_v47  ;;  %v8638_v45 = vld [vmem:[%s7704_s17 + $0x12a] sm:$0xff] }
 0x37e   : > { %v6348_v12 = vld [vmem:[%s7704_s17 + $0x151] sm:$0xff] }
 0x37f   : > { %v3604_v32 = vadd.f32 %v3532_v25, %v3326_v31 }
 0x380   : > { %v3814_v1 = vpop.f32.mrf.mxu0 }
 0x381   : > { %v4092_v7 = vpop.f32.mrf.mxu1  ;;  %v3883_v42 = vadd.f32 %v3811_v36, %v3604_v32  ;;  %6215 = vmatmul.msk.f32.gmra.mxu2 %vm417_vm1, %v8559_v38  ;;  %v6282_v32 = vld [vmem:[%s7704_s17 + $0x150] sm:$0xff] }
 0x382   : > { %6249 = vmatmul.msk.f32.gmra.mxu3 %vm417_vm1, %v8621_v40 }
 0x383   : > { %6315 = vmatmul.msk.f32.gmra.mxu0 %vm417_vm1, %v8624_v51  ;;  %v8634_v47 = vadd.f32 %v4089_v6, %v3883_v42 }
 0x384   : > { %6381 = vmatmul.msk.f32.gmra.mxu1 %vm417_vm1, %v6347_v53  ;;  %v3257_v49 = vpop.f32.mrf.mxu2 }
 0x385   : > { %9378 = vst [vmem:[#allocation38_spill] sm:$0xff] %v8634_v47  ;;  %v3535_v57 = vpop.f32.mrf.mxu3  ;;  %v3327_v27 = vadd.f32 %v3257_v49, %v8141_v29  ;;  %v8652_v49 = vld [vmem:[%s7704_s17 + $0x132] sm:$0xff] }
 0x386   : > { %v6349_v47 = vld [vmem:[%s7704_s17 + $0x159] sm:$0xff] }
 0x387   : > { %v3605_v36 = vadd.f32 %v3535_v57, %v3327_v27 }
 0x388   : > { %v3817_v25 = vpop.f32.mrf.mxu0 }
 0x389   : > { %v4095_v31 = vpop.f32.mrf.mxu1  ;;  %v3884_v40 = vadd.f32 %v3814_v1, %v3605_v36  ;;  %6216 = vmatmul.msk.f32.gmra.mxu2 %vm417_vm1, %v8576_v20  ;;  %v6283_v36 = vld [vmem:[%s7704_s17 + $0x158] sm:$0xff] }
 0x38a   : > { %6250 = vmatmul.msk.f32.gmra.mxu3 %vm417_vm1, %v8638_v45 }
 0x38b   : > { %6316 = vmatmul.msk.f32.gmra.mxu0 %vm417_vm1, %v6282_v32  ;;  %v8648_v29 = vadd.f32 %v4092_v7, %v3884_v40  ;;  %v6450_v32 = vld [vmem:[%s7704_s17 + $0x50] sm:$0xff] }
 0x38c   : > { %6382 = vmatmul.msk.f32.gmra.mxu1 %vm417_vm1, %v6348_v12  ;;  %v3260_v53 = vpop.f32.mrf.mxu2 }
 0x38d   : > { %v3538_v6 = vpop.f32.mrf.mxu3  ;;  %v3328_v42 = vadd.f32 %v3260_v53, %v8155_v18 }
 0x38f   : > { %v3606_v1 = vadd.f32 %v3538_v6, %v3328_v42 }
 0x390   : > { %v3820_v57 = vpop.f32.mrf.mxu0 }
 0x391   : > { %v4098_v27 = vpop.f32.mrf.mxu1  ;;  %v3885_v51 = vadd.f32 %v3817_v25, %v3606_v1  ;;  %6217 = vmatmul.msk.f32.gmra.mxu2 %vm417_vm1, %v6345_v58 }
 0x392   : > { %6251 = vmatmul.msk.f32.gmra.mxu3 %vm417_vm1, %v8652_v49 }
 0x393   : > { %6317 = vmatmul.msk.f32.gmra.mxu0 %vm417_vm1, %v6283_v36  ;;  %v8661_v12 = vadd.f32 %v4095_v31, %v3885_v51  ;;  %v6451_v31 = vld [vmem:[%s7704_s17 + $0x58] sm:$0xff] }
 0x394   : > { %6383 = vmatmul.msk.f32.gmra.mxu1 %vm417_vm1, %v6349_v47  ;;  %v3263_v18 = vpop.f32.mrf.mxu2 }
 0x395   : > { %v3541_v40 = vpop.f32.mrf.mxu3  ;;  %v3329_v7 = vadd.f32 %v3263_v18, %v8166_v39 }
 0x397   : > { %v3607_v53 = vadd.f32 %v3541_v40, %v3329_v7  ;;  %v6452_v40 = vld [vmem:[%s7704_s17 + $0x60] sm:$0xff] }
 0x398   : > { %v3823_v6 = vpop.f32.mrf.mxu0 }
 0x399   : > { %v4101_v25 = vpop.f32.mrf.mxu1  ;;  %v3886_v42 = vadd.f32 %v3820_v57, %v3607_v53  ;;  %6418 = vmatmul.msk.f32.vlgmr.msra.gmra.mxu2 %vm417_vm1, %v8203_v28 }
 0x39a   : > { %6484 = vmatmul.msk.f32.vlgmr.msra.gmra.mxu3 %vm417_vm1, %v6450_v32 }
 0x39b   : > { %6550 = vmatmul.msk.f32.vlgmr.msra.gmra.mxu0 %vm417_vm1, %v8206_v50  ;;  %v8672_v58 = vadd.f32 %v4098_v27, %v3886_v42  ;;  %v9380_v42 = vld [vmem:[#allocation19_spill] sm:$0xff] }
 0x39c   : > { %6616 = vmatmul.msk.f32.vlgmr.msra.gmra.mxu1 %vm417_vm1, %v8267_v34  ;;  %v3266_v51 = vpop.f32.mrf.mxu2 }
 0x39d   : > { %v3544_v39 = vpop.f32.mrf.mxu3  ;;  %v3330_v47 = vadd.f32 %v3266_v51, %v8177_v46 }
 0x39f   : > { %v3608_v1 = vadd.f32 %v3544_v39, %v3330_v47  ;;  %v6453_v39 = vld [vmem:[%s7704_s17 + $0x68] sm:$0xff] }
 0x3a0   : > { %v3826_v57 = vpop.f32.mrf.mxu0 }
 0x3a1   : > { %v4104_v36 = vpop.f32.mrf.mxu1  ;;  %v3887_v28 = vadd.f32 %v3823_v6, %v3608_v1  ;;  %6419 = vmatmul.msk.f32.gmra.mxu2 %vm417_vm1, %v8219_v63 }
 0x3a2   : > { %6485 = vmatmul.msk.f32.gmra.mxu3 %vm417_vm1, %v6451_v31 }
 0x3a3   : > { %6551 = vmatmul.msk.f32.gmra.mxu0 %vm417_vm1, %v8222_v14  ;;  %v8683_v50 = vadd.f32 %v4101_v25, %v3887_v28  ;;  %v9379_v14 = vld [vmem:[#allocation27_spill] sm:$0xff] }
 0x3a4   : > { %6617 = vmatmul.msk.f32.gmra.mxu1 %vm417_vm1, %v8284_v30  ;;  %v3269_v27 = vpop.f32.mrf.mxu2 }
 0x3a5   : > { %v3547_v46 = vpop.f32.mrf.mxu3  ;;  %v3331_v18 = vadd.f32 %v3269_v27, %v8188_v61 }
 0x3a7   : > { %v3609_v7 = vadd.f32 %v3547_v46, %v3331_v18  ;;  %v9383_v46 = vld [vmem:[#allocation12_spill] sm:$0xff] }
 0x3a8   : > { %v3829_v32 = vpop.f32.mrf.mxu0 }
 0x3a9   : > { %v4107_v53 = vpop.f32.mrf.mxu1  ;;  %v3888_v63 = vadd.f32 %v3826_v57, %v3609_v7  ;;  %6420 = vmatmul.msk.f32.gmra.mxu2 %vm417_vm1, %v8235_v52  ;;  %v9381_v57 = vld [vmem:[#allocation23_spill] sm:$0xff] }
 0x3aa   : > { %6486 = vmatmul.msk.f32.gmra.mxu3 %vm417_vm1, %v6452_v40  ;;  %v6454_v40 = vld [vmem:[%s7704_s17 + $0x78] sm:$0xff] }
 0x3ab   : > { %6552 = vmatmul.msk.f32.gmra.mxu0 %vm417_vm1, %v8238_v16  ;;  %v8694_v6 = vadd.f32 %v4104_v36, %v3888_v63  ;;  %v9382_v16 = vld [vmem:[#allocation22_spill] sm:$0xff] }
 0x3ac   : > { %6618 = vmatmul.msk.f32.gmra.mxu1 %vm417_vm1, %v9379_v14  ;;  %v3272_v25 = vpop.f32.mrf.mxu2 }
 0x3ad   : > { %v3550_v61 = vpop.f32.mrf.mxu3  ;;  %v3332_v51 = vadd.f32 %v3272_v25, %v9380_v42 }
 0x3af   : > { %v3610_v47 = vadd.f32 %v3550_v61, %v3332_v51  ;;  %v9385_v51 = vld [vmem:[#allocation21_spill] sm:$0xff] }
 0x3b0   : > { %v3832_v31 = vpop.f32.mrf.mxu0 }
 0x3b1   : > { %v4110_v1 = vpop.f32.mrf.mxu1  ;;  %v3889_v52 = vadd.f32 %v3829_v32, %v3610_v47  ;;  %6421 = vmatmul.msk.f32.gmra.mxu2 %vm417_vm1, %v9381_v57  ;;  %v6455_v47 = vld [vmem:[%s7704_s17 + $0x80] sm:$0xff] }
 0x3b2   : > { %6487 = vmatmul.msk.f32.gmra.mxu3 %vm417_vm1, %v6453_v39 }
 0x3b3   : > { %6553 = vmatmul.msk.f32.gmra.mxu0 %vm417_vm1, %v8254_v41  ;;  %v8705_v36 = vadd.f32 %v4107_v53, %v3889_v52  ;;  %v9384_v41 = vld [vmem:[#allocation26_spill] sm:$0xff] }
 0x3b4   : > { %6619 = vmatmul.msk.f32.gmra.mxu1 %vm417_vm1, %v9382_v16  ;;  %v3275_v28 = vpop.f32.mrf.mxu2 }
 0x3b5   : > { %v3553_v27 = vpop.f32.mrf.mxu3  ;;  %v3333_v18 = vadd.f32 %v3275_v28, %v9383_v46  ;;  %v9387_v46 = vld [vmem:[#allocation14_spill] sm:$0xff] }
 0x3b7   : > { %v3611_v7 = vadd.f32 %v3553_v27, %v3333_v18 }
 0x3b8   : > { %v3835_v32 = vpop.f32.mrf.mxu0 }
 0x3b9   : > { %v4113_v63 = vpop.f32.mrf.mxu1  ;;  %v3890_v25 = vadd.f32 %v3832_v31, %v3611_v7  ;;  %6422 = vmatmul.msk.f32.gmra.mxu2 %vm417_vm1, %v8267_v34 }
 0x3ba   : > { %6488 = vmatmul.msk.f32.gmra.mxu3 %vm417_vm1, %v6454_v40  ;;  %v6456_v40 = vld [vmem:[%s7704_s17 + $0x88] sm:$0xff] }
 0x3bb   : > { %6554 = vmatmul.msk.f32.gmra.mxu0 %vm417_vm1, %v8270_v59  ;;  %v8716_v53 = vadd.f32 %v4110_v1, %v3890_v25  ;;  %v9386_v59 = vld [vmem:[#allocation29_spill] sm:$0xff] }
 0x3bc   : > { %6620 = vmatmul.msk.f32.gmra.mxu1 %vm417_vm1, %v9384_v41  ;;  %v3278_v61 = vpop.f32.mrf.mxu2 }
 0x3bd   : > { %v3556_v42 = vpop.f32.mrf.mxu3  ;;  %v3334_v39 = vadd.f32 %v3278_v61, %v9385_v51 }
 0x3bf   : > { %v3612_v31 = vadd.f32 %v3556_v42, %v3334_v39  ;;  %v9388_v42 = vld [vmem:[#allocation16_spill] sm:$0xff] }
 0x3c0   : > { %v3838_v52 = vpop.f32.mrf.mxu0  ;;  %v6457_v39 = vld [vmem:[%s7704_s17 + $0x90] sm:$0xff] }
 0x3c1   : > { %v4116_v57 = vpop.f32.mrf.mxu1  ;;  %v3891_v34 = vadd.f32 %v3835_v32, %v3612_v31  ;;  %6423 = vmatmul.msk.f32.gmra.mxu2 %vm417_vm1, %v8284_v30 }
 0x3c2   : > { %6489 = vmatmul.msk.f32.gmra.mxu3 %vm417_vm1, %v6455_v47 }
 0x3c3   : > { %6555 = vmatmul.msk.f32.gmra.mxu0 %vm417_vm1, %v8287_v9  ;;  %v8727_v1 = vadd.f32 %v4113_v63, %v3891_v34 }
 0x3c4   : > { %6621 = vmatmul.msk.f32.gmra.mxu1 %vm417_vm1, %v9386_v59  ;;  %v3281_v28 = vpop.f32.mrf.mxu2 }
 0x3c5   : > { %v3559_v27 = vpop.f32.mrf.mxu3  ;;  %v3335_v18 = vadd.f32 %v3281_v28, %v9387_v46  ;;  %v9389_v28 = vld [vmem:[#allocation25_spill] sm:$0xff]  ;;  %v6458_v46 = vld [vmem:[%s7704_s17 + $0xa0] sm:$0xff] }
 0x3c7   : > { %v3613_v7 = vadd.f32 %v3559_v27, %v3335_v18 }
 0x3c8   : > { %v3841_v32 = vpop.f32.mrf.mxu0 }
 0x3c9   : > { %v4119_v25 = vpop.f32.mrf.mxu1  ;;  %v3892_v30 = vadd.f32 %v3838_v52, %v3613_v7  ;;  %6424 = vmatmul.msk.f32.gmra.mxu2 %vm417_vm1, %v9379_v14 }
 0x3ca   : > { %6490 = vmatmul.msk.f32.gmra.mxu3 %vm417_vm1, %v6456_v40 }
 0x3cb   : > { %6556 = vmatmul.msk.f32.gmra.mxu0 %vm417_vm1, %v8304_v37  ;;  %v8738_v9 = vadd.f32 %v4116_v57, %v3892_v30  ;;  %v9390_v30 = vld [vmem:[#allocation18_spill] sm:$0xff] }
 0x3cc   : > { %6622 = vmatmul.msk.f32.gmra.mxu1 %vm417_vm1, %v8369_v54  ;;  %v3284_v63 = vpop.f32.mrf.mxu2 }
 0x3cd   : > { %v3562_v61 = vpop.f32.mrf.mxu3  ;;  %v3336_v51 = vadd.f32 %v3284_v63, %v9388_v42 }
 0x3cf   : > { %v3614_v47 = vadd.f32 %v3562_v61, %v3336_v51  ;;  %v6459_v61 = vld [vmem:[%s7704_s17 + $0xa8] sm:$0xff] }
 0x3d0   : > { %v3844_v31 = vpop.f32.mrf.mxu0 }
 0x3d1   : > { %v4122_v52 = vpop.f32.mrf.mxu1  ;;  %v3893_v14 = vadd.f32 %v3841_v32, %v3614_v47  ;;  %6425 = vmatmul.msk.f32.gmra.mxu2 %vm417_vm1, %v9382_v16 }
 0x3d2   : > { %6491 = vmatmul.msk.f32.gmra.mxu3 %vm417_vm1, %v6457_v39 }
 0x3d3   : > { %6557 = vmatmul.msk.f32.gmra.mxu0 %vm417_vm1, %v8321_v15  ;;  %v8749_v37 = vadd.f32 %v4119_v25, %v3893_v14 }
 0x3d4   : > { %6623 = vmatmul.msk.f32.gmra.mxu1 %vm417_vm1, %v8386_v10  ;;  %v3287_v57 = vpop.f32.mrf.mxu2 }
 0x3d5   : > { %v3565_v34 = vpop.f32.mrf.mxu3  ;;  %v3337_v27 = vadd.f32 %v3287_v57, %v9389_v28  ;;  %v6460_v57 = vld [vmem:[%s7704_s17 + $0xb0] sm:$0xff] }
 0x3d7   : > { %v3615_v18 = vadd.f32 %v3565_v34, %v3337_v27 }
 0x3d8   : > { %v3847_v40 = vpop.f32.mrf.mxu0 }
 0x3d9   : > { %v4125_v7 = vpop.f32.mrf.mxu1  ;;  %v3894_v16 = vadd.f32 %v3844_v31, %v3615_v18  ;;  %6426 = vmatmul.msk.f32.gmra.mxu2 %vm417_vm1, %v9384_v41 }
 0x3da   : > { %6492 = vmatmul.msk.f32.gmra.mxu3 %vm417_vm1, %v6458_v46 }
 0x3db   : > { %6558 = vmatmul.msk.f32.gmra.mxu0 %vm417_vm1, %v8338_v19  ;;  %v8760_v15 = vadd.f32 %v4122_v52, %v3894_v16  ;;  %v9391_v52 = vld [vmem:[#allocation20_spill] sm:$0xff]  ;;  %v6461_v16 = vld [vmem:[%s7704_s17 + $0xb8] sm:$0xff] }
 0x3dc   : > { %6624 = vmatmul.msk.f32.gmra.mxu1 %vm417_vm1, %v8403_v26  ;;  %v3290_v32 = vpop.f32.mrf.mxu2 }
 0x3dd   : > { %v3568_v25 = vpop.f32.mrf.mxu3  ;;  %v3338_v63 = vadd.f32 %v3290_v32, %v9390_v30 }
 0x3df   : > { %v3616_v42 = vadd.f32 %v3568_v25, %v3338_v63 }
 0x3e0   : > { %v3850_v51 = vpop.f32.mrf.mxu0 }
 0x3e1   : > { %v4128_v39 = vpop.f32.mrf.mxu1  ;;  %v3895_v41 = vadd.f32 %v3847_v40, %v3616_v42  ;;  %6427 = vmatmul.msk.f32.gmra.mxu2 %vm417_vm1, %v9386_v59  ;;  %v9392_v40 = vld [vmem:[#allocation24_spill] sm:$0xff] }
 0x3e2   : > { %6493 = vmatmul.msk.f32.gmra.mxu3 %vm417_vm1, %v6459_v61  ;;  %v9393_v42 = vld [vmem:[#allocation28_spill] sm:$0xff] }
 0x3e3   : > { %6559 = vmatmul.msk.f32.gmra.mxu0 %vm417_vm1, %v8355_v11  ;;  %v8771_v19 = vadd.f32 %v4125_v7, %v3895_v41 }
 0x3e4   : > { %6625 = vmatmul.msk.f32.gmra.mxu1 %vm417_vm1, %v8420_v55  ;;  %v3293_v47 = vpop.f32.mrf.mxu2 }
 0x3e5   : > { %v3571_v31 = vpop.f32.mrf.mxu3  ;;  %v3339_v14 = vadd.f32 %v3293_v47, %v9391_v52 }
 0x3e7   : > { %v3617_v34 = vadd.f32 %v3571_v31, %v3339_v14 }
 0x3e8   : > { %v3853_v28 = vpop.f32.mrf.mxu0 }
 0x3e9   : > { %v4131_v27 = vpop.f32.mrf.mxu1  ;;  %v3896_v59 = vadd.f32 %v3850_v51, %v3617_v34  ;;  %6428 = vmatmul.msk.f32.gmra.mxu2 %vm417_vm1, %v8369_v54  ;;  %v9395_v34 = vld [vmem:[#allocation30_spill] sm:$0xff] }
 0x3ea   : > { %6494 = vmatmul.msk.f32.gmra.mxu3 %vm417_vm1, %v6460_v57 }
 0x3eb   : > { %6560 = vmatmul.msk.f32.gmra.mxu0 %vm417_vm1, %v8372_v60  ;;  %v8782_v11 = vadd.f32 %v4128_v39, %v3896_v59  ;;  %v6462_v39 = vld [vmem:[%s7704_s17 + $0xc8] sm:$0xff] }
 0x3ec   : > { %6626 = vmatmul.msk.f32.gmra.mxu1 %vm417_vm1, %v8437_v62  ;;  %v3296_v46 = vpop.f32.mrf.mxu2 }
 0x3ed   : > { %v3574_v18 = vpop.f32.mrf.mxu3  ;;  %v3340_v7 = vadd.f32 %v3296_v46, %v9392_v40 }
 0x3ef   : > { %v3618_v32 = vadd.f32 %v3574_v18, %v3340_v7 }
 0x3f0   : > { %v3856_v25 = vpop.f32.mrf.mxu0 }
 0x3f1   : > { %v4134_v30 = vpop.f32.mrf.mxu1  ;;  %v3897_v54 = vadd.f32 %v3853_v28, %v3618_v32  ;;  %6429 = vmatmul.msk.f32.gmra.mxu2 %vm417_vm1, %v8386_v10 }
 0x3f2   : > { %6495 = vmatmul.msk.f32.gmra.mxu3 %vm417_vm1, %v6461_v16  ;;  %v9396_v16 = vld [vmem:[#allocation33_spill] sm:$0xff] }
 0x3f3   : > { %6561 = vmatmul.msk.f32.gmra.mxu0 %vm417_vm1, %v8389_v17  ;;  %v8793_v60 = vadd.f32 %v4131_v27, %v3897_v54  ;;  %v9394_v17 = vld [vmem:[#allocation5_spill] sm:$0xff]  ;;  %v6463_v27 = vld [vmem:[%s7704_s17 + $0xd0] sm:$0xff] }
 0x3f4   : > { %6627 = vmatmul.msk.f32.gmra.mxu1 %vm417_vm1, %v8454_v33  ;;  %v3299_v63 = vpop.f32.mrf.mxu2 }
 0x3f5   : > { %v3577_v61 = vpop.f32.mrf.mxu3  ;;  %v3341_v51 = vadd.f32 %v3299_v63, %v9393_v42 }
 0x3f7   : > { %v3619_v41 = vadd.f32 %v3577_v61, %v3341_v51  ;;  %v9397_v51 = vld [vmem:[#allocation6_spill] sm:$0xff] }
 0x3f8   : > { %v3859_v47 = vpop.f32.mrf.mxu0 }
 0x3f9   : > { %v4137_v31 = vpop.f32.mrf.mxu1  ;;  %v3898_v10 = vadd.f32 %v3856_v25, %v3619_v41  ;;  %6430 = vmatmul.msk.f32.gmra.mxu2 %vm417_vm1, %v8403_v26  ;;  %v6464_v25 = vld [vmem:[%s7704_s17 + $0xd8] sm:$0xff]  ;;  %v6465_v41 = vld [vmem:[%s7704_s17 + $0xe0] sm:$0xff] }
 0x3fa   : > { %6496 = vmatmul.msk.f32.gmra.mxu3 %vm417_vm1, %v6462_v39 }
 0x3fb   : > { %6562 = vmatmul.msk.f32.gmra.mxu0 %vm417_vm1, %v8406_v56  ;;  %v8804_v52 = vadd.f32 %v4134_v30, %v3898_v10 }
 0x3fc   : > { %6628 = vmatmul.msk.f32.gmra.mxu1 %vm417_vm1, %v9394_v17  ;;  %v3302_v14 = vpop.f32.mrf.mxu2 }
 0x3fd   : > { %v3580_v57 = vpop.f32.mrf.mxu3  ;;  %v3342_v28 = vadd.f32 %v3302_v14, %v9395_v34  ;;  %v9398_v34 = vld [vmem:[#allocation2_spill] sm:$0xff] }
 0x3ff   : > { %v3620_v59 = vadd.f32 %v3580_v57, %v3342_v28 }
 0x400   : > { %v3862_v46 = vpop.f32.mrf.mxu0 }
 0x401   : > { %v4140_v18 = vpop.f32.mrf.mxu1  ;;  %v3899_v26 = vadd.f32 %v3859_v47, %v3620_v59  ;;  %6431 = vmatmul.msk.f32.gmra.mxu2 %vm417_vm1, %v8420_v55 }
 0x402   : > { %6497 = vmatmul.msk.f32.gmra.mxu3 %vm417_vm1, %v6463_v27  ;;  %v6466_v27 = vld [vmem:[%s7704_s17 + $0xf0] sm:$0xff] }
 0x403   : > { %6563 = vmatmul.msk.f32.gmra.mxu0 %vm417_vm1, %v8423_v0  ;;  %v8815_v56 = vadd.f32 %v4137_v31, %v3899_v26 }
 0x404   : > { %6629 = vmatmul.msk.f32.gmra.mxu1 %vm417_vm1, %v8488_v22  ;;  %v3305_v40 = vpop.f32.mrf.mxu2 }
 0x405   : > { %v3583_v7 = vpop.f32.mrf.mxu3  ;;  %v3343_v32 = vadd.f32 %v3305_v40, %v9396_v16 }
 0x407   : > { %v3621_v30 = vadd.f32 %v3583_v7, %v3343_v32  ;;  %v9399_v7 = vld [vmem:[#allocation31_spill] sm:$0xff]  ;;  %v6467_v32 = vld [vmem:[%s7704_s17 + $0xf8] sm:$0xff] }
 0x408   : > { %v3865_v54 = vpop.f32.mrf.mxu0 }
 0x409   : > { %v4143_v63 = vpop.f32.mrf.mxu1  ;;  %v3900_v55 = vadd.f32 %v3862_v46, %v3621_v30  ;;  %6432 = vmatmul.msk.f32.gmra.mxu2 %vm417_vm1, %v8437_v62 }
 0x40a   : > { %6498 = vmatmul.msk.f32.gmra.mxu3 %vm417_vm1, %v6464_v25 }
 0x40b   : > { %6564 = vmatmul.msk.f32.gmra.mxu0 %vm417_vm1, %v8440_v4  ;;  %v8826_v0 = vadd.f32 %v4140_v18, %v3900_v55 }
 0x40c   : > { %6630 = vmatmul.msk.f32.gmra.mxu1 %vm417_vm1, %v8505_v48  ;;  %v3308_v61 = vpop.f32.mrf.mxu2 }
 0x40d   : > { %v3586_v42 = vpop.f32.mrf.mxu3  ;;  %v3344_v39 = vadd.f32 %v3308_v61, %v9397_v51 }
 0x40f   : > { %v3622_v47 = vadd.f32 %v3586_v42, %v3344_v39  ;;  %v9400_v42 = vld [vmem:[#allocation4_spill] sm:$0xff]  ;;  %v8871_v39 = vld [vmem:[%s9213_s5] ss:$0 sm:$0xff] }
 0x410   : > { %v3868_v31 = vpop.f32.mrf.mxu0 }
 0x411   : > { %v4146_v10 = vpop.f32.mrf.mxu1  ;;  %v3901_v62 = vadd.f32 %v3865_v54, %v3622_v47  ;;  %6433 = vmatmul.msk.f32.gmra.mxu2 %vm417_vm1, %v8454_v33 }
 0x412   : > { %6499 = vmatmul.msk.f32.gmra.mxu3 %vm417_vm1, %v6465_v41  ;;  %v6468_v41 = vld [vmem:[%s7704_s17 + $0x100] sm:$0xff] }
 0x413   : > { %6565 = vmatmul.msk.f32.gmra.mxu0 %vm417_vm1, %v8457_v13  ;;  %v8837_v4 = vadd.f32 %v4143_v63, %v3901_v62  ;;  %v8877_v62 = vld [vmem:[%s9214_s6] ss:$0 sm:$0xff] }
 0x414   : > { %6631 = vmatmul.msk.f32.gmra.mxu1 %vm417_vm1, %v8522_v44  ;;  %v3311_v14 = vpop.f32.mrf.mxu2 }
 0x415   : > { %v3589_v57 = vpop.f32.mrf.mxu3  ;;  %v3345_v28 = vadd.f32 %v3311_v14, %v9398_v34 }
 0x417   : > { %v3623_v59 = vadd.f32 %v3589_v57, %v3345_v28 }
 0x418   : > { %v4888_v46 = vpop.f32.mrf.mxu0 }
 0x419   : > { %v5166_v18 = vpop.f32.mrf.mxu1  ;;  %v3902_v33 = vadd.f32 %v3868_v31, %v3623_v59  ;;  %6434 = vmatmul.msk.f32.gmra.mxu2 %vm417_vm1, %v9394_v17 }
 0x41a   : > { %6500 = vmatmul.msk.f32.gmra.mxu3 %vm417_vm1, %v6466_v27 }
 0x41b   : > { %6566 = vmatmul.msk.f32.gmra.mxu0 %vm417_vm1, %v8474_v21  ;;  %v8849_v13 = vadd.f32 %v4146_v10, %v3902_v33  ;;  %v8858_v21 = vld [vmem:[%s9212_s4] ss:$0 sm:$0xff] }
 0x41c   : > { %6632 = vmatmul.msk.f32.gmra.mxu1 %vm417_vm1, %v8539_v43  ;;  %v4331_v26 = vpop.f32.mrf.mxu2 }
 0x41d   : > { %v4610_v40 = vpop.f32.mrf.mxu3  ;;  %v4427_v16 = vadd.f32 %v4331_v26, %v9399_v7 }
 0x41f   : > { %v4706_v25 = vadd.f32 %v4610_v40, %v4427_v16 }
 0x420   : > { %v4891_v17 = vpop.f32.mrf.mxu0 }
 0x421   : > { %v5169_v30 = vpop.f32.mrf.mxu1  ;;  %v4984_v54 = vadd.f32 %v4888_v46, %v4706_v25  ;;  %6435 = vmatmul.msk.f32.gmra.mxu2 %vm417_vm1, %v8488_v22 }
 0x422   : > { %6501 = vmatmul.msk.f32.gmra.mxu3 %vm417_vm1, %v6467_v32 }
 0x423   : > { %6567 = vmatmul.msk.f32.gmra.mxu0 %vm417_vm1, %v8491_v2  ;;  %v5262_v63 = vadd.f32 %v5166_v18, %v4984_v54  ;;  %v9401_v18 = vld [vmem:[#allocation3_spill] sm:$0xff] }
 0x424   : > { %6633 = vmatmul.msk.f32.gmra.mxu1 %vm417_vm1, %v8556_v24  ;;  %v4334_v55 = vpop.f32.mrf.mxu2 }
 0x425   : > { %v4613_v61 = vpop.f32.mrf.mxu3  ;;  %v5298_v22 = vadd.f32 %v8858_v21, %v5262_v63  ;;  %v4428_v51 = vadd.f32 %v4334_v55, %v9400_v42 }
 0x427   : > { %vm5330_vm2 = vcmp.ge.f32.partialorder %v5298_v22, 0.0  ;;  %v5362_v47 = vmul.f32 0.01, %v5298_v22  ;;  %v4707_v2 = vadd.f32 %v4613_v61, %v4428_v51 }
 0x428   : > { %v4894_v31 = vpop.f32.mrf.mxu0 }
 0x429   : > { %v5172_v10 = vpop.f32.mrf.mxu1  ;;  %v5394_v14 = vsel %vm5330_vm2, %v5298_v22, %v5362_v47  ;;  %v4985_v57 = vadd.f32 %v4891_v17, %v4707_v2  ;;  %6436 = vmatmul.msk.f32.gmra.mxu2 %vm417_vm1, %v8505_v48  ;;  %v9402_v22 = vld [vmem:[#allocation32_spill] sm:$0xff] }
 0x42a   : > { %6502 = vmatmul.msk.f32.gmra.mxu3 %vm417_vm1, %v6468_v41  ;;  %v5430_v34 = vmul.f32 %v8871_v39, %v5394_v14  ;;  %v9403_v14 = vld [vmem:[#allocation10_spill] sm:$0xff] }
 0x42b   : > { %6568 = vmatmul.msk.f32.gmra.mxu0 %vm417_vm1, %v8508_v35  ;;  %v5263_v28 = vadd.f32 %v5169_v30, %v4985_v57  ;;  %v6469_v35 = vld [vmem:[%s7704_s17 + $0x108] sm:$0xff] }
 0x42c   : > { %6634 = vmatmul.msk.f32.gmra.mxu1 %vm417_vm1, %v8573_v5  ;;  %v5466_v27 = vadd.f32 %v8877_v62, %v5430_v34  ;;  %v4337_v48 = vpop.f32.mrf.mxu2 }
 0x42d   : > { %v4616_v59 = vpop.f32.mrf.mxu3  ;;  %v5299_v46 = vadd.f32 %v8858_v21, %v5263_v28  ;;  %v4429_v33 = vadd.f32 %v4337_v48, %v9401_v18 }
 0x42e   : > { %5498 = vst.msk [vmem:[%s8890_s19] sm:$0xff] %vm417_vm1, %v5466_v27 }
 0x42f   : > { %vm5331_vm3 = vcmp.ge.f32.partialorder %v5299_v46, 0.0  ;;  %v5363_v26 = vmul.f32 0.01, %v5299_v46  ;;  %v4708_v40 = vadd.f32 %v4616_v59, %v4429_v33  ;;  %v9404_v59 = vld [vmem:[#allocation11_spill] sm:$0xff] }
 0x430   : > { %v4897_v7 = vpop.f32.mrf.mxu0 }
 0x431   : > { %v5175_v16 = vpop.f32.mrf.mxu1  ;;  %v5395_v32 = vsel %vm5331_vm3, %v5299_v46, %v5363_v26  ;;  %v4986_v25 = vadd.f32 %v4894_v31, %v4708_v40  ;;  %6437 = vmatmul.msk.f32.gmra.mxu2 %vm417_vm1, %v8522_v44  ;;  %v6470_v44 = vld [vmem:[%s7704_s17 + $0x118] sm:$0xff] }
 0x432   : > { %6503 = vmatmul.msk.f32.gmra.mxu3 %vm417_vm1, %v6469_v35  ;;  %v5431_v17 = vmul.f32 %v8871_v39, %v5395_v32 }
 0x433   : > { %6569 = vmatmul.msk.f32.gmra.mxu0 %vm417_vm1, %v8525_v23  ;;  %v5264_v30 = vadd.f32 %v5172_v10, %v4986_v25 }
 0x434   : > { %6635 = vmatmul.msk.f32.gmra.mxu1 %vm417_vm1, %v8590_v3  ;;  %v5467_v54 = vadd.f32 %v8877_v62, %v5431_v17  ;;  %v4340_v63 = vpop.f32.mrf.mxu2 }
 0x435   : > { %v4619_v55 = vpop.f32.mrf.mxu3  ;;  %v5300_v61 = vadd.f32 %v8858_v21, %v5264_v30  ;;  %v4430_v42 = vadd.f32 %v4340_v63, %v9402_v22  ;;  %v9406_v63 = vld [vmem:[#allocation7_spill] sm:$0xff] }
 0x436   : > { %5499 = vst.msk [vmem:[%s8890_s19 + $0x8] sm:$0xff] %vm417_vm1, %v5467_v54 }
 0x437   : > { %vm5332_vm4 = vcmp.ge.f32.partialorder %v5300_v61, 0.0  ;;  %v5364_v51 = vmul.f32 0.01, %v5300_v61  ;;  %v4709_v41 = vadd.f32 %v4619_v55, %v4430_v42 }
 0x438   : > { %v4900_v23 = vpop.f32.mrf.mxu0 }
 0x439   : > { %v5178_v47 = vpop.f32.mrf.mxu1  ;;  %v5396_v2 = vsel %vm5332_vm4, %v5300_v61, %v5364_v51  ;;  %v4987_v31 = vadd.f32 %v4897_v7, %v4709_v41  ;;  %6438 = vmatmul.msk.f32.gmra.mxu2 %vm417_vm1, %v8539_v43  ;;  %v6471_v43 = vld [vmem:[%s7704_s17 + $0x120] sm:$0xff] }
 0x43a   : > { %6504 = vmatmul.msk.f32.gmra.mxu3 %vm417_vm1, %v6470_v44  ;;  %v5432_v10 = vmul.f32 %v8871_v39, %v5396_v2 }
 0x43b   : > { %6570 = vmatmul.msk.f32.gmra.mxu0 %vm417_vm1, %v8542_v8  ;;  %v5265_v57 = vadd.f32 %v5175_v16, %v4987_v31  ;;  %v9405_v16 = vld [vmem:[#allocation36_spill] sm:$0xff] }
 0x43c   : > { %6636 = vmatmul.msk.f32.gmra.mxu1 %vm417_vm1, %v9403_v14  ;;  %v5468_v34 = vadd.f32 %v8877_v62, %v5432_v10  ;;  %v4343_v28 = vpop.f32.mrf.mxu2 }
 0x43d   : > { %v4622_v27 = vpop.f32.mrf.mxu3  ;;  %v5301_v48 = vadd.f32 %v8858_v21, %v5265_v57  ;;  %v4431_v46 = vadd.f32 %v4343_v28, %v9404_v59  ;;  %v9407_v57 = vld [vmem:[#allocation13_spill] sm:$0xff] }
 0x43e   : > { %5500 = vst.msk [vmem:[%s8890_s19 + $0x10] sm:$0xff] %vm417_vm1, %v5468_v34  ;;  %v6473_v34 = vld [vmem:[%s7704_s17 + $0x130] sm:$0xff] }
 0x43f   : > { %vm5333_vm5 = vcmp.ge.f32.partialorder %v5301_v48, 0.0  ;;  %v5365_v18 = vmul.f32 0.01, %v5301_v48  ;;  %v4710_v33 = vadd.f32 %v4622_v27, %v4431_v46  ;;  %v6539_v59 = vld [vmem:[%s7704_s17 + $0x131] sm:$0xff] }
 0x440   : > { %v4903_v8 = vpop.f32.mrf.mxu0 }
 0x441   : > { %v5181_v35 = vpop.f32.mrf.mxu1  ;;  %v5397_v26 = vsel %vm5333_vm5, %v5301_v48, %v5365_v18  ;;  %v4988_v40 = vadd.f32 %v4900_v23, %v4710_v33  ;;  %6439 = vmatmul.msk.f32.gmra.mxu2 %vm417_vm1, %v8556_v24  ;;  %v6472_v24 = vld [vmem:[%s7704_s17 + $0x128] sm:$0xff] }
 0x442   : > { %6505 = vmatmul.msk.f32.gmra.mxu3 %vm417_vm1, %v6471_v43  ;;  %v5433_v7 = vmul.f32 %v8871_v39, %v5397_v26 }
 0x443   : > { %6571 = vmatmul.msk.f32.gmra.mxu0 %vm417_vm1, %v8559_v38  ;;  %v5266_v32 = vadd.f32 %v5178_v47, %v4988_v40  ;;  %v9408_v40 = vld [vmem:[#allocation8_spill] sm:$0xff] }
 0x444   : > { %6637 = vmatmul.msk.f32.gmra.mxu1 %vm417_vm1, %v9405_v16  ;;  %v5469_v25 = vadd.f32 %v8877_v62, %v5433_v7  ;;  %v4346_v17 = vpop.f32.mrf.mxu2 }
 0x445   : > { %v4625_v30 = vpop.f32.mrf.mxu3  ;;  %v5302_v54 = vadd.f32 %v8858_v21, %v5266_v32  ;;  %v4432_v55 = vadd.f32 %v4346_v17, %v9406_v63  ;;  %v6540_v17 = vld [vmem:[%s7704_s17 + $0x141] sm:$0xff] }
 0x446   : > { %5501 = vst.msk [vmem:[%s8890_s19 + $0x18] sm:$0xff] %vm417_vm1, %v5469_v25  ;;  %v9409_v63 = vld [vmem:[#allocation34_spill] sm:$0xff] }
 0x447   : > { %vm5334_vm6 = vcmp.ge.f32.partialorder %v5302_v54, 0.0  ;;  %v5366_v61 = vmul.f32 0.01, %v5302_v54  ;;  %v4711_v22 = vadd.f32 %v4625_v30, %v4432_v55 }
 0x448   : > { %v4906_v38 = vpop.f32.mrf.mxu0 }
 0x449   : > { %v5184_v42 = vpop.f32.mrf.mxu1  ;;  %v5398_v44 = vsel %vm5334_vm6, %v5302_v54, %v5366_v61  ;;  %v4989_v51 = vadd.f32 %v4903_v8, %v4711_v22  ;;  %6440 = vmatmul.msk.f32.gmra.mxu2 %vm417_vm1, %v8573_v5 }
 0x44a   : > { %6506 = vmatmul.msk.f32.gmra.mxu3 %vm417_vm1, %v6472_v24  ;;  %v5434_v41 = vmul.f32 %v8871_v39, %v5398_v44 }
 0x44b   : > { %6572 = vmatmul.msk.f32.gmra.mxu0 %vm417_vm1, %v8576_v20  ;;  %v5267_v23 = vadd.f32 %v5181_v35, %v4989_v51  ;;  %v6409_v51 = vld [vmem:[%s7704_s17 + $0x122] sm:$0xff] }
 0x44c   : > { %6638 = vmatmul.msk.f32.gmra.mxu1 %vm417_vm1, %v8638_v45  ;;  %v5470_v47 = vadd.f32 %v8877_v62, %v5434_v41  ;;  %v4349_v2 = vpop.f32.mrf.mxu2 }
 0x44d   : > { %v4628_v31 = vpop.f32.mrf.mxu3  ;;  %v5303_v10 = vadd.f32 %v8858_v21, %v5267_v23  ;;  %v4433_v5 = vadd.f32 %v4349_v2, %v9407_v57 }
 0x44e   : > { %5502 = vst.msk [vmem:[%s8890_s19 + $0x20] sm:$0xff] %vm417_vm1, %v5470_v47 }
 0x44f   : > { %vm5335_vm7 = vcmp.ge.f32.partialorder %v5303_v10, 0.0  ;;  %v5367_v28 = vmul.f32 0.01, %v5303_v10  ;;  %v4712_v27 = vadd.f32 %v4628_v31, %v4433_v5  ;;  %v6541_v31 = vld [vmem:[%s7704_s17 + $0x149] sm:$0xff] }
 0x450   : > { %v4909_v48 = vpop.f32.mrf.mxu0 }
 0x451   : > { %v5187_v20 = vpop.f32.mrf.mxu1  ;;  %v5399_v45 = vsel %vm5335_vm7, %v5303_v10, %v5367_v28  ;;  %v4990_v46 = vadd.f32 %v4906_v38, %v4712_v27  ;;  %6441 = vmatmul.msk.f32.gmra.mxu2 %vm417_vm1, %v8590_v3  ;;  %v8987_v10 = vld [vmem:[%s7704_s17 + $0x14a] sm:$0xff] }
 0x452   : > { %6507 = vmatmul.msk.f32.gmra.mxu3 %vm417_vm1, %v6473_v34  ;;  %v5435_v43 = vmul.f32 %v8871_v39, %v5399_v45  ;;  %v9411_v34 = vld [vmem:[#allocation37_spill] sm:$0xff] }
 0x453   : > { %6573 = vmatmul.msk.f32.gmra.mxu0 %vm417_vm1, %v6539_v59  ;;  %v5268_v18 = vadd.f32 %v5184_v42, %v4990_v46  ;;  %v9412_v46 = vld [vmem:[#allocation9_spill] sm:$0xff] }
 0x454   : > { %6639 = vmatmul.msk.f32.gmra.mxu1 %vm417_vm1, %v8652_v49  ;;  %v5471_v33 = vadd.f32 %v8877_v62, %v5435_v43  ;;  %v4352_v8 = vpop.f32.mrf.mxu2  ;;  %v8969_v49 = vld [vmem:[%s7704_s17 + $0x142] sm:$0xff] }
 0x455   : > { %v4631_v35 = vpop.f32.mrf.mxu3  ;;  %v5304_v26 = vadd.f32 %v8858_v21, %v5268_v18  ;;  %v4434_v3 = vadd.f32 %v4352_v8, %v9408_v40  ;;  %v6410_v18 = vld [vmem:[%s7704_s17 + $0x12a] sm:$0xff] }
 0x456   : > { %5503 = vst.msk [vmem:[%s8890_s19 + $0x28] sm:$0xff] %vm417_vm1, %v5471_v33  ;;  %v6476_v33 = vld [vmem:[%s7704_s17 + $0x150] sm:$0xff] }
 0x457   : > { %vm5336_vm8 = vcmp.ge.f32.partialorder %v5304_v26, 0.0  ;;  %v5368_v7 = vmul.f32 0.01, %v5304_v26  ;;  %v4713_v16 = vadd.f32 %v4631_v35, %v4434_v3  ;;  %v6542_v3 = vld [vmem:[%s7704_s17 + $0x151] sm:$0xff] }
 0x458   : > { %v4912_v32 = vpop.f32.mrf.mxu0 }
 0x459   : > { %v5190_v25 = vpop.f32.mrf.mxu1  ;;  %v5400_v30 = vsel %vm5336_vm8, %v5304_v26, %v5368_v7  ;;  %v4991_v54 = vadd.f32 %v4909_v48, %v4713_v16  ;;  %6442 = vmatmul.msk.f32.gmra.mxu2 %vm417_vm1, %v9403_v14  ;;  %v9410_v14 = vld [vmem:[#allocation15_spill] sm:$0xff]  ;;  %v9005_v7 = vld [vmem:[%s7704_s17 + $0x152] sm:$0xff] }
 0x45a   : > { %6508 = vmatmul.msk.f32.gmra.mxu3 %vm417_vm1, %v9409_v63  ;;  %v5436_v55 = vmul.f32 %v8871_v39, %v5400_v30 }
 0x45b   : > { %6574 = vmatmul.msk.f32.gmra.mxu0 %vm417_vm1, %v6540_v17  ;;  %v5269_v24 = vadd.f32 %v5187_v20, %v4991_v54 }
 0x45c   : > { %6640 = vmatmul.msk.f32.gmra.mxu1 %vm417_vm1, %v8969_v49  ;;  %v5472_v61 = vadd.f32 %v8877_v62, %v5436_v55  ;;  %v4355_v22 = vpop.f32.mrf.mxu2 }
 0x45d   : > { %v4634_v38 = vpop.f32.mrf.mxu3  ;;  %v5305_v42 = vadd.f32 %v8858_v21, %v5269_v24  ;;  %v4435_v44 = vadd.f32 %v4355_v22, %v9410_v14  ;;  %v9413_v24 = vld [vmem:[#allocation17_spill] sm:$0xff] }
 0x45e   : > { %5504 = vst.msk [vmem:[%s8890_s19 + $0x30] sm:$0xff] %vm417_vm1, %v5472_v61  ;;  %v6411_v22 = vld [vmem:[%s7704_s17 + $0x132] sm:$0xff] }
 0x45f   : > { %vm5337_vm9 = vcmp.ge.f32.partialorder %v5305_v42, 0.0  ;;  %v5369_v41 = vmul.f32 0.01, %v5305_v42  ;;  %v4714_v23 = vadd.f32 %v4634_v38, %v4435_v44  ;;  %v6477_v38 = vld [vmem:[%s7704_s17 + $0x158] sm:$0xff] }
 0x460   : > { %v4915_v47 = vpop.f32.mrf.mxu0 }
 0x461   : > { %v5193_v2 = vpop.f32.mrf.mxu1  ;;  %v5401_v57 = vsel %vm5337_vm9, %v5305_v42, %v5369_v41  ;;  %v4992_v5 = vadd.f32 %v4912_v32, %v4714_v23  ;;  %6443 = vmatmul.msk.f32.gmra.mxu2 %vm417_vm1, %v6409_v51  ;;  %v6543_v41 = vld [vmem:[%s7704_s17 + $0x159] sm:$0xff] }
 0x462   : > { %6509 = vmatmul.msk.f32.gmra.mxu3 %vm417_vm1, %v9411_v34  ;;  %v5437_v28 = vmul.f32 %v8871_v39, %v5401_v57  ;;  %v9022_v23 = vld [vmem:[%s7704_s17 + $0x15a] sm:$0xff] }
 0x463   : > { %6575 = vmatmul.msk.f32.gmra.mxu0 %vm417_vm1, %v6541_v31  ;;  %v5270_v27 = vadd.f32 %v5190_v25, %v4992_v5 }
 0x464   : > { %6641 = vmatmul.msk.f32.gmra.mxu1 %vm417_vm1, %v8987_v10  ;;  %v5473_v48 = vadd.f32 %v8877_v62, %v5437_v28  ;;  %v4358_v20 = vpop.f32.mrf.mxu2 }
 0x465   : > { %v4637_v59 = vpop.f32.mrf.mxu3  ;;  %v5306_v45 = vadd.f32 %v8858_v21, %v5270_v27  ;;  %v4436_v43 = vadd.f32 %v4358_v20, %v9412_v46 }
 0x466   : > { %5505 = vst.msk [vmem:[%s8890_s19 + $0x38] sm:$0xff] %vm417_vm1, %v5473_v48  ;;  %v9414_v48 = vld [vmem:[#allocation35_spill] sm:$0xff] }
 0x467   : > { %vm5338_vm10 = vcmp.ge.f32.partialorder %v5306_v45, 0.0  ;;  %v5370_v8 = vmul.f32 0.01, %v5306_v45  ;;  %v4715_v35 = vadd.f32 %v4637_v59, %v4436_v43  ;;  %v6478_v59 = vld [vmem:[%s7704_s17 + $0x168] sm:$0xff] }
 0x468   : > { %v4918_v26 = vpop.f32.mrf.mxu0 }
 0x469   : > { %v5196_v40 = vpop.f32.mrf.mxu1  ;;  %v5402_v16 = vsel %vm5338_vm10, %v5306_v45, %v5370_v8  ;;  %v4993_v32 = vadd.f32 %v4915_v47, %v4715_v35  ;;  %6444 = vmatmul.msk.f32.gmra.mxu2 %vm417_vm1, %v6410_v18  ;;  %v6610_v8 = vld [vmem:[%s7704_s17 + $0x16a] sm:$0xff] }
 0x46a   : > { %6510 = vmatmul.msk.f32.gmra.mxu3 %vm417_vm1, %v6476_v33  ;;  %v5438_v25 = vmul.f32 %v8871_v39, %v5402_v16  ;;  %v6544_v33 = vld [vmem:[%s7704_s17 + $0x169] sm:$0xff] }
 0x46b   : > { %6576 = vmatmul.msk.f32.gmra.mxu0 %vm417_vm1, %v6542_v3  ;;  %v5271_v17 = vadd.f32 %v5193_v2, %v4993_v32 }
 0x46c   : > { %6642 = vmatmul.msk.f32.gmra.mxu1 %vm417_vm1, %v9005_v7  ;;  %v5474_v30 = vadd.f32 %v8877_v62, %v5438_v25  ;;  %v4361_v54 = vpop.f32.mrf.mxu2 }
 0x46d   : > { %v4640_v63 = vpop.f32.mrf.mxu3  ;;  %v5307_v55 = vadd.f32 %v8858_v21, %v5271_v17  ;;  %v4437_v61 = vadd.f32 %v4361_v54, %v9413_v24 }
 0x46e   : > { %5506 = vst.msk [vmem:[%s8890_s19 + $0x40] sm:$0xff] %vm417_vm1, %v5474_v30  ;;  %v9415_v30 = vld [vmem:[#allocation38_spill] sm:$0xff] }
 0x46f   : > { %vm5339_vm11 = vcmp.ge.f32.partialorder %v5307_v55, 0.0  ;;  %v5371_v42 = vmul.f32 0.01, %v5307_v55  ;;  %v4716_v14 = vadd.f32 %v4640_v63, %v4437_v61 }
 0x470   : > { %v4921_v44 = vpop.f32.mrf.mxu0 }
 0x471   : > { %v5199_v51 = vpop.f32.mrf.mxu1  ;;  %v5403_v47 = vsel %vm5339_vm11, %v5307_v55, %v5371_v42  ;;  %v4994_v2 = vadd.f32 %v4918_v26, %v4716_v14  ;;  %6445 = vmatmul.msk.f32.gmra.mxu2 %vm417_vm1, %v6411_v22  ;;  %v6545_v22 = vld [vmem:[%s7704_s17 + $0x171] sm:$0xff] }
 0x472   : > { %6511 = vmatmul.msk.f32.gmra.mxu3 %vm417_vm1, %v6477_v38  ;;  %v5439_v31 = vmul.f32 %v8871_v39, %v5403_v47  ;;  %v6611_v38 = vld [vmem:[%s7704_s17 + $0x172] sm:$0xff] }
 0x473   : > { %6577 = vmatmul.msk.f32.gmra.mxu0 %vm417_vm1, %v6543_v41  ;;  %v5272_v57 = vadd.f32 %v5196_v40, %v4994_v2 }
 0x474   : > { %6643 = vmatmul.msk.f32.gmra.mxu1 %vm417_vm1, %v9022_v23  ;;  %v5475_v5 = vadd.f32 %v8877_v62, %v5439_v31  ;;  %v4364_v34 = vpop.f32.mrf.mxu2 }
 0x475   : > { %v4643_v28 = vpop.f32.mrf.mxu3  ;;  %v5308_v27 = vadd.f32 %v8858_v21, %v5272_v57  ;;  %v4438_v20 = vadd.f32 %v4364_v34, %v9414_v48  ;;  %v6546_v48 = vld [vmem:[%s7704_s17 + $0x179] sm:$0xff] }
 0x476   : > { %5507 = vst.msk [vmem:[%s8890_s19 + $0x48] sm:$0xff] %vm417_vm1, %v5475_v5 }
 0x477   : > { %vm5340_vm12 = vcmp.ge.f32.partialorder %v5308_v27, 0.0  ;;  %v5372_v45 = vmul.f32 0.01, %v5308_v27  ;;  %v4717_v46 = vadd.f32 %v4643_v28, %v4438_v20  ;;  %v6612_v20 = vld [vmem:[%s7704_s17 + $0x17a] sm:$0xff] }
 0x478   : > { %v4924_v43 = vpop.f32.mrf.mxu0 }
 0x479   : > { %v5202_v18 = vpop.f32.mrf.mxu1  ;;  %v5404_v35 = vsel %vm5340_vm12, %v5308_v27, %v5372_v45  ;;  %v4995_v26 = vadd.f32 %v4921_v44, %v4717_v46  ;;  %6446 = vmatmul.msk.f32.gmra.mxu2 %vm417_vm1, %v8969_v49  ;;  %v6479_v49 = vld [vmem:[%s7704_s17 + $0x170] sm:$0xff] }
 0x47a   : > { %6512 = vmatmul.msk.f32.gmra.mxu3 %vm417_vm1, %v6478_v59  ;;  %v5440_v40 = vmul.f32 %v8871_v39, %v5404_v35 }
 0x47b   : > { %6578 = vmatmul.msk.f32.gmra.mxu0 %vm417_vm1, %v6544_v33  ;;  %v5273_v3 = vadd.f32 %v5199_v51, %v4995_v26 }
 0x47c   : > { %6644 = vmatmul.msk.f32.gmra.mxu1 %vm417_vm1, %v6610_v8  ;;  %v5476_v16 = vadd.f32 %v8877_v62, %v5440_v40  ;;  %v4367_v32 = vpop.f32.mrf.mxu2 }
 0x47d   : > { %v4646_v25 = vpop.f32.mrf.mxu3  ;;  %v5309_v17 = vadd.f32 %v8858_v21, %v5273_v3  ;;  %v4439_v54 = vadd.f32 %v4367_v32, %v9415_v30  ;;  %v6547_v32 = vld [vmem:[%s7704_s17 + $0x181] sm:$0xff] }
 0x47e   : > { %5508 = vst.msk [vmem:[%s8890_s19 + $0x50] sm:$0xff] %vm417_vm1, %v5476_v16 }
 0x47f   : > { %vm5341_vm13 = vcmp.ge.f32.partialorder %v5309_v17, 0.0  ;;  %v5373_v63 = vmul.f32 0.01, %v5309_v17  ;;  %v4718_v55 = vadd.f32 %v4646_v25, %v4439_v54  ;;  %v6613_v25 = vld [vmem:[%s7704_s17 + $0x182] sm:$0xff] }
 0x480   : > { %v4927_v24 = vpop.f32.mrf.mxu0 }
 0x481   : > { %v5205_v61 = vpop.f32.mrf.mxu1  ;;  %v5405_v42 = vsel %vm5341_vm13, %v5309_v17, %v5373_v63  ;;  %v4996_v14 = vadd.f32 %v4924_v43, %v4718_v55  ;;  %6447 = vmatmul.msk.f32.gmra.mxu2 %vm417_vm1, %v8987_v10  ;;  %v6480_v10 = vld [vmem:[%s7704_s17 + $0x178] sm:$0xff] }
 0x482   : > { %6513 = vmatmul.msk.f32.gmra.mxu3 %vm417_vm1, %v6479_v49  ;;  %v5441_v44 = vmul.f32 %v8871_v39, %v5405_v42 }
 0x483   : > { %6579 = vmatmul.msk.f32.gmra.mxu0 %vm417_vm1, %v6545_v22  ;;  %v5274_v51 = vadd.f32 %v5202_v18, %v4996_v14 }
 0x484   : > { %6645 = vmatmul.msk.f32.gmra.mxu1 %vm417_vm1, %v6611_v38  ;;  %v5477_v41 = vadd.f32 %v8877_v62, %v5441_v44  ;;  %v4370_v47 = vpop.f32.mrf.mxu2 }
 0x485   : > { %v4649_v2 = vpop.f32.mrf.mxu3  ;;  %v5310_v31 = vadd.f32 %v8858_v21, %v5274_v51  ;;  %v4440_v57 = vadd.f32 %v4370_v47, %v8648_v29 }
 0x486   : > { %5509 = vst.msk [vmem:[%s8890_s19 + $0x58] sm:$0xff] %vm417_vm1, %v5477_v41 }
 0x487   : > { %vm5342_vm14 = vcmp.ge.f32.partialorder %v5310_v31, 0.0  ;;  %v5374_v5 = vmul.f32 0.01, %v5310_v31  ;;  %v4719_v34 = vadd.f32 %v4649_v2, %v4440_v57 }
 0x488   : > { %v4930_v28 = vpop.f32.mrf.mxu0 }
 0x489   : > { %v5208_v27 = vpop.f32.mrf.mxu1  ;;  %v5406_v59 = vsel %vm5342_vm14, %v5310_v31, %v5374_v5  ;;  %v4997_v45 = vadd.f32 %v4927_v24, %v4719_v34  ;;  %6448 = vmatmul.msk.f32.gmra.mxu2 %vm417_vm1, %v9005_v7  ;;  %v6481_v7 = vld [vmem:[%s7704_s17 + $0x180] sm:$0xff] }
 0x48a   : > { %6514 = vmatmul.msk.f32.gmra.mxu3 %vm417_vm1, %v6480_v10  ;;  %v5442_v29 = vmul.f32 %v8871_v39, %v5406_v59 }
 0x48b   : > { %6580 = vmatmul.msk.f32.gmra.mxu0 %vm417_vm1, %v6546_v48  ;;  %v5275_v46 = vadd.f32 %v5205_v61, %v4997_v45 }
 0x48c   : > { %6646 = vmatmul.msk.f32.gmra.mxu1 %vm417_vm1, %v6612_v20  ;;  %v5478_v43 = vadd.f32 %v8877_v62, %v5442_v29  ;;  %v4373_v18 = vpop.f32.mrf.mxu2 }
 0x48d   : > { %v4652_v33 = vpop.f32.mrf.mxu3  ;;  %v5311_v8 = vadd.f32 %v8858_v21, %v5275_v46  ;;  %v4441_v35 = vadd.f32 %v4373_v18, %v8661_v12 }
 0x48e   : > { %5510 = vst.msk [vmem:[%s8890_s19 + $0x60] sm:$0xff] %vm417_vm1, %v5478_v43 }
 0x48f   : > { %vm5343_vm15 = vcmp.ge.f32.partialorder %v5311_v8, 0.0  ;;  %v5375_v26 = vmul.f32 0.01, %v5311_v8  ;;  %v4720_v40 = vadd.f32 %v4652_v33, %v4441_v35 }
 0x490   : > { %v4933_v3 = vpop.f32.mrf.mxu0 }
 0x491   : > { %v5211_v16 = vpop.f32.mrf.mxu1  ;;  %v5407_v17 = vsel %vm5343_vm15, %v5311_v8, %v5375_v26  ;;  %v4998_v30 = vadd.f32 %v4930_v28, %v4720_v40  ;;  %6449 = vmatmul.msk.f32.gmra.mxu2 %vm417_vm1, %v9022_v23 }
 0x492   : > { %6515 = vmatmul.msk.f32.gmra.mxu3 %vm417_vm1, %v6481_v7  ;;  %v5443_v12 = vmul.f32 %v8871_v39, %v5407_v17 }
 0x493   : > { %6581 = vmatmul.msk.f32.gmra.mxu0 %vm417_vm1, %v6547_v32  ;;  %v5276_v54 = vadd.f32 %v5208_v27, %v4998_v30 }
 0x494   : > { %6647 = vmatmul.msk.f32.gmra.mxu1 %vm417_vm1, %v6613_v25  ;;  %v5479_v49 = vadd.f32 %v8877_v62, %v5443_v12  ;;  %v4376_v63 = vpop.f32.mrf.mxu2 }
 0x495   : > { %v4655_v55 = vpop.f32.mrf.mxu3  ;;  %v5312_v24 = vadd.f32 %v8858_v21, %v5276_v54  ;;  %v4442_v61 = vadd.f32 %v4376_v63, %v8672_v58 }
 0x496   : > { %5511 = vst.msk [vmem:[%s8890_s19 + $0x68] sm:$0xff] %vm417_vm1, %v5479_v49 }
 0x497   : > { %vm5344_vm0 = vcmp.ge.f32.partialorder %v5312_v24, 0.0  ;;  %v5376_v23 = vmul.f32 0.01, %v5312_v24  ;;  %v4721_v22 = vadd.f32 %v4655_v55, %v4442_v61 }
 0x498   : > { %v4936_v38 = vpop.f32.mrf.mxu0 }
 0x499   : > { %v5214_v42 = vpop.f32.mrf.mxu1  ;;  %v5408_v14 = vsel %vm5344_vm0, %v5312_v24, %v5376_v23  ;;  %v4999_v44 = vadd.f32 %v4933_v3, %v4721_v22 }
 0x49a   : > { %v5444_v51 = vmul.f32 %v8871_v39, %v5408_v14 }
 0x49b   : > { %v5277_v41 = vadd.f32 %v5211_v16, %v4999_v44 }
 0x49c   : > { %v5480_v47 = vadd.f32 %v8877_v62, %v5444_v51  ;;  %v4379_v2 = vpop.f32.mrf.mxu2 }
 0x49d   : > { %v4658_v31 = vpop.f32.mrf.mxu3  ;;  %v5313_v57 = vadd.f32 %v8858_v21, %v5277_v41  ;;  %v4443_v58 = vadd.f32 %v4379_v2, %v8683_v50 }
 0x49e   : > { %5512 = vst.msk [vmem:[%s8890_s19 + $0x70] sm:$0xff] %vm417_vm1, %v5480_v47 }
 0x49f   : > { %vm5345_vm2 = vcmp.ge.f32.partialorder %v5313_v57, 0.0  ;;  %v5377_v10 = vmul.f32 0.01, %v5313_v57  ;;  %v4722_v5 = vadd.f32 %v4658_v31, %v4443_v58 }
 0x4a0   : > { %v4939_v34 = vpop.f32.mrf.mxu0 }
 0x4a1   : > { %v5217_v28 = vpop.f32.mrf.mxu1  ;;  %v5409_v27 = vsel %vm5345_vm2, %v5313_v57, %v5377_v10  ;;  %v5000_v48 = vadd.f32 %v4936_v38, %v4722_v5 }
 0x4a2   : > { %v5445_v20 = vmul.f32 %v8871_v39, %v5409_v27 }
 0x4a3   : > { %v5278_v59 = vadd.f32 %v5214_v42, %v5000_v48 }
 0x4a4   : > { %v5481_v45 = vadd.f32 %v8877_v62, %v5445_v20  ;;  %v4382_v29 = vpop.f32.mrf.mxu2 }
 0x4a5   : > { %v4661_v46 = vpop.f32.mrf.mxu3  ;;  %v5314_v43 = vadd.f32 %v8858_v21, %v5278_v59  ;;  %v4444_v50 = vadd.f32 %v4382_v29, %v8694_v6 }
 0x4a6   : > { %5513 = vst.msk [vmem:[%s8890_s19 + $0x78] sm:$0xff] %vm417_vm1, %v5481_v45 }
 0x4a7   : > { %vm5346_vm3 = vcmp.ge.f32.partialorder %v5314_v43, 0.0  ;;  %v5378_v18 = vmul.f32 0.01, %v5314_v43  ;;  %v4723_v33 = vadd.f32 %v4661_v46, %v4444_v50 }
 0x4a8   : > { %v4942_v8 = vpop.f32.mrf.mxu0 }
 0x4a9   : > { %v5220_v35 = vpop.f32.mrf.mxu1  ;;  %v5410_v7 = vsel %vm5346_vm3, %v5314_v43, %v5378_v18  ;;  %v5001_v26 = vadd.f32 %v4939_v34, %v4723_v33 }
 0x4aa   : > { %v5446_v40 = vmul.f32 %v8871_v39, %v5410_v7 }
 0x4ab   : > { %v5279_v3 = vadd.f32 %v5217_v28, %v5001_v26 }
 0x4ac   : > { %v5482_v16 = vadd.f32 %v8877_v62, %v5446_v40  ;;  %v4385_v32 = vpop.f32.mrf.mxu2 }
 0x4ad   : > { %v4664_v25 = vpop.f32.mrf.mxu3  ;;  %v5315_v17 = vadd.f32 %v8858_v21, %v5279_v3  ;;  %v4445_v6 = vadd.f32 %v4385_v32, %v8705_v36 }
 0x4ae   : > { %5514 = vst.msk [vmem:[%s8890_s19 + $0x80] sm:$0xff] %vm417_vm1, %v5482_v16 }
 0x4af   : > { %vm5347_vm4 = vcmp.ge.f32.partialorder %v5315_v17, 0.0  ;;  %v5379_v30 = vmul.f32 0.01, %v5315_v17  ;;  %v4724_v12 = vadd.f32 %v4664_v25, %v4445_v6 }
 0x4b0   : > { %v4945_v54 = vpop.f32.mrf.mxu0 }
 0x4b1   : > { %v5223_v49 = vpop.f32.mrf.mxu1  ;;  %v5411_v63 = vsel %vm5347_vm4, %v5315_v17, %v5379_v30  ;;  %v5002_v55 = vadd.f32 %v4942_v8, %v4724_v12 }
 0x4b2   : > { %v5447_v24 = vmul.f32 %v8871_v39, %v5411_v63 }
 0x4b3   : > { %v5280_v61 = vadd.f32 %v5220_v35, %v5002_v55 }
 0x4b4   : > { %v5483_v23 = vadd.f32 %v8877_v62, %v5447_v24  ;;  %v4388_v22 = vpop.f32.mrf.mxu2 }
 0x4b5   : > { %v4667_v38 = vpop.f32.mrf.mxu3  ;;  %v5316_v42 = vadd.f32 %v8858_v21, %v5280_v61  ;;  %v4446_v36 = vadd.f32 %v4388_v22, %v8716_v53 }
 0x4b6   : > { %5515 = vst.msk [vmem:[%s8890_s19 + $0x88] sm:$0xff] %vm417_vm1, %v5483_v23 }
 0x4b7   : > { %vm5348_vm5 = vcmp.ge.f32.partialorder %v5316_v42, 0.0  ;;  %v5380_v14 = vmul.f32 0.01, %v5316_v42  ;;  %v4725_v44 = vadd.f32 %v4667_v38, %v4446_v36 }
 0x4b8   : > { %v4948_v51 = vpop.f32.mrf.mxu0 }
 0x4b9   : > { %v5226_v41 = vpop.f32.mrf.mxu1  ;;  %v5412_v47 = vsel %vm5348_vm5, %v5316_v42, %v5380_v14  ;;  %v5003_v2 = vadd.f32 %v4945_v54, %v4725_v44 }
 0x4ba   : > { %v5448_v31 = vmul.f32 %v8871_v39, %v5412_v47 }
 0x4bb   : > { %v5281_v57 = vadd.f32 %v5223_v49, %v5003_v2 }
 0x4bc   : > { %v5484_v58 = vadd.f32 %v8877_v62, %v5448_v31  ;;  %v4391_v10 = vpop.f32.mrf.mxu2 }
 0x4bd   : > { %v4670_v5 = vpop.f32.mrf.mxu3  ;;  %v5317_v34 = vadd.f32 %v8858_v21, %v5281_v57  ;;  %v4447_v53 = vadd.f32 %v4391_v10, %v8727_v1 }
 0x4be   : > { %5516 = vst.msk [vmem:[%s8890_s19 + $0x90] sm:$0xff] %vm417_vm1, %v5484_v58 }
 0x4bf   : > { %vm5349_vm6 = vcmp.ge.f32.partialorder %v5317_v34, 0.0  ;;  %v5381_v28 = vmul.f32 0.01, %v5317_v34  ;;  %v4726_v27 = vadd.f32 %v4670_v5, %v4447_v53 }
 0x4c0   : > { %v4951_v48 = vpop.f32.mrf.mxu0 }
 0x4c1   : > { %v5229_v20 = vpop.f32.mrf.mxu1  ;;  %v5413_v59 = vsel %vm5349_vm6, %v5317_v34, %v5381_v28  ;;  %v5004_v45 = vadd.f32 %v4948_v51, %v4726_v27 }
 0x4c2   : > { %v5449_v29 = vmul.f32 %v8871_v39, %v5413_v59 }
 0x4c3   : > { %v5282_v46 = vadd.f32 %v5226_v41, %v5004_v45 }
 0x4c4   : > { %v5485_v43 = vadd.f32 %v8877_v62, %v5449_v29  ;;  %v4394_v50 = vpop.f32.mrf.mxu2 }
 0x4c5   : > { %v4673_v18 = vpop.f32.mrf.mxu3  ;;  %v5318_v33 = vadd.f32 %v8858_v21, %v5282_v46  ;;  %v4448_v1 = vadd.f32 %v4394_v50, %v8738_v9 }
 0x4c6   : > { %5517 = vst.msk [vmem:[%s8890_s19 + $0x98] sm:$0xff] %vm417_vm1, %v5485_v43 }
 0x4c7   : > { %vm5350_vm7 = vcmp.ge.f32.partialorder %v5318_v33, 0.0  ;;  %v5382_v8 = vmul.f32 0.01, %v5318_v33  ;;  %v4727_v35 = vadd.f32 %v4673_v18, %v4448_v1 }
 0x4c8   : > { %v4954_v7 = vpop.f32.mrf.mxu0 }
 0x4c9   : > { %v5232_v26 = vpop.f32.mrf.mxu1  ;;  %v5414_v40 = vsel %vm5350_vm7, %v5318_v33, %v5382_v8  ;;  %v5005_v3 = vadd.f32 %v4951_v48, %v4727_v35 }
 0x4ca   : > { %v5450_v16 = vmul.f32 %v8871_v39, %v5414_v40 }
 0x4cb   : > { %v5283_v32 = vadd.f32 %v5229_v20, %v5005_v3 }
 0x4cc   : > { %v5486_v25 = vadd.f32 %v8877_v62, %v5450_v16  ;;  %v4397_v17 = vpop.f32.mrf.mxu2 }
 0x4cd   : > { %v4676_v6 = vpop.f32.mrf.mxu3  ;;  %v5319_v30 = vadd.f32 %v8858_v21, %v5283_v32  ;;  %v4449_v9 = vadd.f32 %v4397_v17, %v8749_v37 }
 0x4ce   : > { %5518 = vst.msk [vmem:[%s8890_s19 + $0xa0] sm:$0xff] %vm417_vm1, %v5486_v25 }
 0x4cf   : > { %vm5351_vm8 = vcmp.ge.f32.partialorder %v5319_v30, 0.0  ;;  %v5383_v12 = vmul.f32 0.01, %v5319_v30  ;;  %v4728_v54 = vadd.f32 %v4676_v6, %v4449_v9 }
 0x4d0   : > { %v4957_v49 = vpop.f32.mrf.mxu0 }
 0x4d1   : > { %v5235_v63 = vpop.f32.mrf.mxu1  ;;  %v5415_v55 = vsel %vm5351_vm8, %v5319_v30, %v5383_v12  ;;  %v5006_v24 = vadd.f32 %v4954_v7, %v4728_v54 }
 0x4d2   : > { %v5451_v61 = vmul.f32 %v8871_v39, %v5415_v55 }
 0x4d3   : > { %v5284_v23 = vadd.f32 %v5232_v26, %v5006_v24 }
 0x4d4   : > { %v5487_v22 = vadd.f32 %v8877_v62, %v5451_v61  ;;  %v4400_v38 = vpop.f32.mrf.mxu2 }
 0x4d5   : > { %v4679_v42 = vpop.f32.mrf.mxu3  ;;  %v5320_v36 = vadd.f32 %v8858_v21, %v5284_v23  ;;  %v4450_v37 = vadd.f32 %v4400_v38, %v8760_v15 }
 0x4d6   : > { %5519 = vst.msk [vmem:[%s8890_s19 + $0xa8] sm:$0xff] %vm417_vm1, %v5487_v22 }
 0x4d7   : > { %vm5352_vm9 = vcmp.ge.f32.partialorder %v5320_v36, 0.0  ;;  %v5384_v14 = vmul.f32 0.01, %v5320_v36  ;;  %v4729_v44 = vadd.f32 %v4679_v42, %v4450_v37 }
 0x4d8   : > { %v4960_v51 = vpop.f32.mrf.mxu0 }
 0x4d9   : > { %v5238_v41 = vpop.f32.mrf.mxu1  ;;  %v5416_v47 = vsel %vm5352_vm9, %v5320_v36, %v5384_v14  ;;  %v5007_v2 = vadd.f32 %v4957_v49, %v4729_v44 }
 0x4da   : > { %v5452_v31 = vmul.f32 %v8871_v39, %v5416_v47 }
 0x4db   : > { %v5285_v57 = vadd.f32 %v5235_v63, %v5007_v2 }
 0x4dc   : > { %v5488_v58 = vadd.f32 %v8877_v62, %v5452_v31  ;;  %v4403_v10 = vpop.f32.mrf.mxu2 }
 0x4dd   : > { %v4682_v5 = vpop.f32.mrf.mxu3  ;;  %v5321_v34 = vadd.f32 %v8858_v21, %v5285_v57  ;;  %v4451_v15 = vadd.f32 %v4403_v10, %v8771_v19 }
 0x4de   : > { %5520 = vst.msk [vmem:[%s8890_s19 + $0xb0] sm:$0xff] %vm417_vm1, %v5488_v58 }
 0x4df   : > { %vm5353_vm10 = vcmp.ge.f32.partialorder %v5321_v34, 0.0  ;;  %v5385_v53 = vmul.f32 0.01, %v5321_v34  ;;  %v4730_v28 = vadd.f32 %v4682_v5, %v4451_v15 }
 0x4e0   : > { %v4963_v27 = vpop.f32.mrf.mxu0 }
 0x4e1   : > { %v5241_v48 = vpop.f32.mrf.mxu1  ;;  %v5417_v20 = vsel %vm5353_vm10, %v5321_v34, %v5385_v53  ;;  %v5008_v59 = vadd.f32 %v4960_v51, %v4730_v28 }
 0x4e2   : > { %v5453_v45 = vmul.f32 %v8871_v39, %v5417_v20 }
 0x4e3   : > { %v5286_v29 = vadd.f32 %v5238_v41, %v5008_v59 }
 0x4e4   : > { %v5489_v46 = vadd.f32 %v8877_v62, %v5453_v45  ;;  %v4406_v43 = vpop.f32.mrf.mxu2 }
 0x4e5   : > { %v4685_v50 = vpop.f32.mrf.mxu3  ;;  %v5322_v18 = vadd.f32 %v8858_v21, %v5286_v29  ;;  %v4452_v19 = vadd.f32 %v4406_v43, %v8782_v11 }
 0x4e6   : > { %5521 = vst.msk [vmem:[%s8890_s19 + $0xb8] sm:$0xff] %vm417_vm1, %v5489_v46 }
 0x4e7   : > { %vm5354_vm11 = vcmp.ge.f32.partialorder %v5322_v18, 0.0  ;;  %v5386_v33 = vmul.f32 0.01, %v5322_v18  ;;  %v4731_v1 = vadd.f32 %v4685_v50, %v4452_v19 }
 0x4e8   : > { %v4966_v8 = vpop.f32.mrf.mxu0 }
 0x4e9   : > { %v5244_v35 = vpop.f32.mrf.mxu1  ;;  %v5418_v7 = vsel %vm5354_vm11, %v5322_v18, %v5386_v33  ;;  %v5009_v26 = vadd.f32 %v4963_v27, %v4731_v1  ;;  %v6699_v33 = vld [vmem:[%s9214_s6] ss:$0 sm:$0xff] }
 0x4ea   : > { %v5454_v40 = vmul.f32 %v8871_v39, %v5418_v7 }
 0x4eb   : > { %v5287_v3 = vadd.f32 %v5241_v48, %v5009_v26 }
 0x4ec   : > { %v5490_v16 = vadd.f32 %v8877_v62, %v5454_v40  ;;  %v4409_v32 = vpop.f32.mrf.mxu2 }
 0x4ed   : > { %v4688_v25 = vpop.f32.mrf.mxu3  ;;  %v5323_v17 = vadd.f32 %v8858_v21, %v5287_v3  ;;  %v4453_v11 = vadd.f32 %v4409_v32, %v8793_v60 }
 0x4ee   : > { %5522 = vst.msk [vmem:[%s8890_s19 + $0xc0] sm:$0xff] %vm417_vm1, %v5490_v16 }
 0x4ef   : > { %vm5355_vm12 = vcmp.ge.f32.partialorder %v5323_v17, 0.0  ;;  %v5387_v6 = vmul.f32 0.01, %v5323_v17  ;;  %v4732_v30 = vadd.f32 %v4688_v25, %v4453_v11 }
 0x4f0   : > { %v4969_v9 = vpop.f32.mrf.mxu0 }
 0x4f1   : > { %v5247_v12 = vpop.f32.mrf.mxu1  ;;  %v5419_v54 = vsel %vm5355_vm12, %v5323_v17, %v5387_v6  ;;  %v5010_v49 = vadd.f32 %v4966_v8, %v4732_v30 }
 0x4f2   : > { %v5455_v63 = vmul.f32 %v8871_v39, %v5419_v54 }
 0x4f3   : > { %v5288_v55 = vadd.f32 %v5244_v35, %v5010_v49 }
 0x4f4   : > { %v5491_v24 = vadd.f32 %v8877_v62, %v5455_v63  ;;  %v4412_v61 = vpop.f32.mrf.mxu2 }
 0x4f5   : > { %v4691_v23 = vpop.f32.mrf.mxu3  ;;  %v5324_v22 = vadd.f32 %v8858_v21, %v5288_v55  ;;  %v4454_v60 = vadd.f32 %v4412_v61, %v8804_v52 }
 0x4f6   : > { %5523 = vst.msk [vmem:[%s8890_s19 + $0xc8] sm:$0xff] %vm417_vm1, %v5491_v24 }
 0x4f7   : > { %vm5356_vm13 = vcmp.ge.f32.partialorder %v5324_v22, 0.0  ;;  %v5388_v38 = vmul.f32 0.01, %v5324_v22  ;;  %v4733_v42 = vadd.f32 %v4691_v23, %v4454_v60 }
 0x4f8   : > { %v4972_v36 = vpop.f32.mrf.mxu0 }
 0x4f9   : > { %v5420_v37 = vsel %vm5356_vm13, %v5324_v22, %v5388_v38  ;;  %v5011_v14 = vadd.f32 %v4969_v9, %v4733_v42  ;;  %v5250_v44 = vpop.f32.mrf.mxu1 }
 0x4fa   : > { %v5456_v51 = vmul.f32 %v8871_v39, %v5420_v37 }
 0x4fb   : > { %v5289_v41 = vadd.f32 %v5247_v12, %v5011_v14 }
 0x4fc   : > { %v5492_v47 = vadd.f32 %v8877_v62, %v5456_v51  ;;  %v4415_v2 = vpop.f32.mrf.mxu2 }
 0x4fd   : > { %v4694_v31 = vpop.f32.mrf.mxu3  ;;  %v5325_v57 = vadd.f32 %v8858_v21, %v5289_v41  ;;  %v4455_v52 = vadd.f32 %v4415_v2, %v8815_v56  ;;  %v6697_v56 = vld [vmem:[%s9212_s4] ss:$0 sm:$0xff] }
 0x4fe   : > { %5524 = vst.msk [vmem:[%s8890_s19 + $0xd0] sm:$0xff] %vm417_vm1, %v5492_v47 }
 0x4ff   : > { %vm5357_vm14 = vcmp.ge.f32.partialorder %v5325_v57, 0.0  ;;  %v5389_v58 = vmul.f32 0.01, %v5325_v57  ;;  %v4734_v10 = vadd.f32 %v4694_v31, %v4455_v52 }
 0x500   : > { %v4975_v15 = vpop.f32.mrf.mxu0 }
 0x501   : > { %v5421_v5 = vsel %vm5357_vm14, %v5325_v57, %v5389_v58  ;;  %v5012_v34 = vadd.f32 %v4972_v36, %v4734_v10  ;;  %v5253_v27 = vpop.f32.mrf.mxu1 }
 0x502   : > { %v5457_v53 = vmul.f32 %v8871_v39, %v5421_v5 }
 0x503   : > { %v5290_v28 = vadd.f32 %v5250_v44, %v5012_v34 }
 0x504   : > { %v5493_v48 = vadd.f32 %v8877_v62, %v5457_v53  ;;  %v4418_v20 = vpop.f32.mrf.mxu2  ;;  %v6698_v62 = vld [vmem:[%s9213_s5] ss:$0 sm:$0xff] }
 0x505   : > { %v4697_v59 = vpop.f32.mrf.mxu3  ;;  %v5326_v21 = vadd.f32 %v6697_v56, %v5290_v28  ;;  %v4456_v45 = vadd.f32 %v4418_v20, %v8826_v0 }
 0x506   : > { %5525 = vst.msk [vmem:[%s8890_s19 + $0xd8] sm:$0xff] %vm417_vm1, %v5493_v48 }
 0x507   : > { %vm5358_vm15 = vcmp.ge.f32.partialorder %v5326_v21, 0.0  ;;  %v5390_v29 = vmul.f32 0.01, %v5326_v21  ;;  %v4735_v46 = vadd.f32 %v4697_v59, %v4456_v45 }
 0x508   : > { %v4978_v19 = vpop.f32.mrf.mxu0 }
 0x509   : > { %v5422_v39 = vsel %vm5358_vm15, %v5326_v21, %v5390_v29  ;;  %v5013_v43 = vadd.f32 %v4975_v15, %v4735_v46  ;;  %v5256_v26 = vpop.f32.mrf.mxu1 }
 0x50a   : > { %v5458_v50 = vmul.f32 %v6698_v62, %v5422_v39 }
 0x50b   : > { %v5291_v18 = vadd.f32 %v5253_v27, %v5013_v43 }
 0x50c   : > { %v5494_v0 = vadd.f32 %v6699_v33, %v5458_v50  ;;  %v4421_v1 = vpop.f32.mrf.mxu2 }
 0x50d   : > { %v4700_v8 = vpop.f32.mrf.mxu3  ;;  %v5327_v35 = vadd.f32 %v6697_v56, %v5291_v18  ;;  %v4457_v7 = vadd.f32 %v4421_v1, %v8837_v4 }
 0x50e   : > { %5526 = vst.msk [vmem:[%s8890_s19 + $0xe0] sm:$0xff] %vm417_vm1, %v5494_v0 }
 0x50f   : > { %vm5359_vm0 = vcmp.ge.f32.partialorder %v5327_v35, 0.0  ;;  %v5391_v40 = vmul.f32 0.01, %v5327_v35  ;;  %v4736_v3 = vadd.f32 %v4700_v8, %v4457_v7 }
 0x510   : > { %v4981_v4 = vpop.f32.mrf.mxu0 }
 0x511   : > { %v5423_v16 = vsel %vm5359_vm0, %v5327_v35, %v5391_v40  ;;  %v5014_v32 = vadd.f32 %v4978_v19, %v4736_v3  ;;  %v5259_v63 = vpop.f32.mrf.mxu1 }
 0x512   : > { %v5459_v25 = vmul.f32 %v6698_v62, %v5423_v16 }
 0x513   : > { %v5292_v17 = vadd.f32 %v5256_v26, %v5014_v32 }
 0x514   : > { %v5495_v11 = vadd.f32 %v6699_v33, %v5459_v25  ;;  %v4424_v6 = vpop.f32.mrf.mxu2 }
 0x515   : > { %v4703_v30 = vpop.f32.mrf.mxu3  ;;  %v5328_v9 = vadd.f32 %v6697_v56, %v5292_v17  ;;  %v4458_v12 = vadd.f32 %v4424_v6, %v8849_v13 }
 0x516   : > { %5527 = vst.msk [vmem:[%s8890_s19 + $0xe8] sm:$0xff] %vm417_vm1, %v5495_v11 }
 0x517   : > { %vm5360_vm2 = vcmp.ge.f32.partialorder %v5328_v9, 0.0  ;;  %v5392_v54 = vmul.f32 0.01, %v5328_v9  ;;  %v4737_v49 = vadd.f32 %v4703_v30, %v4458_v12 }
 0x519   : > { %v5424_v55 = vsel %vm5360_vm2, %v5328_v9, %v5392_v54  ;;  %v5015_v24 = vadd.f32 %v4981_v4, %v4737_v49 }
 0x51a   : > { %v5460_v61 = vmul.f32 %v6698_v62, %v5424_v55 }
 0x51b   : > { %v5293_v23 = vadd.f32 %v5259_v63, %v5015_v24 }
 0x51c   : > { %v5496_v22 = vadd.f32 %v6699_v33, %v5460_v61 }
 0x51d   : > { %v5329_v60 = vadd.f32 %v6697_v56, %v5293_v23 }
 0x51e   : > { %5528 = vst.msk [vmem:[%s8890_s19 + $0xf0] sm:$0xff] %vm417_vm1, %v5496_v22 }
 0x51f   : > { %vm5361_vm3 = vcmp.ge.f32.partialorder %v5329_v60, 0.0  ;;  %v5393_v38 = vmul.f32 0.01, %v5329_v60 }
 0x521   : > { %v5425_v42 = vsel %vm5361_vm3, %v5329_v60, %v5393_v38 }
 0x522   : > { %v5461_v13 = vmul.f32 %v6698_v62, %v5425_v42 }
 0x524   : > { %v5497_v36 = vadd.f32 %v6699_v33, %v5461_v13 }
 0x526   : > { %5529 = vst.msk [vmem:[%s8890_s19 + $0xf8] sm:$0xff] %vm417_vm1, %v5497_v36 }
 0x527 PF: > { %s17_s28 = sadd.s32 1, %s6738_s28   ;;  %s9416_s24 = smov %s6730_s26 }
 0x528   : > { %p14_p8 = scmp.ge.s32.totalorder %s17_s28, 10   ;;  %s9417_s25 = smov %s6734_s27 }
 0x529   : > { %s9418_s26 = smov %s9421_s29  ;;  %s9419_s27 = smov %s9425_s30 }
 0x52a   :  { %16 = sbr.rel (!%p14_p8) target bundleno = 3 (0x3), region = 101 }

</bundles_post_ra>
